<compile_context>
chip_gen: v7x
topology: tpu7x:2x2x1
jax: 0.10.0
libtpu: 0.0.40
codegen_flags: <defaults>
</compile_context>

<pallas_src>
import functools

import jax
import jax.numpy as jnp
from jax.experimental import pallas as pl
from jax.experimental.pallas import tpu as pltpu


def _cdiv(a, b):
    return -(-a // b)


def _round_up(x, m):
    return ((x + m - 1) // m) * m


def _choose_time_tile(T):
    # bf16 sublane packing wants multiples of 16; cap at 512 so the fused
    # kernel's VMEM footprint stays well under 48 MiB on every generation.
    return max(16, min(512, _round_up(T, 16)))


# ----------------------------------------------------------------------------
# Fused conv1(k=5, im2col) -> conv2(k=3) -> conv3(k=3) -> conv4(k=1)
# -> conv5(k=1) -> StatsPooling kernel.  Streams T-tiles per batch element,
# keeps every intermediate activation in VMEM only, and accumulates
# sum / sum-of-squares in a persistent f32 scratch (var = (E[x^2*T]-sum*mean)/(T-1)).
# ----------------------------------------------------------------------------
def _fused_stats_kernel(xc_ref, w1_ref, b1_ref, w2_ref, b2_ref, w3_ref, b3_ref,
                        w4_ref, b4_ref, w5_ref, b5_ref, o_ref, acc_ref, *, T, tT):
    # xc_ref: (1, 1, tT+4, 205) bf16  (im2col'd conv1 input, 4-row halo)
    # w1_ref: (205, 512) bf16         w2/w3_ref: (3, 512, 512) bf16
    # w4_ref: (512, 512) bf16         w5_ref: (512, C5P) bf16
    # b*_ref: (1, C) f32              o_ref: (1, 2, C5P) f32
    # acc_ref: (2, C5P) f32 scratch (persistent across the time grid axis)
    t = pl.program_id(1)
    base = t * tT

    @pl.when(t == 0)
    def _():
        acc_ref[...] = jnp.zeros_like(acc_ref)

    # ---- conv1: single K=205 MXU pass (im2col), bias + ReLU ----------------
    h1 = jnp.dot(xc_ref[0, 0], w1_ref[...], preferred_element_type=jnp.float32)
    h1 = jnp.maximum(h1 + b1_ref[...], 0.0)              # (tT+4, 512) f32
    # Zero rows outside [0, T): conv2's 'same' padding must see zeros, not
    # ReLU(bias) garbage recomputed from the zero-padded input.
    r1 = base - 2 + jax.lax.broadcasted_iota(jnp.int32, (tT + 4, 1), 0)
    h1 = jnp.where((r1 >= 0) & (r1 < T), h1, 0.0).astype(jnp.bfloat16)

    # ---- conv2 (k=3) --------------------------------------------------------
    h2 = jnp.dot(h1[0:tT + 2], w2_ref[0], preferred_element_type=jnp.float32)
    h2 = h2 + jnp.dot(h1[1:tT + 3], w2_ref[1], preferred_element_type=jnp.float32)
    h2 = h2 + jnp.dot(h1[2:tT + 4], w2_ref[2], preferred_element_type=jnp.float32)
    h2 = jnp.maximum(h2 + b2_ref[...], 0.0)              # (tT+2, 512) f32
    r2 = base - 1 + jax.lax.broadcasted_iota(jnp.int32, (tT + 2, 1), 0)
    h2 = jnp.where((r2 >= 0) & (r2 < T), h2, 0.0).astype(jnp.bfloat16)

    # ---- conv3 (k=3) --------------------------------------------------------
    h3 = jnp.dot(h2[0:tT], w3_ref[0], preferred_element_type=jnp.float32)
    h3 = h3 + jnp.dot(h2[1:tT + 1], w3_ref[1], preferred_element_type=jnp.float32)
    h3 = h3 + jnp.dot(h2[2:tT + 2], w3_ref[2], preferred_element_type=jnp.float32)
    h3 = jnp.maximum(h3 + b3_ref[...], 0.0).astype(jnp.bfloat16)   # (tT, 512)

    # ---- conv4 (k=1) + conv5 (k=1) ------------------------------------------
    h4 = jnp.dot(h3, w4_ref[...], preferred_element_type=jnp.float32)
    h4 = jnp.maximum(h4 + b4_ref[...], 0.0).astype(jnp.bfloat16)   # (tT, 512)
    h5 = jnp.dot(h4, w5_ref[...], preferred_element_type=jnp.float32)
    h5 = jnp.maximum(h5 + b5_ref[...], 0.0)                        # (tT, C5P) f32

    # ---- statistics: mask padded tail rows, accumulate sum / sum-of-squares -
    r3 = base + jax.lax.broadcasted_iota(jnp.int32, (tT, 1), 0)
    h5 = jnp.where(r3 < T, h5, 0.0)
    stat = jnp.concatenate(
        [jnp.sum(h5, axis=0, keepdims=True),
         jnp.sum(h5 * h5, axis=0, keepdims=True)], axis=0)         # (2, C5P)
    acc_ref[...] += stat

    @pl.when(t == pl.num_programs(1) - 1)
    def _():
        s1 = acc_ref[0:1, :]
        s2 = acc_ref[1:2, :]
        mean = s1 / T
        # NOTE: cancellation-prone for very long T; clamp keeps std >= 0.
        var = (s2 - s1 * mean) / (T - 1)                  # unbiased (torch.std)
        std = jnp.sqrt(jnp.maximum(var, 0.0))
        o_ref[0] = jnp.concatenate([mean, std], axis=0)   # (2, C5P)


def fused_convnet_stats(x, kp, *, tT):
    # x: (B, T, Cin) f32 channels-last.  Returns (B, 2*C5P) f32
    # laid out as [mean(C5P) | std(C5P)] to match the re-packed w6.
    B, T, Cin = x.shape
    assert T >= 2, "unbiased std (ddof=1) requires T >= 2"
    K1 = 5
    C5P = kp["w5p"].shape[1]
    nT = _cdiv(T, tT)
    Tp = nT * tT

    # Zero-pad time: 4 rows of left halo (conv1+conv2+conv3) and Tp-T+4 right.
    xp = jnp.pad(x.astype(jnp.bfloat16), ((0, 0), (4, Tp - T + 4), (0, 0)))
    # conv1 im2col along channels: xcol[b, m, dt*Cin + c] = xp[b, m + dt, c].
    xcol = jnp.concatenate([xp[:, dt:dt + Tp + 4, :] for dt in range(K1)],
                           axis=2)                        # (B, Tp+4, K1*Cin)
    # Overlapping time tiles (4-row halo) as a single gather (O(1) HLO size).
    idx = jnp.arange(nT)[:, None] * tT + jnp.arange(tT + 4)[None, :]
    frames = xcol[:, idx, :]                              # (B, nT, tT+4, K1*Cin)

    out = pl.pallas_call(
        functools.partial(_fused_stats_kernel, T=T, tT=tT),
        out_shape=jax.ShapeDtypeStruct((B, 2, C5P), jnp.float32),
        grid=(B, nT),
        in_specs=[
            pl.BlockSpec((1, 1, tT + 4, K1 * Cin), lambda b, t: (b, t, 0, 0)),
            pl.BlockSpec((K1 * Cin, 512), lambda b, t: (0, 0)),
            pl.BlockSpec((1, 512), lambda b, t: (0, 0)),
            pl.BlockSpec((3, 512, 512), lambda b, t: (0, 0, 0)),
            pl.BlockSpec((1, 512), lambda b, t: (0, 0)),
            pl.BlockSpec((3, 512, 512), lambda b, t: (0, 0, 0)),
            pl.BlockSpec((1, 512), lambda b, t: (0, 0)),
            pl.BlockSpec((512, 512), lambda b, t: (0, 0)),
            pl.BlockSpec((1, 512), lambda b, t: (0, 0)),
            pl.BlockSpec((512, C5P), lambda b, t: (0, 0)),
            pl.BlockSpec((1, C5P), lambda b, t: (0, 0)),
        ],
        out_specs=pl.BlockSpec((1, 2, C5P), lambda b, t: (b, 0, 0)),
        scratch_shapes=[pltpu.VMEM((2, C5P), jnp.float32)],
        compiler_params=pltpu.CompilerParams(
            dimension_semantics=("parallel", "arbitrary"),
            vmem_limit_bytes=48 * 1024 * 1024),   # v5e default (16 MiB) is too small
    )(frames,
      kp["w1c"], kp["b1"].reshape(1, -1),
      kp["w2"], kp["b2"].reshape(1, -1),
      kp["w3"], kp["b3"].reshape(1, -1),
      kp["w4"], kp["b4"].reshape(1, -1),
      kp["w5p"], kp["b5p"].reshape(1, -1))
    return out.reshape(B, 2 * C5P)


# ----------------------------------------------------------------------------
# Fused MLP head: Linear(3072->512)+ReLU, Linear(512->512)+ReLU, Linear(512->2)
# Single kernel, all operands resident in VMEM (tiny at inference batch sizes).
# TODO(synk): add a batch-tiled grid here if B ever grows beyond a few hundred.
# ----------------------------------------------------------------------------
def _mlp_kernel(x_ref, w6_ref, b6_ref, w7_ref, b7_ref, wo_ref, bo_ref, o_ref):
    h = jnp.dot(x_ref[...].astype(jnp.bfloat16), w6_ref[...],
                preferred_element_type=jnp.float32) + b6_ref[...]
    h = jnp.maximum(h, 0.0)
    h = jnp.dot(h.astype(jnp.bfloat16), w7_ref[...],
                preferred_element_type=jnp.float32) + b7_ref[...]
    h = jnp.maximum(h, 0.0)
    o_ref[...] = (jnp.dot(h.astype(jnp.bfloat16), wo_ref[...],
                          preferred_element_type=jnp.float32) + bo_ref[...])


def mlp_head(x, w6, b6, w7, b7, wo, bo):
    B = x.shape[0]
    return pl.pallas_call(
        _mlp_kernel,
        out_shape=jax.ShapeDtypeStruct((B, wo.shape[1]), jnp.float32),
    )(x, w6, b6.reshape(1, -1), w7, b7.reshape(1, -1), wo, bo.reshape(1, -1))


# ----------------------------------------------------------------------------
# Full XVectorNet forward (inference: dropout == identity).
# ----------------------------------------------------------------------------
def xvector_forward(x_ncw, kp):
    x = jnp.transpose(x_ncw, (0, 2, 1))                   # NCW -> (B, T, C)
    tT = _choose_time_tile(x.shape[1])
    s = fused_convnet_stats(x, kp, tT=tT)                 # (B, 2*C5P)
    return mlp_head(s, kp["w6p"], kp["b6"], kp["w7"], kp["b7"],
                    kp["wo"], kp["bo"])


# ----------------------------------------------------------------------------
# Kernel-side parameter prep: bf16 casts, conv1 im2col repack (5,41,512)->(205,512),
# lane padding 1500->1536 (conv5), and w6 rows re-packed for [mean|std] layout.
# ----------------------------------------------------------------------------
def prepare_params(p):
    C5 = p["w5"].shape[2]                   # 1500
    C5P = _round_up(C5, 128)                # 1536
    k1, cin, c1 = p["w1"].shape
    kp = {}
    kp["w1c"] = p["w1"].reshape(k1 * cin, c1).astype(jnp.bfloat16)
    kp["b1"] = p["b1"]
    kp["w2"] = p["w2"].astype(jnp.bfloat16); kp["b2"] = p["b2"]
    kp["w3"] = p["w3"].astype(jnp.bfloat16); kp["b3"] = p["b3"]
    kp["w4"] = p["w4"][0].astype(jnp.bfloat16); kp["b4"] = p["b4"]
    kp["w5p"] = jnp.pad(p["w5"][0], ((0, 0), (0, C5P - C5))).astype(jnp.bfloat16)
    kp["b5p"] = jnp.pad(p["b5"], (0, C5P - C5))
    w6p = jnp.zeros((2 * C5P, p["w6"].shape[1]), jnp.float32)
    w6p = w6p.at[:C5, :].set(p["w6"][:C5, :])
    w6p = w6p.at[C5P:C5P + C5, :].set(p["w6"][C5:, :])
    kp["w6p"] = w6p.astype(jnp.bfloat16); kp["b6"] = p["b6"]
    kp["w7"] = p["w7"].astype(jnp.bfloat16); kp["b7"] = p["b7"]
    kp["wo"] = p["wo"].astype(jnp.bfloat16); kp["bo"] = p["bo"]
    return kp


# ----------------------------------------------------------------------------
# Pure-JAX reference with the same numerics (bf16 MXU inputs, f32 accumulate)
# for correctness checking.
# ----------------------------------------------------------------------------
def reference_forward(x_ncw, p):
    x = jnp.transpose(x_ncw, (0, 2, 1))

    def conv(h, w, b, pad):
        k = w.shape[0]
        T = h.shape[1]
        hb = h.astype(jnp.bfloat16)
        wb = w.astype(jnp.bfloat16)
        hp = jnp.pad(hb, ((0, 0), (pad, pad), (0, 0)))
        out = sum(jnp.einsum("btc,cd->btd", hp[:, dt:dt + T, :], wb[dt],
                             preferred_element_type=jnp.float32)
                  for dt in range(k)) + b
        return jnp.maximum(out, 0.0)

    def dense(h, w, b):
        return jnp.einsum("bi,io->bo", h.astype(jnp.bfloat16),
                          w.astype(jnp.bfloat16),
                          preferred_element_type=jnp.float32) + b

    h = conv(x, p["w1"], p["b1"], 2)
    h = conv(h, p["w2"], p["b2"], 1)
    h = conv(h, p["w3"], p["b3"], 1)
    h = conv(h, p["w4"], p["b4"], 0)
    h = conv(h, p["w5"], p["b5"], 0)
    mean = jnp.mean(h, axis=1)
    std = jnp.std(h, axis=1, ddof=1)                 # torch.std default: unbiased
    s = jnp.concatenate([mean, std], axis=1)
    h = jnp.maximum(dense(s, p["w6"], p["b6"]), 0.0)
    h = jnp.maximum(dense(h, p["w7"], p["b7"]), 0.0)
    return dense(h, p["wo"], p["bo"])


# ----------------------------------------------------------------------------
# Deterministic synthetic parameters (shapes follow XVectorNet.__init__).
# Conv weights stored as (k, Cin, Cout); Linear weights as (in, out).
# ----------------------------------------------------------------------------
def init_params(key, input_dim=41):
    ks = jax.random.split(key, 16)

    def w_init(k, shape, fan_in):
        return jax.random.normal(k, shape, jnp.float32) / jnp.sqrt(float(fan_in))

    def b_init(k, n):
        return 0.01 * jax.random.normal(k, (n,), jnp.float32)

    p = {}
    p["w1"] = w_init(ks[0], (5, input_dim, 512), 5 * input_dim)
    p["b1"] = b_init(ks[1], 512)
    p["w2"] = w_init(ks[2], (3, 512, 512), 3 * 512)
    p["b2"] = b_init(ks[3], 512)
    p["w3"] = w_init(ks[4], (3, 512, 512), 3 * 512)
    p["b3"] = b_init(ks[5], 512)
    p["w4"] = w_init(ks[6], (1, 512, 512), 512)
    p["b4"] = b_init(ks[7], 512)
    p["w5"] = w_init(ks[8], (1, 512, 1500), 512)
    p["b5"] = b_init(ks[9], 1500)
    p["w6"] = w_init(ks[10], (3000, 512), 3000)
    p["b6"] = b_init(ks[11], 512)
    p["w7"] = w_init(ks[12], (512, 512), 512)
    p["b7"] = b_init(ks[13], 512)
    p["wo"] = w_init(ks[14], (512, 2), 512)
    p["bo"] = b_init(ks[15], 2)
    return p


if __name__ == "__main__":
    key = jax.random.PRNGKey(0)
    k_x, k_p = jax.random.split(key)

    B, C_IN, T = 2, 41, 16                      # small shapes; NCW like PyTorch
    x = jax.random.normal(k_x, (B, C_IN, T), jnp.float32)
    params = init_params(k_p, input_dim=C_IN)
    kparams = prepare_params(params)

    out = jax.block_until_ready(jax.jit(xvector_forward)(x, kparams))
    ref = jax.block_until_ready(reference_forward(x, params))

    assert out.shape == (B, 2), out.shape
    max_err = float(jnp.max(jnp.abs(out - ref)))
    assert jnp.allclose(out, ref, rtol=1e-2, atol=1e-2), (out, ref, max_err)
    print("KERNEL_OK")
</pallas_src>

<mosaic_0001>
module attributes {stable_mosaic.version = 11 : i64} {
  func.func @_fused_stats_kernel(%arg0: i32, %arg1: i32, %arg2: memref<1x1x20x205xbf16, #tpu.memory_space<vmem>>, %arg3: memref<205x512xbf16, #tpu.memory_space<vmem>>, %arg4: memref<1x512xf32, #tpu.memory_space<vmem>>, %arg5: memref<3x512x512xbf16, #tpu.memory_space<vmem>>, %arg6: memref<1x512xf32, #tpu.memory_space<vmem>>, %arg7: memref<3x512x512xbf16, #tpu.memory_space<vmem>>, %arg8: memref<1x512xf32, #tpu.memory_space<vmem>>, %arg9: memref<512x512xbf16, #tpu.memory_space<vmem>>, %arg10: memref<1x512xf32, #tpu.memory_space<vmem>>, %arg11: memref<512x1536xbf16, #tpu.memory_space<vmem>>, %arg12: memref<1x1536xf32, #tpu.memory_space<vmem>>, %arg13: memref<1x2x1536xf32, #tpu.memory_space<vmem>>, %arg14: memref<2x1536xf32, #tpu.memory_space<vmem>>) attributes {dimension_semantics = [#tpu.dimension_semantics<parallel>, #tpu.dimension_semantics<arbitrary>], iteration_bounds = array<i64: 2, 1>, scalar_prefetch = 0 : i64, scratch_operands = 1 : i64, tpu.core_type = #tpu.core_type<tc>, window_params = [{transform_indices = @transform_0, window_bounds = array<i64: 1, 1, 20, 205>}, {pipeline_mode = #tpu.pipeline_mode<synchronous>, transform_indices = @transform_1, window_bounds = array<i64: 205, 512>}, {pipeline_mode = #tpu.pipeline_mode<synchronous>, transform_indices = @transform_2, window_bounds = array<i64: 1, 512>}, {pipeline_mode = #tpu.pipeline_mode<synchronous>, transform_indices = @transform_3, window_bounds = array<i64: 3, 512, 512>}, {pipeline_mode = #tpu.pipeline_mode<synchronous>, transform_indices = @transform_4, window_bounds = array<i64: 1, 512>}, {pipeline_mode = #tpu.pipeline_mode<synchronous>, transform_indices = @transform_5, window_bounds = array<i64: 3, 512, 512>}, {pipeline_mode = #tpu.pipeline_mode<synchronous>, transform_indices = @transform_6, window_bounds = array<i64: 1, 512>}, {pipeline_mode = #tpu.pipeline_mode<synchronous>, transform_indices = @transform_7, window_bounds = array<i64: 512, 512>}, {pipeline_mode = #tpu.pipeline_mode<synchronous>, transform_indices = @transform_8, window_bounds = array<i64: 1, 512>}, {pipeline_mode = #tpu.pipeline_mode<synchronous>, transform_indices = @transform_9, window_bounds = array<i64: 512, 1536>}, {pipeline_mode = #tpu.pipeline_mode<synchronous>, transform_indices = @transform_10, window_bounds = array<i64: 1, 1536>}, {transform_indices = @transform_11, window_bounds = array<i64: 1, 2, 1536>}]} {
    %c16_i32 = arith.constant 16 : i32
    %0 = arith.muli %arg1, %c16_i32 : i32
    %c0_i32 = arith.constant 0 : i32
    %1 = arith.cmpi eq, %arg1, %c0_i32 : i32
    %2 = arith.extui %1 : i1 to i32
    %c0_i32_0 = arith.constant 0 : i32
    %3 = arith.cmpi ne, %2, %c0_i32_0 : i32
    scf.if %3 {
      %cst_65 = arith.constant 0.000000e+00 : f32
      %116 = vector.broadcast %cst_65 : f32 to vector<2x1536xf32>
      %c0_66 = arith.constant 0 : index
      %c0_67 = arith.constant 0 : index
      %117 = vector.load %arg14[%c0_66, %c0_67] : memref<2x1536xf32, #tpu.memory_space<vmem>>, vector<2x1536xf32>
      tpu.vector_store %arg14[%c0_66, %c0_67], %116 {strides = array<i32>} : memref<2x1536xf32, #tpu.memory_space<vmem>>, vector<2x1536xf32>,
    } else {
    }
    %c0 = arith.constant 0 : index
    %c0_1 = arith.constant 0 : index
    %c0_2 = arith.constant 0 : index
    %c0_3 = arith.constant 0 : index
    %4 = vector.load %arg2[%c0, %c0_1, %c0_2, %c0_3] : memref<1x1x20x205xbf16, #tpu.memory_space<vmem>>, vector<1x1x20x205xbf16>
    %5 = vector.shape_cast %4 : vector<1x1x20x205xbf16> to vector<20x205xbf16>
    %c0_4 = arith.constant 0 : index
    %c0_5 = arith.constant 0 : index
    %6 = vector.load %arg3[%c0_4, %c0_5] : memref<205x512xbf16, #tpu.memory_space<vmem>>, vector<205x512xbf16>
    %cst = arith.constant dense<0.000000e+00> : vector<20x512xf32>
    %7 = tpu.matmul %5, %6, %cst {dimension_numbers = #tpu.dot_dimension_numbers<[1], [0], [0], [1], [0, 0, 1, 1], [], []>} : vector<20x205xbf16>, vector<205x512xbf16>, vector<20x512xf32> -> vector<20x512xf32>
    %c0_6 = arith.constant 0 : index
    %c0_7 = arith.constant 0 : index
    %8 = vector.load %arg4[%c0_6, %c0_7] : memref<1x512xf32, #tpu.memory_space<vmem>>, vector<1x512xf32>
    %9 = vector.broadcast %8 : vector<1x512xf32> to vector<20x512xf32>
    %10 = arith.addf %7, %9 : vector<20x512xf32>
    %cst_8 = arith.constant 0.000000e+00 : f32
    %11 = vector.broadcast %cst_8 : f32 to vector<20x512xf32>
    %12 = arith.maximumf %10, %11 : vector<20x512xf32>
    %c2_i32 = arith.constant 2 : i32
    %13 = arith.subi %0, %c2_i32 : i32
    %14 = tpu.iota {dimensions = array<i32: 0>} : vector<20x1xi32>
    %15 = vector.broadcast %13 : i32 to vector<20x1xi32>
    %16 = arith.addi %15, %14 : vector<20x1xi32>
    %c0_i32_9 = arith.constant 0 : i32
    %17 = vector.broadcast %c0_i32_9 : i32 to vector<20x1xi32>
    %18 = arith.cmpi sge, %16, %17 : vector<20x1xi32>
    %c16_i32_10 = arith.constant 16 : i32
    %19 = vector.broadcast %c16_i32_10 : i32 to vector<20x1xi32>
    %20 = arith.cmpi slt, %16, %19 : vector<20x1xi32>
    %21 = arith.andi %18, %20 : vector<20x1xi1>
    %cst_11 = arith.constant 0.000000e+00 : f32
    %22 = vector.shape_cast %21 : vector<20x1xi1> to vector<20x1xi1>
    %23 = vector.broadcast %22 : vector<20x1xi1> to vector<20x512xi1>
    %24 = vector.broadcast %cst_11 : f32 to vector<20x512xf32>
    %25 = arith.select %23, %12, %24 : vector<20x512xi1>, vector<20x512xf32>
    %26 = arith.truncf %25 : vector<20x512xf32> to vector<20x512xbf16>
    %27 = vector.extract_strided_slice %26 {offsets = [0, 0], sizes = [18, 512], strides = [1, 1]} : vector<20x512xbf16> to vector<18x512xbf16>
    %c0_12 = arith.constant 0 : index
    %c0_13 = arith.constant 0 : index
    %c0_14 = arith.constant 0 : index
    %28 = vector.load %arg5[%c0_12, %c0_13, %c0_14] : memref<3x512x512xbf16, #tpu.memory_space<vmem>>, vector<1x512x512xbf16>
    %29 = vector.shape_cast %28 : vector<1x512x512xbf16> to vector<512x512xbf16>
    %cst_15 = arith.constant dense<0.000000e+00> : vector<18x512xf32>
    %30 = tpu.matmul %27, %29, %cst_15 {dimension_numbers = #tpu.dot_dimension_numbers<[1], [0], [0], [1], [0, 0, 1, 1], [], []>} : vector<18x512xbf16>, vector<512x512xbf16>, vector<18x512xf32> -> vector<18x512xf32>
    %31 = vector.extract_strided_slice %26 {offsets = [1, 0], sizes = [18, 512], strides = [1, 1]} : vector<20x512xbf16> to vector<18x512xbf16>
    %c1 = arith.constant 1 : index
    %c0_16 = arith.constant 0 : index
    %c0_17 = arith.constant 0 : index
    %32 = vector.load %arg5[%c1, %c0_16, %c0_17] : memref<3x512x512xbf16, #tpu.memory_space<vmem>>, vector<1x512x512xbf16>
    %33 = vector.shape_cast %32 : vector<1x512x512xbf16> to vector<512x512xbf16>
    %cst_18 = arith.constant dense<0.000000e+00> : vector<18x512xf32>
    %34 = tpu.matmul %31, %33, %cst_18 {dimension_numbers = #tpu.dot_dimension_numbers<[1], [0], [0], [1], [0, 0, 1, 1], [], []>} : vector<18x512xbf16>, vector<512x512xbf16>, vector<18x512xf32> -> vector<18x512xf32>
    %35 = arith.addf %30, %34 : vector<18x512xf32>
    %36 = vector.extract_strided_slice %26 {offsets = [2, 0], sizes = [18, 512], strides = [1, 1]} : vector<20x512xbf16> to vector<18x512xbf16>
    %c2 = arith.constant 2 : index
    %c0_19 = arith.constant 0 : index
    %c0_20 = arith.constant 0 : index
    %37 = vector.load %arg5[%c2, %c0_19, %c0_20] : memref<3x512x512xbf16, #tpu.memory_space<vmem>>, vector<1x512x512xbf16>
    %38 = vector.shape_cast %37 : vector<1x512x512xbf16> to vector<512x512xbf16>
    %cst_21 = arith.constant dense<0.000000e+00> : vector<18x512xf32>
    %39 = tpu.matmul %36, %38, %cst_21 {dimension_numbers = #tpu.dot_dimension_numbers<[1], [0], [0], [1], [0, 0, 1, 1], [], []>} : vector<18x512xbf16>, vector<512x512xbf16>, vector<18x512xf32> -> vector<18x512xf32>
    %40 = arith.addf %35, %39 : vector<18x512xf32>
    %c0_22 = arith.constant 0 : index
    %c0_23 = arith.constant 0 : index
    %41 = vector.load %arg6[%c0_22, %c0_23] : memref<1x512xf32, #tpu.memory_space<vmem>>, vector<1x512xf32>
    %42 = vector.broadcast %41 : vector<1x512xf32> to vector<18x512xf32>
    %43 = arith.addf %40, %42 : vector<18x512xf32>
    %cst_24 = arith.constant 0.000000e+00 : f32
    %44 = vector.broadcast %cst_24 : f32 to vector<18x512xf32>
    %45 = arith.maximumf %43, %44 : vector<18x512xf32>
    %c1_i32 = arith.constant 1 : i32
    %46 = arith.subi %0, %c1_i32 : i32
    %47 = tpu.iota {dimensions = array<i32: 0>} : vector<18x1xi32>
    %48 = vector.broadcast %46 : i32 to vector<18x1xi32>
    %49 = arith.addi %48, %47 : vector<18x1xi32>
    %c0_i32_25 = arith.constant 0 : i32
    %50 = vector.broadcast %c0_i32_25 : i32 to vector<18x1xi32>
    %51 = arith.cmpi sge, %49, %50 : vector<18x1xi32>
    %c16_i32_26 = arith.constant 16 : i32
    %52 = vector.broadcast %c16_i32_26 : i32 to vector<18x1xi32>
    %53 = arith.cmpi slt, %49, %52 : vector<18x1xi32>
    %54 = arith.andi %51, %53 : vector<18x1xi1>
    %cst_27 = arith.constant 0.000000e+00 : f32
    %55 = vector.shape_cast %54 : vector<18x1xi1> to vector<18x1xi1>
    %56 = vector.broadcast %55 : vector<18x1xi1> to vector<18x512xi1>
    %57 = vector.broadcast %cst_27 : f32 to vector<18x512xf32>
    %58 = arith.select %56, %45, %57 : vector<18x512xi1>, vector<18x512xf32>
    %59 = arith.truncf %58 : vector<18x512xf32> to vector<18x512xbf16>
    %60 = vector.extract_strided_slice %59 {offsets = [0, 0], sizes = [16, 512], strides = [1, 1]} : vector<18x512xbf16> to vector<16x512xbf16>
    %c0_28 = arith.constant 0 : index
    %c0_29 = arith.constant 0 : index
    %c0_30 = arith.constant 0 : index
    %61 = vector.load %arg7[%c0_28, %c0_29, %c0_30] : memref<3x512x512xbf16, #tpu.memory_space<vmem>>, vector<1x512x512xbf16>
    %62 = vector.shape_cast %61 : vector<1x512x512xbf16> to vector<512x512xbf16>
    %cst_31 = arith.constant dense<0.000000e+00> : vector<16x512xf32>
    %63 = tpu.matmul %60, %62, %cst_31 {dimension_numbers = #tpu.dot_dimension_numbers<[1], [0], [0], [1], [0, 0, 1, 1], [], []>} : vector<16x512xbf16>, vector<512x512xbf16>, vector<16x512xf32> -> vector<16x512xf32>
    %64 = vector.extract_strided_slice %59 {offsets = [1, 0], sizes = [16, 512], strides = [1, 1]} : vector<18x512xbf16> to vector<16x512xbf16>
    %c1_32 = arith.constant 1 : index
    %c0_33 = arith.constant 0 : index
    %c0_34 = arith.constant 0 : index
    %65 = vector.load %arg7[%c1_32, %c0_33, %c0_34] : memref<3x512x512xbf16, #tpu.memory_space<vmem>>, vector<1x512x512xbf16>
    %66 = vector.shape_cast %65 : vector<1x512x512xbf16> to vector<512x512xbf16>
    %cst_35 = arith.constant dense<0.000000e+00> : vector<16x512xf32>
    %67 = tpu.matmul %64, %66, %cst_35 {dimension_numbers = #tpu.dot_dimension_numbers<[1], [0], [0], [1], [0, 0, 1, 1], [], []>} : vector<16x512xbf16>, vector<512x512xbf16>, vector<16x512xf32> -> vector<16x512xf32>
    %68 = arith.addf %63, %67 : vector<16x512xf32>
    %69 = vector.extract_strided_slice %59 {offsets = [2, 0], sizes = [16, 512], strides = [1, 1]} : vector<18x512xbf16> to vector<16x512xbf16>
    %c2_36 = arith.constant 2 : index
    %c0_37 = arith.constant 0 : index
    %c0_38 = arith.constant 0 : index
    %70 = vector.load %arg7[%c2_36, %c0_37, %c0_38] : memref<3x512x512xbf16, #tpu.memory_space<vmem>>, vector<1x512x512xbf16>
    %71 = vector.shape_cast %70 : vector<1x512x512xbf16> to vector<512x512xbf16>
    %cst_39 = arith.constant dense<0.000000e+00> : vector<16x512xf32>
    %72 = tpu.matmul %69, %71, %cst_39 {dimension_numbers = #tpu.dot_dimension_numbers<[1], [0], [0], [1], [0, 0, 1, 1], [], []>} : vector<16x512xbf16>, vector<512x512xbf16>, vector<16x512xf32> -> vector<16x512xf32>
    %73 = arith.addf %68, %72 : vector<16x512xf32>
    %c0_40 = arith.constant 0 : index
    %c0_41 = arith.constant 0 : index
    %74 = vector.load %arg8[%c0_40, %c0_41] : memref<1x512xf32, #tpu.memory_space<vmem>>, vector<1x512xf32>
    %75 = vector.broadcast %74 : vector<1x512xf32> to vector<16x512xf32>
    %76 = arith.addf %73, %75 : vector<16x512xf32>
    %cst_42 = arith.constant 0.000000e+00 : f32
    %77 = vector.broadcast %cst_42 : f32 to vector<16x512xf32>
    %78 = arith.maximumf %76, %77 : vector<16x512xf32>
    %79 = arith.truncf %78 : vector<16x512xf32> to vector<16x512xbf16>
    %c0_43 = arith.constant 0 : index
    %c0_44 = arith.constant 0 : index
    %80 = vector.load %arg9[%c0_43, %c0_44] : memref<512x512xbf16, #tpu.memory_space<vmem>>, vector<512x512xbf16>
    %cst_45 = arith.constant dense<0.000000e+00> : vector<16x512xf32>
    %81 = tpu.matmul %79, %80, %cst_45 {dimension_numbers = #tpu.dot_dimension_numbers<[1], [0], [0], [1], [0, 0, 1, 1], [], []>} : vector<16x512xbf16>, vector<512x512xbf16>, vector<16x512xf32> -> vector<16x512xf32>
    %c0_46 = arith.constant 0 : index
    %c0_47 = arith.constant 0 : index
    %82 = vector.load %arg10[%c0_46, %c0_47] : memref<1x512xf32, #tpu.memory_space<vmem>>, vector<1x512xf32>
    %83 = vector.broadcast %82 : vector<1x512xf32> to vector<16x512xf32>
    %84 = arith.addf %81, %83 : vector<16x512xf32>
    %cst_48 = arith.constant 0.000000e+00 : f32
    %85 = vector.broadcast %cst_48 : f32 to vector<16x512xf32>
    %86 = arith.maximumf %84, %85 : vector<16x512xf32>
    %87 = arith.truncf %86 : vector<16x512xf32> to vector<16x512xbf16>
    %c0_49 = arith.constant 0 : index
    %c0_50 = arith.constant 0 : index
    %88 = vector.load %arg11[%c0_49, %c0_50] : memref<512x1536xbf16, #tpu.memory_space<vmem>>, vector<512x1536xbf16>
    %cst_51 = arith.constant dense<0.000000e+00> : vector<16x1536xf32>
    %89 = tpu.matmul %87, %88, %cst_51 {dimension_numbers = #tpu.dot_dimension_numbers<[1], [0], [0], [1], [0, 0, 1, 1], [], []>} : vector<16x512xbf16>, vector<512x1536xbf16>, vector<16x1536xf32> -> vector<16x1536xf32>
    %c0_52 = arith.constant 0 : index
    %c0_53 = arith.constant 0 : index
    %90 = vector.load %arg12[%c0_52, %c0_53] : memref<1x1536xf32, #tpu.memory_space<vmem>>, vector<1x1536xf32>
    %91 = vector.broadcast %90 : vector<1x1536xf32> to vector<16x1536xf32>
    %92 = arith.addf %89, %91 : vector<16x1536xf32>
    %cst_54 = arith.constant 0.000000e+00 : f32
    %93 = vector.broadcast %cst_54 : f32 to vector<16x1536xf32>
    %94 = arith.maximumf %92, %93 : vector<16x1536xf32>
    %95 = tpu.iota {dimensions = array<i32: 0>} : vector<16x1xi32>
    %96 = vector.broadcast %0 : i32 to vector<16x1xi32>
    %97 = arith.addi %96, %95 : vector<16x1xi32>
    %c16_i32_55 = arith.constant 16 : i32
    %98 = vector.broadcast %c16_i32_55 : i32 to vector<16x1xi32>
    %99 = arith.cmpi slt, %97, %98 : vector<16x1xi32>
    %cst_56 = arith.constant 0.000000e+00 : f32
    %100 = vector.shape_cast %99 : vector<16x1xi1> to vector<16x1xi1>
    %101 = vector.broadcast %100 : vector<16x1xi1> to vector<16x1536xi1>
    %102 = vector.broadcast %cst_56 : f32 to vector<16x1536xf32>
    %103 = arith.select %101, %94, %102 : vector<16x1536xi1>, vector<16x1536xf32>
    %cst_57 = arith.constant dense<0.000000e+00> : vector<1536xf32>
    %104 = vector.multi_reduction <add>, %103, %cst_57 [0] : vector<16x1536xf32> to vector<1536xf32>
    %105 = vector.shape_cast %104 : vector<1536xf32> to vector<1x1536xf32>
    %106 = arith.mulf %103, %103 : vector<16x1536xf32>
    %cst_58 = arith.constant dense<0.000000e+00> : vector<1536xf32>
    %107 = vector.multi_reduction <add>, %106, %cst_58 [0] : vector<16x1536xf32> to vector<1536xf32>
    %108 = vector.shape_cast %107 : vector<1536xf32> to vector<1x1536xf32>
    %109 = tpu.concatenate %105, %108 in 0 : vector<1x1536xf32>, vector<1x1536xf32> -> vector<2x1536xf32>
    %c0_59 = arith.constant 0 : index
    %c0_60 = arith.constant 0 : index
    %110 = vector.load %arg14[%c0_59, %c0_60] : memref<2x1536xf32, #tpu.memory_space<vmem>>, vector<2x1536xf32>
    %111 = arith.addf %110, %109 : vector<2x1536xf32>
    %c0_61 = arith.constant 0 : index
    %c0_62 = arith.constant 0 : index
    %112 = vector.load %arg14[%c0_61, %c0_62] : memref<2x1536xf32, #tpu.memory_space<vmem>>, vector<2x1536xf32>
    tpu.vector_store %arg14[%c0_61, %c0_62], %111 {strides = array<i32>} : memref<2x1536xf32, #tpu.memory_space<vmem>>, vector<2x1536xf32>,
    %c0_i32_63 = arith.constant 0 : i32
    %113 = arith.cmpi eq, %arg1, %c0_i32_63 : i32
    %114 = arith.extui %113 : i1 to i32
    %c0_i32_64 = arith.constant 0 : i32
    %115 = arith.cmpi ne, %114, %c0_i32_64 : i32
    scf.if %115 {
      %c0_65 = arith.constant 0 : index
      %c0_66 = arith.constant 0 : index
      %116 = vector.load %arg14[%c0_65, %c0_66] : memref<2x1536xf32, #tpu.memory_space<vmem>>, vector<1x1536xf32>
      %c1_67 = arith.constant 1 : index
      %c0_68 = arith.constant 0 : index
      %117 = vector.load %arg14[%c1_67, %c0_68] : memref<2x1536xf32, #tpu.memory_space<vmem>>, vector<1x1536xf32>
      %cst_69 = arith.constant 1.600000e+01 : f32
      %118 = vector.broadcast %cst_69 : f32 to vector<1x1536xf32>
      %119 = arith.divf %116, %118 : vector<1x1536xf32>
      %120 = arith.mulf %116, %119 : vector<1x1536xf32>
      %121 = arith.subf %117, %120 : vector<1x1536xf32>
      %cst_70 = arith.constant 1.500000e+01 : f32
      %122 = vector.broadcast %cst_70 : f32 to vector<1x1536xf32>
      %123 = arith.divf %121, %122 : vector<1x1536xf32>
      %cst_71 = arith.constant 0.000000e+00 : f32
      %124 = vector.broadcast %cst_71 : f32 to vector<1x1536xf32>
      %125 = arith.maximumf %123, %124 : vector<1x1536xf32>
      %126 = math.sqrt %125 : vector<1x1536xf32>
      %127 = tpu.concatenate %119, %126 in 0 : vector<1x1536xf32>, vector<1x1536xf32> -> vector<2x1536xf32>
      %c0_72 = arith.constant 0 : index
      %c0_73 = arith.constant 0 : index
      %c0_74 = arith.constant 0 : index
      %128 = vector.load %arg13[%c0_72, %c0_73, %c0_74] : memref<1x2x1536xf32, #tpu.memory_space<vmem>>, vector<1x2x1536xf32>
      %129 = vector.shape_cast %128 : vector<1x2x1536xf32> to vector<2x1536xf32>
      %130 = vector.shape_cast %127 : vector<2x1536xf32> to vector<1x2x1536xf32>
      tpu.vector_store %arg13[%c0_72, %c0_73, %c0_74], %130 {strides = array<i32>} : memref<1x2x1536xf32, #tpu.memory_space<vmem>>, vector<1x2x1536xf32>,
    } else {
    }
    return
  }
  func.func @transform_0(%arg0: i32, %arg1: i32) -> (i32, i32, i32, i32) {
    %c0_i32 = arith.constant 0 : i32
    %c0_i32_0 = arith.constant 0 : i32
    %c0_i32_1 = arith.constant 0 : i32
    return %arg0, %arg1, %c0_i32, %c0_i32_0 : i32, i32, i32, i32
  }
  func.func @transform_1(%arg0: i32, %arg1: i32) -> (i32, i32) {
    %c0_i32 = arith.constant 0 : i32
    %c0_i32_0 = arith.constant 0 : i32
    %c0_i32_1 = arith.constant 0 : i32
    return %c0_i32, %c0_i32_0 : i32, i32
  }
  func.func @transform_2(%arg0: i32, %arg1: i32) -> (i32, i32) {
    %c0_i32 = arith.constant 0 : i32
    %c0_i32_0 = arith.constant 0 : i32
    %c0_i32_1 = arith.constant 0 : i32
    return %c0_i32, %c0_i32_0 : i32, i32
  }
  func.func @transform_3(%arg0: i32, %arg1: i32) -> (i32, i32, i32) {
    %c0_i32 = arith.constant 0 : i32
    %c0_i32_0 = arith.constant 0 : i32
    %c0_i32_1 = arith.constant 0 : i32
    %c0_i32_2 = arith.constant 0 : i32
    return %c0_i32, %c0_i32_0, %c0_i32_1 : i32, i32, i32
  }
  func.func @transform_4(%arg0: i32, %arg1: i32) -> (i32, i32) {
    %c0_i32 = arith.constant 0 : i32
    %c0_i32_0 = arith.constant 0 : i32
    %c0_i32_1 = arith.constant 0 : i32
    return %c0_i32, %c0_i32_0 : i32, i32
  }
  func.func @transform_5(%arg0: i32, %arg1: i32) -> (i32, i32, i32) {
    %c0_i32 = arith.constant 0 : i32
    %c0_i32_0 = arith.constant 0 : i32
    %c0_i32_1 = arith.constant 0 : i32
    %c0_i32_2 = arith.constant 0 : i32
    return %c0_i32, %c0_i32_0, %c0_i32_1 : i32, i32, i32
  }
  func.func @transform_6(%arg0: i32, %arg1: i32) -> (i32, i32) {
    %c0_i32 = arith.constant 0 : i32
    %c0_i32_0 = arith.constant 0 : i32
    %c0_i32_1 = arith.constant 0 : i32
    return %c0_i32, %c0_i32_0 : i32, i32
  }
  func.func @transform_7(%arg0: i32, %arg1: i32) -> (i32, i32) {
    %c0_i32 = arith.constant 0 : i32
    %c0_i32_0 = arith.constant 0 : i32
    %c0_i32_1 = arith.constant 0 : i32
    return %c0_i32, %c0_i32_0 : i32, i32
  }
  func.func @transform_8(%arg0: i32, %arg1: i32) -> (i32, i32) {
    %c0_i32 = arith.constant 0 : i32
    %c0_i32_0 = arith.constant 0 : i32
    %c0_i32_1 = arith.constant 0 : i32
    return %c0_i32, %c0_i32_0 : i32, i32
  }
  func.func @transform_9(%arg0: i32, %arg1: i32) -> (i32, i32) {
    %c0_i32 = arith.constant 0 : i32
    %c0_i32_0 = arith.constant 0 : i32
    %c0_i32_1 = arith.constant 0 : i32
    return %c0_i32, %c0_i32_0 : i32, i32
  }
  func.func @transform_10(%arg0: i32, %arg1: i32) -> (i32, i32) {
    %c0_i32 = arith.constant 0 : i32
    %c0_i32_0 = arith.constant 0 : i32
    %c0_i32_1 = arith.constant 0 : i32
    return %c0_i32, %c0_i32_0 : i32, i32
  }
  func.func @transform_11(%arg0: i32, %arg1: i32) -> (i32, i32, i32) {
    %c0_i32 = arith.constant 0 : i32
    %c0_i32_0 = arith.constant 0 : i32
    %c0_i32_1 = arith.constant 0 : i32
    return %arg0, %c0_i32, %c0_i32_0 : i32, i32, i32
  }
}

module attributes {stable_mosaic.version = 11 : i64} {
  func.func @_mlp_kernel(%arg0: memref<2x3072xf32, #tpu.memory_space<vmem>>, %arg1: memref<3072x512xbf16, #tpu.memory_space<vmem>>, %arg2: memref<1x512xf32, #tpu.memory_space<vmem>>, %arg3: memref<512x512xbf16, #tpu.memory_space<vmem>>, %arg4: memref<1x512xf32, #tpu.memory_space<vmem>>, %arg5: memref<512x2xbf16, #tpu.memory_space<vmem>>, %arg6: memref<1x2xf32, #tpu.memory_space<vmem>>, %arg7: memref<2x2xf32, #tpu.memory_space<vmem>>) attributes {dimension_semantics = [], scalar_prefetch = 0 : i64, scratch_operands = 0 : i64, tpu.core_type = #tpu.core_type<tc>} {
    %c0 = arith.constant 0 : index
    %c0_0 = arith.constant 0 : index
    %0 = vector.load %arg0[%c0, %c0_0] : memref<2x3072xf32, #tpu.memory_space<vmem>>, vector<2x3072xf32>
    %1 = arith.truncf %0 : vector<2x3072xf32> to vector<2x3072xbf16>
    %c0_1 = arith.constant 0 : index
    %c0_2 = arith.constant 0 : index
    %2 = vector.load %arg1[%c0_1, %c0_2] : memref<3072x512xbf16, #tpu.memory_space<vmem>>, vector<3072x512xbf16>
    %cst = arith.constant dense<0.000000e+00> : vector<2x512xf32>
    %3 = tpu.matmul %1, %2, %cst {dimension_numbers = #tpu.dot_dimension_numbers<[1], [0], [0], [1], [0, 0, 1, 1], [], []>} : vector<2x3072xbf16>, vector<3072x512xbf16>, vector<2x512xf32> -> vector<2x512xf32>
    %c0_3 = arith.constant 0 : index
    %c0_4 = arith.constant 0 : index
    %4 = vector.load %arg2[%c0_3, %c0_4] : memref<1x512xf32, #tpu.memory_space<vmem>>, vector<1x512xf32>
    %5 = vector.broadcast %4 : vector<1x512xf32> to vector<2x512xf32>
    %6 = arith.addf %3, %5 : vector<2x512xf32>
    %cst_5 = arith.constant 0.000000e+00 : f32
    %7 = vector.broadcast %cst_5 : f32 to vector<2x512xf32>
    %8 = arith.maximumf %6, %7 : vector<2x512xf32>
    %9 = arith.truncf %8 : vector<2x512xf32> to vector<2x512xbf16>
    %c0_6 = arith.constant 0 : index
    %c0_7 = arith.constant 0 : index
    %10 = vector.load %arg3[%c0_6, %c0_7] : memref<512x512xbf16, #tpu.memory_space<vmem>>, vector<512x512xbf16>
    %cst_8 = arith.constant dense<0.000000e+00> : vector<2x512xf32>
    %11 = tpu.matmul %9, %10, %cst_8 {dimension_numbers = #tpu.dot_dimension_numbers<[1], [0], [0], [1], [0, 0, 1, 1], [], []>} : vector<2x512xbf16>, vector<512x512xbf16>, vector<2x512xf32> -> vector<2x512xf32>
    %c0_9 = arith.constant 0 : index
    %c0_10 = arith.constant 0 : index
    %12 = vector.load %arg4[%c0_9, %c0_10] : memref<1x512xf32, #tpu.memory_space<vmem>>, vector<1x512xf32>
    %13 = vector.broadcast %12 : vector<1x512xf32> to vector<2x512xf32>
    %14 = arith.addf %11, %13 : vector<2x512xf32>
    %cst_11 = arith.constant 0.000000e+00 : f32
    %15 = vector.broadcast %cst_11 : f32 to vector<2x512xf32>
    %16 = arith.maximumf %14, %15 : vector<2x512xf32>
    %17 = arith.truncf %16 : vector<2x512xf32> to vector<2x512xbf16>
    %c0_12 = arith.constant 0 : index
    %c0_13 = arith.constant 0 : index
    %18 = vector.load %arg5[%c0_12, %c0_13] : memref<512x2xbf16, #tpu.memory_space<vmem>>, vector<512x2xbf16>
    %cst_14 = arith.constant dense<0.000000e+00> : vector<2x2xf32>
    %19 = tpu.matmul %17, %18, %cst_14 {dimension_numbers = #tpu.dot_dimension_numbers<[1], [0], [0], [1], [0, 0, 1, 1], [], []>} : vector<2x512xbf16>, vector<512x2xbf16>, vector<2x2xf32> -> vector<2x2xf32>
    %c0_15 = arith.constant 0 : index
    %c0_16 = arith.constant 0 : index
    %20 = vector.load %arg6[%c0_15, %c0_16] : memref<1x2xf32, #tpu.memory_space<vmem>>, vector<1x2xf32>
    %21 = vector.broadcast %20 : vector<1x2xf32> to vector<2x2xf32>
    %22 = arith.addf %19, %21 : vector<2x2xf32>
    %c0_17 = arith.constant 0 : index
    %c0_18 = arith.constant 0 : index
    %23 = vector.load %arg7[%c0_17, %c0_18] : memref<2x2xf32, #tpu.memory_space<vmem>>, vector<2x2xf32>
    tpu.vector_store %arg7[%c0_17, %c0_18], %22 {strides = array<i32>} : memref<2x2xf32, #tpu.memory_space<vmem>>, vector<2x2xf32>,
    return
  }
}

</mosaic_0001>

<bundles_post_ra>
// kernel: xvector_forward.3
= control target key start
LH: loop header
LB: loop body
LE: loop exit
PB: predicated region body
PF: predicated region fallthrough
CT: control target
= control target key end

     0   :  { %v9618_v36 = vmov 1983009808   ;;  %v44_v38 = vlaneseq  ;;  %s12620_s0 = inlined_call_operand.vmem [shape: f32[2,3072], index: 0, kind: input, shape index: {}]   ;;  %s12621_s1 = inlined_call_operand.vmem [shape: bf16[3072,512], index: 1, kind: input, shape index: {}]   ;;  %s12622_s2 = inlined_call_operand.vmem [shape: f32[1,512], index: 2, kind: input, shape index: {}]   ;;  %s12623_s3 = inlined_call_operand.vmem [shape: bf16[512,512], index: 3, kind: input, shape index: {}]   ;;  %s12624_s4 = inlined_call_operand.vmem [shape: f32[1,512], index: 4, kind: input, shape index: {}]   ;;  %s12625_s5 = inlined_call_operand.vmem [shape: bf16[512,2], index: 5, kind: input, shape index: {}]   ;;  %s12626_s6 = inlined_call_operand.vmem [shape: f32[1,2], index: 6, kind: input, shape index: {}]   ;;  %s12627_s7 = inlined_call_operand.hbm [shape: f32[2,2], index: 7, kind: output, shape index: {}]  }
   0x1   :  { %v8212_v0 = vld [vmem:[%s12621_s1 + $0x4] ss:$16 sps:$4 sm:$0xff]   ;;  %v8214_v1 = vld [vmem:[%s12621_s1 + $0xc] ss:$16 sps:$4 sm:$0xff]   ;;  %v8216_v2 = vld [vmem:[%s12621_s1] ss:$16 sps:$4 sm:$0xff]   ;;  %v42_v37 = vunpack.c.l.s4 %v9618_v36 }
   0x2   :  { %4820 = vmatprep.subr.bf16.mxu0 %v8212_v0  ;;  %v8217_v3 = vld [vmem:[%s12621_s1 + $0x8] ss:$16 sps:$4 sm:$0xff]   ;;  %5312 = vmatprep.subr.bf16.mxu1 %v8214_v1  ;;  %v8218_v4 = vld [vmem:[%s12621_s1 + $0x24] ss:$16 sps:$4 sm:$0xff]   ;;  %v8220_v5 = vld [vmem:[%s12621_s1 + $0x2c] ss:$16 sps:$4 sm:$0xff]  }
   0x3   :  { %4821 = vmatpush1.bf16.msra.mxu0 %v8216_v2  ;;  %5313 = vmatpush1.bf16.msra.mxu1 %v8217_v3  ;;  %v8222_v6 = vld [vmem:[%s12621_s1 + $0x20] ss:$16 sps:$4 sm:$0xff]   ;;  %v8223_v7 = vld [vmem:[%s12621_s1 + $0x28] ss:$16 sps:$4 sm:$0xff]   ;;  %v8224_v8 = vld [vmem:[%s12621_s1 + $0x44] ss:$16 sps:$4 sm:$0xff]   ;;  %v43_v42 = vunpack.c.0.s8 %v42_v37 }
   0x4   :  { %4822 = vmatprep.subr.bf16.mxu0 %v8218_v4  ;;  %5314 = vmatprep.subr.bf16.mxu1 %v8220_v5  ;;  %v8226_v9 = vld [vmem:[%s12621_s1 + $0x4c] ss:$16 sps:$4 sm:$0xff]   ;;  %v8228_v10 = vld [vmem:[%s12621_s1 + $0x40] ss:$16 sps:$4 sm:$0xff]   ;;  %v8229_v11 = vld [vmem:[%s12621_s1 + $0x48] ss:$16 sps:$4 sm:$0xff]  }
   0x5   :  { %v8230_v12 = vld [vmem:[%s12621_s1 + $0x64] ss:$16 sps:$4 sm:$0xff]   ;;  %v8232_v13 = vld [vmem:[%s12621_s1 + $0x6c] ss:$16 sps:$4 sm:$0xff]   ;;  %v8234_v14 = vld [vmem:[%s12621_s1 + $0x60] ss:$16 sps:$4 sm:$0xff]  }
   0x6   :  { %v8235_v15 = vld [vmem:[%s12621_s1 + $0x68] ss:$16 sps:$4 sm:$0xff]   ;;  %v8236_v16 = vld [vmem:[%s12621_s1 + $0x84] ss:$16 sps:$4 sm:$0xff]   ;;  %v8238_v17 = vld [vmem:[%s12621_s1 + $0x8c] ss:$16 sps:$4 sm:$0xff]  }
   0x7   :  { %4823 = vmatpush1.bf16.msra.mxu0 %v8222_v6  ;;  %5315 = vmatpush1.bf16.msra.mxu1 %v8223_v7  ;;  %v8240_v18 = vld [vmem:[%s12621_s1 + $0x80] ss:$16 sps:$4 sm:$0xff]   ;;  %v8241_v19 = vld [vmem:[%s12621_s1 + $0x88] ss:$16 sps:$4 sm:$0xff]   ;;  %v8242_v20 = vld [vmem:[%s12621_s1 + $0xa4] ss:$16 sps:$4 sm:$0xff]  }
   0x8   :  { %4824 = vmatprep.subr.bf16.mxu0 %v8224_v8  ;;  %5316 = vmatprep.subr.bf16.mxu1 %v8226_v9  ;;  %v8244_v21 = vld [vmem:[%s12621_s1 + $0xac] ss:$16 sps:$4 sm:$0xff]   ;;  %v8246_v22 = vld [vmem:[%s12621_s1 + $0xa0] ss:$16 sps:$4 sm:$0xff]   ;;  %v8247_v23 = vld [vmem:[%s12621_s1 + $0xa8] ss:$16 sps:$4 sm:$0xff]  }
   0x9   :  { %v8248_v24 = vld [vmem:[%s12621_s1 + $0xc4] ss:$16 sps:$4 sm:$0xff]   ;;  %v8250_v25 = vld [vmem:[%s12621_s1 + $0xcc] ss:$16 sps:$4 sm:$0xff]   ;;  %v8252_v26 = vld [vmem:[%s12621_s1 + $0xc0] ss:$16 sps:$4 sm:$0xff]  }
   0xa   :  { %v8253_v27 = vld [vmem:[%s12621_s1 + $0xc8] ss:$16 sps:$4 sm:$0xff]   ;;  %v8254_v28 = vld [vmem:[%s12621_s1 + $0xe4] ss:$16 sps:$4 sm:$0xff]   ;;  %v8256_v29 = vld [vmem:[%s12621_s1 + $0xec] ss:$16 sps:$4 sm:$0xff]  }
   0xb   :  { %4825 = vmatpush1.bf16.msra.mxu0 %v8228_v10  ;;  %5317 = vmatpush1.bf16.msra.mxu1 %v8229_v11  ;;  %v8258_v30 = vld [vmem:[%s12621_s1 + $0xe0] ss:$16 sps:$4 sm:$0xff]   ;;  %v8259_v31 = vld [vmem:[%s12621_s1 + $0xe8] ss:$16 sps:$4 sm:$0xff]   ;;  %v8260_v32 = vld [vmem:[%s12621_s1 + $0x104] ss:$16 sps:$4 sm:$0xff]  }
   0xc   :  { %4826 = vmatprep.subr.bf16.mxu0 %v8230_v12  ;;  %5318 = vmatprep.subr.bf16.mxu1 %v8232_v13  ;;  %v8262_v33 = vld [vmem:[%s12621_s1 + $0x10c] ss:$16 sps:$4 sm:$0xff]   ;;  %v8264_v34 = vld [vmem:[%s12621_s1 + $0x100] ss:$16 sps:$4 sm:$0xff]   ;;  %v8265_v35 = vld [vmem:[%s12621_s1 + $0x108] ss:$16 sps:$4 sm:$0xff]  }
   0xd   :  { %v8266_v39 = vld [vmem:[%s12621_s1 + $0x124] ss:$16 sps:$4 sm:$0xff]   ;;  %v8268_v40 = vld [vmem:[%s12621_s1 + $0x12c] ss:$16 sps:$4 sm:$0xff]   ;;  %v8270_v41 = vld [vmem:[%s12621_s1 + $0x120] ss:$16 sps:$4 sm:$0xff]  }
   0xe   :  { %v9777_v43 = vshrl.u32 %v44_v38, 7  ;;  %v8271_v44 = vld [vmem:[%s12621_s1 + $0x128] ss:$16 sps:$4 sm:$0xff]   ;;  %v8272_v45 = vld [vmem:[%s12621_s1 + $0x144] ss:$16 sps:$4 sm:$0xff]  }
   0xf   :  { %4827 = vmatpush1.bf16.msra.mxu0 %v8234_v14  ;;  %5319 = vmatpush1.bf16.msra.mxu1 %v8235_v15  ;;  %v8274_v46 = vld [vmem:[%s12621_s1 + $0x14c] ss:$16 sps:$4 sm:$0xff]   ;;  %v8276_v47 = vld [vmem:[%s12621_s1 + $0x140] ss:$16 sps:$4 sm:$0xff]   ;;  %v8277_v48 = vld [vmem:[%s12621_s1 + $0x148] ss:$16 sps:$4 sm:$0xff]  }
  0x10   :  { %4828 = vmatprep.subr.bf16.mxu0 %v8236_v16  ;;  %5320 = vmatprep.subr.bf16.mxu1 %v8238_v17  ;;  %v9795_v49 = vsub.s32 %v43_v42, %v9777_v43  ;;  %v8278_v50 = vld [vmem:[%s12621_s1 + $0x164] ss:$16 sps:$4 sm:$0xff]   ;;  %v8280_v51 = vld [vmem:[%s12621_s1 + $0x16c] ss:$16 sps:$4 sm:$0xff]   ;;  %v8282_v53 = vld [vmem:[%s12621_s1 + $0x160] ss:$16 sps:$4 sm:$0xff]  }
  0x11   :  { %v28_v52 = vld [vmem:[%s12620_s0] sm:$0xff]  ;;  %v8283_v55 = vld [vmem:[%s12621_s1 + $0x168] ss:$16 sps:$4 sm:$0xff]   ;;  %v8286_v57 = vld [vmem:[%s12621_s1 + $0x18c] ss:$16 sps:$4 sm:$0xff]  }
  0x12   :  { %v47_v54 = vrot.slane %v28_v52, %v9795_v49  ;;  %v8284_v56 = vld [vmem:[%s12621_s1 + $0x184] ss:$16 sps:$4 sm:$0xff]   ;;  %v8288_v59 = vld [vmem:[%s12621_s1 + $0x180] ss:$16 sps:$4 sm:$0xff]   ;;  %v8289_v61 = vld [vmem:[%s12621_s1 + $0x188] ss:$16 sps:$4 sm:$0xff]   ;;  %v40_v4 = vcombine.high %v28_v52, %v28_v52 }
  0x13   :  { %4829 = vmatpush1.bf16.msra.mxu0 %v8240_v18  ;;  %5321 = vmatpush1.bf16.msra.mxu1 %v8241_v19  ;;  %v8290_v62 = vld [vmem:[%s12621_s1 + $0x1a4] ss:$16 sps:$4 sm:$0xff]   ;;  %v8292_v63 = vld [vmem:[%s12621_s1 + $0x1ac] ss:$16 sps:$4 sm:$0xff]   ;;  %v8294_v0 = vld [vmem:[%s12621_s1 + $0x1a0] ss:$16 sps:$4 sm:$0xff]  }
  0x14   :  { %4830 = vmatprep.subr.bf16.mxu0 %v8242_v20  ;;  %5322 = vmatprep.subr.bf16.mxu1 %v8244_v21  ;;  %v55_v58 = vcombine.high %v47_v54, %v47_v54  ;;  %v8295_v1 = vld [vmem:[%s12621_s1 + $0x1a8] ss:$16 sps:$4 sm:$0xff]   ;;  %v8296_v2 = vld [vmem:[%s12621_s1 + $0x1c4] ss:$16 sps:$4 sm:$0xff]   ;;  %v8298_v3 = vld [vmem:[%s12621_s1 + $0x1cc] ss:$16 sps:$4 sm:$0xff]   ;;  %v9856_v9 = vrot.slane %v40_v4, %v9795_v49  ;;  %v166_v16 = vpack.c.bf16 %v47_v54, %v47_v54 }
  0x15   :  { %v8300_v5 = vld [vmem:[%s12621_s1 + $0x1c0] ss:$16 sps:$4 sm:$0xff]   ;;  %v8301_v6 = vld [vmem:[%s12621_s1 + $0x1c8] ss:$16 sps:$4 sm:$0xff]   ;;  %v8302_v7 = vld [vmem:[%s12621_s1 + $0x1e4] ss:$16 sps:$4 sm:$0xff]  }
  0x16   :  { %v167_v60 = vpack.c.bf16 %v55_v58, %v55_v58  ;;  %v8304_v8 = vld [vmem:[%s12621_s1 + $0x1ec] ss:$16 sps:$4 sm:$0xff]   ;;  %v8306_v10 = vld [vmem:[%s12621_s1 + $0x1e0] ss:$16 sps:$4 sm:$0xff]   ;;  %v8307_v11 = vld [vmem:[%s12621_s1 + $0x1e8] ss:$16 sps:$4 sm:$0xff]   ;;  %v56_v14 = vcombine.high %v9856_v9, %v9856_v9 }
  0x17   :  { %4831 = vmatpush1.bf16.msra.mxu0 %v8246_v22  ;;  %5323 = vmatpush1.bf16.msra.mxu1 %v8247_v23  ;;  %v8311_v12 = vld [vmem:[%s12621_s1 + $0x204] ss:$16 sps:$4 sm:$0xff]   ;;  %v8314_v13 = vld [vmem:[%s12621_s1 + $0x20c] ss:$16 sps:$4 sm:$0xff]   ;;  %v8309_v15 = vld [vmem:[%s12621_s1 + $0x200] ss:$16 sps:$4 sm:$0xff]  }
  0x18   :  { %4832 = vmatprep.subr.bf16.mxu0 %v8248_v24  ;;  %5324 = vmatprep.subr.bf16.mxu1 %v8250_v25  ;;  %v8312_v17 = vld [vmem:[%s12621_s1 + $0x208] ss:$16 sps:$4 sm:$0xff]   ;;  %v8317_v18 = vld [vmem:[%s12621_s1 + $0x224] ss:$16 sps:$4 sm:$0xff]   ;;  %v8320_v19 = vld [vmem:[%s12621_s1 + $0x22c] ss:$16 sps:$4 sm:$0xff]   ;;  %v169_v20 = vpack.c.bf16 %v56_v14, %v56_v14 }
  0x19   :  { %4852 = vmatprep.mubr.bf16.mxu0 %v167_v60  ;;  %5344 = vmatprep.mubr.bf16.mxu1 %v167_v60  ;;  %v8315_v21 = vld [vmem:[%s12621_s1 + $0x220] ss:$16 sps:$4 sm:$0xff]   ;;  %v8318_v22 = vld [vmem:[%s12621_s1 + $0x228] ss:$16 sps:$4 sm:$0xff]   ;;  %v8323_v23 = vld [vmem:[%s12621_s1 + $0x244] ss:$16 sps:$4 sm:$0xff]  }
  0x1a   :  { %v8326_v24 = vld [vmem:[%s12621_s1 + $0x24c] ss:$16 sps:$4 sm:$0xff]   ;;  %v8321_v25 = vld [vmem:[%s12621_s1 + $0x240] ss:$16 sps:$4 sm:$0xff]   ;;  %v8342_v38 = vld [vmem:[%s12621_s1 + $0x2a8] ss:$16 sps:$4 sm:$0xff]  }
  0x1b   :  { %4833 = vmatpush1.bf16.msra.mxu0 %v8252_v26  ;;  %5325 = vmatpush1.bf16.msra.mxu1 %v8253_v27  ;;  %v8324_v26 = vld [vmem:[%s12621_s1 + $0x248] ss:$16 sps:$4 sm:$0xff]   ;;  %v8329_v27 = vld [vmem:[%s12621_s1 + $0x264] ss:$16 sps:$4 sm:$0xff]   ;;  %v8344_v36 = vld [vmem:[%s12621_s1 + $0x2ac] ss:$16 sps:$4 sm:$0xff]  }
  0x1c   :  { %4834 = vmatprep.subr.bf16.mxu0 %v8254_v28  ;;  %5326 = vmatprep.subr.bf16.mxu1 %v8256_v29  ;;  %v8332_v28 = vld [vmem:[%s12621_s1 + $0x26c] ss:$16 sps:$4 sm:$0xff]   ;;  %v8327_v29 = vld [vmem:[%s12621_s1 + $0x260] ss:$16 sps:$4 sm:$0xff]   ;;  %v8348_v42 = vld [vmem:[%s12621_s1 + $0x2c8] ss:$16 sps:$4 sm:$0xff]  }
  0x1d   :  { %v8339_v37 = vld [vmem:[%s12621_s1 + $0x2a0] ss:$16 sps:$4 sm:$0xff]   ;;  %v8360_v52 = vld [vmem:[%s12621_s1 + $0x308] ss:$16 sps:$4 sm:$0xff]   ;;  %v8368_v54 = vld [vmem:[%s12621_s1 + $0x32c] ss:$16 sps:$4 sm:$0xff]  }
  0x1e   :  { %v8374_v58 = vld [vmem:[%s12621_s1 + $0x34c] ss:$16 sps:$4 sm:$0xff]   ;;  %v8372_v60 = vld [vmem:[%s12621_s1 + $0x348] ss:$16 sps:$4 sm:$0xff]   ;;  %v8401_v14 = vld [vmem:[%s12621_s1 + $0x3e4] ss:$16 sps:$4 sm:$0xff]  }
  0x1f   :  { %4835 = vmatpush1.bf16.msra.mxu0 %v8258_v30  ;;  %5327 = vmatpush1.bf16.msra.mxu1 %v8259_v31  ;;  %v8330_v30 = vld [vmem:[%s12621_s1 + $0x268] ss:$16 sps:$4 sm:$0xff]   ;;  %v8335_v31 = vld [vmem:[%s12621_s1 + $0x284] ss:$16 sps:$4 sm:$0xff]  }
  0x20   :  { %4836 = vmatprep.subr.bf16.mxu0 %v8260_v32  ;;  %5328 = vmatprep.subr.bf16.mxu1 %v8262_v33  ;;  %v8338_v32 = vld [vmem:[%s12621_s1 + $0x28c] ss:$16 sps:$4 sm:$0xff]   ;;  %v8333_v33 = vld [vmem:[%s12621_s1 + $0x280] ss:$16 sps:$4 sm:$0xff]   ;;  %v8384_v4 = vld [vmem:[%s12621_s1 + $0x388] ss:$16 sps:$4 sm:$0xff]  }
  0x23   :  { %4837 = vmatpush1.bf16.msra.mxu0 %v8264_v34  ;;  %5329 = vmatpush1.bf16.msra.mxu1 %v8265_v35  ;;  %v8336_v34 = vld [vmem:[%s12621_s1 + $0x288] ss:$16 sps:$4 sm:$0xff]   ;;  %v8341_v35 = vld [vmem:[%s12621_s1 + $0x2a4] ss:$16 sps:$4 sm:$0xff]  }
  0x24   :  { %4838 = vmatprep.subr.bf16.mxu0 %v8266_v39  ;;  %5330 = vmatprep.subr.bf16.mxu1 %v8268_v40  ;;  %v8347_v39 = vld [vmem:[%s12621_s1 + $0x2c4] ss:$16 sps:$4 sm:$0xff]   ;;  %v8350_v40 = vld [vmem:[%s12621_s1 + $0x2cc] ss:$16 sps:$4 sm:$0xff]  }
  0x27   :  { %4839 = vmatpush1.bf16.msra.mxu0 %v8270_v41  ;;  %5331 = vmatpush1.bf16.msra.mxu1 %v8271_v44  ;;  %v8345_v41 = vld [vmem:[%s12621_s1 + $0x2c0] ss:$16 sps:$4 sm:$0xff]   ;;  %v8353_v44 = vld [vmem:[%s12621_s1 + $0x2e4] ss:$16 sps:$4 sm:$0xff]  }
  0x28   :  { %4840 = vmatprep.subr.bf16.mxu0 %v8272_v45  ;;  %5332 = vmatprep.subr.bf16.mxu1 %v8274_v46  ;;  %v8356_v45 = vld [vmem:[%s12621_s1 + $0x2ec] ss:$16 sps:$4 sm:$0xff]   ;;  %v8351_v46 = vld [vmem:[%s12621_s1 + $0x2e0] ss:$16 sps:$4 sm:$0xff]  }
  0x2b   :  { %4841 = vmatpush1.bf16.msra.mxu0 %v8276_v47  ;;  %5333 = vmatpush1.bf16.msra.mxu1 %v8277_v48  ;;  %v8354_v47 = vld [vmem:[%s12621_s1 + $0x2e8] ss:$16 sps:$4 sm:$0xff]   ;;  %v8359_v48 = vld [vmem:[%s12621_s1 + $0x304] ss:$16 sps:$4 sm:$0xff]  }
  0x2c   :  { %4842 = vmatprep.subr.bf16.mxu0 %v8278_v50  ;;  %5334 = vmatprep.subr.bf16.mxu1 %v8280_v51  ;;  %v8362_v50 = vld [vmem:[%s12621_s1 + $0x30c] ss:$16 sps:$4 sm:$0xff]   ;;  %v8357_v51 = vld [vmem:[%s12621_s1 + $0x300] ss:$16 sps:$4 sm:$0xff]  }
  0x2f   :  { %4843 = vmatpush1.bf16.msra.mxu0 %v8282_v53  ;;  %5335 = vmatpush1.bf16.msra.mxu1 %v8283_v55  ;;  %v8365_v53 = vld [vmem:[%s12621_s1 + $0x324] ss:$16 sps:$4 sm:$0xff]   ;;  %v8363_v55 = vld [vmem:[%s12621_s1 + $0x320] ss:$16 sps:$4 sm:$0xff]  }
  0x30   :  { %4844 = vmatprep.subr.bf16.mxu0 %v8284_v56  ;;  %5336 = vmatprep.subr.bf16.mxu1 %v8286_v57  ;;  %v8366_v56 = vld [vmem:[%s12621_s1 + $0x328] ss:$16 sps:$4 sm:$0xff]   ;;  %v8371_v57 = vld [vmem:[%s12621_s1 + $0x344] ss:$16 sps:$4 sm:$0xff]  }
  0x33   :  { %4845 = vmatpush1.bf16.msra.mxu0 %v8288_v59  ;;  %5337 = vmatpush1.bf16.msra.mxu1 %v8289_v61  ;;  %v8369_v59 = vld [vmem:[%s12621_s1 + $0x340] ss:$16 sps:$4 sm:$0xff]   ;;  %v8377_v61 = vld [vmem:[%s12621_s1 + $0x364] ss:$16 sps:$4 sm:$0xff]  }
  0x34   :  { %4846 = vmatprep.subr.bf16.mxu0 %v8290_v62  ;;  %5338 = vmatprep.subr.bf16.mxu1 %v8292_v63  ;;  %v8380_v62 = vld [vmem:[%s12621_s1 + $0x36c] ss:$16 sps:$4 sm:$0xff]   ;;  %v8375_v63 = vld [vmem:[%s12621_s1 + $0x360] ss:$16 sps:$4 sm:$0xff]  }
  0x37   :  { %4847 = vmatpush1.bf16.msra.mxu0 %v8294_v0  ;;  %5339 = vmatpush1.bf16.msra.mxu1 %v8295_v1  ;;  %v8378_v0 = vld [vmem:[%s12621_s1 + $0x368] ss:$16 sps:$4 sm:$0xff]   ;;  %v8383_v1 = vld [vmem:[%s12621_s1 + $0x384] ss:$16 sps:$4 sm:$0xff]  }
  0x38   :  { %4848 = vmatprep.subr.bf16.mxu0 %v8296_v2  ;;  %5340 = vmatprep.subr.bf16.mxu1 %v8298_v3  ;;  %v8386_v2 = vld [vmem:[%s12621_s1 + $0x38c] ss:$16 sps:$4 sm:$0xff]   ;;  %v8381_v3 = vld [vmem:[%s12621_s1 + $0x380] ss:$16 sps:$4 sm:$0xff]  }
  0x3b   :  { %4849 = vmatpush1.bf16.msra.mxu0 %v8300_v5  ;;  %5341 = vmatpush1.bf16.msra.mxu1 %v8301_v6  ;;  %v8389_v5 = vld [vmem:[%s12621_s1 + $0x3a4] ss:$16 sps:$4 sm:$0xff]   ;;  %v8392_v6 = vld [vmem:[%s12621_s1 + $0x3ac] ss:$16 sps:$4 sm:$0xff]  }
  0x3c   :  { %4850 = vmatprep.subr.bf16.mxu0 %v8302_v7  ;;  %5342 = vmatprep.subr.bf16.mxu1 %v8304_v8  ;;  %v8387_v7 = vld [vmem:[%s12621_s1 + $0x3a0] ss:$16 sps:$4 sm:$0xff]   ;;  %v8390_v8 = vld [vmem:[%s12621_s1 + $0x3a8] ss:$16 sps:$4 sm:$0xff]  }
  0x3f   :  { %4851 = vmatpush1.bf16.msra.mxu0 %v8306_v10  ;;  %5343 = vmatpush1.bf16.msra.mxu1 %v8307_v11  ;;  %v8395_v10 = vld [vmem:[%s12621_s1 + $0x3c4] ss:$16 sps:$4 sm:$0xff]   ;;  %v8398_v11 = vld [vmem:[%s12621_s1 + $0x3cc] ss:$16 sps:$4 sm:$0xff]  }
  0x40   :  { %4861 = vmatprep.subr.bf16.mxu0 %v8311_v12  ;;  %5353 = vmatprep.subr.bf16.mxu1 %v8314_v13  ;;  %v8393_v12 = vld [vmem:[%s12621_s1 + $0x3c0] ss:$16 sps:$4 sm:$0xff]   ;;  %v8396_v13 = vld [vmem:[%s12621_s1 + $0x3c8] ss:$16 sps:$4 sm:$0xff]  }
  0x42   :  { %4853 = vmatmul.mubr.bf16.vlgmr.msra.gmra.mrb[0].mxu0 %v166_v16  ;;  %5345 = vmatmul.mubr.bf16.vlgmr.msra.gmra.mrb[0].mxu1 %v166_v16  ;;  %v8399_v16 = vld [vmem:[%s12621_s1 + $0x3e0] ss:$16 sps:$4 sm:$0xff]  }
  0x43   :  { %4862 = vmatpush1.bf16.msra.mxu0 %v8309_v15  ;;  %5354 = vmatpush1.bf16.msra.mxu1 %v8312_v17  ;;  %v8404_v15 = vld [vmem:[%s12621_s1 + $0x3ec] ss:$16 sps:$4 sm:$0xff]   ;;  %v8402_v17 = vld [vmem:[%s12621_s1 + $0x3e8] ss:$16 sps:$4 sm:$0xff]  }
  0x44   :  { %4863 = vmatprep.subr.bf16.mxu0 %v8317_v18  ;;  %5355 = vmatprep.subr.bf16.mxu1 %v8320_v19  ;;  %v8407_v18 = vld [vmem:[%s12621_s1 + $0x404] ss:$16 sps:$4 sm:$0xff]   ;;  %v8410_v19 = vld [vmem:[%s12621_s1 + $0x40c] ss:$16 sps:$4 sm:$0xff]  }
  0x45   :  { %4893 = vmatprep.mubr.bf16.mxu0 %v169_v20  ;;  %5385 = vmatprep.mubr.bf16.mxu1 %v169_v20  ;;  %v8405_v20 = vld [vmem:[%s12621_s1 + $0x400] ss:$16 sps:$4 sm:$0xff]  }
  0x47   :  { %4864 = vmatpush1.bf16.msra.mxu0 %v8315_v21  ;;  %5356 = vmatpush1.bf16.msra.mxu1 %v8318_v22  ;;  %v168_v21 = vpack.c.bf16 %v9856_v9, %v9856_v9  ;;  %v8408_v22 = vld [vmem:[%s12621_s1 + $0x408] ss:$16 sps:$4 sm:$0xff]   ;;  %v8416_v9 = vld [vmem:[%s12621_s1 + $0x42c] ss:$16 sps:$4 sm:$0xff]  }
  0x48   :  { %4865 = vmatprep.subr.bf16.mxu0 %v8323_v23  ;;  %5357 = vmatprep.subr.bf16.mxu1 %v8326_v24  ;;  %v10075_v23 = vld [vmem:[%s12620_s0 + $0x8] sm:$0xff]  ;;  %v8413_v24 = vld [vmem:[%s12621_s1 + $0x424] ss:$16 sps:$4 sm:$0xff]  }
  0x4b   :  { %4866 = vmatpush1.bf16.msra.mxu0 %v8321_v25  ;;  %5358 = vmatpush1.bf16.msra.mxu1 %v8324_v26  ;;  %v10085_v25 = vrot.slane %v10075_v23, %v9795_v49 }
  0x4c   :  { %4867 = vmatprep.subr.bf16.mxu0 %v8329_v27  ;;  %5359 = vmatprep.subr.bf16.mxu1 %v8332_v28  ;;  %v8411_v27 = vld [vmem:[%s12621_s1 + $0x420] ss:$16 sps:$4 sm:$0xff]   ;;  %v8414_v28 = vld [vmem:[%s12621_s1 + $0x428] ss:$16 sps:$4 sm:$0xff]  }
  0x4d   :  { %v72_v26 = vcombine.high %v10085_v25, %v10085_v25 }
  0x4f   :  { %4868 = vmatpush1.bf16.msra.mxu0 %v8327_v29  ;;  %5360 = vmatpush1.bf16.msra.mxu1 %v8330_v30  ;;  %v8419_v29 = vld [vmem:[%s12621_s1 + $0x444] ss:$16 sps:$4 sm:$0xff]   ;;  %v8422_v30 = vld [vmem:[%s12621_s1 + $0x44c] ss:$16 sps:$4 sm:$0xff]  }
  0x50   :  { %4869 = vmatprep.subr.bf16.mxu0 %v8335_v31  ;;  %5361 = vmatprep.subr.bf16.mxu1 %v8338_v32  ;;  %v171_v31 = vpack.c.bf16 %v72_v26, %v72_v26  ;;  %v8417_v32 = vld [vmem:[%s12621_s1 + $0x440] ss:$16 sps:$4 sm:$0xff]   ;;  %v8498_v26 = vld [vmem:[%s12621_s1 + $0x5e8] ss:$16 sps:$4 sm:$0xff]  }
  0x53   :  { %4870 = vmatpush1.bf16.msra.mxu0 %v8333_v33  ;;  %5362 = vmatpush1.bf16.msra.mxu1 %v8336_v34  ;;  %v8420_v33 = vld [vmem:[%s12621_s1 + $0x448] ss:$16 sps:$4 sm:$0xff]   ;;  %v8425_v34 = vld [vmem:[%s12621_s1 + $0x464] ss:$16 sps:$4 sm:$0xff]  }
  0x54   :  { %4871 = vmatprep.subr.bf16.mxu0 %v8341_v35  ;;  %5363 = vmatprep.subr.bf16.mxu1 %v8344_v36  ;;  %v8428_v35 = vld [vmem:[%s12621_s1 + $0x46c] ss:$16 sps:$4 sm:$0xff]   ;;  %v8423_v36 = vld [vmem:[%s12621_s1 + $0x460] ss:$16 sps:$4 sm:$0xff]  }
  0x57   :  { %4872 = vmatpush1.bf16.msra.mxu0 %v8339_v37  ;;  %5364 = vmatpush1.bf16.msra.mxu1 %v8342_v38  ;;  %v8426_v37 = vld [vmem:[%s12621_s1 + $0x468] ss:$16 sps:$4 sm:$0xff]   ;;  %v8431_v38 = vld [vmem:[%s12621_s1 + $0x484] ss:$16 sps:$4 sm:$0xff]  }
  0x58   :  { %4873 = vmatprep.subr.bf16.mxu0 %v8347_v39  ;;  %5365 = vmatprep.subr.bf16.mxu1 %v8350_v40  ;;  %v8434_v39 = vld [vmem:[%s12621_s1 + $0x48c] ss:$16 sps:$4 sm:$0xff]   ;;  %v8429_v40 = vld [vmem:[%s12621_s1 + $0x480] ss:$16 sps:$4 sm:$0xff]  }
  0x5b   :  { %4874 = vmatpush1.bf16.msra.mxu0 %v8345_v41  ;;  %5366 = vmatpush1.bf16.msra.mxu1 %v8348_v42  ;;  %v8432_v41 = vld [vmem:[%s12621_s1 + $0x488] ss:$16 sps:$4 sm:$0xff]   ;;  %v8437_v42 = vld [vmem:[%s12621_s1 + $0x4a4] ss:$16 sps:$4 sm:$0xff]  }
  0x5c   :  { %4875 = vmatprep.subr.bf16.mxu0 %v8353_v44  ;;  %5367 = vmatprep.subr.bf16.mxu1 %v8356_v45  ;;  %v8440_v44 = vld [vmem:[%s12621_s1 + $0x4ac] ss:$16 sps:$4 sm:$0xff]   ;;  %v8435_v45 = vld [vmem:[%s12621_s1 + $0x4a0] ss:$16 sps:$4 sm:$0xff]  }
  0x5f   :  { %4876 = vmatpush1.bf16.msra.mxu0 %v8351_v46  ;;  %5368 = vmatpush1.bf16.msra.mxu1 %v8354_v47  ;;  %v8438_v46 = vld [vmem:[%s12621_s1 + $0x4a8] ss:$16 sps:$4 sm:$0xff]   ;;  %v8443_v47 = vld [vmem:[%s12621_s1 + $0x4c4] ss:$16 sps:$4 sm:$0xff]  }
  0x60   :  { %4877 = vmatprep.subr.bf16.mxu0 %v8359_v48  ;;  %5369 = vmatprep.subr.bf16.mxu1 %v8362_v50  ;;  %v8446_v48 = vld [vmem:[%s12621_s1 + $0x4cc] ss:$16 sps:$4 sm:$0xff]   ;;  %v8441_v50 = vld [vmem:[%s12621_s1 + $0x4c0] ss:$16 sps:$4 sm:$0xff]  }
  0x63   :  { %4878 = vmatpush1.bf16.msra.mxu0 %v8357_v51  ;;  %5370 = vmatpush1.bf16.msra.mxu1 %v8360_v52  ;;  %v8444_v51 = vld [vmem:[%s12621_s1 + $0x4c8] ss:$16 sps:$4 sm:$0xff]   ;;  %v8449_v52 = vld [vmem:[%s12621_s1 + $0x4e4] ss:$16 sps:$4 sm:$0xff]  }
  0x64   :  { %4879 = vmatprep.subr.bf16.mxu0 %v8365_v53  ;;  %5371 = vmatprep.subr.bf16.mxu1 %v8368_v54  ;;  %v8452_v53 = vld [vmem:[%s12621_s1 + $0x4ec] ss:$16 sps:$4 sm:$0xff]   ;;  %v8447_v54 = vld [vmem:[%s12621_s1 + $0x4e0] ss:$16 sps:$4 sm:$0xff]  }
  0x67   :  { %4880 = vmatpush1.bf16.msra.mxu0 %v8363_v55  ;;  %5372 = vmatpush1.bf16.msra.mxu1 %v8366_v56  ;;  %v8450_v55 = vld [vmem:[%s12621_s1 + $0x4e8] ss:$16 sps:$4 sm:$0xff]   ;;  %v8455_v56 = vld [vmem:[%s12621_s1 + $0x504] ss:$16 sps:$4 sm:$0xff]  }
  0x68   :  { %4881 = vmatprep.subr.bf16.mxu0 %v8371_v57  ;;  %5373 = vmatprep.subr.bf16.mxu1 %v8374_v58  ;;  %v8458_v57 = vld [vmem:[%s12621_s1 + $0x50c] ss:$16 sps:$4 sm:$0xff]   ;;  %v8453_v58 = vld [vmem:[%s12621_s1 + $0x500] ss:$16 sps:$4 sm:$0xff]  }
  0x6b   :  { %4882 = vmatpush1.bf16.msra.mxu0 %v8369_v59  ;;  %5374 = vmatpush1.bf16.msra.mxu1 %v8372_v60  ;;  %v8456_v59 = vld [vmem:[%s12621_s1 + $0x508] ss:$16 sps:$4 sm:$0xff]   ;;  %v8461_v60 = vld [vmem:[%s12621_s1 + $0x524] ss:$16 sps:$4 sm:$0xff]  }
  0x6c   :  { %4883 = vmatprep.subr.bf16.mxu0 %v8377_v61  ;;  %5375 = vmatprep.subr.bf16.mxu1 %v8380_v62  ;;  %v8464_v61 = vld [vmem:[%s12621_s1 + $0x52c] ss:$16 sps:$4 sm:$0xff]   ;;  %v8459_v62 = vld [vmem:[%s12621_s1 + $0x520] ss:$16 sps:$4 sm:$0xff]  }
  0x6f   :  { %4884 = vmatpush1.bf16.msra.mxu0 %v8375_v63  ;;  %5376 = vmatpush1.bf16.msra.mxu1 %v8378_v0  ;;  %v8462_v63 = vld [vmem:[%s12621_s1 + $0x528] ss:$16 sps:$4 sm:$0xff]   ;;  %v8467_v0 = vld [vmem:[%s12621_s1 + $0x544] ss:$16 sps:$4 sm:$0xff]  }
  0x70   :  { %4885 = vmatprep.subr.bf16.mxu0 %v8383_v1  ;;  %5377 = vmatprep.subr.bf16.mxu1 %v8386_v2  ;;  %v8470_v1 = vld [vmem:[%s12621_s1 + $0x54c] ss:$16 sps:$4 sm:$0xff]   ;;  %v8465_v2 = vld [vmem:[%s12621_s1 + $0x540] ss:$16 sps:$4 sm:$0xff]  }
  0x73   :  { %4886 = vmatpush1.bf16.msra.mxu0 %v8381_v3  ;;  %5378 = vmatpush1.bf16.msra.mxu1 %v8384_v4  ;;  %v8468_v3 = vld [vmem:[%s12621_s1 + $0x548] ss:$16 sps:$4 sm:$0xff]   ;;  %v8473_v4 = vld [vmem:[%s12621_s1 + $0x564] ss:$16 sps:$4 sm:$0xff]  }
  0x74   :  { %4887 = vmatprep.subr.bf16.mxu0 %v8389_v5  ;;  %5379 = vmatprep.subr.bf16.mxu1 %v8392_v6  ;;  %v8476_v5 = vld [vmem:[%s12621_s1 + $0x56c] ss:$16 sps:$4 sm:$0xff]   ;;  %v8471_v6 = vld [vmem:[%s12621_s1 + $0x560] ss:$16 sps:$4 sm:$0xff]  }
  0x77   :  { %4888 = vmatpush1.bf16.msra.mxu0 %v8387_v7  ;;  %5380 = vmatpush1.bf16.msra.mxu1 %v8390_v8  ;;  %v8474_v7 = vld [vmem:[%s12621_s1 + $0x568] ss:$16 sps:$4 sm:$0xff]   ;;  %v8479_v8 = vld [vmem:[%s12621_s1 + $0x584] ss:$16 sps:$4 sm:$0xff]  }
  0x78   :  { %4889 = vmatprep.subr.bf16.mxu0 %v8395_v10  ;;  %5381 = vmatprep.subr.bf16.mxu1 %v8398_v11  ;;  %v8482_v10 = vld [vmem:[%s12621_s1 + $0x58c] ss:$16 sps:$4 sm:$0xff]   ;;  %v8477_v11 = vld [vmem:[%s12621_s1 + $0x580] ss:$16 sps:$4 sm:$0xff]  }
  0x7b   :  { %4890 = vmatpush1.bf16.msra.mxu0 %v8393_v12  ;;  %5382 = vmatpush1.bf16.msra.mxu1 %v8396_v13  ;;  %v8480_v12 = vld [vmem:[%s12621_s1 + $0x588] ss:$16 sps:$4 sm:$0xff]   ;;  %v8485_v13 = vld [vmem:[%s12621_s1 + $0x5a4] ss:$16 sps:$4 sm:$0xff]  }
  0x7c   :  { %4891 = vmatprep.subr.bf16.mxu0 %v8401_v14  ;;  %5383 = vmatprep.subr.bf16.mxu1 %v8404_v15  ;;  %v8488_v14 = vld [vmem:[%s12621_s1 + $0x5ac] ss:$16 sps:$4 sm:$0xff]   ;;  %v8483_v15 = vld [vmem:[%s12621_s1 + $0x5a0] ss:$16 sps:$4 sm:$0xff]  }
  0x7f   :  { %4892 = vmatpush1.bf16.msra.mxu0 %v8399_v16  ;;  %5384 = vmatpush1.bf16.msra.mxu1 %v8402_v17  ;;  %v8486_v16 = vld [vmem:[%s12621_s1 + $0x5a8] ss:$16 sps:$4 sm:$0xff]   ;;  %v8491_v17 = vld [vmem:[%s12621_s1 + $0x5c4] ss:$16 sps:$4 sm:$0xff]  }
  0x80   :  { %4902 = vmatprep.subr.bf16.mxu0 %v8407_v18  ;;  %5394 = vmatprep.subr.bf16.mxu1 %v8410_v19  ;;  %v8494_v18 = vld [vmem:[%s12621_s1 + $0x5cc] ss:$16 sps:$4 sm:$0xff]   ;;  %v57_v19 = vcombine.high %v10075_v23, %v10075_v23 }
  0x81   :  { %v8500_v23 = vld [vmem:[%s12621_s1 + $0x5ec] ss:$16 sps:$4 sm:$0xff]  }
  0x82   :  { %4894 = vmatmul.mubr.bf16.vlgmr.msra.gmra.mrb[0].mxu0 %v168_v21  ;;  %5386 = vmatmul.mubr.bf16.vlgmr.msra.gmra.mrb[0].mxu1 %v168_v21  ;;  %v8492_v21 = vld [vmem:[%s12621_s1 + $0x5c8] ss:$16 sps:$4 sm:$0xff]  }
  0x83   :  { %4903 = vmatpush1.bf16.msra.mxu0 %v8405_v20  ;;  %5395 = vmatpush1.bf16.msra.mxu1 %v8408_v22  ;;  %v8489_v20 = vld [vmem:[%s12621_s1 + $0x5c0] ss:$16 sps:$4 sm:$0xff]   ;;  %v8497_v22 = vld [vmem:[%s12621_s1 + $0x5e4] ss:$16 sps:$4 sm:$0xff]  }
  0x84   :  { %4904 = vmatprep.subr.bf16.mxu0 %v8413_v24  ;;  %5396 = vmatprep.subr.bf16.mxu1 %v8416_v9  ;;  %v10260_v24 = vrot.slane %v57_v19, %v9795_v49  ;;  %v8495_v9 = vld [vmem:[%s12621_s1 + $0x5e0] ss:$16 sps:$4 sm:$0xff]   ;;  %v8576_v19 = vld [vmem:[%s12621_s1 + $0x788] ss:$16 sps:$4 sm:$0xff]  }
  0x85   :  { %4934 = vmatprep.mubr.bf16.mxu0 %v171_v31  ;;  %5426 = vmatprep.mubr.bf16.mxu1 %v171_v31  ;;  %v8501_v31 = vld [vmem:[%s12621_s1 + $0x600] ss:$16 sps:$4 sm:$0xff]  }
  0x87   :  { %4905 = vmatpush1.bf16.msra.mxu0 %v8411_v27  ;;  %5397 = vmatpush1.bf16.msra.mxu1 %v8414_v28  ;;  %v8503_v27 = vld [vmem:[%s12621_s1 + $0x604] ss:$16 sps:$4 sm:$0xff]   ;;  %v8506_v28 = vld [vmem:[%s12621_s1 + $0x60c] ss:$16 sps:$4 sm:$0xff]  }
  0x88   :  { %4906 = vmatprep.subr.bf16.mxu0 %v8419_v29  ;;  %5398 = vmatprep.subr.bf16.mxu1 %v8422_v30  ;;  %v73_v29 = vcombine.high %v10260_v24, %v10260_v24  ;;  %v170_v30 = vpack.c.bf16 %v10085_v25, %v10085_v25  ;;  %v8512_v25 = vld [vmem:[%s12621_s1 + $0x62c] ss:$16 sps:$4 sm:$0xff]  }
  0x8b   :  { %4907 = vmatpush1.bf16.msra.mxu0 %v8417_v32  ;;  %5399 = vmatpush1.bf16.msra.mxu1 %v8420_v33  ;;  %v8504_v32 = vld [vmem:[%s12621_s1 + $0x608] ss:$16 sps:$4 sm:$0xff]   ;;  %v8509_v33 = vld [vmem:[%s12621_s1 + $0x624] ss:$16 sps:$4 sm:$0xff]  }
  0x8c   :  { %4908 = vmatprep.subr.bf16.mxu0 %v8425_v34  ;;  %5400 = vmatprep.subr.bf16.mxu1 %v8428_v35  ;;  %v173_v34 = vpack.c.bf16 %v73_v29, %v73_v29  ;;  %v8507_v35 = vld [vmem:[%s12621_s1 + $0x620] ss:$16 sps:$4 sm:$0xff]   ;;  %v8588_v29 = vld [vmem:[%s12621_s1 + $0x7c8] ss:$16 sps:$4 sm:$0xff]  }
  0x8f   :  { %4909 = vmatpush1.bf16.msra.mxu0 %v8423_v36  ;;  %5401 = vmatpush1.bf16.msra.mxu1 %v8426_v37  ;;  %v8510_v36 = vld [vmem:[%s12621_s1 + $0x628] ss:$16 sps:$4 sm:$0xff]   ;;  %v8515_v37 = vld [vmem:[%s12621_s1 + $0x644] ss:$16 sps:$4 sm:$0xff]  }
  0x90   :  { %4910 = vmatprep.subr.bf16.mxu0 %v8431_v38  ;;  %5402 = vmatprep.subr.bf16.mxu1 %v8434_v39  ;;  %v8518_v38 = vld [vmem:[%s12621_s1 + $0x64c] ss:$16 sps:$4 sm:$0xff]   ;;  %v8513_v39 = vld [vmem:[%s12621_s1 + $0x640] ss:$16 sps:$4 sm:$0xff]  }
  0x93   :  { %4911 = vmatpush1.bf16.msra.mxu0 %v8429_v40  ;;  %5403 = vmatpush1.bf16.msra.mxu1 %v8432_v41  ;;  %v8516_v40 = vld [vmem:[%s12621_s1 + $0x648] ss:$16 sps:$4 sm:$0xff]   ;;  %v8521_v41 = vld [vmem:[%s12621_s1 + $0x664] ss:$16 sps:$4 sm:$0xff]  }
  0x94   :  { %4912 = vmatprep.subr.bf16.mxu0 %v8437_v42  ;;  %5404 = vmatprep.subr.bf16.mxu1 %v8440_v44  ;;  %v8524_v42 = vld [vmem:[%s12621_s1 + $0x66c] ss:$16 sps:$4 sm:$0xff]   ;;  %v8519_v44 = vld [vmem:[%s12621_s1 + $0x660] ss:$16 sps:$4 sm:$0xff]  }
  0x97   :  { %4913 = vmatpush1.bf16.msra.mxu0 %v8435_v45  ;;  %5405 = vmatpush1.bf16.msra.mxu1 %v8438_v46  ;;  %v8522_v45 = vld [vmem:[%s12621_s1 + $0x668] ss:$16 sps:$4 sm:$0xff]   ;;  %v8527_v46 = vld [vmem:[%s12621_s1 + $0x684] ss:$16 sps:$4 sm:$0xff]  }
  0x98   :  { %4914 = vmatprep.subr.bf16.mxu0 %v8443_v47  ;;  %5406 = vmatprep.subr.bf16.mxu1 %v8446_v48  ;;  %v8530_v47 = vld [vmem:[%s12621_s1 + $0x68c] ss:$16 sps:$4 sm:$0xff]   ;;  %v8525_v48 = vld [vmem:[%s12621_s1 + $0x680] ss:$16 sps:$4 sm:$0xff]  }
  0x9b   :  { %4915 = vmatpush1.bf16.msra.mxu0 %v8441_v50  ;;  %5407 = vmatpush1.bf16.msra.mxu1 %v8444_v51  ;;  %v8528_v50 = vld [vmem:[%s12621_s1 + $0x688] ss:$16 sps:$4 sm:$0xff]   ;;  %v8533_v51 = vld [vmem:[%s12621_s1 + $0x6a4] ss:$16 sps:$4 sm:$0xff]  }
  0x9c   :  { %4916 = vmatprep.subr.bf16.mxu0 %v8449_v52  ;;  %5408 = vmatprep.subr.bf16.mxu1 %v8452_v53  ;;  %v8536_v52 = vld [vmem:[%s12621_s1 + $0x6ac] ss:$16 sps:$4 sm:$0xff]   ;;  %v8531_v53 = vld [vmem:[%s12621_s1 + $0x6a0] ss:$16 sps:$4 sm:$0xff]  }
  0x9f   :  { %4917 = vmatpush1.bf16.msra.mxu0 %v8447_v54  ;;  %5409 = vmatpush1.bf16.msra.mxu1 %v8450_v55  ;;  %v8534_v54 = vld [vmem:[%s12621_s1 + $0x6a8] ss:$16 sps:$4 sm:$0xff]   ;;  %v8539_v55 = vld [vmem:[%s12621_s1 + $0x6c4] ss:$16 sps:$4 sm:$0xff]  }
  0xa0   :  { %4918 = vmatprep.subr.bf16.mxu0 %v8455_v56  ;;  %5410 = vmatprep.subr.bf16.mxu1 %v8458_v57  ;;  %v8542_v56 = vld [vmem:[%s12621_s1 + $0x6cc] ss:$16 sps:$4 sm:$0xff]   ;;  %v8537_v57 = vld [vmem:[%s12621_s1 + $0x6c0] ss:$16 sps:$4 sm:$0xff]  }
  0xa3   :  { %4919 = vmatpush1.bf16.msra.mxu0 %v8453_v58  ;;  %5411 = vmatpush1.bf16.msra.mxu1 %v8456_v59  ;;  %v8540_v58 = vld [vmem:[%s12621_s1 + $0x6c8] ss:$16 sps:$4 sm:$0xff]   ;;  %v8545_v59 = vld [vmem:[%s12621_s1 + $0x6e4] ss:$16 sps:$4 sm:$0xff]  }
  0xa4   :  { %4920 = vmatprep.subr.bf16.mxu0 %v8461_v60  ;;  %5412 = vmatprep.subr.bf16.mxu1 %v8464_v61  ;;  %v8548_v60 = vld [vmem:[%s12621_s1 + $0x6ec] ss:$16 sps:$4 sm:$0xff]   ;;  %v8543_v61 = vld [vmem:[%s12621_s1 + $0x6e0] ss:$16 sps:$4 sm:$0xff]  }
  0xa7   :  { %4921 = vmatpush1.bf16.msra.mxu0 %v8459_v62  ;;  %5413 = vmatpush1.bf16.msra.mxu1 %v8462_v63  ;;  %v8546_v62 = vld [vmem:[%s12621_s1 + $0x6e8] ss:$16 sps:$4 sm:$0xff]   ;;  %v8551_v63 = vld [vmem:[%s12621_s1 + $0x704] ss:$16 sps:$4 sm:$0xff]  }
  0xa8   :  { %4922 = vmatprep.subr.bf16.mxu0 %v8467_v0  ;;  %5414 = vmatprep.subr.bf16.mxu1 %v8470_v1  ;;  %v8554_v0 = vld [vmem:[%s12621_s1 + $0x70c] ss:$16 sps:$4 sm:$0xff]   ;;  %v8549_v1 = vld [vmem:[%s12621_s1 + $0x700] ss:$16 sps:$4 sm:$0xff]  }
  0xab   :  { %4923 = vmatpush1.bf16.msra.mxu0 %v8465_v2  ;;  %5415 = vmatpush1.bf16.msra.mxu1 %v8468_v3  ;;  %v8552_v2 = vld [vmem:[%s12621_s1 + $0x708] ss:$16 sps:$4 sm:$0xff]   ;;  %v8557_v3 = vld [vmem:[%s12621_s1 + $0x724] ss:$16 sps:$4 sm:$0xff]  }
  0xac   :  { %4924 = vmatprep.subr.bf16.mxu0 %v8473_v4  ;;  %5416 = vmatprep.subr.bf16.mxu1 %v8476_v5  ;;  %v8560_v4 = vld [vmem:[%s12621_s1 + $0x72c] ss:$16 sps:$4 sm:$0xff]   ;;  %v8555_v5 = vld [vmem:[%s12621_s1 + $0x720] ss:$16 sps:$4 sm:$0xff]  }
  0xaf   :  { %4925 = vmatpush1.bf16.msra.mxu0 %v8471_v6  ;;  %5417 = vmatpush1.bf16.msra.mxu1 %v8474_v7  ;;  %v8558_v6 = vld [vmem:[%s12621_s1 + $0x728] ss:$16 sps:$4 sm:$0xff]   ;;  %v8563_v7 = vld [vmem:[%s12621_s1 + $0x744] ss:$16 sps:$4 sm:$0xff]  }
  0xb0   :  { %4926 = vmatprep.subr.bf16.mxu0 %v8479_v8  ;;  %5418 = vmatprep.subr.bf16.mxu1 %v8482_v10  ;;  %v8566_v8 = vld [vmem:[%s12621_s1 + $0x74c] ss:$16 sps:$4 sm:$0xff]   ;;  %v8561_v10 = vld [vmem:[%s12621_s1 + $0x740] ss:$16 sps:$4 sm:$0xff]  }
  0xb3   :  { %4927 = vmatpush1.bf16.msra.mxu0 %v8477_v11  ;;  %5419 = vmatpush1.bf16.msra.mxu1 %v8480_v12  ;;  %v8564_v11 = vld [vmem:[%s12621_s1 + $0x748] ss:$16 sps:$4 sm:$0xff]   ;;  %v8569_v12 = vld [vmem:[%s12621_s1 + $0x764] ss:$16 sps:$4 sm:$0xff]  }
  0xb4   :  { %4928 = vmatprep.subr.bf16.mxu0 %v8485_v13  ;;  %5420 = vmatprep.subr.bf16.mxu1 %v8488_v14  ;;  %v8572_v13 = vld [vmem:[%s12621_s1 + $0x76c] ss:$16 sps:$4 sm:$0xff]   ;;  %v8567_v14 = vld [vmem:[%s12621_s1 + $0x760] ss:$16 sps:$4 sm:$0xff]  }
  0xb7   :  { %4929 = vmatpush1.bf16.msra.mxu0 %v8483_v15  ;;  %5421 = vmatpush1.bf16.msra.mxu1 %v8486_v16  ;;  %v8570_v15 = vld [vmem:[%s12621_s1 + $0x768] ss:$16 sps:$4 sm:$0xff]   ;;  %v8575_v16 = vld [vmem:[%s12621_s1 + $0x784] ss:$16 sps:$4 sm:$0xff]  }
  0xb8   :  { %4930 = vmatprep.subr.bf16.mxu0 %v8491_v17  ;;  %5422 = vmatprep.subr.bf16.mxu1 %v8494_v18  ;;  %v8578_v17 = vld [vmem:[%s12621_s1 + $0x78c] ss:$16 sps:$4 sm:$0xff]   ;;  %v8573_v18 = vld [vmem:[%s12621_s1 + $0x780] ss:$16 sps:$4 sm:$0xff]  }
  0xbb   :  { %4931 = vmatpush1.bf16.msra.mxu0 %v8489_v20  ;;  %5423 = vmatpush1.bf16.msra.mxu1 %v8492_v21  ;;  %v8581_v20 = vld [vmem:[%s12621_s1 + $0x7a4] ss:$16 sps:$4 sm:$0xff]   ;;  %v8584_v21 = vld [vmem:[%s12621_s1 + $0x7ac] ss:$16 sps:$4 sm:$0xff]  }
  0xbc   :  { %4932 = vmatprep.subr.bf16.mxu0 %v8497_v22  ;;  %5424 = vmatprep.subr.bf16.mxu1 %v8500_v23  ;;  %v8579_v22 = vld [vmem:[%s12621_s1 + $0x7a0] ss:$16 sps:$4 sm:$0xff]   ;;  %v8582_v23 = vld [vmem:[%s12621_s1 + $0x7a8] ss:$16 sps:$4 sm:$0xff]  }
  0xbf   :  { %4933 = vmatpush1.bf16.msra.mxu0 %v8495_v9  ;;  %5425 = vmatpush1.bf16.msra.mxu1 %v8498_v26  ;;  %v8587_v9 = vld [vmem:[%s12621_s1 + $0x7c4] ss:$16 sps:$4 sm:$0xff]   ;;  %v8590_v26 = vld [vmem:[%s12621_s1 + $0x7cc] ss:$16 sps:$4 sm:$0xff]  }
  0xc0   :  { %4943 = vmatprep.subr.bf16.mxu0 %v8503_v27  ;;  %5435 = vmatprep.subr.bf16.mxu1 %v8506_v28  ;;  %v8585_v27 = vld [vmem:[%s12621_s1 + $0x7c0] ss:$16 sps:$4 sm:$0xff]  }
  0xc1   :  { %v10452_v28 = vld [vmem:[%s12620_s0 + $0x10] sm:$0xff] }
  0xc2   :  { %4935 = vmatmul.mubr.bf16.vlgmr.msra.gmra.mrb[0].mxu0 %v170_v30  ;;  %5427 = vmatmul.mubr.bf16.vlgmr.msra.gmra.mrb[0].mxu1 %v170_v30  ;;  %v8593_v30 = vld [vmem:[%s12621_s1 + $0x7e4] ss:$16 sps:$4 sm:$0xff]  }
  0xc3   :  { %4944 = vmatpush1.bf16.msra.mxu0 %v8501_v31  ;;  %5436 = vmatpush1.bf16.msra.mxu1 %v8504_v32  ;;  %v8596_v31 = vld [vmem:[%s12621_s1 + $0x7ec] ss:$16 sps:$4 sm:$0xff]   ;;  %v10465_v32 = vrot.slane %v10452_v28, %v9795_v49 }
  0xc4   :  { %4945 = vmatprep.subr.bf16.mxu0 %v8509_v33  ;;  %5437 = vmatprep.subr.bf16.mxu1 %v8512_v25  ;;  %v8591_v33 = vld [vmem:[%s12621_s1 + $0x7e0] ss:$16 sps:$4 sm:$0xff]   ;;  %v8594_v25 = vld [vmem:[%s12621_s1 + $0x7e8] ss:$16 sps:$4 sm:$0xff]  }
  0xc5   :  { %4975 = vmatprep.mubr.bf16.mxu0 %v173_v34  ;;  %5467 = vmatprep.mubr.bf16.mxu1 %v173_v34  ;;  %v8600_v34 = vld [vmem:[%s12621_s1 + $0x804] ss:$16 sps:$4 sm:$0xff]  }
  0xc7   :  { %4946 = vmatpush1.bf16.msra.mxu0 %v8507_v35  ;;  %5438 = vmatpush1.bf16.msra.mxu1 %v8510_v36  ;;  %v8603_v35 = vld [vmem:[%s12621_s1 + $0x80c] ss:$16 sps:$4 sm:$0xff]   ;;  %v89_v36 = vcombine.high %v10465_v32, %v10465_v32 }
  0xc8   :  { %4947 = vmatprep.subr.bf16.mxu0 %v8515_v37  ;;  %5439 = vmatprep.subr.bf16.mxu1 %v8518_v38  ;;  %v8598_v37 = vld [vmem:[%s12621_s1 + $0x800] ss:$16 sps:$4 sm:$0xff]   ;;  %v172_v38 = vpack.c.bf16 %v10260_v24, %v10260_v24 }
  0xc9   :  { %v8604_v24 = vld [vmem:[%s12621_s1 + $0x820] ss:$16 sps:$4 sm:$0xff]  }
  0xcb   :  { %4948 = vmatpush1.bf16.msra.mxu0 %v8513_v39  ;;  %5440 = vmatpush1.bf16.msra.mxu1 %v8516_v40  ;;  %v8601_v39 = vld [vmem:[%s12621_s1 + $0x808] ss:$16 sps:$4 sm:$0xff]   ;;  %v8606_v40 = vld [vmem:[%s12621_s1 + $0x824] ss:$16 sps:$4 sm:$0xff]  }
  0xcc   :  { %4949 = vmatprep.subr.bf16.mxu0 %v8521_v41  ;;  %5441 = vmatprep.subr.bf16.mxu1 %v8524_v42  ;;  %v8609_v41 = vld [vmem:[%s12621_s1 + $0x82c] ss:$16 sps:$4 sm:$0xff]   ;;  %v175_v42 = vpack.c.bf16 %v89_v36, %v89_v36  ;;  %v8682_v36 = vld [vmem:[%s12621_s1 + $0x9c0] ss:$16 sps:$4 sm:$0xff]  }
  0xcf   :  { %4950 = vmatpush1.bf16.msra.mxu0 %v8519_v44  ;;  %5442 = vmatpush1.bf16.msra.mxu1 %v8522_v45  ;;  %v8607_v44 = vld [vmem:[%s12621_s1 + $0x828] ss:$16 sps:$4 sm:$0xff]   ;;  %v8612_v45 = vld [vmem:[%s12621_s1 + $0x844] ss:$16 sps:$4 sm:$0xff]  }
  0xd0   :  { %4951 = vmatprep.subr.bf16.mxu0 %v8527_v46  ;;  %5443 = vmatprep.subr.bf16.mxu1 %v8530_v47  ;;  %v8615_v46 = vld [vmem:[%s12621_s1 + $0x84c] ss:$16 sps:$4 sm:$0xff]   ;;  %v8610_v47 = vld [vmem:[%s12621_s1 + $0x840] ss:$16 sps:$4 sm:$0xff]  }
  0xd3   :  { %4952 = vmatpush1.bf16.msra.mxu0 %v8525_v48  ;;  %5444 = vmatpush1.bf16.msra.mxu1 %v8528_v50  ;;  %v8613_v48 = vld [vmem:[%s12621_s1 + $0x848] ss:$16 sps:$4 sm:$0xff]   ;;  %v8618_v50 = vld [vmem:[%s12621_s1 + $0x864] ss:$16 sps:$4 sm:$0xff]  }
  0xd4   :  { %4953 = vmatprep.subr.bf16.mxu0 %v8533_v51  ;;  %5445 = vmatprep.subr.bf16.mxu1 %v8536_v52  ;;  %v8621_v51 = vld [vmem:[%s12621_s1 + $0x86c] ss:$16 sps:$4 sm:$0xff]   ;;  %v8616_v52 = vld [vmem:[%s12621_s1 + $0x860] ss:$16 sps:$4 sm:$0xff]  }
  0xd7   :  { %4954 = vmatpush1.bf16.msra.mxu0 %v8531_v53  ;;  %5446 = vmatpush1.bf16.msra.mxu1 %v8534_v54  ;;  %v8619_v53 = vld [vmem:[%s12621_s1 + $0x868] ss:$16 sps:$4 sm:$0xff]   ;;  %v8624_v54 = vld [vmem:[%s12621_s1 + $0x884] ss:$16 sps:$4 sm:$0xff]  }
  0xd8   :  { %4955 = vmatprep.subr.bf16.mxu0 %v8539_v55  ;;  %5447 = vmatprep.subr.bf16.mxu1 %v8542_v56  ;;  %v8627_v55 = vld [vmem:[%s12621_s1 + $0x88c] ss:$16 sps:$4 sm:$0xff]   ;;  %v8622_v56 = vld [vmem:[%s12621_s1 + $0x880] ss:$16 sps:$4 sm:$0xff]  }
  0xdb   :  { %4956 = vmatpush1.bf16.msra.mxu0 %v8537_v57  ;;  %5448 = vmatpush1.bf16.msra.mxu1 %v8540_v58  ;;  %v8625_v57 = vld [vmem:[%s12621_s1 + $0x888] ss:$16 sps:$4 sm:$0xff]   ;;  %v8630_v58 = vld [vmem:[%s12621_s1 + $0x8a4] ss:$16 sps:$4 sm:$0xff]  }
  0xdc   :  { %4957 = vmatprep.subr.bf16.mxu0 %v8545_v59  ;;  %5449 = vmatprep.subr.bf16.mxu1 %v8548_v60  ;;  %v8633_v59 = vld [vmem:[%s12621_s1 + $0x8ac] ss:$16 sps:$4 sm:$0xff]   ;;  %v8628_v60 = vld [vmem:[%s12621_s1 + $0x8a0] ss:$16 sps:$4 sm:$0xff]  }
  0xdf   :  { %4958 = vmatpush1.bf16.msra.mxu0 %v8543_v61  ;;  %5450 = vmatpush1.bf16.msra.mxu1 %v8546_v62  ;;  %v8631_v61 = vld [vmem:[%s12621_s1 + $0x8a8] ss:$16 sps:$4 sm:$0xff]   ;;  %v8636_v62 = vld [vmem:[%s12621_s1 + $0x8c4] ss:$16 sps:$4 sm:$0xff]  }
  0xe0   :  { %4959 = vmatprep.subr.bf16.mxu0 %v8551_v63  ;;  %5451 = vmatprep.subr.bf16.mxu1 %v8554_v0  ;;  %v8639_v63 = vld [vmem:[%s12621_s1 + $0x8cc] ss:$16 sps:$4 sm:$0xff]   ;;  %v8634_v0 = vld [vmem:[%s12621_s1 + $0x8c0] ss:$16 sps:$4 sm:$0xff]  }
  0xe3   :  { %4960 = vmatpush1.bf16.msra.mxu0 %v8549_v1  ;;  %5452 = vmatpush1.bf16.msra.mxu1 %v8552_v2  ;;  %v8637_v1 = vld [vmem:[%s12621_s1 + $0x8c8] ss:$16 sps:$4 sm:$0xff]   ;;  %v8642_v2 = vld [vmem:[%s12621_s1 + $0x8e4] ss:$16 sps:$4 sm:$0xff]  }
  0xe4   :  { %4961 = vmatprep.subr.bf16.mxu0 %v8557_v3  ;;  %5453 = vmatprep.subr.bf16.mxu1 %v8560_v4  ;;  %v8645_v3 = vld [vmem:[%s12621_s1 + $0x8ec] ss:$16 sps:$4 sm:$0xff]   ;;  %v8640_v4 = vld [vmem:[%s12621_s1 + $0x8e0] ss:$16 sps:$4 sm:$0xff]  }
  0xe7   :  { %4962 = vmatpush1.bf16.msra.mxu0 %v8555_v5  ;;  %5454 = vmatpush1.bf16.msra.mxu1 %v8558_v6  ;;  %v8643_v5 = vld [vmem:[%s12621_s1 + $0x8e8] ss:$16 sps:$4 sm:$0xff]   ;;  %v8648_v6 = vld [vmem:[%s12621_s1 + $0x904] ss:$16 sps:$4 sm:$0xff]  }
  0xe8   :  { %4963 = vmatprep.subr.bf16.mxu0 %v8563_v7  ;;  %5455 = vmatprep.subr.bf16.mxu1 %v8566_v8  ;;  %v8651_v7 = vld [vmem:[%s12621_s1 + $0x90c] ss:$16 sps:$4 sm:$0xff]   ;;  %v8646_v8 = vld [vmem:[%s12621_s1 + $0x900] ss:$16 sps:$4 sm:$0xff]  }
  0xeb   :  { %4964 = vmatpush1.bf16.msra.mxu0 %v8561_v10  ;;  %5456 = vmatpush1.bf16.msra.mxu1 %v8564_v11  ;;  %v8649_v10 = vld [vmem:[%s12621_s1 + $0x908] ss:$16 sps:$4 sm:$0xff]   ;;  %v8654_v11 = vld [vmem:[%s12621_s1 + $0x924] ss:$16 sps:$4 sm:$0xff]  }
  0xec   :  { %4965 = vmatprep.subr.bf16.mxu0 %v8569_v12  ;;  %5457 = vmatprep.subr.bf16.mxu1 %v8572_v13  ;;  %v8657_v12 = vld [vmem:[%s12621_s1 + $0x92c] ss:$16 sps:$4 sm:$0xff]   ;;  %v8652_v13 = vld [vmem:[%s12621_s1 + $0x920] ss:$16 sps:$4 sm:$0xff]  }
  0xef   :  { %4966 = vmatpush1.bf16.msra.mxu0 %v8567_v14  ;;  %5458 = vmatpush1.bf16.msra.mxu1 %v8570_v15  ;;  %v8655_v14 = vld [vmem:[%s12621_s1 + $0x928] ss:$16 sps:$4 sm:$0xff]   ;;  %v8660_v15 = vld [vmem:[%s12621_s1 + $0x944] ss:$16 sps:$4 sm:$0xff]  }
  0xf0   :  { %4967 = vmatprep.subr.bf16.mxu0 %v8575_v16  ;;  %5459 = vmatprep.subr.bf16.mxu1 %v8578_v17  ;;  %v8663_v16 = vld [vmem:[%s12621_s1 + $0x94c] ss:$16 sps:$4 sm:$0xff]   ;;  %v8658_v17 = vld [vmem:[%s12621_s1 + $0x940] ss:$16 sps:$4 sm:$0xff]  }
  0xf3   :  { %4968 = vmatpush1.bf16.msra.mxu0 %v8573_v18  ;;  %5460 = vmatpush1.bf16.msra.mxu1 %v8576_v19  ;;  %v8661_v18 = vld [vmem:[%s12621_s1 + $0x948] ss:$16 sps:$4 sm:$0xff]   ;;  %v8666_v19 = vld [vmem:[%s12621_s1 + $0x964] ss:$16 sps:$4 sm:$0xff]  }
  0xf4   :  { %4969 = vmatprep.subr.bf16.mxu0 %v8581_v20  ;;  %5461 = vmatprep.subr.bf16.mxu1 %v8584_v21  ;;  %v8669_v20 = vld [vmem:[%s12621_s1 + $0x96c] ss:$16 sps:$4 sm:$0xff]   ;;  %v8664_v21 = vld [vmem:[%s12621_s1 + $0x960] ss:$16 sps:$4 sm:$0xff]  }
  0xf7   :  { %4970 = vmatpush1.bf16.msra.mxu0 %v8579_v22  ;;  %5462 = vmatpush1.bf16.msra.mxu1 %v8582_v23  ;;  %v8667_v22 = vld [vmem:[%s12621_s1 + $0x968] ss:$16 sps:$4 sm:$0xff]   ;;  %v8672_v23 = vld [vmem:[%s12621_s1 + $0x984] ss:$16 sps:$4 sm:$0xff]  }
  0xf8   :  { %4971 = vmatprep.subr.bf16.mxu0 %v8587_v9  ;;  %5463 = vmatprep.subr.bf16.mxu1 %v8590_v26  ;;  %v8675_v9 = vld [vmem:[%s12621_s1 + $0x98c] ss:$16 sps:$4 sm:$0xff]   ;;  %v8670_v26 = vld [vmem:[%s12621_s1 + $0x980] ss:$16 sps:$4 sm:$0xff]  }
  0xfb   :  { %4972 = vmatpush1.bf16.msra.mxu0 %v8585_v27  ;;  %5464 = vmatpush1.bf16.msra.mxu1 %v8588_v29  ;;  %v8673_v27 = vld [vmem:[%s12621_s1 + $0x988] ss:$16 sps:$4 sm:$0xff]   ;;  %v8678_v29 = vld [vmem:[%s12621_s1 + $0x9a4] ss:$16 sps:$4 sm:$0xff]  }
  0xfc   :  { %4973 = vmatprep.subr.bf16.mxu0 %v8593_v30  ;;  %5465 = vmatprep.subr.bf16.mxu1 %v8596_v31  ;;  %v8681_v30 = vld [vmem:[%s12621_s1 + $0x9ac] ss:$16 sps:$4 sm:$0xff]   ;;  %v8676_v31 = vld [vmem:[%s12621_s1 + $0x9a0] ss:$16 sps:$4 sm:$0xff]  }
  0xff   :  { %4974 = vmatpush1.bf16.msra.mxu0 %v8591_v33  ;;  %5466 = vmatpush1.bf16.msra.mxu1 %v8594_v25  ;;  %v8679_v33 = vld [vmem:[%s12621_s1 + $0x9a8] ss:$16 sps:$4 sm:$0xff]   ;;  %v8684_v25 = vld [vmem:[%s12621_s1 + $0x9c4] ss:$16 sps:$4 sm:$0xff]  }
 0x100   :  { %4984 = vmatprep.subr.bf16.mxu0 %v8600_v34  ;;  %5476 = vmatprep.subr.bf16.mxu1 %v8603_v35  ;;  %v8687_v34 = vld [vmem:[%s12621_s1 + $0x9cc] ss:$16 sps:$4 sm:$0xff]   ;;  %v74_v35 = vcombine.high %v10452_v28, %v10452_v28 }
 0x101   :  { %v8693_v28 = vld [vmem:[%s12621_s1 + $0x9ec] ss:$16 sps:$4 sm:$0xff]  }
 0x102   :  { %4976 = vmatmul.mubr.bf16.vlgmr.msra.gmra.mrb[0].mxu0 %v172_v38  ;;  %5468 = vmatmul.mubr.bf16.vlgmr.msra.gmra.mrb[0].mxu1 %v172_v38  ;;  %v8690_v38 = vld [vmem:[%s12621_s1 + $0x9e4] ss:$16 sps:$4 sm:$0xff]  }
 0x103   :  { %4985 = vmatpush1.bf16.msra.mxu0 %v8598_v37  ;;  %5477 = vmatpush1.bf16.msra.mxu1 %v8601_v39  ;;  %v8685_v37 = vld [vmem:[%s12621_s1 + $0x9c8] ss:$16 sps:$4 sm:$0xff]   ;;  %v10666_v39 = vrot.slane %v74_v35, %v9795_v49 }
 0x104   :  { %4986 = vmatprep.subr.bf16.mxu0 %v8606_v40  ;;  %5478 = vmatprep.subr.bf16.mxu1 %v8609_v41  ;;  %v8688_v40 = vld [vmem:[%s12621_s1 + $0x9e0] ss:$16 sps:$4 sm:$0xff]   ;;  %v8691_v41 = vld [vmem:[%s12621_s1 + $0x9e8] ss:$16 sps:$4 sm:$0xff]  }
 0x105   :  { %5016 = vmatprep.mubr.bf16.mxu0 %v175_v42  ;;  %5508 = vmatprep.mubr.bf16.mxu1 %v175_v42  ;;  %v8696_v42 = vld [vmem:[%s12621_s1 + $0xa04] ss:$16 sps:$4 sm:$0xff]   ;;  %v8769_v35 = vld [vmem:[%s12621_s1 + $0xb88] ss:$16 sps:$4 sm:$0xff]  }
 0x107   :  { %4987 = vmatpush1.bf16.msra.mxu0 %v8604_v24  ;;  %5479 = vmatpush1.bf16.msra.mxu1 %v8607_v44  ;;  %v8699_v24 = vld [vmem:[%s12621_s1 + $0xa0c] ss:$16 sps:$4 sm:$0xff]   ;;  %v90_v44 = vcombine.high %v10666_v39, %v10666_v39 }
 0x108   :  { %4988 = vmatprep.subr.bf16.mxu0 %v8612_v45  ;;  %5480 = vmatprep.subr.bf16.mxu1 %v8615_v46  ;;  %v174_v45 = vpack.c.bf16 %v10465_v32, %v10465_v32  ;;  %v8694_v46 = vld [vmem:[%s12621_s1 + $0xa00] ss:$16 sps:$4 sm:$0xff]   ;;  %v8705_v32 = vld [vmem:[%s12621_s1 + $0xa2c] ss:$16 sps:$4 sm:$0xff]  }
 0x10b   :  { %4989 = vmatpush1.bf16.msra.mxu0 %v8610_v47  ;;  %5481 = vmatpush1.bf16.msra.mxu1 %v8613_v48  ;;  %v8697_v47 = vld [vmem:[%s12621_s1 + $0xa08] ss:$16 sps:$4 sm:$0xff]   ;;  %v8702_v48 = vld [vmem:[%s12621_s1 + $0xa24] ss:$16 sps:$4 sm:$0xff]  }
 0x10c   :  { %4990 = vmatprep.subr.bf16.mxu0 %v8618_v50  ;;  %5482 = vmatprep.subr.bf16.mxu1 %v8621_v51  ;;  %v177_v50 = vpack.c.bf16 %v90_v44, %v90_v44  ;;  %v8700_v51 = vld [vmem:[%s12621_s1 + $0xa20] ss:$16 sps:$4 sm:$0xff]   ;;  %v8781_v44 = vld [vmem:[%s12621_s1 + $0xbc8] ss:$16 sps:$4 sm:$0xff]  }
 0x10f   :  { %4991 = vmatpush1.bf16.msra.mxu0 %v8616_v52  ;;  %5483 = vmatpush1.bf16.msra.mxu1 %v8619_v53  ;;  %v8703_v52 = vld [vmem:[%s12621_s1 + $0xa28] ss:$16 sps:$4 sm:$0xff]   ;;  %v8708_v53 = vld [vmem:[%s12621_s1 + $0xa44] ss:$16 sps:$4 sm:$0xff]  }
 0x110   :  { %4992 = vmatprep.subr.bf16.mxu0 %v8624_v54  ;;  %5484 = vmatprep.subr.bf16.mxu1 %v8627_v55  ;;  %v8711_v54 = vld [vmem:[%s12621_s1 + $0xa4c] ss:$16 sps:$4 sm:$0xff]   ;;  %v8706_v55 = vld [vmem:[%s12621_s1 + $0xa40] ss:$16 sps:$4 sm:$0xff]  }
 0x113   :  { %4993 = vmatpush1.bf16.msra.mxu0 %v8622_v56  ;;  %5485 = vmatpush1.bf16.msra.mxu1 %v8625_v57  ;;  %v8709_v56 = vld [vmem:[%s12621_s1 + $0xa48] ss:$16 sps:$4 sm:$0xff]   ;;  %v8714_v57 = vld [vmem:[%s12621_s1 + $0xa64] ss:$16 sps:$4 sm:$0xff]  }
 0x114   :  { %4994 = vmatprep.subr.bf16.mxu0 %v8630_v58  ;;  %5486 = vmatprep.subr.bf16.mxu1 %v8633_v59  ;;  %v8717_v58 = vld [vmem:[%s12621_s1 + $0xa6c] ss:$16 sps:$4 sm:$0xff]   ;;  %v8712_v59 = vld [vmem:[%s12621_s1 + $0xa60] ss:$16 sps:$4 sm:$0xff]  }
 0x117   :  { %4995 = vmatpush1.bf16.msra.mxu0 %v8628_v60  ;;  %5487 = vmatpush1.bf16.msra.mxu1 %v8631_v61  ;;  %v8715_v60 = vld [vmem:[%s12621_s1 + $0xa68] ss:$16 sps:$4 sm:$0xff]   ;;  %v8720_v61 = vld [vmem:[%s12621_s1 + $0xa84] ss:$16 sps:$4 sm:$0xff]  }
 0x118   :  { %4996 = vmatprep.subr.bf16.mxu0 %v8636_v62  ;;  %5488 = vmatprep.subr.bf16.mxu1 %v8639_v63  ;;  %v8723_v62 = vld [vmem:[%s12621_s1 + $0xa8c] ss:$16 sps:$4 sm:$0xff]   ;;  %v8718_v63 = vld [vmem:[%s12621_s1 + $0xa80] ss:$16 sps:$4 sm:$0xff]  }
 0x11b   :  { %4997 = vmatpush1.bf16.msra.mxu0 %v8634_v0  ;;  %5489 = vmatpush1.bf16.msra.mxu1 %v8637_v1  ;;  %v8721_v0 = vld [vmem:[%s12621_s1 + $0xa88] ss:$16 sps:$4 sm:$0xff]   ;;  %v8726_v1 = vld [vmem:[%s12621_s1 + $0xaa4] ss:$16 sps:$4 sm:$0xff]  }
 0x11c   :  { %4998 = vmatprep.subr.bf16.mxu0 %v8642_v2  ;;  %5490 = vmatprep.subr.bf16.mxu1 %v8645_v3  ;;  %v8729_v2 = vld [vmem:[%s12621_s1 + $0xaac] ss:$16 sps:$4 sm:$0xff]   ;;  %v8724_v3 = vld [vmem:[%s12621_s1 + $0xaa0] ss:$16 sps:$4 sm:$0xff]  }
 0x11f   :  { %4999 = vmatpush1.bf16.msra.mxu0 %v8640_v4  ;;  %5491 = vmatpush1.bf16.msra.mxu1 %v8643_v5  ;;  %v8727_v4 = vld [vmem:[%s12621_s1 + $0xaa8] ss:$16 sps:$4 sm:$0xff]   ;;  %v8732_v5 = vld [vmem:[%s12621_s1 + $0xac4] ss:$16 sps:$4 sm:$0xff]  }
 0x120   :  { %5000 = vmatprep.subr.bf16.mxu0 %v8648_v6  ;;  %5492 = vmatprep.subr.bf16.mxu1 %v8651_v7  ;;  %v8735_v6 = vld [vmem:[%s12621_s1 + $0xacc] ss:$16 sps:$4 sm:$0xff]   ;;  %v8730_v7 = vld [vmem:[%s12621_s1 + $0xac0] ss:$16 sps:$4 sm:$0xff]  }
 0x123   :  { %5001 = vmatpush1.bf16.msra.mxu0 %v8646_v8  ;;  %5493 = vmatpush1.bf16.msra.mxu1 %v8649_v10  ;;  %v8733_v8 = vld [vmem:[%s12621_s1 + $0xac8] ss:$16 sps:$4 sm:$0xff]   ;;  %v8738_v10 = vld [vmem:[%s12621_s1 + $0xae4] ss:$16 sps:$4 sm:$0xff]  }
 0x124   :  { %5002 = vmatprep.subr.bf16.mxu0 %v8654_v11  ;;  %5494 = vmatprep.subr.bf16.mxu1 %v8657_v12  ;;  %v8741_v11 = vld [vmem:[%s12621_s1 + $0xaec] ss:$16 sps:$4 sm:$0xff]   ;;  %v8736_v12 = vld [vmem:[%s12621_s1 + $0xae0] ss:$16 sps:$4 sm:$0xff]  }
 0x127   :  { %5003 = vmatpush1.bf16.msra.mxu0 %v8652_v13  ;;  %5495 = vmatpush1.bf16.msra.mxu1 %v8655_v14  ;;  %v8739_v13 = vld [vmem:[%s12621_s1 + $0xae8] ss:$16 sps:$4 sm:$0xff]   ;;  %v8744_v14 = vld [vmem:[%s12621_s1 + $0xb04] ss:$16 sps:$4 sm:$0xff]  }
 0x128   :  { %5004 = vmatprep.subr.bf16.mxu0 %v8660_v15  ;;  %5496 = vmatprep.subr.bf16.mxu1 %v8663_v16  ;;  %v8747_v15 = vld [vmem:[%s12621_s1 + $0xb0c] ss:$16 sps:$4 sm:$0xff]   ;;  %v8742_v16 = vld [vmem:[%s12621_s1 + $0xb00] ss:$16 sps:$4 sm:$0xff]  }
 0x12b   :  { %5005 = vmatpush1.bf16.msra.mxu0 %v8658_v17  ;;  %5497 = vmatpush1.bf16.msra.mxu1 %v8661_v18  ;;  %v8745_v17 = vld [vmem:[%s12621_s1 + $0xb08] ss:$16 sps:$4 sm:$0xff]   ;;  %v8750_v18 = vld [vmem:[%s12621_s1 + $0xb24] ss:$16 sps:$4 sm:$0xff]  }
 0x12c   :  { %5006 = vmatprep.subr.bf16.mxu0 %v8666_v19  ;;  %5498 = vmatprep.subr.bf16.mxu1 %v8669_v20  ;;  %v8753_v19 = vld [vmem:[%s12621_s1 + $0xb2c] ss:$16 sps:$4 sm:$0xff]   ;;  %v8748_v20 = vld [vmem:[%s12621_s1 + $0xb20] ss:$16 sps:$4 sm:$0xff]  }
 0x12f   :  { %5007 = vmatpush1.bf16.msra.mxu0 %v8664_v21  ;;  %5499 = vmatpush1.bf16.msra.mxu1 %v8667_v22  ;;  %v8751_v21 = vld [vmem:[%s12621_s1 + $0xb28] ss:$16 sps:$4 sm:$0xff]   ;;  %v8756_v22 = vld [vmem:[%s12621_s1 + $0xb44] ss:$16 sps:$4 sm:$0xff]  }
 0x130   :  { %5008 = vmatprep.subr.bf16.mxu0 %v8672_v23  ;;  %5500 = vmatprep.subr.bf16.mxu1 %v8675_v9  ;;  %v8759_v23 = vld [vmem:[%s12621_s1 + $0xb4c] ss:$16 sps:$4 sm:$0xff]   ;;  %v8754_v9 = vld [vmem:[%s12621_s1 + $0xb40] ss:$16 sps:$4 sm:$0xff]  }
 0x133   :  { %5009 = vmatpush1.bf16.msra.mxu0 %v8670_v26  ;;  %5501 = vmatpush1.bf16.msra.mxu1 %v8673_v27  ;;  %v8757_v26 = vld [vmem:[%s12621_s1 + $0xb48] ss:$16 sps:$4 sm:$0xff]   ;;  %v8762_v27 = vld [vmem:[%s12621_s1 + $0xb64] ss:$16 sps:$4 sm:$0xff]  }
 0x134   :  { %5010 = vmatprep.subr.bf16.mxu0 %v8678_v29  ;;  %5502 = vmatprep.subr.bf16.mxu1 %v8681_v30  ;;  %v8765_v29 = vld [vmem:[%s12621_s1 + $0xb6c] ss:$16 sps:$4 sm:$0xff]   ;;  %v8760_v30 = vld [vmem:[%s12621_s1 + $0xb60] ss:$16 sps:$4 sm:$0xff]  }
 0x137   :  { %5011 = vmatpush1.bf16.msra.mxu0 %v8676_v31  ;;  %5503 = vmatpush1.bf16.msra.mxu1 %v8679_v33  ;;  %v8763_v31 = vld [vmem:[%s12621_s1 + $0xb68] ss:$16 sps:$4 sm:$0xff]   ;;  %v8768_v33 = vld [vmem:[%s12621_s1 + $0xb84] ss:$16 sps:$4 sm:$0xff]  }
 0x138   :  { %5012 = vmatprep.subr.bf16.mxu0 %v8684_v25  ;;  %5504 = vmatprep.subr.bf16.mxu1 %v8687_v34  ;;  %v8771_v25 = vld [vmem:[%s12621_s1 + $0xb8c] ss:$16 sps:$4 sm:$0xff]   ;;  %v8766_v34 = vld [vmem:[%s12621_s1 + $0xb80] ss:$16 sps:$4 sm:$0xff]  }
 0x13b   :  { %5013 = vmatpush1.bf16.msra.mxu0 %v8682_v36  ;;  %5505 = vmatpush1.bf16.msra.mxu1 %v8685_v37  ;;  %v8774_v36 = vld [vmem:[%s12621_s1 + $0xba4] ss:$16 sps:$4 sm:$0xff]   ;;  %v8777_v37 = vld [vmem:[%s12621_s1 + $0xbac] ss:$16 sps:$4 sm:$0xff]  }
 0x13c   :  { %5014 = vmatprep.subr.bf16.mxu0 %v8690_v38  ;;  %5506 = vmatprep.subr.bf16.mxu1 %v8693_v28  ;;  %v8772_v38 = vld [vmem:[%s12621_s1 + $0xba0] ss:$16 sps:$4 sm:$0xff]   ;;  %v8775_v28 = vld [vmem:[%s12621_s1 + $0xba8] ss:$16 sps:$4 sm:$0xff]  }
 0x13f   :  { %5015 = vmatpush1.bf16.msra.mxu0 %v8688_v40  ;;  %5507 = vmatpush1.bf16.msra.mxu1 %v8691_v41  ;;  %v8780_v40 = vld [vmem:[%s12621_s1 + $0xbc4] ss:$16 sps:$4 sm:$0xff]   ;;  %v8783_v41 = vld [vmem:[%s12621_s1 + $0xbcc] ss:$16 sps:$4 sm:$0xff]  }
 0x140   :  { %5025 = vmatprep.subr.bf16.mxu0 %v8696_v42  ;;  %5517 = vmatprep.subr.bf16.mxu1 %v8699_v24  ;;  %v10855_v42 = vld [vmem:[%s12620_s0 + $0x18] sm:$0xff]  ;;  %v8778_v24 = vld [vmem:[%s12621_s1 + $0xbc0] ss:$16 sps:$4 sm:$0xff]  }
 0x142   :  { %5017 = vmatmul.mubr.bf16.vlgmr.msra.gmra.mrb[0].mxu0 %v174_v45  ;;  %5509 = vmatmul.mubr.bf16.vlgmr.msra.gmra.mrb[0].mxu1 %v174_v45  ;;  %v8786_v45 = vld [vmem:[%s12621_s1 + $0xbe4] ss:$16 sps:$4 sm:$0xff]  }
 0x143   :  { %5026 = vmatpush1.bf16.msra.mxu0 %v8694_v46  ;;  %5518 = vmatpush1.bf16.msra.mxu1 %v8697_v47  ;;  %v8789_v46 = vld [vmem:[%s12621_s1 + $0xbec] ss:$16 sps:$4 sm:$0xff]   ;;  %v10871_v47 = vrot.slane %v10855_v42, %v9795_v49 }
 0x144   :  { %5027 = vmatprep.subr.bf16.mxu0 %v8702_v48  ;;  %5519 = vmatprep.subr.bf16.mxu1 %v8705_v32  ;;  %v8784_v48 = vld [vmem:[%s12621_s1 + $0xbe0] ss:$16 sps:$4 sm:$0xff]   ;;  %v8787_v32 = vld [vmem:[%s12621_s1 + $0xbe8] ss:$16 sps:$4 sm:$0xff]  }
 0x145   :  { %5057 = vmatprep.mubr.bf16.mxu0 %v177_v50  ;;  %5549 = vmatprep.mubr.bf16.mxu1 %v177_v50  ;;  %v8793_v50 = vld [vmem:[%s12621_s1 + $0xc04] ss:$16 sps:$4 sm:$0xff]  }
 0x147   :  { %5028 = vmatpush1.bf16.msra.mxu0 %v8700_v51  ;;  %5520 = vmatpush1.bf16.msra.mxu1 %v8703_v52  ;;  %v8796_v51 = vld [vmem:[%s12621_s1 + $0xc0c] ss:$16 sps:$4 sm:$0xff]   ;;  %v106_v52 = vcombine.high %v10871_v47, %v10871_v47 }
 0x148   :  { %5029 = vmatprep.subr.bf16.mxu0 %v8708_v53  ;;  %5521 = vmatprep.subr.bf16.mxu1 %v8711_v54  ;;  %v176_v53 = vpack.c.bf16 %v10666_v39, %v10666_v39  ;;  %v8791_v54 = vld [vmem:[%s12621_s1 + $0xc00] ss:$16 sps:$4 sm:$0xff]   ;;  %v8802_v39 = vld [vmem:[%s12621_s1 + $0xc2c] ss:$16 sps:$4 sm:$0xff]  }
 0x14b   :  { %5030 = vmatpush1.bf16.msra.mxu0 %v8706_v55  ;;  %5522 = vmatpush1.bf16.msra.mxu1 %v8709_v56  ;;  %v8794_v55 = vld [vmem:[%s12621_s1 + $0xc08] ss:$16 sps:$4 sm:$0xff]   ;;  %v8799_v56 = vld [vmem:[%s12621_s1 + $0xc24] ss:$16 sps:$4 sm:$0xff]  }
 0x14c   :  { %5031 = vmatprep.subr.bf16.mxu0 %v8714_v57  ;;  %5523 = vmatprep.subr.bf16.mxu1 %v8717_v58  ;;  %v179_v57 = vpack.c.bf16 %v106_v52, %v106_v52  ;;  %v8797_v58 = vld [vmem:[%s12621_s1 + $0xc20] ss:$16 sps:$4 sm:$0xff]  }
 0x14d   :  { %v8875_v52 = vld [vmem:[%s12621_s1 + $0xdc0] ss:$16 sps:$4 sm:$0xff]  }
 0x14f   :  { %5032 = vmatpush1.bf16.msra.mxu0 %v8712_v59  ;;  %5524 = vmatpush1.bf16.msra.mxu1 %v8715_v60  ;;  %v8800_v59 = vld [vmem:[%s12621_s1 + $0xc28] ss:$16 sps:$4 sm:$0xff]   ;;  %v8805_v60 = vld [vmem:[%s12621_s1 + $0xc44] ss:$16 sps:$4 sm:$0xff]  }
 0x150   :  { %5033 = vmatprep.subr.bf16.mxu0 %v8720_v61  ;;  %5525 = vmatprep.subr.bf16.mxu1 %v8723_v62  ;;  %v8808_v61 = vld [vmem:[%s12621_s1 + $0xc4c] ss:$16 sps:$4 sm:$0xff]   ;;  %v8803_v62 = vld [vmem:[%s12621_s1 + $0xc40] ss:$16 sps:$4 sm:$0xff]  }
 0x153   :  { %5034 = vmatpush1.bf16.msra.mxu0 %v8718_v63  ;;  %5526 = vmatpush1.bf16.msra.mxu1 %v8721_v0  ;;  %v8806_v63 = vld [vmem:[%s12621_s1 + $0xc48] ss:$16 sps:$4 sm:$0xff]   ;;  %v8811_v0 = vld [vmem:[%s12621_s1 + $0xc64] ss:$16 sps:$4 sm:$0xff]  }
 0x154   :  { %5035 = vmatprep.subr.bf16.mxu0 %v8726_v1  ;;  %5527 = vmatprep.subr.bf16.mxu1 %v8729_v2  ;;  %v8814_v1 = vld [vmem:[%s12621_s1 + $0xc6c] ss:$16 sps:$4 sm:$0xff]   ;;  %v8809_v2 = vld [vmem:[%s12621_s1 + $0xc60] ss:$16 sps:$4 sm:$0xff]  }
 0x157   :  { %5036 = vmatpush1.bf16.msra.mxu0 %v8724_v3  ;;  %5528 = vmatpush1.bf16.msra.mxu1 %v8727_v4  ;;  %v8812_v3 = vld [vmem:[%s12621_s1 + $0xc68] ss:$16 sps:$4 sm:$0xff]   ;;  %v8817_v4 = vld [vmem:[%s12621_s1 + $0xc84] ss:$16 sps:$4 sm:$0xff]  }
 0x158   :  { %5037 = vmatprep.subr.bf16.mxu0 %v8732_v5  ;;  %5529 = vmatprep.subr.bf16.mxu1 %v8735_v6  ;;  %v8820_v5 = vld [vmem:[%s12621_s1 + $0xc8c] ss:$16 sps:$4 sm:$0xff]   ;;  %v8815_v6 = vld [vmem:[%s12621_s1 + $0xc80] ss:$16 sps:$4 sm:$0xff]  }
 0x15b   :  { %5038 = vmatpush1.bf16.msra.mxu0 %v8730_v7  ;;  %5530 = vmatpush1.bf16.msra.mxu1 %v8733_v8  ;;  %v8818_v7 = vld [vmem:[%s12621_s1 + $0xc88] ss:$16 sps:$4 sm:$0xff]   ;;  %v8823_v8 = vld [vmem:[%s12621_s1 + $0xca4] ss:$16 sps:$4 sm:$0xff]  }
 0x15c   :  { %5039 = vmatprep.subr.bf16.mxu0 %v8738_v10  ;;  %5531 = vmatprep.subr.bf16.mxu1 %v8741_v11  ;;  %v8826_v10 = vld [vmem:[%s12621_s1 + $0xcac] ss:$16 sps:$4 sm:$0xff]   ;;  %v8821_v11 = vld [vmem:[%s12621_s1 + $0xca0] ss:$16 sps:$4 sm:$0xff]  }
 0x15f   :  { %5040 = vmatpush1.bf16.msra.mxu0 %v8736_v12  ;;  %5532 = vmatpush1.bf16.msra.mxu1 %v8739_v13  ;;  %v8824_v12 = vld [vmem:[%s12621_s1 + $0xca8] ss:$16 sps:$4 sm:$0xff]   ;;  %v8829_v13 = vld [vmem:[%s12621_s1 + $0xcc4] ss:$16 sps:$4 sm:$0xff]  }
 0x160   :  { %5041 = vmatprep.subr.bf16.mxu0 %v8744_v14  ;;  %5533 = vmatprep.subr.bf16.mxu1 %v8747_v15  ;;  %v8832_v14 = vld [vmem:[%s12621_s1 + $0xccc] ss:$16 sps:$4 sm:$0xff]   ;;  %v8827_v15 = vld [vmem:[%s12621_s1 + $0xcc0] ss:$16 sps:$4 sm:$0xff]  }
 0x163   :  { %5042 = vmatpush1.bf16.msra.mxu0 %v8742_v16  ;;  %5534 = vmatpush1.bf16.msra.mxu1 %v8745_v17  ;;  %v8830_v16 = vld [vmem:[%s12621_s1 + $0xcc8] ss:$16 sps:$4 sm:$0xff]   ;;  %v8835_v17 = vld [vmem:[%s12621_s1 + $0xce4] ss:$16 sps:$4 sm:$0xff]  }
 0x164   :  { %5043 = vmatprep.subr.bf16.mxu0 %v8750_v18  ;;  %5535 = vmatprep.subr.bf16.mxu1 %v8753_v19  ;;  %v8838_v18 = vld [vmem:[%s12621_s1 + $0xcec] ss:$16 sps:$4 sm:$0xff]   ;;  %v8833_v19 = vld [vmem:[%s12621_s1 + $0xce0] ss:$16 sps:$4 sm:$0xff]  }
 0x167   :  { %5044 = vmatpush1.bf16.msra.mxu0 %v8748_v20  ;;  %5536 = vmatpush1.bf16.msra.mxu1 %v8751_v21  ;;  %v8836_v20 = vld [vmem:[%s12621_s1 + $0xce8] ss:$16 sps:$4 sm:$0xff]   ;;  %v8841_v21 = vld [vmem:[%s12621_s1 + $0xd04] ss:$16 sps:$4 sm:$0xff]  }
 0x168   :  { %5045 = vmatprep.subr.bf16.mxu0 %v8756_v22  ;;  %5537 = vmatprep.subr.bf16.mxu1 %v8759_v23  ;;  %v8844_v22 = vld [vmem:[%s12621_s1 + $0xd0c] ss:$16 sps:$4 sm:$0xff]   ;;  %v8839_v23 = vld [vmem:[%s12621_s1 + $0xd00] ss:$16 sps:$4 sm:$0xff]  }
 0x16b   :  { %5046 = vmatpush1.bf16.msra.mxu0 %v8754_v9  ;;  %5538 = vmatpush1.bf16.msra.mxu1 %v8757_v26  ;;  %v8842_v9 = vld [vmem:[%s12621_s1 + $0xd08] ss:$16 sps:$4 sm:$0xff]   ;;  %v8847_v26 = vld [vmem:[%s12621_s1 + $0xd24] ss:$16 sps:$4 sm:$0xff]  }
 0x16c   :  { %5047 = vmatprep.subr.bf16.mxu0 %v8762_v27  ;;  %5539 = vmatprep.subr.bf16.mxu1 %v8765_v29  ;;  %v8850_v27 = vld [vmem:[%s12621_s1 + $0xd2c] ss:$16 sps:$4 sm:$0xff]   ;;  %v8845_v29 = vld [vmem:[%s12621_s1 + $0xd20] ss:$16 sps:$4 sm:$0xff]  }
 0x16f   :  { %5048 = vmatpush1.bf16.msra.mxu0 %v8760_v30  ;;  %5540 = vmatpush1.bf16.msra.mxu1 %v8763_v31  ;;  %v8848_v30 = vld [vmem:[%s12621_s1 + $0xd28] ss:$16 sps:$4 sm:$0xff]   ;;  %v8853_v31 = vld [vmem:[%s12621_s1 + $0xd44] ss:$16 sps:$4 sm:$0xff]  }
 0x170   :  { %5049 = vmatprep.subr.bf16.mxu0 %v8768_v33  ;;  %5541 = vmatprep.subr.bf16.mxu1 %v8771_v25  ;;  %v8856_v33 = vld [vmem:[%s12621_s1 + $0xd4c] ss:$16 sps:$4 sm:$0xff]   ;;  %v8851_v25 = vld [vmem:[%s12621_s1 + $0xd40] ss:$16 sps:$4 sm:$0xff]  }
 0x173   :  { %5050 = vmatpush1.bf16.msra.mxu0 %v8766_v34  ;;  %5542 = vmatpush1.bf16.msra.mxu1 %v8769_v35  ;;  %v8854_v34 = vld [vmem:[%s12621_s1 + $0xd48] ss:$16 sps:$4 sm:$0xff]   ;;  %v8859_v35 = vld [vmem:[%s12621_s1 + $0xd64] ss:$16 sps:$4 sm:$0xff]  }
 0x174   :  { %5051 = vmatprep.subr.bf16.mxu0 %v8774_v36  ;;  %5543 = vmatprep.subr.bf16.mxu1 %v8777_v37  ;;  %v8862_v36 = vld [vmem:[%s12621_s1 + $0xd6c] ss:$16 sps:$4 sm:$0xff]   ;;  %v8857_v37 = vld [vmem:[%s12621_s1 + $0xd60] ss:$16 sps:$4 sm:$0xff]  }
 0x177   :  { %5052 = vmatpush1.bf16.msra.mxu0 %v8772_v38  ;;  %5544 = vmatpush1.bf16.msra.mxu1 %v8775_v28  ;;  %v8860_v38 = vld [vmem:[%s12621_s1 + $0xd68] ss:$16 sps:$4 sm:$0xff]   ;;  %v8865_v28 = vld [vmem:[%s12621_s1 + $0xd84] ss:$16 sps:$4 sm:$0xff]  }
 0x178   :  { %5053 = vmatprep.subr.bf16.mxu0 %v8780_v40  ;;  %5545 = vmatprep.subr.bf16.mxu1 %v8783_v41  ;;  %v8868_v40 = vld [vmem:[%s12621_s1 + $0xd8c] ss:$16 sps:$4 sm:$0xff]   ;;  %v8863_v41 = vld [vmem:[%s12621_s1 + $0xd80] ss:$16 sps:$4 sm:$0xff]  }
 0x17b   :  { %5054 = vmatpush1.bf16.msra.mxu0 %v8778_v24  ;;  %5546 = vmatpush1.bf16.msra.mxu1 %v8781_v44  ;;  %v8866_v24 = vld [vmem:[%s12621_s1 + $0xd88] ss:$16 sps:$4 sm:$0xff]   ;;  %v8871_v44 = vld [vmem:[%s12621_s1 + $0xda4] ss:$16 sps:$4 sm:$0xff]  }
 0x17c   :  { %5055 = vmatprep.subr.bf16.mxu0 %v8786_v45  ;;  %5547 = vmatprep.subr.bf16.mxu1 %v8789_v46  ;;  %v8874_v45 = vld [vmem:[%s12621_s1 + $0xdac] ss:$16 sps:$4 sm:$0xff]   ;;  %v8869_v46 = vld [vmem:[%s12621_s1 + $0xda0] ss:$16 sps:$4 sm:$0xff]  }
 0x17f   :  { %5056 = vmatpush1.bf16.msra.mxu0 %v8784_v48  ;;  %5548 = vmatpush1.bf16.msra.mxu1 %v8787_v32  ;;  %v8872_v48 = vld [vmem:[%s12621_s1 + $0xda8] ss:$16 sps:$4 sm:$0xff]   ;;  %v8877_v32 = vld [vmem:[%s12621_s1 + $0xdc4] ss:$16 sps:$4 sm:$0xff]  }
 0x180   :  { %5066 = vmatprep.subr.bf16.mxu0 %v8793_v50  ;;  %5558 = vmatprep.subr.bf16.mxu1 %v8796_v51  ;;  %v8880_v50 = vld [vmem:[%s12621_s1 + $0xdcc] ss:$16 sps:$4 sm:$0xff]   ;;  %v91_v51 = vcombine.high %v10855_v42, %v10855_v42 }
 0x181   :  { %v8886_v42 = vld [vmem:[%s12621_s1 + $0xdec] ss:$16 sps:$4 sm:$0xff]  }
 0x182   :  { %5058 = vmatmul.mubr.bf16.vlgmr.msra.gmra.mrb[0].mxu0 %v176_v53  ;;  %5550 = vmatmul.mubr.bf16.vlgmr.msra.gmra.mrb[0].mxu1 %v176_v53  ;;  %v8878_v53 = vld [vmem:[%s12621_s1 + $0xdc8] ss:$16 sps:$4 sm:$0xff]  }
 0x183   :  { %5067 = vmatpush1.bf16.msra.mxu0 %v8791_v54  ;;  %5559 = vmatpush1.bf16.msra.mxu1 %v8794_v55  ;;  %v8883_v54 = vld [vmem:[%s12621_s1 + $0xde4] ss:$16 sps:$4 sm:$0xff]   ;;  %v11072_v55 = vrot.slane %v91_v51, %v9795_v49  ;;  %v8962_v51 = vld [vmem:[%s12621_s1 + $0xf88] ss:$16 sps:$4 sm:$0xff]  }
 0x184   :  { %5068 = vmatprep.subr.bf16.mxu0 %v8799_v56  ;;  %5560 = vmatprep.subr.bf16.mxu1 %v8802_v39  ;;  %v8881_v56 = vld [vmem:[%s12621_s1 + $0xde0] ss:$16 sps:$4 sm:$0xff]   ;;  %v8884_v39 = vld [vmem:[%s12621_s1 + $0xde8] ss:$16 sps:$4 sm:$0xff]  }
 0x185   :  { %5098 = vmatprep.mubr.bf16.mxu0 %v179_v57  ;;  %5590 = vmatprep.mubr.bf16.mxu1 %v179_v57  ;;  %v8889_v57 = vld [vmem:[%s12621_s1 + $0xe04] ss:$16 sps:$4 sm:$0xff]  }
 0x187   :  { %5069 = vmatpush1.bf16.msra.mxu0 %v8797_v58  ;;  %5561 = vmatpush1.bf16.msra.mxu1 %v8800_v59  ;;  %v8892_v58 = vld [vmem:[%s12621_s1 + $0xe0c] ss:$16 sps:$4 sm:$0xff]   ;;  %v107_v59 = vcombine.high %v11072_v55, %v11072_v55 }
 0x188   :  { %5070 = vmatprep.subr.bf16.mxu0 %v8805_v60  ;;  %5562 = vmatprep.subr.bf16.mxu1 %v8808_v61  ;;  %v178_v60 = vpack.c.bf16 %v10871_v47, %v10871_v47  ;;  %v8887_v61 = vld [vmem:[%s12621_s1 + $0xe00] ss:$16 sps:$4 sm:$0xff]   ;;  %v8898_v47 = vld [vmem:[%s12621_s1 + $0xe2c] ss:$16 sps:$4 sm:$0xff]  }
 0x18b   :  { %5071 = vmatpush1.bf16.msra.mxu0 %v8803_v62  ;;  %5563 = vmatpush1.bf16.msra.mxu1 %v8806_v63  ;;  %v8890_v62 = vld [vmem:[%s12621_s1 + $0xe08] ss:$16 sps:$4 sm:$0xff]   ;;  %v8895_v63 = vld [vmem:[%s12621_s1 + $0xe24] ss:$16 sps:$4 sm:$0xff]  }
 0x18c   :  { %5072 = vmatprep.subr.bf16.mxu0 %v8811_v0  ;;  %5564 = vmatprep.subr.bf16.mxu1 %v8814_v1  ;;  %v181_v0 = vpack.c.bf16 %v107_v59, %v107_v59  ;;  %v8893_v1 = vld [vmem:[%s12621_s1 + $0xe20] ss:$16 sps:$4 sm:$0xff]   ;;  %v8974_v59 = vld [vmem:[%s12621_s1 + $0xfc8] ss:$16 sps:$4 sm:$0xff]  }
 0x18f   :  { %5073 = vmatpush1.bf16.msra.mxu0 %v8809_v2  ;;  %5565 = vmatpush1.bf16.msra.mxu1 %v8812_v3  ;;  %v8896_v2 = vld [vmem:[%s12621_s1 + $0xe28] ss:$16 sps:$4 sm:$0xff]   ;;  %v8901_v3 = vld [vmem:[%s12621_s1 + $0xe44] ss:$16 sps:$4 sm:$0xff]  }
 0x190   :  { %5074 = vmatprep.subr.bf16.mxu0 %v8817_v4  ;;  %5566 = vmatprep.subr.bf16.mxu1 %v8820_v5  ;;  %v8904_v4 = vld [vmem:[%s12621_s1 + $0xe4c] ss:$16 sps:$4 sm:$0xff]   ;;  %v8899_v5 = vld [vmem:[%s12621_s1 + $0xe40] ss:$16 sps:$4 sm:$0xff]  }
 0x193   :  { %5075 = vmatpush1.bf16.msra.mxu0 %v8815_v6  ;;  %5567 = vmatpush1.bf16.msra.mxu1 %v8818_v7  ;;  %v8902_v6 = vld [vmem:[%s12621_s1 + $0xe48] ss:$16 sps:$4 sm:$0xff]   ;;  %v8907_v7 = vld [vmem:[%s12621_s1 + $0xe64] ss:$16 sps:$4 sm:$0xff]  }
 0x194   :  { %5076 = vmatprep.subr.bf16.mxu0 %v8823_v8  ;;  %5568 = vmatprep.subr.bf16.mxu1 %v8826_v10  ;;  %v8910_v8 = vld [vmem:[%s12621_s1 + $0xe6c] ss:$16 sps:$4 sm:$0xff]   ;;  %v8905_v10 = vld [vmem:[%s12621_s1 + $0xe60] ss:$16 sps:$4 sm:$0xff]  }
 0x197   :  { %5077 = vmatpush1.bf16.msra.mxu0 %v8821_v11  ;;  %5569 = vmatpush1.bf16.msra.mxu1 %v8824_v12  ;;  %v8908_v11 = vld [vmem:[%s12621_s1 + $0xe68] ss:$16 sps:$4 sm:$0xff]   ;;  %v8913_v12 = vld [vmem:[%s12621_s1 + $0xe84] ss:$16 sps:$4 sm:$0xff]  }
 0x198   :  { %5078 = vmatprep.subr.bf16.mxu0 %v8829_v13  ;;  %5570 = vmatprep.subr.bf16.mxu1 %v8832_v14  ;;  %v8916_v13 = vld [vmem:[%s12621_s1 + $0xe8c] ss:$16 sps:$4 sm:$0xff]   ;;  %v8911_v14 = vld [vmem:[%s12621_s1 + $0xe80] ss:$16 sps:$4 sm:$0xff]  }
 0x19b   :  { %5079 = vmatpush1.bf16.msra.mxu0 %v8827_v15  ;;  %5571 = vmatpush1.bf16.msra.mxu1 %v8830_v16  ;;  %v8914_v15 = vld [vmem:[%s12621_s1 + $0xe88] ss:$16 sps:$4 sm:$0xff]   ;;  %v8919_v16 = vld [vmem:[%s12621_s1 + $0xea4] ss:$16 sps:$4 sm:$0xff]  }
 0x19c   :  { %5080 = vmatprep.subr.bf16.mxu0 %v8835_v17  ;;  %5572 = vmatprep.subr.bf16.mxu1 %v8838_v18  ;;  %v8922_v17 = vld [vmem:[%s12621_s1 + $0xeac] ss:$16 sps:$4 sm:$0xff]   ;;  %v8917_v18 = vld [vmem:[%s12621_s1 + $0xea0] ss:$16 sps:$4 sm:$0xff]  }
 0x19f   :  { %5081 = vmatpush1.bf16.msra.mxu0 %v8833_v19  ;;  %5573 = vmatpush1.bf16.msra.mxu1 %v8836_v20  ;;  %v8920_v19 = vld [vmem:[%s12621_s1 + $0xea8] ss:$16 sps:$4 sm:$0xff]   ;;  %v8925_v20 = vld [vmem:[%s12621_s1 + $0xec4] ss:$16 sps:$4 sm:$0xff]  }
 0x1a0   :  { %5082 = vmatprep.subr.bf16.mxu0 %v8841_v21  ;;  %5574 = vmatprep.subr.bf16.mxu1 %v8844_v22  ;;  %v8928_v21 = vld [vmem:[%s12621_s1 + $0xecc] ss:$16 sps:$4 sm:$0xff]   ;;  %v8923_v22 = vld [vmem:[%s12621_s1 + $0xec0] ss:$16 sps:$4 sm:$0xff]  }
 0x1a3   :  { %5083 = vmatpush1.bf16.msra.mxu0 %v8839_v23  ;;  %5575 = vmatpush1.bf16.msra.mxu1 %v8842_v9  ;;  %v8926_v23 = vld [vmem:[%s12621_s1 + $0xec8] ss:$16 sps:$4 sm:$0xff]   ;;  %v8931_v9 = vld [vmem:[%s12621_s1 + $0xee4] ss:$16 sps:$4 sm:$0xff]  }
 0x1a4   :  { %5084 = vmatprep.subr.bf16.mxu0 %v8847_v26  ;;  %5576 = vmatprep.subr.bf16.mxu1 %v8850_v27  ;;  %v8934_v26 = vld [vmem:[%s12621_s1 + $0xeec] ss:$16 sps:$4 sm:$0xff]   ;;  %v8929_v27 = vld [vmem:[%s12621_s1 + $0xee0] ss:$16 sps:$4 sm:$0xff]  }
 0x1a7   :  { %5085 = vmatpush1.bf16.msra.mxu0 %v8845_v29  ;;  %5577 = vmatpush1.bf16.msra.mxu1 %v8848_v30  ;;  %v8932_v29 = vld [vmem:[%s12621_s1 + $0xee8] ss:$16 sps:$4 sm:$0xff]   ;;  %v8937_v30 = vld [vmem:[%s12621_s1 + $0xf04] ss:$16 sps:$4 sm:$0xff]  }
 0x1a8   :  { %5086 = vmatprep.subr.bf16.mxu0 %v8853_v31  ;;  %5578 = vmatprep.subr.bf16.mxu1 %v8856_v33  ;;  %v8940_v31 = vld [vmem:[%s12621_s1 + $0xf0c] ss:$16 sps:$4 sm:$0xff]   ;;  %v8935_v33 = vld [vmem:[%s12621_s1 + $0xf00] ss:$16 sps:$4 sm:$0xff]  }
 0x1ab   :  { %5087 = vmatpush1.bf16.msra.mxu0 %v8851_v25  ;;  %5579 = vmatpush1.bf16.msra.mxu1 %v8854_v34  ;;  %v8938_v25 = vld [vmem:[%s12621_s1 + $0xf08] ss:$16 sps:$4 sm:$0xff]   ;;  %v8943_v34 = vld [vmem:[%s12621_s1 + $0xf24] ss:$16 sps:$4 sm:$0xff]  }
 0x1ac   :  { %5088 = vmatprep.subr.bf16.mxu0 %v8859_v35  ;;  %5580 = vmatprep.subr.bf16.mxu1 %v8862_v36  ;;  %v8946_v35 = vld [vmem:[%s12621_s1 + $0xf2c] ss:$16 sps:$4 sm:$0xff]   ;;  %v8941_v36 = vld [vmem:[%s12621_s1 + $0xf20] ss:$16 sps:$4 sm:$0xff]  }
 0x1af   :  { %5089 = vmatpush1.bf16.msra.mxu0 %v8857_v37  ;;  %5581 = vmatpush1.bf16.msra.mxu1 %v8860_v38  ;;  %v8944_v37 = vld [vmem:[%s12621_s1 + $0xf28] ss:$16 sps:$4 sm:$0xff]   ;;  %v8949_v38 = vld [vmem:[%s12621_s1 + $0xf44] ss:$16 sps:$4 sm:$0xff]  }
 0x1b0   :  { %5090 = vmatprep.subr.bf16.mxu0 %v8865_v28  ;;  %5582 = vmatprep.subr.bf16.mxu1 %v8868_v40  ;;  %v8952_v28 = vld [vmem:[%s12621_s1 + $0xf4c] ss:$16 sps:$4 sm:$0xff]   ;;  %v8947_v40 = vld [vmem:[%s12621_s1 + $0xf40] ss:$16 sps:$4 sm:$0xff]  }
 0x1b3   :  { %5091 = vmatpush1.bf16.msra.mxu0 %v8863_v41  ;;  %5583 = vmatpush1.bf16.msra.mxu1 %v8866_v24  ;;  %v8950_v41 = vld [vmem:[%s12621_s1 + $0xf48] ss:$16 sps:$4 sm:$0xff]   ;;  %v8955_v24 = vld [vmem:[%s12621_s1 + $0xf64] ss:$16 sps:$4 sm:$0xff]  }
 0x1b4   :  { %5092 = vmatprep.subr.bf16.mxu0 %v8871_v44  ;;  %5584 = vmatprep.subr.bf16.mxu1 %v8874_v45  ;;  %v8958_v44 = vld [vmem:[%s12621_s1 + $0xf6c] ss:$16 sps:$4 sm:$0xff]   ;;  %v8953_v45 = vld [vmem:[%s12621_s1 + $0xf60] ss:$16 sps:$4 sm:$0xff]  }
 0x1b7   :  { %5093 = vmatpush1.bf16.msra.mxu0 %v8869_v46  ;;  %5585 = vmatpush1.bf16.msra.mxu1 %v8872_v48  ;;  %v8956_v46 = vld [vmem:[%s12621_s1 + $0xf68] ss:$16 sps:$4 sm:$0xff]   ;;  %v8961_v48 = vld [vmem:[%s12621_s1 + $0xf84] ss:$16 sps:$4 sm:$0xff]  }
 0x1b8   :  { %5094 = vmatprep.subr.bf16.mxu0 %v8877_v32  ;;  %5586 = vmatprep.subr.bf16.mxu1 %v8880_v50  ;;  %v8964_v32 = vld [vmem:[%s12621_s1 + $0xf8c] ss:$16 sps:$4 sm:$0xff]   ;;  %v8959_v50 = vld [vmem:[%s12621_s1 + $0xf80] ss:$16 sps:$4 sm:$0xff]  }
 0x1bb   :  { %5095 = vmatpush1.bf16.msra.mxu0 %v8875_v52  ;;  %5587 = vmatpush1.bf16.msra.mxu1 %v8878_v53  ;;  %v8967_v52 = vld [vmem:[%s12621_s1 + $0xfa4] ss:$16 sps:$4 sm:$0xff]   ;;  %v8970_v53 = vld [vmem:[%s12621_s1 + $0xfac] ss:$16 sps:$4 sm:$0xff]  }
 0x1bc   :  { %5096 = vmatprep.subr.bf16.mxu0 %v8883_v54  ;;  %5588 = vmatprep.subr.bf16.mxu1 %v8886_v42  ;;  %v8965_v54 = vld [vmem:[%s12621_s1 + $0xfa0] ss:$16 sps:$4 sm:$0xff]   ;;  %v8968_v42 = vld [vmem:[%s12621_s1 + $0xfa8] ss:$16 sps:$4 sm:$0xff]  }
 0x1bf   :  { %5097 = vmatpush1.bf16.msra.mxu0 %v8881_v56  ;;  %5589 = vmatpush1.bf16.msra.mxu1 %v8884_v39  ;;  %v8973_v56 = vld [vmem:[%s12621_s1 + $0xfc4] ss:$16 sps:$4 sm:$0xff]   ;;  %v8976_v39 = vld [vmem:[%s12621_s1 + $0xfcc] ss:$16 sps:$4 sm:$0xff]  }
 0x1c0   :  { %5107 = vmatprep.subr.bf16.mxu0 %v8889_v57  ;;  %5599 = vmatprep.subr.bf16.mxu1 %v8892_v58  ;;  %v11261_v57 = vld [vmem:[%s12620_s0 + $0x20] sm:$0xff] }
 0x1c1   :  { %v8971_v58 = vld [vmem:[%s12621_s1 + $0xfc0] ss:$16 sps:$4 sm:$0xff]  }
 0x1c2   :  { %5099 = vmatmul.mubr.bf16.vlgmr.msra.gmra.mrb[0].mxu0 %v178_v60  ;;  %5591 = vmatmul.mubr.bf16.vlgmr.msra.gmra.mrb[0].mxu1 %v178_v60  ;;  %v8979_v60 = vld [vmem:[%s12621_s1 + $0xfe4] ss:$16 sps:$4 sm:$0xff]  }
 0x1c3   :  { %5108 = vmatpush1.bf16.msra.mxu0 %v8887_v61  ;;  %5600 = vmatpush1.bf16.msra.mxu1 %v8890_v62  ;;  %v8982_v61 = vld [vmem:[%s12621_s1 + $0xfec] ss:$16 sps:$4 sm:$0xff]   ;;  %v11277_v62 = vrot.slane %v11261_v57, %v9795_v49 }
 0x1c4   :  { %5109 = vmatprep.subr.bf16.mxu0 %v8895_v63  ;;  %5601 = vmatprep.subr.bf16.mxu1 %v8898_v47  ;;  %v8977_v63 = vld [vmem:[%s12621_s1 + $0xfe0] ss:$16 sps:$4 sm:$0xff]   ;;  %v8980_v47 = vld [vmem:[%s12621_s1 + $0xfe8] ss:$16 sps:$4 sm:$0xff]  }
 0x1c5   :  { %5139 = vmatprep.mubr.bf16.mxu0 %v181_v0  ;;  %5631 = vmatprep.mubr.bf16.mxu1 %v181_v0  ;;  %v8986_v0 = vld [vmem:[%s12621_s1 + $0x1004] ss:$16 sps:$4 sm:$0xff]  }
 0x1c7   :  { %5110 = vmatpush1.bf16.msra.mxu0 %v8893_v1  ;;  %5602 = vmatpush1.bf16.msra.mxu1 %v8896_v2  ;;  %v8989_v1 = vld [vmem:[%s12621_s1 + $0x100c] ss:$16 sps:$4 sm:$0xff]   ;;  %v123_v2 = vcombine.high %v11277_v62, %v11277_v62 }
 0x1c8   :  { %5111 = vmatprep.subr.bf16.mxu0 %v8901_v3  ;;  %5603 = vmatprep.subr.bf16.mxu1 %v8904_v4  ;;  %v180_v3 = vpack.c.bf16 %v11072_v55, %v11072_v55  ;;  %v8984_v4 = vld [vmem:[%s12621_s1 + $0x1000] ss:$16 sps:$4 sm:$0xff]   ;;  %v8995_v55 = vld [vmem:[%s12621_s1 + $0x102c] ss:$16 sps:$4 sm:$0xff]  }
 0x1cb   :  { %5112 = vmatpush1.bf16.msra.mxu0 %v8899_v5  ;;  %5604 = vmatpush1.bf16.msra.mxu1 %v8902_v6  ;;  %v8987_v5 = vld [vmem:[%s12621_s1 + $0x1008] ss:$16 sps:$4 sm:$0xff]   ;;  %v8992_v6 = vld [vmem:[%s12621_s1 + $0x1024] ss:$16 sps:$4 sm:$0xff]  }
 0x1cc   :  { %5113 = vmatprep.subr.bf16.mxu0 %v8907_v7  ;;  %5605 = vmatprep.subr.bf16.mxu1 %v8910_v8  ;;  %v183_v7 = vpack.c.bf16 %v123_v2, %v123_v2  ;;  %v8990_v8 = vld [vmem:[%s12621_s1 + $0x1020] ss:$16 sps:$4 sm:$0xff]  }
 0x1cf   :  { %5114 = vmatpush1.bf16.msra.mxu0 %v8905_v10  ;;  %5606 = vmatpush1.bf16.msra.mxu1 %v8908_v11  ;;  %v8993_v10 = vld [vmem:[%s12621_s1 + $0x1028] ss:$16 sps:$4 sm:$0xff]   ;;  %v8998_v11 = vld [vmem:[%s12621_s1 + $0x1044] ss:$16 sps:$4 sm:$0xff]  }
 0x1d0   :  { %5115 = vmatprep.subr.bf16.mxu0 %v8913_v12  ;;  %5607 = vmatprep.subr.bf16.mxu1 %v8916_v13  ;;  %v9001_v12 = vld [vmem:[%s12621_s1 + $0x104c] ss:$16 sps:$4 sm:$0xff]   ;;  %v8996_v13 = vld [vmem:[%s12621_s1 + $0x1040] ss:$16 sps:$4 sm:$0xff]  }
 0x1d3   :  { %5116 = vmatpush1.bf16.msra.mxu0 %v8911_v14  ;;  %5608 = vmatpush1.bf16.msra.mxu1 %v8914_v15  ;;  %v8999_v14 = vld [vmem:[%s12621_s1 + $0x1048] ss:$16 sps:$4 sm:$0xff]   ;;  %v9004_v15 = vld [vmem:[%s12621_s1 + $0x1064] ss:$16 sps:$4 sm:$0xff]  }
 0x1d4   :  { %5117 = vmatprep.subr.bf16.mxu0 %v8919_v16  ;;  %5609 = vmatprep.subr.bf16.mxu1 %v8922_v17  ;;  %v9007_v16 = vld [vmem:[%s12621_s1 + $0x106c] ss:$16 sps:$4 sm:$0xff]   ;;  %v9002_v17 = vld [vmem:[%s12621_s1 + $0x1060] ss:$16 sps:$4 sm:$0xff]  }
 0x1d7   :  { %5118 = vmatpush1.bf16.msra.mxu0 %v8917_v18  ;;  %5610 = vmatpush1.bf16.msra.mxu1 %v8920_v19  ;;  %v9005_v18 = vld [vmem:[%s12621_s1 + $0x1068] ss:$16 sps:$4 sm:$0xff]   ;;  %v9010_v19 = vld [vmem:[%s12621_s1 + $0x1084] ss:$16 sps:$4 sm:$0xff]  }
 0x1d8   :  { %5119 = vmatprep.subr.bf16.mxu0 %v8925_v20  ;;  %5611 = vmatprep.subr.bf16.mxu1 %v8928_v21  ;;  %v9013_v20 = vld [vmem:[%s12621_s1 + $0x108c] ss:$16 sps:$4 sm:$0xff]   ;;  %v9008_v21 = vld [vmem:[%s12621_s1 + $0x1080] ss:$16 sps:$4 sm:$0xff]  }
 0x1db   :  { %5120 = vmatpush1.bf16.msra.mxu0 %v8923_v22  ;;  %5612 = vmatpush1.bf16.msra.mxu1 %v8926_v23  ;;  %v9011_v22 = vld [vmem:[%s12621_s1 + $0x1088] ss:$16 sps:$4 sm:$0xff]   ;;  %v9016_v23 = vld [vmem:[%s12621_s1 + $0x10a4] ss:$16 sps:$4 sm:$0xff]  }
 0x1dc   :  { %5121 = vmatprep.subr.bf16.mxu0 %v8931_v9  ;;  %5613 = vmatprep.subr.bf16.mxu1 %v8934_v26  ;;  %v9019_v9 = vld [vmem:[%s12621_s1 + $0x10ac] ss:$16 sps:$4 sm:$0xff]   ;;  %v9014_v26 = vld [vmem:[%s12621_s1 + $0x10a0] ss:$16 sps:$4 sm:$0xff]  }
 0x1df   :  { %5122 = vmatpush1.bf16.msra.mxu0 %v8929_v27  ;;  %5614 = vmatpush1.bf16.msra.mxu1 %v8932_v29  ;;  %v9017_v27 = vld [vmem:[%s12621_s1 + $0x10a8] ss:$16 sps:$4 sm:$0xff]   ;;  %v9022_v29 = vld [vmem:[%s12621_s1 + $0x10c4] ss:$16 sps:$4 sm:$0xff]  }
 0x1e0   :  { %5123 = vmatprep.subr.bf16.mxu0 %v8937_v30  ;;  %5615 = vmatprep.subr.bf16.mxu1 %v8940_v31  ;;  %v9025_v30 = vld [vmem:[%s12621_s1 + $0x10cc] ss:$16 sps:$4 sm:$0xff]   ;;  %v9020_v31 = vld [vmem:[%s12621_s1 + $0x10c0] ss:$16 sps:$4 sm:$0xff]  }
 0x1e3   :  { %5124 = vmatpush1.bf16.msra.mxu0 %v8935_v33  ;;  %5616 = vmatpush1.bf16.msra.mxu1 %v8938_v25  ;;  %v9023_v33 = vld [vmem:[%s12621_s1 + $0x10c8] ss:$16 sps:$4 sm:$0xff]   ;;  %v9028_v25 = vld [vmem:[%s12621_s1 + $0x10e4] ss:$16 sps:$4 sm:$0xff]  }
 0x1e4   :  { %5125 = vmatprep.subr.bf16.mxu0 %v8943_v34  ;;  %5617 = vmatprep.subr.bf16.mxu1 %v8946_v35  ;;  %v9031_v34 = vld [vmem:[%s12621_s1 + $0x10ec] ss:$16 sps:$4 sm:$0xff]   ;;  %v9026_v35 = vld [vmem:[%s12621_s1 + $0x10e0] ss:$16 sps:$4 sm:$0xff]  }
 0x1e7   :  { %5126 = vmatpush1.bf16.msra.mxu0 %v8941_v36  ;;  %5618 = vmatpush1.bf16.msra.mxu1 %v8944_v37  ;;  %v9029_v36 = vld [vmem:[%s12621_s1 + $0x10e8] ss:$16 sps:$4 sm:$0xff]   ;;  %v9034_v37 = vld [vmem:[%s12621_s1 + $0x1104] ss:$16 sps:$4 sm:$0xff]  }
 0x1e8   :  { %5127 = vmatprep.subr.bf16.mxu0 %v8949_v38  ;;  %5619 = vmatprep.subr.bf16.mxu1 %v8952_v28  ;;  %v9037_v38 = vld [vmem:[%s12621_s1 + $0x110c] ss:$16 sps:$4 sm:$0xff]   ;;  %v9032_v28 = vld [vmem:[%s12621_s1 + $0x1100] ss:$16 sps:$4 sm:$0xff]  }
 0x1eb   :  { %5128 = vmatpush1.bf16.msra.mxu0 %v8947_v40  ;;  %5620 = vmatpush1.bf16.msra.mxu1 %v8950_v41  ;;  %v9035_v40 = vld [vmem:[%s12621_s1 + $0x1108] ss:$16 sps:$4 sm:$0xff]   ;;  %v9040_v41 = vld [vmem:[%s12621_s1 + $0x1124] ss:$16 sps:$4 sm:$0xff]  }
 0x1ec   :  { %5129 = vmatprep.subr.bf16.mxu0 %v8955_v24  ;;  %5621 = vmatprep.subr.bf16.mxu1 %v8958_v44  ;;  %v9043_v24 = vld [vmem:[%s12621_s1 + $0x112c] ss:$16 sps:$4 sm:$0xff]  }
 0x1ef   :  { %5130 = vmatpush1.bf16.msra.mxu0 %v8953_v45  ;;  %5622 = vmatpush1.bf16.msra.mxu1 %v8956_v46 }
 0x1f0   :  { %5131 = vmatprep.subr.bf16.mxu0 %v8961_v48  ;;  %5623 = vmatprep.subr.bf16.mxu1 %v8964_v32 }
 0x1f3   :  { %5132 = vmatpush1.bf16.msra.mxu0 %v8959_v50  ;;  %5624 = vmatpush1.bf16.msra.mxu1 %v8962_v51 }
 0x1f4   :  { %5133 = vmatprep.subr.bf16.mxu0 %v8967_v52  ;;  %5625 = vmatprep.subr.bf16.mxu1 %v8970_v53 }
 0x1f7   :  { %5134 = vmatpush1.bf16.msra.mxu0 %v8965_v54  ;;  %5626 = vmatpush1.bf16.msra.mxu1 %v8968_v42 }
 0x1f8   :  { %5135 = vmatprep.subr.bf16.mxu0 %v8973_v56  ;;  %5627 = vmatprep.subr.bf16.mxu1 %v8976_v39 }
 0x1fb   :  { %5136 = vmatpush1.bf16.msra.mxu0 %v8971_v58  ;;  %5628 = vmatpush1.bf16.msra.mxu1 %v8974_v59 }
 0x1fc   :  { %5137 = vmatprep.subr.bf16.mxu0 %v8979_v60  ;;  %5629 = vmatprep.subr.bf16.mxu1 %v8982_v61 }
 0x1ff   :  { %5138 = vmatpush1.bf16.msra.mxu0 %v8977_v63  ;;  %5630 = vmatpush1.bf16.msra.mxu1 %v8980_v47 }
 0x200   :  { %5148 = vmatprep.subr.bf16.mxu0 %v8986_v0  ;;  %5640 = vmatprep.subr.bf16.mxu1 %v8989_v1 }
 0x202   :  { %5140 = vmatmul.mubr.bf16.vlgmr.msra.gmra.mrb[0].mxu0 %v180_v3  ;;  %5632 = vmatmul.mubr.bf16.vlgmr.msra.gmra.mrb[0].mxu1 %v180_v3 }
 0x203   :  { %5149 = vmatpush1.bf16.msra.mxu0 %v8984_v4  ;;  %5641 = vmatpush1.bf16.msra.mxu1 %v8987_v5 }
 0x204   :  { %5150 = vmatprep.subr.bf16.mxu0 %v8992_v6  ;;  %5642 = vmatprep.subr.bf16.mxu1 %v8995_v55 }
 0x205   :  { %5180 = vmatprep.mubr.bf16.mxu0 %v183_v7  ;;  %5672 = vmatprep.mubr.bf16.mxu1 %v183_v7 }
 0x207   :  { %5151 = vmatpush1.bf16.msra.mxu0 %v8990_v8  ;;  %5643 = vmatpush1.bf16.msra.mxu1 %v8993_v10 }
 0x208   :  { %5152 = vmatprep.subr.bf16.mxu0 %v8998_v11  ;;  %5644 = vmatprep.subr.bf16.mxu1 %v9001_v12 }
 0x20b   :  { %5153 = vmatpush1.bf16.msra.mxu0 %v8996_v13  ;;  %5645 = vmatpush1.bf16.msra.mxu1 %v8999_v14 }
 0x20c   :  { %5154 = vmatprep.subr.bf16.mxu0 %v9004_v15  ;;  %5646 = vmatprep.subr.bf16.mxu1 %v9007_v16 }
 0x20f   :  { %5155 = vmatpush1.bf16.msra.mxu0 %v9002_v17  ;;  %5647 = vmatpush1.bf16.msra.mxu1 %v9005_v18 }
 0x210   :  { %5156 = vmatprep.subr.bf16.mxu0 %v9010_v19  ;;  %5648 = vmatprep.subr.bf16.mxu1 %v9013_v20 }
 0x213   :  { %5157 = vmatpush1.bf16.msra.mxu0 %v9008_v21  ;;  %5649 = vmatpush1.bf16.msra.mxu1 %v9011_v22 }
 0x214   :  { %5158 = vmatprep.subr.bf16.mxu0 %v9016_v23  ;;  %5650 = vmatprep.subr.bf16.mxu1 %v9019_v9 }
 0x217   :  { %5159 = vmatpush1.bf16.msra.mxu0 %v9014_v26  ;;  %5651 = vmatpush1.bf16.msra.mxu1 %v9017_v27 }
 0x218   :  { %5160 = vmatprep.subr.bf16.mxu0 %v9022_v29  ;;  %5652 = vmatprep.subr.bf16.mxu1 %v9025_v30 }
 0x21b   :  { %5161 = vmatpush1.bf16.msra.mxu0 %v9020_v31  ;;  %5653 = vmatpush1.bf16.msra.mxu1 %v9023_v33 }
 0x21c   :  { %5162 = vmatprep.subr.bf16.mxu0 %v9028_v25  ;;  %5654 = vmatprep.subr.bf16.mxu1 %v9031_v34 }
 0x21f   :  { %5163 = vmatpush1.bf16.msra.mxu0 %v9026_v35  ;;  %5655 = vmatpush1.bf16.msra.mxu1 %v9029_v36 }
 0x220   :  { %5164 = vmatprep.subr.bf16.mxu0 %v9034_v37  ;;  %5656 = vmatprep.subr.bf16.mxu1 %v9037_v38 }
 0x221   :  { %12 = vsyncpa [#allocation3], 0  ;;  %v9038_v44 = vld [vmem:[%s12621_s1 + $0x1120] ss:$16 sps:$4 sm:$0xff]   ;;  %v9041_v45 = vld [vmem:[%s12621_s1 + $0x1128] ss:$16 sps:$4 sm:$0xff]   ;;  %v108_v1 = vcombine.high %v11261_v57, %v11261_v57  ;;  %v182_v11 = vpack.c.bf16 %v11277_v62, %v11277_v62 }
 0x222   :  { %v9046_v46 = vld [vmem:[%s12621_s1 + $0x1144] ss:$16 sps:$4 sm:$0xff]   ;;  %v9049_v48 = vld [vmem:[%s12621_s1 + $0x114c] ss:$16 sps:$4 sm:$0xff]   ;;  %v9044_v32 = vld [vmem:[%s12621_s1 + $0x1140] ss:$16 sps:$4 sm:$0xff]  }
 0x223   :  { %5165 = vmatpush1.bf16.msra.mxu0 %v9032_v28  ;;  %5657 = vmatpush1.bf16.msra.mxu1 %v9035_v40  ;;  %v9047_v50 = vld [vmem:[%s12621_s1 + $0x1148] ss:$16 sps:$4 sm:$0xff]   ;;  %v9052_v51 = vld [vmem:[%s12621_s1 + $0x1164] ss:$16 sps:$4 sm:$0xff]   ;;  %v9055_v52 = vld [vmem:[%s12621_s1 + $0x116c] ss:$16 sps:$4 sm:$0xff]   ;;  %v11478_v5 = vrot.slane %v108_v1, %v9795_v49 }
 0x224   :  { %5166 = vmatprep.subr.bf16.mxu0 %v9040_v41  ;;  %5658 = vmatprep.subr.bf16.mxu1 %v9043_v24  ;;  %v9050_v53 = vld [vmem:[%s12621_s1 + $0x1160] ss:$16 sps:$4 sm:$0xff]   ;;  %v9053_v54 = vld [vmem:[%s12621_s1 + $0x1168] ss:$16 sps:$4 sm:$0xff]   ;;  %v9058_v42 = vld [vmem:[%s12621_s1 + $0x1184] ss:$16 sps:$4 sm:$0xff]  }
 0x225   :  { %v9061_v56 = vld [vmem:[%s12621_s1 + $0x118c] ss:$16 sps:$4 sm:$0xff]   ;;  %v9056_v39 = vld [vmem:[%s12621_s1 + $0x1180] ss:$16 sps:$4 sm:$0xff]   ;;  %v9059_v58 = vld [vmem:[%s12621_s1 + $0x1188] ss:$16 sps:$4 sm:$0xff]   ;;  %v124_v10 = vcombine.high %v11478_v5, %v11478_v5 }
 0x226   :  { %v9064_v59 = vld [vmem:[%s12621_s1 + $0x11a4] ss:$16 sps:$4 sm:$0xff]   ;;  %v9067_v60 = vld [vmem:[%s12621_s1 + $0x11ac] ss:$16 sps:$4 sm:$0xff]   ;;  %v9062_v61 = vld [vmem:[%s12621_s1 + $0x11a0] ss:$16 sps:$4 sm:$0xff]  }
 0x227   :  { %5167 = vmatpush1.bf16.msra.mxu0 %v9038_v44  ;;  %5659 = vmatpush1.bf16.msra.mxu1 %v9041_v45  ;;  %v9065_v63 = vld [vmem:[%s12621_s1 + $0x11a8] ss:$16 sps:$4 sm:$0xff]   ;;  %v9070_v47 = vld [vmem:[%s12621_s1 + $0x11c4] ss:$16 sps:$4 sm:$0xff]   ;;  %v9073_v0 = vld [vmem:[%s12621_s1 + $0x11cc] ss:$16 sps:$4 sm:$0xff]   ;;  %v185_v15 = vpack.c.bf16 %v124_v10, %v124_v10 }
 0x228   :  { %5168 = vmatprep.subr.bf16.mxu0 %v9046_v46  ;;  %5660 = vmatprep.subr.bf16.mxu1 %v9049_v48  ;;  %v9068_v2 = vld [vmem:[%s12621_s1 + $0x11c0] ss:$16 sps:$4 sm:$0xff]   ;;  %v9071_v3 = vld [vmem:[%s12621_s1 + $0x11c8] ss:$16 sps:$4 sm:$0xff]   ;;  %v9076_v4 = vld [vmem:[%s12621_s1 + $0x11e4] ss:$16 sps:$4 sm:$0xff]  }
 0x229   :  { %v9079_v57 = vld [vmem:[%s12621_s1 + $0x11ec] ss:$16 sps:$4 sm:$0xff]   ;;  %v9074_v6 = vld [vmem:[%s12621_s1 + $0x11e0] ss:$16 sps:$4 sm:$0xff]   ;;  %v9077_v55 = vld [vmem:[%s12621_s1 + $0x11e8] ss:$16 sps:$4 sm:$0xff]  }
 0x22a   :  { %v9082_v7 = vld [vmem:[%s12621_s1 + $0x1204] ss:$16 sps:$4 sm:$0xff]   ;;  %v9085_v8 = vld [vmem:[%s12621_s1 + $0x120c] ss:$16 sps:$4 sm:$0xff]   ;;  %v9080_v12 = vld [vmem:[%s12621_s1 + $0x1200] ss:$16 sps:$4 sm:$0xff]  }
 0x22b   :  { %5169 = vmatpush1.bf16.msra.mxu0 %v9044_v32  ;;  %5661 = vmatpush1.bf16.msra.mxu1 %v9047_v50  ;;  %v9083_v13 = vld [vmem:[%s12621_s1 + $0x1208] ss:$16 sps:$4 sm:$0xff]   ;;  %v9088_v14 = vld [vmem:[%s12621_s1 + $0x1224] ss:$16 sps:$4 sm:$0xff]   ;;  %v9091_v62 = vld [vmem:[%s12621_s1 + $0x122c] ss:$16 sps:$4 sm:$0xff]  }
 0x22c   :  { %5170 = vmatprep.subr.bf16.mxu0 %v9052_v51  ;;  %5662 = vmatprep.subr.bf16.mxu1 %v9055_v52  ;;  %v9086_v16 = vld [vmem:[%s12621_s1 + $0x1220] ss:$16 sps:$4 sm:$0xff]   ;;  %v9089_v17 = vld [vmem:[%s12621_s1 + $0x1228] ss:$16 sps:$4 sm:$0xff]   ;;  %v9094_v18 = vld [vmem:[%s12621_s1 + $0x1244] ss:$16 sps:$4 sm:$0xff]  }
 0x22d   :  { %v9097_v19 = vld [vmem:[%s12621_s1 + $0x124c] ss:$16 sps:$4 sm:$0xff]   ;;  %v9092_v20 = vld [vmem:[%s12621_s1 + $0x1240] ss:$16 sps:$4 sm:$0xff]   ;;  %v9095_v21 = vld [vmem:[%s12621_s1 + $0x1248] ss:$16 sps:$4 sm:$0xff]  }
 0x22e   :  { %v9100_v22 = vld [vmem:[%s12621_s1 + $0x1264] ss:$16 sps:$4 sm:$0xff]   ;;  %v9103_v23 = vld [vmem:[%s12621_s1 + $0x126c] ss:$16 sps:$4 sm:$0xff]   ;;  %v9098_v9 = vld [vmem:[%s12621_s1 + $0x1260] ss:$16 sps:$4 sm:$0xff]  }
 0x22f   :  { %5171 = vmatpush1.bf16.msra.mxu0 %v9050_v53  ;;  %5663 = vmatpush1.bf16.msra.mxu1 %v9053_v54  ;;  %v9101_v26 = vld [vmem:[%s12621_s1 + $0x1268] ss:$16 sps:$4 sm:$0xff]   ;;  %v9106_v27 = vld [vmem:[%s12621_s1 + $0x1284] ss:$16 sps:$4 sm:$0xff]   ;;  %v9109_v29 = vld [vmem:[%s12621_s1 + $0x128c] ss:$16 sps:$4 sm:$0xff]  }
 0x230   :  { %5172 = vmatprep.subr.bf16.mxu0 %v9058_v42  ;;  %5664 = vmatprep.subr.bf16.mxu1 %v9061_v56  ;;  %v9104_v30 = vld [vmem:[%s12621_s1 + $0x1280] ss:$16 sps:$4 sm:$0xff]   ;;  %v9107_v31 = vld [vmem:[%s12621_s1 + $0x1288] ss:$16 sps:$4 sm:$0xff]   ;;  %v9112_v33 = vld [vmem:[%s12621_s1 + $0x12a4] ss:$16 sps:$4 sm:$0xff]  }
 0x231   :  { %v9115_v25 = vld [vmem:[%s12621_s1 + $0x12ac] ss:$16 sps:$4 sm:$0xff]   ;;  %v9110_v34 = vld [vmem:[%s12621_s1 + $0x12a0] ss:$16 sps:$4 sm:$0xff]   ;;  %v9113_v35 = vld [vmem:[%s12621_s1 + $0x12a8] ss:$16 sps:$4 sm:$0xff]  }
 0x232   :  { %v9118_v36 = vld [vmem:[%s12621_s1 + $0x12c4] ss:$16 sps:$4 sm:$0xff]   ;;  %v9121_v37 = vld [vmem:[%s12621_s1 + $0x12cc] ss:$16 sps:$4 sm:$0xff]   ;;  %v9116_v38 = vld [vmem:[%s12621_s1 + $0x12c0] ss:$16 sps:$4 sm:$0xff]  }
 0x233   :  { %5173 = vmatpush1.bf16.msra.mxu0 %v9056_v39  ;;  %5665 = vmatpush1.bf16.msra.mxu1 %v9059_v58  ;;  %v9119_v28 = vld [vmem:[%s12621_s1 + $0x12c8] ss:$16 sps:$4 sm:$0xff]   ;;  %v9124_v40 = vld [vmem:[%s12621_s1 + $0x12e4] ss:$16 sps:$4 sm:$0xff]   ;;  %v9127_v41 = vld [vmem:[%s12621_s1 + $0x12ec] ss:$16 sps:$4 sm:$0xff]  }
 0x234   :  { %5174 = vmatprep.subr.bf16.mxu0 %v9064_v59  ;;  %5666 = vmatprep.subr.bf16.mxu1 %v9067_v60  ;;  %v9122_v24 = vld [vmem:[%s12621_s1 + $0x12e0] ss:$16 sps:$4 sm:$0xff]   ;;  %v9125_v44 = vld [vmem:[%s12621_s1 + $0x12e8] ss:$16 sps:$4 sm:$0xff]   ;;  %v9130_v45 = vld [vmem:[%s12621_s1 + $0x1304] ss:$16 sps:$4 sm:$0xff]  }
 0x235   :  { %v9133_v46 = vld [vmem:[%s12621_s1 + $0x130c] ss:$16 sps:$4 sm:$0xff]   ;;  %v9128_v48 = vld [vmem:[%s12621_s1 + $0x1300] ss:$16 sps:$4 sm:$0xff]   ;;  %v9131_v32 = vld [vmem:[%s12621_s1 + $0x1308] ss:$16 sps:$4 sm:$0xff]  }
 0x236   :  { %v9136_v50 = vld [vmem:[%s12621_s1 + $0x1324] ss:$16 sps:$4 sm:$0xff]   ;;  %v9139_v51 = vld [vmem:[%s12621_s1 + $0x132c] ss:$16 sps:$4 sm:$0xff]   ;;  %v9134_v52 = vld [vmem:[%s12621_s1 + $0x1320] ss:$16 sps:$4 sm:$0xff]  }
 0x237   :  { %5175 = vmatpush1.bf16.msra.mxu0 %v9062_v61  ;;  %5667 = vmatpush1.bf16.msra.mxu1 %v9065_v63  ;;  %v9137_v53 = vld [vmem:[%s12621_s1 + $0x1328] ss:$16 sps:$4 sm:$0xff]   ;;  %v9142_v54 = vld [vmem:[%s12621_s1 + $0x1344] ss:$16 sps:$4 sm:$0xff]   ;;  %v9145_v42 = vld [vmem:[%s12621_s1 + $0x134c] ss:$16 sps:$4 sm:$0xff]  }
 0x238   :  { %5176 = vmatprep.subr.bf16.mxu0 %v9070_v47  ;;  %5668 = vmatprep.subr.bf16.mxu1 %v9073_v0  ;;  %v9140_v56 = vld [vmem:[%s12621_s1 + $0x1340] ss:$16 sps:$4 sm:$0xff]   ;;  %v9143_v39 = vld [vmem:[%s12621_s1 + $0x1348] ss:$16 sps:$4 sm:$0xff]   ;;  %v9148_v58 = vld [vmem:[%s12621_s1 + $0x1364] ss:$16 sps:$4 sm:$0xff]  }
 0x239   :  { %v9151_v59 = vld [vmem:[%s12621_s1 + $0x136c] ss:$16 sps:$4 sm:$0xff]   ;;  %v9146_v60 = vld [vmem:[%s12621_s1 + $0x1360] ss:$16 sps:$4 sm:$0xff]   ;;  %v9149_v61 = vld [vmem:[%s12621_s1 + $0x1368] ss:$16 sps:$4 sm:$0xff]  }
 0x23a   :  { %v9154_v63 = vld [vmem:[%s12621_s1 + $0x1384] ss:$16 sps:$4 sm:$0xff]   ;;  %v9157_v47 = vld [vmem:[%s12621_s1 + $0x138c] ss:$16 sps:$4 sm:$0xff]   ;;  %v9152_v0 = vld [vmem:[%s12621_s1 + $0x1380] ss:$16 sps:$4 sm:$0xff]  }
 0x23b   :  { %5177 = vmatpush1.bf16.msra.mxu0 %v9068_v2  ;;  %5669 = vmatpush1.bf16.msra.mxu1 %v9071_v3  ;;  %v9155_v1 = vld [vmem:[%s12621_s1 + $0x1388] ss:$16 sps:$4 sm:$0xff]   ;;  %v9160_v2 = vld [vmem:[%s12621_s1 + $0x13a4] ss:$16 sps:$4 sm:$0xff]   ;;  %v9163_v3 = vld [vmem:[%s12621_s1 + $0x13ac] ss:$16 sps:$4 sm:$0xff]  }
 0x23c   :  { %5178 = vmatprep.subr.bf16.mxu0 %v9076_v4  ;;  %5670 = vmatprep.subr.bf16.mxu1 %v9079_v57  ;;  %v9158_v4 = vld [vmem:[%s12621_s1 + $0x13a0] ss:$16 sps:$4 sm:$0xff]   ;;  %v9161_v57 = vld [vmem:[%s12621_s1 + $0x13a8] ss:$16 sps:$4 sm:$0xff]   ;;  %s9619_s8 = smov [#allocation2]   ;;  %vm7117_vm0 = vcmask 9216  }
 0x23d   :  { %v9167_v10 = vld [vmem:[%s12621_s1 + $0x13c8] ss:$16 sps:$4 sm:$0xff]   ;;  %s7125_s9 = sshll.u32 %s9619_s8, 4  ;;  %s7126_s9 = int_to_ptr.vmem [resolvable:$true] %s7125_s9 }
 0x23e   :  { %s9594_s10 = scalar_lea.vmem %s7126_s9, 32  ;;  %p9599_p1 = scmp.lt.s32.totalorder %s7126_s9, %s7126_s9 }
 0x23f   :  { %5179 = vmatpush1.bf16.msra.mxu0 %v9074_v6  ;;  %5671 = vmatpush1.bf16.msra.mxu1 %v9077_v55  ;;  %v9166_v6 = vld [vmem:[%s12621_s1 + $0x13c4] ss:$16 sps:$4 sm:$0xff]   ;;  %v9169_v55 = vld [vmem:[%s12621_s1 + $0x13cc] ss:$16 sps:$4 sm:$0xff]   ;;  %p9595_p0 = scmp.ne.s32.totalorder %s7126_s9, %s9594_s10  ;;  %p9600_p2 = scmp.lt.s32.totalorder %s9594_s10, %s9594_s10 }
 0x240   :  { %5189 = vmatprep.subr.bf16.mxu0 %v9082_v7  ;;  %5681 = vmatprep.subr.bf16.mxu1 %v9085_v8  ;;  %v11667_v7 = vld [vmem:[%s12620_s0 + $0x28] sm:$0xff]  ;;  %v9164_v8 = vld [vmem:[%s12621_s1 + $0x13c0] ss:$16 sps:$4 sm:$0xff]  }
 0x241   :  { %p9601_p3 = por %p9600_p2, %p9599_p1 }
 0x242   :  { %5181 = vmatmul.mubr.bf16.vlgmr.msra.gmra.mrb[0].mxu0 %v182_v11  ;;  %5673 = vmatmul.mubr.bf16.vlgmr.msra.gmra.mrb[0].mxu1 %v182_v11  ;;  %v9172_v11 = vld [vmem:[%s12621_s1 + $0x13e4] ss:$16 sps:$4 sm:$0xff]  }
 0x243   :  { %5190 = vmatpush1.bf16.msra.mxu0 %v9080_v12  ;;  %5682 = vmatpush1.bf16.msra.mxu1 %v9083_v13  ;;  %v9175_v12 = vld [vmem:[%s12621_s1 + $0x13ec] ss:$16 sps:$4 sm:$0xff]   ;;  %v11683_v13 = vrot.slane %v11667_v7, %v9795_v49  ;;  %p9602_p4 = pnand %p9601_p3, %p9595_p0 }
 0x244   :  { %5191 = vmatprep.subr.bf16.mxu0 %v9088_v14  ;;  %5683 = vmatprep.subr.bf16.mxu1 %v9091_v62  ;;  %v9170_v14 = vld [vmem:[%s12621_s1 + $0x13e0] ss:$16 sps:$4 sm:$0xff]   ;;  %v9173_v62 = vld [vmem:[%s12621_s1 + $0x13e8] ss:$16 sps:$4 sm:$0xff]  }
 0x245   :  { %5221 = vmatprep.mubr.bf16.mxu0 %v185_v15  ;;  %5713 = vmatprep.mubr.bf16.mxu1 %v185_v15  ;;  %v9179_v15 = vld [vmem:[%s12621_s1 + $0x1404] ss:$16 sps:$4 sm:$0xff]  }
 0x247   :  { %5192 = vmatpush1.bf16.msra.mxu0 %v9086_v16  ;;  %5684 = vmatpush1.bf16.msra.mxu1 %v9089_v17  ;;  %v9182_v16 = vld [vmem:[%s12621_s1 + $0x140c] ss:$16 sps:$4 sm:$0xff]   ;;  %v140_v17 = vcombine.high %v11683_v13, %v11683_v13 }
 0x248   :  { %5193 = vmatprep.subr.bf16.mxu0 %v9094_v18  ;;  %5685 = vmatprep.subr.bf16.mxu1 %v9097_v19  ;;  %v184_v18 = vpack.c.bf16 %v11478_v5, %v11478_v5  ;;  %v9177_v19 = vld [vmem:[%s12621_s1 + $0x1400] ss:$16 sps:$4 sm:$0xff]   ;;  %v9188_v5 = vld [vmem:[%s12621_s1 + $0x142c] ss:$16 sps:$4 sm:$0xff]  }
 0x24b   :  { %5194 = vmatpush1.bf16.msra.mxu0 %v9092_v20  ;;  %5686 = vmatpush1.bf16.msra.mxu1 %v9095_v21  ;;  %v9180_v20 = vld [vmem:[%s12621_s1 + $0x1408] ss:$16 sps:$4 sm:$0xff]   ;;  %v9185_v21 = vld [vmem:[%s12621_s1 + $0x1424] ss:$16 sps:$4 sm:$0xff]  }
 0x24c   :  { %5195 = vmatprep.subr.bf16.mxu0 %v9100_v22  ;;  %5687 = vmatprep.subr.bf16.mxu1 %v9103_v23  ;;  %v187_v22 = vpack.c.bf16 %v140_v17, %v140_v17  ;;  %v9183_v23 = vld [vmem:[%s12621_s1 + $0x1420] ss:$16 sps:$4 sm:$0xff]  }
 0x24d   :  { %v9261_v17 = vld [vmem:[%s12621_s1 + $0x15c0] ss:$16 sps:$4 sm:$0xff]  }
 0x24f   :  { %5196 = vmatpush1.bf16.msra.mxu0 %v9098_v9  ;;  %5688 = vmatpush1.bf16.msra.mxu1 %v9101_v26  ;;  %v9186_v9 = vld [vmem:[%s12621_s1 + $0x1428] ss:$16 sps:$4 sm:$0xff]   ;;  %v9191_v26 = vld [vmem:[%s12621_s1 + $0x1444] ss:$16 sps:$4 sm:$0xff]  }
 0x250   :  { %5197 = vmatprep.subr.bf16.mxu0 %v9106_v27  ;;  %5689 = vmatprep.subr.bf16.mxu1 %v9109_v29  ;;  %v9194_v27 = vld [vmem:[%s12621_s1 + $0x144c] ss:$16 sps:$4 sm:$0xff]   ;;  %v9189_v29 = vld [vmem:[%s12621_s1 + $0x1440] ss:$16 sps:$4 sm:$0xff]  }
 0x253   :  { %5198 = vmatpush1.bf16.msra.mxu0 %v9104_v30  ;;  %5690 = vmatpush1.bf16.msra.mxu1 %v9107_v31  ;;  %v9192_v30 = vld [vmem:[%s12621_s1 + $0x1448] ss:$16 sps:$4 sm:$0xff]   ;;  %v9197_v31 = vld [vmem:[%s12621_s1 + $0x1464] ss:$16 sps:$4 sm:$0xff]  }
 0x254   :  { %5199 = vmatprep.subr.bf16.mxu0 %v9112_v33  ;;  %5691 = vmatprep.subr.bf16.mxu1 %v9115_v25  ;;  %v9200_v33 = vld [vmem:[%s12621_s1 + $0x146c] ss:$16 sps:$4 sm:$0xff]   ;;  %v9195_v25 = vld [vmem:[%s12621_s1 + $0x1460] ss:$16 sps:$4 sm:$0xff]  }
 0x257   :  { %5200 = vmatpush1.bf16.msra.mxu0 %v9110_v34  ;;  %5692 = vmatpush1.bf16.msra.mxu1 %v9113_v35  ;;  %v9198_v34 = vld [vmem:[%s12621_s1 + $0x1468] ss:$16 sps:$4 sm:$0xff]   ;;  %v9203_v35 = vld [vmem:[%s12621_s1 + $0x1484] ss:$16 sps:$4 sm:$0xff]  }
 0x258   :  { %5201 = vmatprep.subr.bf16.mxu0 %v9118_v36  ;;  %5693 = vmatprep.subr.bf16.mxu1 %v9121_v37  ;;  %v9206_v36 = vld [vmem:[%s12621_s1 + $0x148c] ss:$16 sps:$4 sm:$0xff]   ;;  %v9201_v37 = vld [vmem:[%s12621_s1 + $0x1480] ss:$16 sps:$4 sm:$0xff]  }
 0x25b   :  { %5202 = vmatpush1.bf16.msra.mxu0 %v9116_v38  ;;  %5694 = vmatpush1.bf16.msra.mxu1 %v9119_v28  ;;  %v9204_v38 = vld [vmem:[%s12621_s1 + $0x1488] ss:$16 sps:$4 sm:$0xff]   ;;  %v9209_v28 = vld [vmem:[%s12621_s1 + $0x14a4] ss:$16 sps:$4 sm:$0xff]  }
 0x25c   :  { %5203 = vmatprep.subr.bf16.mxu0 %v9124_v40  ;;  %5695 = vmatprep.subr.bf16.mxu1 %v9127_v41  ;;  %v9212_v40 = vld [vmem:[%s12621_s1 + $0x14ac] ss:$16 sps:$4 sm:$0xff]   ;;  %v9207_v41 = vld [vmem:[%s12621_s1 + $0x14a0] ss:$16 sps:$4 sm:$0xff]  }
 0x25f   :  { %5204 = vmatpush1.bf16.msra.mxu0 %v9122_v24  ;;  %5696 = vmatpush1.bf16.msra.mxu1 %v9125_v44  ;;  %v9210_v24 = vld [vmem:[%s12621_s1 + $0x14a8] ss:$16 sps:$4 sm:$0xff]   ;;  %v9215_v44 = vld [vmem:[%s12621_s1 + $0x14c4] ss:$16 sps:$4 sm:$0xff]  }
 0x260   :  { %5205 = vmatprep.subr.bf16.mxu0 %v9130_v45  ;;  %5697 = vmatprep.subr.bf16.mxu1 %v9133_v46  ;;  %v9218_v45 = vld [vmem:[%s12621_s1 + $0x14cc] ss:$16 sps:$4 sm:$0xff]   ;;  %v9213_v46 = vld [vmem:[%s12621_s1 + $0x14c0] ss:$16 sps:$4 sm:$0xff]  }
 0x263   :  { %5206 = vmatpush1.bf16.msra.mxu0 %v9128_v48  ;;  %5698 = vmatpush1.bf16.msra.mxu1 %v9131_v32  ;;  %v9216_v48 = vld [vmem:[%s12621_s1 + $0x14c8] ss:$16 sps:$4 sm:$0xff]   ;;  %v9221_v32 = vld [vmem:[%s12621_s1 + $0x14e4] ss:$16 sps:$4 sm:$0xff]  }
 0x264   :  { %5207 = vmatprep.subr.bf16.mxu0 %v9136_v50  ;;  %5699 = vmatprep.subr.bf16.mxu1 %v9139_v51  ;;  %v9224_v50 = vld [vmem:[%s12621_s1 + $0x14ec] ss:$16 sps:$4 sm:$0xff]   ;;  %v9219_v51 = vld [vmem:[%s12621_s1 + $0x14e0] ss:$16 sps:$4 sm:$0xff]  }
 0x267   :  { %5208 = vmatpush1.bf16.msra.mxu0 %v9134_v52  ;;  %5700 = vmatpush1.bf16.msra.mxu1 %v9137_v53  ;;  %v9222_v52 = vld [vmem:[%s12621_s1 + $0x14e8] ss:$16 sps:$4 sm:$0xff]   ;;  %v9227_v53 = vld [vmem:[%s12621_s1 + $0x1504] ss:$16 sps:$4 sm:$0xff]  }
 0x268   :  { %5209 = vmatprep.subr.bf16.mxu0 %v9142_v54  ;;  %5701 = vmatprep.subr.bf16.mxu1 %v9145_v42  ;;  %v9230_v54 = vld [vmem:[%s12621_s1 + $0x150c] ss:$16 sps:$4 sm:$0xff]   ;;  %v9225_v42 = vld [vmem:[%s12621_s1 + $0x1500] ss:$16 sps:$4 sm:$0xff]  }
 0x26b   :  { %5210 = vmatpush1.bf16.msra.mxu0 %v9140_v56  ;;  %5702 = vmatpush1.bf16.msra.mxu1 %v9143_v39  ;;  %v9228_v56 = vld [vmem:[%s12621_s1 + $0x1508] ss:$16 sps:$4 sm:$0xff]   ;;  %v9233_v39 = vld [vmem:[%s12621_s1 + $0x1524] ss:$16 sps:$4 sm:$0xff]  }
 0x26c   :  { %5211 = vmatprep.subr.bf16.mxu0 %v9148_v58  ;;  %5703 = vmatprep.subr.bf16.mxu1 %v9151_v59  ;;  %v9236_v58 = vld [vmem:[%s12621_s1 + $0x152c] ss:$16 sps:$4 sm:$0xff]   ;;  %v9231_v59 = vld [vmem:[%s12621_s1 + $0x1520] ss:$16 sps:$4 sm:$0xff]  }
 0x26f   :  { %5212 = vmatpush1.bf16.msra.mxu0 %v9146_v60  ;;  %5704 = vmatpush1.bf16.msra.mxu1 %v9149_v61  ;;  %v9234_v60 = vld [vmem:[%s12621_s1 + $0x1528] ss:$16 sps:$4 sm:$0xff]   ;;  %v9239_v61 = vld [vmem:[%s12621_s1 + $0x1544] ss:$16 sps:$4 sm:$0xff]  }
 0x270   :  { %5213 = vmatprep.subr.bf16.mxu0 %v9154_v63  ;;  %5705 = vmatprep.subr.bf16.mxu1 %v9157_v47  ;;  %v9242_v63 = vld [vmem:[%s12621_s1 + $0x154c] ss:$16 sps:$4 sm:$0xff]   ;;  %v9237_v47 = vld [vmem:[%s12621_s1 + $0x1540] ss:$16 sps:$4 sm:$0xff]  }
 0x273   :  { %5214 = vmatpush1.bf16.msra.mxu0 %v9152_v0  ;;  %5706 = vmatpush1.bf16.msra.mxu1 %v9155_v1  ;;  %v9240_v0 = vld [vmem:[%s12621_s1 + $0x1548] ss:$16 sps:$4 sm:$0xff]   ;;  %v9245_v1 = vld [vmem:[%s12621_s1 + $0x1564] ss:$16 sps:$4 sm:$0xff]  }
 0x274   :  { %5215 = vmatprep.subr.bf16.mxu0 %v9160_v2  ;;  %5707 = vmatprep.subr.bf16.mxu1 %v9163_v3  ;;  %v9248_v2 = vld [vmem:[%s12621_s1 + $0x156c] ss:$16 sps:$4 sm:$0xff]   ;;  %v9243_v3 = vld [vmem:[%s12621_s1 + $0x1560] ss:$16 sps:$4 sm:$0xff]  }
 0x277   :  { %5216 = vmatpush1.bf16.msra.mxu0 %v9158_v4  ;;  %5708 = vmatpush1.bf16.msra.mxu1 %v9161_v57  ;;  %v9246_v4 = vld [vmem:[%s12621_s1 + $0x1568] ss:$16 sps:$4 sm:$0xff]   ;;  %v9251_v57 = vld [vmem:[%s12621_s1 + $0x1584] ss:$16 sps:$4 sm:$0xff]  }
 0x278   :  { %5217 = vmatprep.subr.bf16.mxu0 %v9166_v6  ;;  %5709 = vmatprep.subr.bf16.mxu1 %v9169_v55  ;;  %v9254_v6 = vld [vmem:[%s12621_s1 + $0x158c] ss:$16 sps:$4 sm:$0xff]   ;;  %v9249_v55 = vld [vmem:[%s12621_s1 + $0x1580] ss:$16 sps:$4 sm:$0xff]  }
 0x27b   :  { %5218 = vmatpush1.bf16.msra.mxu0 %v9164_v8  ;;  %5710 = vmatpush1.bf16.msra.mxu1 %v9167_v10  ;;  %v9252_v8 = vld [vmem:[%s12621_s1 + $0x1588] ss:$16 sps:$4 sm:$0xff]   ;;  %v9257_v10 = vld [vmem:[%s12621_s1 + $0x15a4] ss:$16 sps:$4 sm:$0xff]  }
 0x27c   :  { %5219 = vmatprep.subr.bf16.mxu0 %v9172_v11  ;;  %5711 = vmatprep.subr.bf16.mxu1 %v9175_v12  ;;  %v9260_v11 = vld [vmem:[%s12621_s1 + $0x15ac] ss:$16 sps:$4 sm:$0xff]   ;;  %v9255_v12 = vld [vmem:[%s12621_s1 + $0x15a0] ss:$16 sps:$4 sm:$0xff]  }
 0x27f   :  { %5220 = vmatpush1.bf16.msra.mxu0 %v9170_v14  ;;  %5712 = vmatpush1.bf16.msra.mxu1 %v9173_v62  ;;  %v9258_v14 = vld [vmem:[%s12621_s1 + $0x15a8] ss:$16 sps:$4 sm:$0xff]   ;;  %v9263_v62 = vld [vmem:[%s12621_s1 + $0x15c4] ss:$16 sps:$4 sm:$0xff]  }
 0x280   :  { %5230 = vmatprep.subr.bf16.mxu0 %v9179_v15  ;;  %5722 = vmatprep.subr.bf16.mxu1 %v9182_v16  ;;  %v9266_v15 = vld [vmem:[%s12621_s1 + $0x15cc] ss:$16 sps:$4 sm:$0xff]   ;;  %v125_v16 = vcombine.high %v11667_v7, %v11667_v7 }
 0x281   :  { %v9272_v7 = vld [vmem:[%s12621_s1 + $0x15ec] ss:$16 sps:$4 sm:$0xff]  }
 0x282   :  { %5222 = vmatmul.mubr.bf16.vlgmr.msra.gmra.mrb[0].mxu0 %v184_v18  ;;  %5714 = vmatmul.mubr.bf16.vlgmr.msra.gmra.mrb[0].mxu1 %v184_v18  ;;  %v9264_v18 = vld [vmem:[%s12621_s1 + $0x15c8] ss:$16 sps:$4 sm:$0xff]  }
 0x283   :  { %5231 = vmatpush1.bf16.msra.mxu0 %v9177_v19  ;;  %5723 = vmatpush1.bf16.msra.mxu1 %v9180_v20  ;;  %v9269_v19 = vld [vmem:[%s12621_s1 + $0x15e4] ss:$16 sps:$4 sm:$0xff]   ;;  %v11884_v20 = vrot.slane %v125_v16, %v9795_v49  ;;  %v9278_v49 = vld [vmem:[%s12621_s1 + $0x160c] ss:$16 sps:$4 sm:$0xff]  }
 0x284   :  { %5232 = vmatprep.subr.bf16.mxu0 %v9185_v21  ;;  %5724 = vmatprep.subr.bf16.mxu1 %v9188_v5  ;;  %v9267_v21 = vld [vmem:[%s12621_s1 + $0x15e0] ss:$16 sps:$4 sm:$0xff]   ;;  %v9270_v5 = vld [vmem:[%s12621_s1 + $0x15e8] ss:$16 sps:$4 sm:$0xff]   ;;  %v9353_v16 = vld [vmem:[%s12621_s1 + $0x17a4] ss:$16 sps:$4 sm:$0xff]  }
 0x285   :  { %5262 = vmatprep.mubr.bf16.mxu0 %v187_v22  ;;  %5754 = vmatprep.mubr.bf16.mxu1 %v187_v22  ;;  %v9275_v22 = vld [vmem:[%s12621_s1 + $0x1604] ss:$16 sps:$4 sm:$0xff]  }
 0x287   :  { %5233 = vmatpush1.bf16.msra.mxu0 %v9183_v23  ;;  %5725 = vmatpush1.bf16.msra.mxu1 %v9186_v9  ;;  %v141_v23 = vcombine.high %v11884_v20, %v11884_v20  ;;  %v186_v9 = vpack.c.bf16 %v11683_v13, %v11683_v13  ;;  %v9284_v13 = vld [vmem:[%s12621_s1 + $0x162c] ss:$16 sps:$4 sm:$0xff]  }
 0x288   :  { %5234 = vmatprep.subr.bf16.mxu0 %v9191_v26  ;;  %5726 = vmatprep.subr.bf16.mxu1 %v9194_v27  ;;  %v9273_v26 = vld [vmem:[%s12621_s1 + $0x1600] ss:$16 sps:$4 sm:$0xff]   ;;  %v9276_v27 = vld [vmem:[%s12621_s1 + $0x1608] ss:$16 sps:$4 sm:$0xff]  }
 0x28b   :  { %5235 = vmatpush1.bf16.msra.mxu0 %v9189_v29  ;;  %5727 = vmatpush1.bf16.msra.mxu1 %v9192_v30  ;;  %v9281_v29 = vld [vmem:[%s12621_s1 + $0x1624] ss:$16 sps:$4 sm:$0xff]   ;;  %v189_v30 = vpack.c.bf16 %v141_v23, %v141_v23  ;;  %v9368_v23 = vld [vmem:[%s12621_s1 + $0x17ec] ss:$16 sps:$4 sm:$0xff]  }
 0x28c   :  { %5236 = vmatprep.subr.bf16.mxu0 %v9197_v31  ;;  %5728 = vmatprep.subr.bf16.mxu1 %v9200_v33  ;;  %v9279_v31 = vld [vmem:[%s12621_s1 + $0x1620] ss:$16 sps:$4 sm:$0xff]   ;;  %v9282_v33 = vld [vmem:[%s12621_s1 + $0x1628] ss:$16 sps:$4 sm:$0xff]  }
 0x28f   :  { %5237 = vmatpush1.bf16.msra.mxu0 %v9195_v25  ;;  %5729 = vmatpush1.bf16.msra.mxu1 %v9198_v34  ;;  %v9287_v25 = vld [vmem:[%s12621_s1 + $0x1644] ss:$16 sps:$4 sm:$0xff]   ;;  %v9290_v34 = vld [vmem:[%s12621_s1 + $0x164c] ss:$16 sps:$4 sm:$0xff]  }
 0x290   :  { %5238 = vmatprep.subr.bf16.mxu0 %v9203_v35  ;;  %5730 = vmatprep.subr.bf16.mxu1 %v9206_v36  ;;  %v9285_v35 = vld [vmem:[%s12621_s1 + $0x1640] ss:$16 sps:$4 sm:$0xff]   ;;  %v9288_v36 = vld [vmem:[%s12621_s1 + $0x1648] ss:$16 sps:$4 sm:$0xff]  }
 0x293   :  { %5239 = vmatpush1.bf16.msra.mxu0 %v9201_v37  ;;  %5731 = vmatpush1.bf16.msra.mxu1 %v9204_v38  ;;  %v9293_v37 = vld [vmem:[%s12621_s1 + $0x1664] ss:$16 sps:$4 sm:$0xff]   ;;  %v9296_v38 = vld [vmem:[%s12621_s1 + $0x166c] ss:$16 sps:$4 sm:$0xff]  }
 0x294   :  { %5240 = vmatprep.subr.bf16.mxu0 %v9209_v28  ;;  %5732 = vmatprep.subr.bf16.mxu1 %v9212_v40  ;;  %v9291_v28 = vld [vmem:[%s12621_s1 + $0x1660] ss:$16 sps:$4 sm:$0xff]   ;;  %v9294_v40 = vld [vmem:[%s12621_s1 + $0x1668] ss:$16 sps:$4 sm:$0xff]  }
 0x297   :  { %5241 = vmatpush1.bf16.msra.mxu0 %v9207_v41  ;;  %5733 = vmatpush1.bf16.msra.mxu1 %v9210_v24  ;;  %v9299_v41 = vld [vmem:[%s12621_s1 + $0x1684] ss:$16 sps:$4 sm:$0xff]   ;;  %v9302_v24 = vld [vmem:[%s12621_s1 + $0x168c] ss:$16 sps:$4 sm:$0xff]  }
 0x298   :  { %5242 = vmatprep.subr.bf16.mxu0 %v9215_v44  ;;  %5734 = vmatprep.subr.bf16.mxu1 %v9218_v45  ;;  %v9297_v44 = vld [vmem:[%s12621_s1 + $0x1680] ss:$16 sps:$4 sm:$0xff]   ;;  %v9300_v45 = vld [vmem:[%s12621_s1 + $0x1688] ss:$16 sps:$4 sm:$0xff]  }
 0x29b   :  { %5243 = vmatpush1.bf16.msra.mxu0 %v9213_v46  ;;  %5735 = vmatpush1.bf16.msra.mxu1 %v9216_v48  ;;  %v9305_v46 = vld [vmem:[%s12621_s1 + $0x16a4] ss:$16 sps:$4 sm:$0xff]   ;;  %v9308_v48 = vld [vmem:[%s12621_s1 + $0x16ac] ss:$16 sps:$4 sm:$0xff]  }
 0x29c   :  { %5244 = vmatprep.subr.bf16.mxu0 %v9221_v32  ;;  %5736 = vmatprep.subr.bf16.mxu1 %v9224_v50  ;;  %v9303_v32 = vld [vmem:[%s12621_s1 + $0x16a0] ss:$16 sps:$4 sm:$0xff]   ;;  %v9306_v50 = vld [vmem:[%s12621_s1 + $0x16a8] ss:$16 sps:$4 sm:$0xff]  }
 0x29f   :  { %5245 = vmatpush1.bf16.msra.mxu0 %v9219_v51  ;;  %5737 = vmatpush1.bf16.msra.mxu1 %v9222_v52  ;;  %v9311_v51 = vld [vmem:[%s12621_s1 + $0x16c4] ss:$16 sps:$4 sm:$0xff]   ;;  %v9314_v52 = vld [vmem:[%s12621_s1 + $0x16cc] ss:$16 sps:$4 sm:$0xff]  }
 0x2a0   :  { %5246 = vmatprep.subr.bf16.mxu0 %v9227_v53  ;;  %5738 = vmatprep.subr.bf16.mxu1 %v9230_v54  ;;  %v9309_v53 = vld [vmem:[%s12621_s1 + $0x16c0] ss:$16 sps:$4 sm:$0xff]   ;;  %v9312_v54 = vld [vmem:[%s12621_s1 + $0x16c8] ss:$16 sps:$4 sm:$0xff]  }
 0x2a3   :  { %5247 = vmatpush1.bf16.msra.mxu0 %v9225_v42  ;;  %5739 = vmatpush1.bf16.msra.mxu1 %v9228_v56  ;;  %v9317_v42 = vld [vmem:[%s12621_s1 + $0x16e4] ss:$16 sps:$4 sm:$0xff]   ;;  %v9320_v56 = vld [vmem:[%s12621_s1 + $0x16ec] ss:$16 sps:$4 sm:$0xff]  }
 0x2a4   :  { %5248 = vmatprep.subr.bf16.mxu0 %v9233_v39  ;;  %5740 = vmatprep.subr.bf16.mxu1 %v9236_v58  ;;  %v9315_v39 = vld [vmem:[%s12621_s1 + $0x16e0] ss:$16 sps:$4 sm:$0xff]   ;;  %v9318_v58 = vld [vmem:[%s12621_s1 + $0x16e8] ss:$16 sps:$4 sm:$0xff]  }
 0x2a7   :  { %5249 = vmatpush1.bf16.msra.mxu0 %v9231_v59  ;;  %5741 = vmatpush1.bf16.msra.mxu1 %v9234_v60  ;;  %v9323_v59 = vld [vmem:[%s12621_s1 + $0x1704] ss:$16 sps:$4 sm:$0xff]   ;;  %v9326_v60 = vld [vmem:[%s12621_s1 + $0x170c] ss:$16 sps:$4 sm:$0xff]  }
 0x2a8   :  { %5250 = vmatprep.subr.bf16.mxu0 %v9239_v61  ;;  %5742 = vmatprep.subr.bf16.mxu1 %v9242_v63  ;;  %v9321_v61 = vld [vmem:[%s12621_s1 + $0x1700] ss:$16 sps:$4 sm:$0xff]   ;;  %v9324_v63 = vld [vmem:[%s12621_s1 + $0x1708] ss:$16 sps:$4 sm:$0xff]  }
 0x2ab   :  { %5251 = vmatpush1.bf16.msra.mxu0 %v9237_v47  ;;  %5743 = vmatpush1.bf16.msra.mxu1 %v9240_v0  ;;  %v9329_v47 = vld [vmem:[%s12621_s1 + $0x1724] ss:$16 sps:$4 sm:$0xff]   ;;  %v9332_v0 = vld [vmem:[%s12621_s1 + $0x172c] ss:$16 sps:$4 sm:$0xff]  }
 0x2ac   :  { %5252 = vmatprep.subr.bf16.mxu0 %v9245_v1  ;;  %5744 = vmatprep.subr.bf16.mxu1 %v9248_v2  ;;  %v9327_v1 = vld [vmem:[%s12621_s1 + $0x1720] ss:$16 sps:$4 sm:$0xff]   ;;  %v9330_v2 = vld [vmem:[%s12621_s1 + $0x1728] ss:$16 sps:$4 sm:$0xff]  }
 0x2af   :  { %5253 = vmatpush1.bf16.msra.mxu0 %v9243_v3  ;;  %5745 = vmatpush1.bf16.msra.mxu1 %v9246_v4  ;;  %v9335_v3 = vld [vmem:[%s12621_s1 + $0x1744] ss:$16 sps:$4 sm:$0xff]   ;;  %v9338_v4 = vld [vmem:[%s12621_s1 + $0x174c] ss:$16 sps:$4 sm:$0xff]  }
 0x2b0   :  { %5254 = vmatprep.subr.bf16.mxu0 %v9251_v57  ;;  %5746 = vmatprep.subr.bf16.mxu1 %v9254_v6  ;;  %v9333_v57 = vld [vmem:[%s12621_s1 + $0x1740] ss:$16 sps:$4 sm:$0xff]   ;;  %v9336_v6 = vld [vmem:[%s12621_s1 + $0x1748] ss:$16 sps:$4 sm:$0xff]  }
 0x2b3   :  { %5255 = vmatpush1.bf16.msra.mxu0 %v9249_v55  ;;  %5747 = vmatpush1.bf16.msra.mxu1 %v9252_v8  ;;  %v9341_v55 = vld [vmem:[%s12621_s1 + $0x1764] ss:$16 sps:$4 sm:$0xff]   ;;  %v9344_v8 = vld [vmem:[%s12621_s1 + $0x176c] ss:$16 sps:$4 sm:$0xff]  }
 0x2b4   :  { %5256 = vmatprep.subr.bf16.mxu0 %v9257_v10  ;;  %5748 = vmatprep.subr.bf16.mxu1 %v9260_v11  ;;  %v9339_v10 = vld [vmem:[%s12621_s1 + $0x1760] ss:$16 sps:$4 sm:$0xff]   ;;  %v9342_v11 = vld [vmem:[%s12621_s1 + $0x1768] ss:$16 sps:$4 sm:$0xff]  }
 0x2b7   :  { %5257 = vmatpush1.bf16.msra.mxu0 %v9255_v12  ;;  %5749 = vmatpush1.bf16.msra.mxu1 %v9258_v14  ;;  %v9347_v12 = vld [vmem:[%s12621_s1 + $0x1784] ss:$16 sps:$4 sm:$0xff]   ;;  %v9350_v14 = vld [vmem:[%s12621_s1 + $0x178c] ss:$16 sps:$4 sm:$0xff]  }
 0x2b8   :  { %5258 = vmatprep.subr.bf16.mxu0 %v9263_v62  ;;  %5750 = vmatprep.subr.bf16.mxu1 %v9266_v15  ;;  %v9345_v62 = vld [vmem:[%s12621_s1 + $0x1780] ss:$16 sps:$4 sm:$0xff]   ;;  %v9348_v15 = vld [vmem:[%s12621_s1 + $0x1788] ss:$16 sps:$4 sm:$0xff]  }
 0x2bb   :  { %5259 = vmatpush1.bf16.msra.mxu0 %v9261_v17  ;;  %5751 = vmatpush1.bf16.msra.mxu1 %v9264_v18  ;;  %v9356_v17 = vld [vmem:[%s12621_s1 + $0x17ac] ss:$16 sps:$4 sm:$0xff]   ;;  %v9351_v18 = vld [vmem:[%s12621_s1 + $0x17a0] ss:$16 sps:$4 sm:$0xff]  }
 0x2bc   :  { %5260 = vmatprep.subr.bf16.mxu0 %v9269_v19  ;;  %5752 = vmatprep.subr.bf16.mxu1 %v9272_v7  ;;  %v9354_v19 = vld [vmem:[%s12621_s1 + $0x17a8] ss:$16 sps:$4 sm:$0xff]   ;;  %v9359_v7 = vld [vmem:[%s12621_s1 + $0x17c4] ss:$16 sps:$4 sm:$0xff]  }
 0x2bf   :  { %5261 = vmatpush1.bf16.msra.mxu0 %v9267_v21  ;;  %5753 = vmatpush1.bf16.msra.mxu1 %v9270_v5  ;;  %v9362_v21 = vld [vmem:[%s12621_s1 + $0x17cc] ss:$16 sps:$4 sm:$0xff]   ;;  %v9357_v5 = vld [vmem:[%s12621_s1 + $0x17c0] ss:$16 sps:$4 sm:$0xff]  }
 0x2c0   :  { %5271 = vmatprep.subr.bf16.mxu0 %v9275_v22  ;;  %5763 = vmatprep.subr.bf16.mxu1 %v9278_v49  ;;  %v9360_v22 = vld [vmem:[%s12621_s1 + $0x17c8] ss:$16 sps:$4 sm:$0xff]   ;;  %v9365_v49 = vld [vmem:[%s12621_s1 + $0x17e4] ss:$16 sps:$4 sm:$0xff]  }
 0x2c2   :  { %5263 = vmatmul.mubr.bf16.vlgmr.msra.gmra.mrb[0].mxu0 %v186_v9  ;;  %5755 = vmatmul.mubr.bf16.vlgmr.msra.gmra.mrb[0].mxu1 %v186_v9  ;;  %v9363_v9 = vld [vmem:[%s12621_s1 + $0x17e0] ss:$16 sps:$4 sm:$0xff]  }
 0x2c3   :  { %5272 = vmatpush1.bf16.msra.mxu0 %v9273_v26  ;;  %5764 = vmatpush1.bf16.msra.mxu1 %v9276_v27  ;;  %v9366_v26 = vld [vmem:[%s12621_s1 + $0x17e8] ss:$16 sps:$4 sm:$0xff]   ;;  %v9372_v27 = vld [vmem:[%s12623_s3 + $0x4] ss:$16 sps:$4 sm:$0xff]  }
 0x2c4   :  { %5273 = vmatprep.subr.bf16.mxu0 %v9281_v29  ;;  %5765 = vmatprep.subr.bf16.mxu1 %v9284_v13  ;;  %v9375_v29 = vld [vmem:[%s12623_s3 + $0xc] ss:$16 sps:$4 sm:$0xff]   ;;  %v188_v13 = vpack.c.bf16 %v11884_v20, %v11884_v20 }
 0x2c5   :  { %5303 = vmatprep.mubr.bf16.mxu0 %v189_v30  ;;  %5795 = vmatprep.mubr.bf16.mxu1 %v189_v30  ;;  %v9370_v30 = vld [vmem:[%s12623_s3] ss:$16 sps:$4 sm:$0xff]   ;;  %v9381_v20 = vld [vmem:[%s12623_s3 + $0x2c] ss:$16 sps:$4 sm:$0xff]  }
 0x2c7   :  { %5274 = vmatpush1.bf16.msra.mxu0 %v9279_v31  ;;  %5766 = vmatpush1.bf16.msra.mxu1 %v9282_v33  ;;  %v9373_v31 = vld [vmem:[%s12623_s3 + $0x8] ss:$16 sps:$4 sm:$0xff]   ;;  %v9378_v33 = vld [vmem:[%s12623_s3 + $0x24] ss:$16 sps:$4 sm:$0xff]  }
 0x2c8   :  { %5275 = vmatprep.subr.bf16.mxu0 %v9287_v25  ;;  %5767 = vmatprep.subr.bf16.mxu1 %v9290_v34  ;;  %v9376_v25 = vld [vmem:[%s12623_s3 + $0x20] ss:$16 sps:$4 sm:$0xff]   ;;  %v9379_v34 = vld [vmem:[%s12623_s3 + $0x28] ss:$16 sps:$4 sm:$0xff]  }
 0x2cb   :  { %5276 = vmatpush1.bf16.msra.mxu0 %v9285_v35  ;;  %5768 = vmatpush1.bf16.msra.mxu1 %v9288_v36  ;;  %v9384_v35 = vld [vmem:[%s12623_s3 + $0x44] ss:$16 sps:$4 sm:$0xff]   ;;  %v9387_v36 = vld [vmem:[%s12623_s3 + $0x4c] ss:$16 sps:$4 sm:$0xff]  }
 0x2cc   :  { %5277 = vmatprep.subr.bf16.mxu0 %v9293_v37  ;;  %5769 = vmatprep.subr.bf16.mxu1 %v9296_v38  ;;  %v9382_v37 = vld [vmem:[%s12623_s3 + $0x40] ss:$16 sps:$4 sm:$0xff]   ;;  %v9385_v38 = vld [vmem:[%s12623_s3 + $0x48] ss:$16 sps:$4 sm:$0xff]  }
 0x2cf   :  { %5278 = vmatpush1.bf16.msra.mxu0 %v9291_v28  ;;  %5770 = vmatpush1.bf16.msra.mxu1 %v9294_v40  ;;  %v9390_v28 = vld [vmem:[%s12623_s3 + $0x64] ss:$16 sps:$4 sm:$0xff]   ;;  %v9393_v40 = vld [vmem:[%s12623_s3 + $0x6c] ss:$16 sps:$4 sm:$0xff]  }
 0x2d0   :  { %5279 = vmatprep.subr.bf16.mxu0 %v9299_v41  ;;  %5771 = vmatprep.subr.bf16.mxu1 %v9302_v24  ;;  %v9388_v41 = vld [vmem:[%s12623_s3 + $0x60] ss:$16 sps:$4 sm:$0xff]   ;;  %v9391_v24 = vld [vmem:[%s12623_s3 + $0x68] ss:$16 sps:$4 sm:$0xff]  }
 0x2d3   :  { %5280 = vmatpush1.bf16.msra.mxu0 %v9297_v44  ;;  %5772 = vmatpush1.bf16.msra.mxu1 %v9300_v45  ;;  %v9396_v44 = vld [vmem:[%s12623_s3 + $0x84] ss:$16 sps:$4 sm:$0xff]   ;;  %v9399_v45 = vld [vmem:[%s12623_s3 + $0x8c] ss:$16 sps:$4 sm:$0xff]  }
 0x2d4   :  { %5281 = vmatprep.subr.bf16.mxu0 %v9305_v46  ;;  %5773 = vmatprep.subr.bf16.mxu1 %v9308_v48  ;;  %v9394_v46 = vld [vmem:[%s12623_s3 + $0x80] ss:$16 sps:$4 sm:$0xff]   ;;  %v9397_v48 = vld [vmem:[%s12623_s3 + $0x88] ss:$16 sps:$4 sm:$0xff]  }
 0x2d7   :  { %5282 = vmatpush1.bf16.msra.mxu0 %v9303_v32  ;;  %5774 = vmatpush1.bf16.msra.mxu1 %v9306_v50  ;;  %v9402_v32 = vld [vmem:[%s12623_s3 + $0xa4] ss:$16 sps:$4 sm:$0xff]   ;;  %v9405_v50 = vld [vmem:[%s12623_s3 + $0xac] ss:$16 sps:$4 sm:$0xff]  }
 0x2d8   :  { %5283 = vmatprep.subr.bf16.mxu0 %v9311_v51  ;;  %5775 = vmatprep.subr.bf16.mxu1 %v9314_v52  ;;  %v9400_v51 = vld [vmem:[%s12623_s3 + $0xa0] ss:$16 sps:$4 sm:$0xff]   ;;  %v9403_v52 = vld [vmem:[%s12623_s3 + $0xa8] ss:$16 sps:$4 sm:$0xff]  }
 0x2db   :  { %5284 = vmatpush1.bf16.msra.mxu0 %v9309_v53  ;;  %5776 = vmatpush1.bf16.msra.mxu1 %v9312_v54  ;;  %v9408_v53 = vld [vmem:[%s12623_s3 + $0xc4] ss:$16 sps:$4 sm:$0xff]   ;;  %v9411_v54 = vld [vmem:[%s12623_s3 + $0xcc] ss:$16 sps:$4 sm:$0xff]  }
 0x2dc   :  { %5285 = vmatprep.subr.bf16.mxu0 %v9317_v42  ;;  %5777 = vmatprep.subr.bf16.mxu1 %v9320_v56  ;;  %v9406_v42 = vld [vmem:[%s12623_s3 + $0xc0] ss:$16 sps:$4 sm:$0xff]   ;;  %v9409_v56 = vld [vmem:[%s12623_s3 + $0xc8] ss:$16 sps:$4 sm:$0xff]  }
 0x2df   :  { %5286 = vmatpush1.bf16.msra.mxu0 %v9315_v39  ;;  %5778 = vmatpush1.bf16.msra.mxu1 %v9318_v58  ;;  %v9414_v39 = vld [vmem:[%s12623_s3 + $0xe4] ss:$16 sps:$4 sm:$0xff]   ;;  %v9417_v58 = vld [vmem:[%s12623_s3 + $0xec] ss:$16 sps:$4 sm:$0xff]  }
 0x2e0   :  { %5287 = vmatprep.subr.bf16.mxu0 %v9323_v59  ;;  %5779 = vmatprep.subr.bf16.mxu1 %v9326_v60  ;;  %v9412_v59 = vld [vmem:[%s12623_s3 + $0xe0] ss:$16 sps:$4 sm:$0xff]   ;;  %v9415_v60 = vld [vmem:[%s12623_s3 + $0xe8] ss:$16 sps:$4 sm:$0xff]  }
 0x2e3   :  { %5288 = vmatpush1.bf16.msra.mxu0 %v9321_v61  ;;  %5780 = vmatpush1.bf16.msra.mxu1 %v9324_v63  ;;  %v9420_v61 = vld [vmem:[%s12623_s3 + $0x104] ss:$16 sps:$4 sm:$0xff]   ;;  %v9423_v63 = vld [vmem:[%s12623_s3 + $0x10c] ss:$16 sps:$4 sm:$0xff]  }
 0x2e4   :  { %5289 = vmatprep.subr.bf16.mxu0 %v9329_v47  ;;  %5781 = vmatprep.subr.bf16.mxu1 %v9332_v0  ;;  %v9418_v47 = vld [vmem:[%s12623_s3 + $0x100] ss:$16 sps:$4 sm:$0xff]   ;;  %v9421_v0 = vld [vmem:[%s12623_s3 + $0x108] ss:$16 sps:$4 sm:$0xff]  }
 0x2e7   :  { %5290 = vmatpush1.bf16.msra.mxu0 %v9327_v1  ;;  %5782 = vmatpush1.bf16.msra.mxu1 %v9330_v2  ;;  %v9426_v1 = vld [vmem:[%s12623_s3 + $0x124] ss:$16 sps:$4 sm:$0xff]   ;;  %v9429_v2 = vld [vmem:[%s12623_s3 + $0x12c] ss:$16 sps:$4 sm:$0xff]  }
 0x2e8   :  { %5291 = vmatprep.subr.bf16.mxu0 %v9335_v3  ;;  %5783 = vmatprep.subr.bf16.mxu1 %v9338_v4  ;;  %v9424_v3 = vld [vmem:[%s12623_s3 + $0x120] ss:$16 sps:$4 sm:$0xff]   ;;  %v9427_v4 = vld [vmem:[%s12623_s3 + $0x128] ss:$16 sps:$4 sm:$0xff]  }
 0x2eb   :  { %5292 = vmatpush1.bf16.msra.mxu0 %v9333_v57  ;;  %5784 = vmatpush1.bf16.msra.mxu1 %v9336_v6  ;;  %v9432_v57 = vld [vmem:[%s12623_s3 + $0x144] ss:$16 sps:$4 sm:$0xff]   ;;  %v9435_v6 = vld [vmem:[%s12623_s3 + $0x14c] ss:$16 sps:$4 sm:$0xff]  }
 0x2ec   :  { %5293 = vmatprep.subr.bf16.mxu0 %v9341_v55  ;;  %5785 = vmatprep.subr.bf16.mxu1 %v9344_v8  ;;  %v9430_v55 = vld [vmem:[%s12623_s3 + $0x140] ss:$16 sps:$4 sm:$0xff]   ;;  %v9433_v8 = vld [vmem:[%s12623_s3 + $0x148] ss:$16 sps:$4 sm:$0xff]  }
 0x2ef   :  { %5294 = vmatpush1.bf16.msra.mxu0 %v9339_v10  ;;  %5786 = vmatpush1.bf16.msra.mxu1 %v9342_v11  ;;  %v9438_v10 = vld [vmem:[%s12623_s3 + $0x164] ss:$16 sps:$4 sm:$0xff]   ;;  %v9441_v11 = vld [vmem:[%s12623_s3 + $0x16c] ss:$16 sps:$4 sm:$0xff]  }
 0x2f0   :  { %5295 = vmatprep.subr.bf16.mxu0 %v9347_v12  ;;  %5787 = vmatprep.subr.bf16.mxu1 %v9350_v14  ;;  %v9436_v12 = vld [vmem:[%s12623_s3 + $0x160] ss:$16 sps:$4 sm:$0xff]   ;;  %v9439_v14 = vld [vmem:[%s12623_s3 + $0x168] ss:$16 sps:$4 sm:$0xff]  }
 0x2f3   :  { %5296 = vmatpush1.bf16.msra.mxu0 %v9345_v62  ;;  %5788 = vmatpush1.bf16.msra.mxu1 %v9348_v15  ;;  %v9444_v62 = vld [vmem:[%s12623_s3 + $0x184] ss:$16 sps:$4 sm:$0xff]   ;;  %v9447_v15 = vld [vmem:[%s12623_s3 + $0x18c] ss:$16 sps:$4 sm:$0xff]  }
 0x2f4   :  { %5297 = vmatprep.subr.bf16.mxu0 %v9353_v16  ;;  %5789 = vmatprep.subr.bf16.mxu1 %v9356_v17  ;;  %v9442_v16 = vld [vmem:[%s12623_s3 + $0x180] ss:$16 sps:$4 sm:$0xff]   ;;  %v9445_v17 = vld [vmem:[%s12623_s3 + $0x188] ss:$16 sps:$4 sm:$0xff]  }
 0x2f7   :  { %5298 = vmatpush1.bf16.msra.mxu0 %v9351_v18  ;;  %5790 = vmatpush1.bf16.msra.mxu1 %v9354_v19  ;;  %v9450_v18 = vld [vmem:[%s12623_s3 + $0x1a4] ss:$16 sps:$4 sm:$0xff]   ;;  %v9453_v19 = vld [vmem:[%s12623_s3 + $0x1ac] ss:$16 sps:$4 sm:$0xff]  }
 0x2f8   :  { %5299 = vmatprep.subr.bf16.mxu0 %v9359_v7  ;;  %5791 = vmatprep.subr.bf16.mxu1 %v9362_v21  ;;  %v9448_v7 = vld [vmem:[%s12623_s3 + $0x1a0] ss:$16 sps:$4 sm:$0xff]   ;;  %v9451_v21 = vld [vmem:[%s12623_s3 + $0x1a8] ss:$16 sps:$4 sm:$0xff]  }
 0x2fb   :  { %5300 = vmatpush1.bf16.msra.mxu0 %v9357_v5  ;;  %5792 = vmatpush1.bf16.msra.mxu1 %v9360_v22  ;;  %v9456_v5 = vld [vmem:[%s12623_s3 + $0x1c4] ss:$16 sps:$4 sm:$0xff]   ;;  %v9459_v22 = vld [vmem:[%s12623_s3 + $0x1cc] ss:$16 sps:$4 sm:$0xff]  }
 0x2fc   :  { %5301 = vmatprep.subr.bf16.mxu0 %v9365_v49  ;;  %5793 = vmatprep.subr.bf16.mxu1 %v9368_v23  ;;  %v9454_v49 = vld [vmem:[%s12623_s3 + $0x1c0] ss:$16 sps:$4 sm:$0xff]   ;;  %v9457_v23 = vld [vmem:[%s12623_s3 + $0x1c8] ss:$16 sps:$4 sm:$0xff]  }
 0x2ff   :  { %5302 = vmatpush1.bf16.msra.mxu0 %v9363_v9  ;;  %5794 = vmatpush1.bf16.msra.mxu1 %v9366_v26  ;;  %v9462_v9 = vld [vmem:[%s12623_s3 + $0x1e4] ss:$16 sps:$4 sm:$0xff]   ;;  %v9465_v26 = vld [vmem:[%s12623_s3 + $0x1ec] ss:$16 sps:$4 sm:$0xff]  }
 0x300   :  { %6602 = vmatprep.subr.bf16.mxu0 %v9372_v27  ;;  %6684 = vmatprep.subr.bf16.mxu1 %v9375_v29  ;;  %v9460_v27 = vld [vmem:[%s12623_s3 + $0x1e0] ss:$16 sps:$4 sm:$0xff]   ;;  %v9463_v29 = vld [vmem:[%s12623_s3 + $0x1e8] ss:$16 sps:$4 sm:$0xff]  }
 0x302   :  { %5304 = vmatmul.mubr.bf16.vlgmr.msra.gmra.mrb[0].mxu0 %v188_v13  ;;  %5796 = vmatmul.mubr.bf16.vlgmr.msra.gmra.mrb[0].mxu1 %v188_v13  ;;  %v9468_v13 = vld [vmem:[%s12623_s3 + $0x204] ss:$16 sps:$4 sm:$0xff]  }
 0x303   :  { %6603 = vmatpush1.bf16.msra.mxu0 %v9370_v30  ;;  %6685 = vmatpush1.bf16.msra.mxu1 %v9373_v31  ;;  %v9471_v30 = vld [vmem:[%s12623_s3 + $0x20c] ss:$16 sps:$4 sm:$0xff]   ;;  %v962_v31 = vsub.s32 0, %v9777_v43 }
 0x304   :  { %6604 = vmatprep.subr.bf16.mxu0 %v9378_v33  ;;  %6686 = vmatprep.subr.bf16.mxu1 %v9381_v20  ;;  %v12292_v33 = vld [vmem:[%s12622_s2] sm:$0xf]  ;;  %v966_v20 = vsub.s32 1, %v9777_v43 }
 0x307   :  { %6605 = vmatpush1.bf16.msra.mxu0 %v9376_v25  ;;  %6687 = vmatpush1.bf16.msra.mxu1 %v9379_v34  ;;  %v974_v25 = vsub.s32 3, %v9777_v43  ;;  %v963_v34 = vrot.slane %v12292_v33, %v962_v31 }
 0x308   :  { %6606 = vmatprep.subr.bf16.mxu0 %v9384_v35  ;;  %6688 = vmatprep.subr.bf16.mxu1 %v9387_v36  ;;  %v967_v35 = vrot.slane %v12292_v33, %v966_v20 }
 0x309   :  { %v975_v36 = vrot.slane %v12292_v33, %v974_v25 }
 0x30b   :  { %6607 = vmatpush1.bf16.msra.mxu0 %v9382_v37  ;;  %6689 = vmatpush1.bf16.msra.mxu1 %v9385_v38 }
 0x30c   :  { %6608 = vmatprep.subr.bf16.mxu0 %v9390_v28  ;;  %6690 = vmatprep.subr.bf16.mxu1 %v9393_v40 }
 0x30f   :  { %6609 = vmatpush1.bf16.msra.mxu0 %v9388_v41  ;;  %6691 = vmatpush1.bf16.msra.mxu1 %v9391_v24 }
 0x310   :  { %6610 = vmatprep.subr.bf16.mxu0 %v9396_v44  ;;  %6692 = vmatprep.subr.bf16.mxu1 %v9399_v45 }
 0x313   :  { %6611 = vmatpush1.bf16.msra.mxu0 %v9394_v46  ;;  %6693 = vmatpush1.bf16.msra.mxu1 %v9397_v48 }
 0x314   :  { %6612 = vmatprep.subr.bf16.mxu0 %v9402_v32  ;;  %6694 = vmatprep.subr.bf16.mxu1 %v9405_v50 }
 0x317   :  { %6613 = vmatpush1.bf16.msra.mxu0 %v9400_v51  ;;  %6695 = vmatpush1.bf16.msra.mxu1 %v9403_v52 }
 0x318   :  { %6614 = vmatprep.subr.bf16.mxu0 %v9408_v53  ;;  %6696 = vmatprep.subr.bf16.mxu1 %v9411_v54  ;;  %v9466_v54 = vld [vmem:[%s12623_s3 + $0x200] ss:$16 sps:$4 sm:$0xff]  }
 0x31b   :  { %6615 = vmatpush1.bf16.msra.mxu0 %v9406_v42  ;;  %6697 = vmatpush1.bf16.msra.mxu1 %v9409_v56  ;;  %v9469_v42 = vld [vmem:[%s12623_s3 + $0x208] ss:$16 sps:$4 sm:$0xff]  }
 0x31c   :  { %6616 = vmatprep.subr.bf16.mxu0 %v9414_v39  ;;  %6698 = vmatprep.subr.bf16.mxu1 %v9417_v58  ;;  %v9474_v39 = vld [vmem:[%s12623_s3 + $0x224] ss:$16 sps:$4 sm:$0xff]   ;;  %v9477_v58 = vld [vmem:[%s12623_s3 + $0x22c] ss:$16 sps:$4 sm:$0xff]  }
 0x31f   :  { %6617 = vmatpush1.bf16.msra.mxu0 %v9412_v59  ;;  %6699 = vmatpush1.bf16.msra.mxu1 %v9415_v60  ;;  %v9472_v60 = vld [vmem:[%s12623_s3 + $0x220] ss:$16 sps:$4 sm:$0xff]  }
 0x320   :  { %6618 = vmatprep.subr.bf16.mxu0 %v9420_v61  ;;  %6700 = vmatprep.subr.bf16.mxu1 %v9423_v63  ;;  %v9475_v61 = vld [vmem:[%s12623_s3 + $0x228] ss:$16 sps:$4 sm:$0xff]   ;;  %v9480_v63 = vld [vmem:[%s12623_s3 + $0x244] ss:$16 sps:$4 sm:$0xff]  }
 0x323   :  { %6619 = vmatpush1.bf16.msra.mxu0 %v9418_v47  ;;  %6701 = vmatpush1.bf16.msra.mxu1 %v9421_v0  ;;  %v9483_v47 = vld [vmem:[%s12623_s3 + $0x24c] ss:$16 sps:$4 sm:$0xff]   ;;  %v9478_v0 = vld [vmem:[%s12623_s3 + $0x240] ss:$16 sps:$4 sm:$0xff]  }
 0x324   :  { %6620 = vmatprep.subr.bf16.mxu0 %v9426_v1  ;;  %6702 = vmatprep.subr.bf16.mxu1 %v9429_v2  ;;  %v9481_v1 = vld [vmem:[%s12623_s3 + $0x248] ss:$16 sps:$4 sm:$0xff]   ;;  %v9486_v2 = vld [vmem:[%s12623_s3 + $0x264] ss:$16 sps:$4 sm:$0xff]  }
 0x327   :  { %6621 = vmatpush1.bf16.msra.mxu0 %v9424_v3  ;;  %6703 = vmatpush1.bf16.msra.mxu1 %v9427_v4  ;;  %v9489_v3 = vld [vmem:[%s12623_s3 + $0x26c] ss:$16 sps:$4 sm:$0xff]   ;;  %v9484_v4 = vld [vmem:[%s12623_s3 + $0x260] ss:$16 sps:$4 sm:$0xff]  }
 0x328   :  { %6622 = vmatprep.subr.bf16.mxu0 %v9432_v57  ;;  %6704 = vmatprep.subr.bf16.mxu1 %v9435_v6  ;;  %v9487_v57 = vld [vmem:[%s12623_s3 + $0x268] ss:$16 sps:$4 sm:$0xff]   ;;  %v9492_v6 = vld [vmem:[%s12623_s3 + $0x284] ss:$16 sps:$4 sm:$0xff]  }
 0x32b   :  { %6623 = vmatpush1.bf16.msra.mxu0 %v9430_v55  ;;  %6705 = vmatpush1.bf16.msra.mxu1 %v9433_v8  ;;  %v9495_v55 = vld [vmem:[%s12623_s3 + $0x28c] ss:$16 sps:$4 sm:$0xff]   ;;  %v9490_v8 = vld [vmem:[%s12623_s3 + $0x280] ss:$16 sps:$4 sm:$0xff]  }
 0x32c   :  { %6624 = vmatprep.subr.bf16.mxu0 %v9438_v10  ;;  %6706 = vmatprep.subr.bf16.mxu1 %v9441_v11  ;;  %v9493_v10 = vld [vmem:[%s12623_s3 + $0x288] ss:$16 sps:$4 sm:$0xff]   ;;  %v9498_v11 = vld [vmem:[%s12623_s3 + $0x2a4] ss:$16 sps:$4 sm:$0xff]  }
 0x32f   :  { %6625 = vmatpush1.bf16.msra.mxu0 %v9436_v12  ;;  %6707 = vmatpush1.bf16.msra.mxu1 %v9439_v14  ;;  %v9501_v12 = vld [vmem:[%s12623_s3 + $0x2ac] ss:$16 sps:$4 sm:$0xff]   ;;  %v9496_v14 = vld [vmem:[%s12623_s3 + $0x2a0] ss:$16 sps:$4 sm:$0xff]  }
 0x330   :  { %6626 = vmatprep.subr.bf16.mxu0 %v9444_v62  ;;  %6708 = vmatprep.subr.bf16.mxu1 %v9447_v15  ;;  %v9499_v62 = vld [vmem:[%s12623_s3 + $0x2a8] ss:$16 sps:$4 sm:$0xff]   ;;  %v9504_v15 = vld [vmem:[%s12623_s3 + $0x2c4] ss:$16 sps:$4 sm:$0xff]  }
 0x333   :  { %6627 = vmatpush1.bf16.msra.mxu0 %v9442_v16  ;;  %6709 = vmatpush1.bf16.msra.mxu1 %v9445_v17  ;;  %v9507_v16 = vld [vmem:[%s12623_s3 + $0x2cc] ss:$16 sps:$4 sm:$0xff]   ;;  %v9502_v17 = vld [vmem:[%s12623_s3 + $0x2c0] ss:$16 sps:$4 sm:$0xff]  }
 0x334   :  { %6628 = vmatprep.subr.bf16.mxu0 %v9450_v18  ;;  %6710 = vmatprep.subr.bf16.mxu1 %v9453_v19  ;;  %v9505_v18 = vld [vmem:[%s12623_s3 + $0x2c8] ss:$16 sps:$4 sm:$0xff]   ;;  %v9510_v19 = vld [vmem:[%s12623_s3 + $0x2e4] ss:$16 sps:$4 sm:$0xff]  }
 0x337   :  { %6629 = vmatpush1.bf16.msra.mxu0 %v9448_v7  ;;  %6711 = vmatpush1.bf16.msra.mxu1 %v9451_v21  ;;  %v9513_v7 = vld [vmem:[%s12623_s3 + $0x2ec] ss:$16 sps:$4 sm:$0xff]   ;;  %v9508_v21 = vld [vmem:[%s12623_s3 + $0x2e0] ss:$16 sps:$4 sm:$0xff]  }
 0x338   :  { %6630 = vmatprep.subr.bf16.mxu0 %v9456_v5  ;;  %6712 = vmatprep.subr.bf16.mxu1 %v9459_v22  ;;  %v9511_v5 = vld [vmem:[%s12623_s3 + $0x2e8] ss:$16 sps:$4 sm:$0xff]   ;;  %v9516_v22 = vld [vmem:[%s12623_s3 + $0x304] ss:$16 sps:$4 sm:$0xff]  }
 0x33b   :  { %6631 = vmatpush1.bf16.msra.mxu0 %v9454_v49  ;;  %6713 = vmatpush1.bf16.msra.mxu1 %v9457_v23  ;;  %v9519_v49 = vld [vmem:[%s12623_s3 + $0x30c] ss:$16 sps:$4 sm:$0xff]   ;;  %v9514_v23 = vld [vmem:[%s12623_s3 + $0x300] ss:$16 sps:$4 sm:$0xff]  }
 0x33c   :  { %6632 = vmatprep.subr.bf16.mxu0 %v9462_v9  ;;  %6714 = vmatprep.subr.bf16.mxu1 %v9465_v26  ;;  %v9517_v9 = vld [vmem:[%s12623_s3 + $0x308] ss:$16 sps:$4 sm:$0xff]   ;;  %v9522_v26 = vld [vmem:[%s12623_s3 + $0x324] ss:$16 sps:$4 sm:$0xff]  }
 0x33f   :  { %6633 = vmatpush1.bf16.msra.mxu0 %v9460_v27  ;;  %6715 = vmatpush1.bf16.msra.mxu1 %v9463_v29  ;;  %v9525_v27 = vld [vmem:[%s12623_s3 + $0x32c] ss:$16 sps:$4 sm:$0xff]   ;;  %v9520_v29 = vld [vmem:[%s12623_s3 + $0x320] ss:$16 sps:$4 sm:$0xff]  }
 0x340   :  { %6643 = vmatprep.subr.bf16.mxu0 %v9468_v13  ;;  %6725 = vmatprep.subr.bf16.mxu1 %v9471_v30  ;;  %v9523_v13 = vld [vmem:[%s12623_s3 + $0x328] ss:$16 sps:$4 sm:$0xff]   ;;  %v9528_v30 = vld [vmem:[%s12623_s3 + $0x344] ss:$16 sps:$4 sm:$0xff]  }
 0x3d5   :  { %v5305_v37 = vpop.f32.mrb[0].mxu0  ;;  %v12305_v38 = vpop.f32.mrb[0].mxu1 }
 0x3d6   :  { %v8106_v28 = vadd.f32 %v5305_v37, %v963_v34  ;;  %v5307_v40 = vpop.f32.mrb[1].mxu0  ;;  %v5799_v41 = vpop.f32.mrb[1].mxu1  ;;  %v9531_v34 = vld [vmem:[%s12623_s3 + $0x34c] ss:$16 sps:$4 sm:$0xff]   ;;  %v9534_v37 = vld [vmem:[%s12623_s3 + $0x364] ss:$16 sps:$4 sm:$0xff]  }
 0x3d7   :  { %v8107_v24 = vadd.f32 %v5307_v40, %v967_v35  ;;  %v8109_v44 = vadd.f32 %v5799_v41, %v975_v36  ;;  %v5309_v45 = vpop.f32.mrb[2].mxu0  ;;  %v5801_v46 = vpop.f32.mrb[2].mxu1  ;;  %v9526_v35 = vld [vmem:[%s12623_s3 + $0x340] ss:$16 sps:$4 sm:$0xff]   ;;  %v9529_v36 = vld [vmem:[%s12623_s3 + $0x348] ss:$16 sps:$4 sm:$0xff]  }
 0x3d8   :  { %v5804_v48 = vmax.f32 %v8106_v28, 0.0  ;;  %v5310_v32 = vpop.f32.mrb[3].mxu0  ;;  %v5802_v50 = vpop.f32.mrb[3].mxu1  ;;  %v9537_v28 = vld [vmem:[%s12623_s3 + $0x36c] ss:$16 sps:$4 sm:$0xff]  }
 0x3d9   :  { %v5805_v51 = vmax.f32 %v8107_v24, 0.0  ;;  %v5807_v52 = vmax.f32 %v8109_v44, 0.0  ;;  %v9532_v40 = vld [vmem:[%s12623_s3 + $0x360] ss:$16 sps:$4 sm:$0xff]   ;;  %v9535_v41 = vld [vmem:[%s12623_s3 + $0x368] ss:$16 sps:$4 sm:$0xff]  }
 0x3da   :  { %v5808_v56 = vpack.c.bf16 %v5804_v48, %v5804_v48  ;;  %v9540_v24 = vld [vmem:[%s12623_s3 + $0x384] ss:$16 sps:$4 sm:$0xff]   ;;  %v9543_v44 = vld [vmem:[%s12623_s3 + $0x38c] ss:$16 sps:$4 sm:$0xff]   ;;  %v9538_v45 = vld [vmem:[%s12623_s3 + $0x380] ss:$16 sps:$4 sm:$0xff]  }
 0x3db   :  { %v5809_v53 = vpack.c.bf16 %v5805_v51, %v5805_v51  ;;  %v5811_v59 = vpack.c.bf16 %v5807_v52, %v5807_v52  ;;  %v9541_v46 = vld [vmem:[%s12623_s3 + $0x388] ss:$16 sps:$4 sm:$0xff]   ;;  %v970_v48 = vsub.s32 2, %v9777_v43  ;;  %v9546_v32 = vld [vmem:[%s12623_s3 + $0x3a4] ss:$16 sps:$4 sm:$0xff]  }
 0x3dc   :  { %v9549_v50 = vld [vmem:[%s12623_s3 + $0x3ac] ss:$16 sps:$4 sm:$0xff]   ;;  %v9544_v51 = vld [vmem:[%s12623_s3 + $0x3a0] ss:$16 sps:$4 sm:$0xff]   ;;  %v9547_v52 = vld [vmem:[%s12623_s3 + $0x3a8] ss:$16 sps:$4 sm:$0xff]  }
 0x3dd   :  { %6634 = vmatprep.mubr.bf16.mxu0 %v5809_v53  ;;  %6716 = vmatprep.mubr.bf16.mxu1 %v5809_v53  ;;  %v971_v53 = vrot.slane %v12292_v33, %v970_v48  ;;  %v9553_v33 = vld [vmem:[%s12623_s3 + $0x3c8] ss:$16 sps:$4 sm:$0xff]  }
 0x3de   :  { %6635 = vmatmul.mubr.bf16.vlgmr.msra.gmra.mrb[4].mxu0 %v5808_v56  ;;  %6717 = vmatmul.mubr.bf16.vlgmr.msra.gmra.mrb[4].mxu1 %v5808_v56  ;;  %v9550_v56 = vld [vmem:[%s12623_s3 + $0x3c0] ss:$16 sps:$4 sm:$0xff]  }
 0x3df   :  { %6644 = vmatpush1.bf16.msra.mxu0 %v9466_v54  ;;  %6726 = vmatpush1.bf16.msra.mxu1 %v9469_v42  ;;  %v9552_v54 = vld [vmem:[%s12623_s3 + $0x3c4] ss:$16 sps:$4 sm:$0xff]   ;;  %v9555_v42 = vld [vmem:[%s12623_s3 + $0x3cc] ss:$16 sps:$4 sm:$0xff]  }
 0x3e0   :  { %6675 = vmatprep.mubr.bf16.mxu0 %v5811_v59  ;;  %6757 = vmatprep.mubr.bf16.mxu1 %v5811_v59  ;;  %v9561_v59 = vld [vmem:[%s12623_s3 + $0x3ec] ss:$16 sps:$4 sm:$0xff]  }
 0x3e1   :  { %6645 = vmatprep.subr.bf16.mxu0 %v9474_v39  ;;  %6727 = vmatprep.subr.bf16.mxu1 %v9477_v58  ;;  %v8108_v39 = vadd.f32 %v12305_v38, %v971_v53  ;;  %v9558_v58 = vld [vmem:[%s12623_s3 + $0x3e4] ss:$16 sps:$4 sm:$0xff]   ;;  %v9559_v38 = vld [vmem:[%s12623_s3 + $0x3e8] ss:$16 sps:$4 sm:$0xff]  }
 0x3e3   :  { %6646 = vmatpush1.bf16.msra.mxu0 %v9472_v60  ;;  %6728 = vmatpush1.bf16.msra.mxu1 %v9475_v61  ;;  %v9556_v60 = vld [vmem:[%s12623_s3 + $0x3e0] ss:$16 sps:$4 sm:$0xff]   ;;  %v5806_v61 = vmax.f32 %v8108_v39, 0.0 }
 0x3e4   :  { %6647 = vmatprep.subr.bf16.mxu0 %v9480_v63  ;;  %6729 = vmatprep.subr.bf16.mxu1 %v9483_v47  ;;  %v9562_v63 = vld [vmem:[%s12625_s5 + $0x40] sm:$0xff]  }
 0x3e5   :  { %v9563_v47 = vld [vmem:[%s12625_s5 + $0xc0] sm:$0xff]  }
 0x3e7   :  { %6648 = vmatpush1.bf16.msra.mxu0 %v9478_v0  ;;  %6730 = vmatpush1.bf16.msra.mxu1 %v9481_v1  ;;  %v9564_v0 = vld [vmem:[%s12625_s5] sm:$0xff]  }
 0x3e8   :  { %6649 = vmatprep.subr.bf16.mxu0 %v9486_v2  ;;  %6731 = vmatprep.subr.bf16.mxu1 %v9489_v3  ;;  %v9565_v1 = vld [vmem:[%s12625_s5 + $0x80] sm:$0xff]   ;;  %v5810_v2 = vpack.c.bf16 %v5806_v61, %v5806_v61  ;;  %v9566_v3 = vld [vmem:[%s12625_s5 + $0x48] sm:$0xff]  }
 0x3eb   :  { %6650 = vmatpush1.bf16.msra.mxu0 %v9484_v4  ;;  %6732 = vmatpush1.bf16.msra.mxu1 %v9487_v57  ;;  %v9567_v4 = vld [vmem:[%s12625_s5 + $0xc8] sm:$0xff]  }
 0x3ec   :  { %6651 = vmatprep.subr.bf16.mxu0 %v9492_v6  ;;  %6733 = vmatprep.subr.bf16.mxu1 %v9495_v55  ;;  %v9568_v57 = vld [vmem:[%s12625_s5 + $0x8] sm:$0xff]   ;;  %v9570_v55 = vld [vmem:[%s12625_s5 + $0x50] sm:$0xff]  }
 0x3ed   :  { %v9569_v6 = vld [vmem:[%s12625_s5 + $0x88] sm:$0xff]  }
 0x3ef   :  { %6652 = vmatpush1.bf16.msra.mxu0 %v9490_v8  ;;  %6734 = vmatpush1.bf16.msra.mxu1 %v9493_v10  ;;  %v9571_v8 = vld [vmem:[%s12625_s5 + $0xd0] sm:$0xff]  }
 0x3f0   :  { %6653 = vmatprep.subr.bf16.mxu0 %v9498_v11  ;;  %6735 = vmatprep.subr.bf16.mxu1 %v9501_v12  ;;  %v9572_v10 = vld [vmem:[%s12625_s5 + $0x10] sm:$0xff]   ;;  %v9574_v12 = vld [vmem:[%s12625_s5 + $0x58] sm:$0xff]  }
 0x3f1   :  { %v9573_v11 = vld [vmem:[%s12625_s5 + $0x90] sm:$0xff]  }
 0x3f3   :  { %6654 = vmatpush1.bf16.msra.mxu0 %v9496_v14  ;;  %6736 = vmatpush1.bf16.msra.mxu1 %v9499_v62  ;;  %v9575_v14 = vld [vmem:[%s12625_s5 + $0xd8] sm:$0xff]  }
 0x3f4   :  { %6655 = vmatprep.subr.bf16.mxu0 %v9504_v15  ;;  %6737 = vmatprep.subr.bf16.mxu1 %v9507_v16  ;;  %v9576_v62 = vld [vmem:[%s12625_s5 + $0x18] sm:$0xff]   ;;  %v9578_v16 = vld [vmem:[%s12625_s5 + $0x60] sm:$0xff]  }
 0x3f5   :  { %v9577_v15 = vld [vmem:[%s12625_s5 + $0x98] sm:$0xff]  }
 0x3f7   :  { %6656 = vmatpush1.bf16.msra.mxu0 %v9502_v17  ;;  %6738 = vmatpush1.bf16.msra.mxu1 %v9505_v18  ;;  %v9579_v17 = vld [vmem:[%s12625_s5 + $0xe0] sm:$0xff]  }
 0x3f8   :  { %6657 = vmatprep.subr.bf16.mxu0 %v9510_v19  ;;  %6739 = vmatprep.subr.bf16.mxu1 %v9513_v7  ;;  %v9580_v18 = vld [vmem:[%s12625_s5 + $0x20] sm:$0xff]   ;;  %v9582_v7 = vld [vmem:[%s12625_s5 + $0x68] sm:$0xff]  }
 0x3f9   :  { %v9581_v19 = vld [vmem:[%s12625_s5 + $0xa0] sm:$0xff]  }
 0x3fb   :  { %6658 = vmatpush1.bf16.msra.mxu0 %v9508_v21  ;;  %6740 = vmatpush1.bf16.msra.mxu1 %v9511_v5  ;;  %v9583_v21 = vld [vmem:[%s12625_s5 + $0xe8] sm:$0xff]  }
 0x3fc   :  { %6659 = vmatprep.subr.bf16.mxu0 %v9516_v22  ;;  %6741 = vmatprep.subr.bf16.mxu1 %v9519_v49  ;;  %v9584_v5 = vld [vmem:[%s12625_s5 + $0x28] sm:$0xff]   ;;  %v9586_v49 = vld [vmem:[%s12625_s5 + $0x70] sm:$0xff]  }
 0x3fd   :  { %v9585_v22 = vld [vmem:[%s12625_s5 + $0xa8] sm:$0xff]  }
 0x3ff   :  { %6660 = vmatpush1.bf16.msra.mxu0 %v9514_v23  ;;  %6742 = vmatpush1.bf16.msra.mxu1 %v9517_v9  ;;  %v9587_v23 = vld [vmem:[%s12625_s5 + $0xf0] sm:$0xff]  }
 0x400   :  { %6661 = vmatprep.subr.bf16.mxu0 %v9522_v26  ;;  %6743 = vmatprep.subr.bf16.mxu1 %v9525_v27  ;;  %v9588_v9 = vld [vmem:[%s12625_s5 + $0x30] sm:$0xff]   ;;  %v9590_v27 = vld [vmem:[%s12625_s5 + $0x78] sm:$0xff]  }
 0x401   :  { %v9589_v26 = vld [vmem:[%s12625_s5 + $0xb0] sm:$0xff]  }
 0x403   :  { %6662 = vmatpush1.bf16.msra.mxu0 %v9520_v29  ;;  %6744 = vmatpush1.bf16.msra.mxu1 %v9523_v13  ;;  %v9591_v29 = vld [vmem:[%s12625_s5 + $0xf8] sm:$0xff]  }
 0x404   :  { %6663 = vmatprep.subr.bf16.mxu0 %v9528_v30  ;;  %6745 = vmatprep.subr.bf16.mxu1 %v9531_v34  ;;  %v9592_v13 = vld [vmem:[%s12625_s5 + $0x38] sm:$0xff]   ;;  %v5940_v34 = vld [vmem:[%s12624_s4] sm:$0xf] }
 0x405   :  { %v9593_v30 = vld [vmem:[%s12625_s5 + $0xb8] sm:$0xff]  }
 0x407   :  { %6664 = vmatpush1.bf16.msra.mxu0 %v9526_v35  ;;  %6746 = vmatpush1.bf16.msra.mxu1 %v9529_v36  ;;  %v5945_v35 = vrot.slane %v5940_v34, %v962_v31  ;;  %v5953_v36 = vrot.slane %v5940_v34, %v970_v48 }
 0x408   :  { %6665 = vmatprep.subr.bf16.mxu0 %v9534_v37  ;;  %6747 = vmatprep.subr.bf16.mxu1 %v9537_v28  ;;  %v5949_v37 = vrot.slane %v5940_v34, %v966_v20  ;;  %v5957_v28 = vrot.slane %v5940_v34, %v974_v25 }
 0x40b   :  { %6666 = vmatpush1.bf16.msra.mxu0 %v9532_v40  ;;  %6748 = vmatpush1.bf16.msra.mxu1 %v9535_v41 }
 0x40c   :  { %6667 = vmatprep.subr.bf16.mxu0 %v9540_v24  ;;  %6749 = vmatprep.subr.bf16.mxu1 %v9543_v44 }
 0x40f   :  { %6668 = vmatpush1.bf16.msra.mxu0 %v9538_v45  ;;  %6750 = vmatpush1.bf16.msra.mxu1 %v9541_v46 }
 0x410   :  { %6669 = vmatprep.subr.bf16.mxu0 %v9546_v32  ;;  %6751 = vmatprep.subr.bf16.mxu1 %v9549_v50 }
 0x413   :  { %6670 = vmatpush1.bf16.msra.mxu0 %v9544_v51  ;;  %6752 = vmatpush1.bf16.msra.mxu1 %v9547_v52 }
 0x414   :  { %6671 = vmatprep.subr.bf16.mxu0 %v9552_v54  ;;  %6753 = vmatprep.subr.bf16.mxu1 %v9555_v42 }
 0x417   :  { %6672 = vmatpush1.bf16.msra.mxu0 %v9550_v56  ;;  %6754 = vmatpush1.bf16.msra.mxu1 %v9553_v33 }
 0x418   :  { %6673 = vmatprep.subr.bf16.mxu0 %v9558_v58  ;;  %6755 = vmatprep.subr.bf16.mxu1 %v9561_v59  ;;  %v8029_v59 = vld [vmem:[%s12626_s6] ss:$0 sm:$0xff] }
 0x41b   :  { %6674 = vmatpush1.bf16.msra.mxu0 %v9556_v60  ;;  %6756 = vmatpush1.bf16.msra.mxu1 %v9559_v38 }
 0x41c   :  { %8062 = vmatprep.subr.bf16.mxu0 %v9562_v63  ;;  %8084 = vmatprep.subr.bf16.mxu1 %v9563_v47 }
 0x41e   :  { %6676 = vmatmul.mubr.bf16.vlgmr.msra.gmra.mrb[4].mxu0 %v5810_v2  ;;  %6758 = vmatmul.mubr.bf16.vlgmr.msra.gmra.mrb[4].mxu1 %v5810_v2 }
 0x41f   :  { %8063 = vmatpush3.bf16.msra.mxu0 %v9564_v0  ;;  %8085 = vmatpush3.bf16.msra.mxu1 %v9565_v1 }
 0x420   :  { %8064 = vmatprep.subr.bf16.mxu0 %v9566_v3  ;;  %8086 = vmatprep.subr.bf16.mxu1 %v9567_v4 }
 0x423   :  { %8065 = vmatpush3.bf16.msra.mxu0 %v9568_v57  ;;  %8087 = vmatpush3.bf16.msra.mxu1 %v9569_v6 }
 0x424   :  { %8066 = vmatprep.subr.bf16.mxu0 %v9570_v55  ;;  %8088 = vmatprep.subr.bf16.mxu1 %v9571_v8 }
 0x427   :  { %8067 = vmatpush3.bf16.msra.mxu0 %v9572_v10  ;;  %8089 = vmatpush3.bf16.msra.mxu1 %v9573_v11 }
 0x428   :  { %8068 = vmatprep.subr.bf16.mxu0 %v9574_v12  ;;  %8090 = vmatprep.subr.bf16.mxu1 %v9575_v14 }
 0x42b   :  { %8069 = vmatpush3.bf16.msra.mxu0 %v9576_v62  ;;  %8091 = vmatpush3.bf16.msra.mxu1 %v9577_v15 }
 0x42c   :  { %8070 = vmatprep.subr.bf16.mxu0 %v9578_v16  ;;  %8092 = vmatprep.subr.bf16.mxu1 %v9579_v17 }
 0x42f   :  { %8071 = vmatpush3.bf16.msra.mxu0 %v9580_v18  ;;  %8093 = vmatpush3.bf16.msra.mxu1 %v9581_v19 }
 0x430   :  { %8072 = vmatprep.subr.bf16.mxu0 %v9582_v7  ;;  %8094 = vmatprep.subr.bf16.mxu1 %v9583_v21 }
 0x433   :  { %8073 = vmatpush3.bf16.msra.mxu0 %v9584_v5  ;;  %8095 = vmatpush3.bf16.msra.mxu1 %v9585_v22 }
 0x434   :  { %8074 = vmatprep.subr.bf16.mxu0 %v9586_v49  ;;  %8096 = vmatprep.subr.bf16.mxu1 %v9587_v23 }
 0x437   :  { %8075 = vmatpush3.bf16.msra.mxu0 %v9588_v9  ;;  %8097 = vmatpush3.bf16.msra.mxu1 %v9589_v26 }
 0x438   :  { %8076 = vmatprep.subr.bf16.mxu0 %v9590_v27  ;;  %8098 = vmatprep.subr.bf16.mxu1 %v9591_v29 }
 0x43b   :  { %8077 = vmatpush3.bf16.msra.mxu0 %v9592_v13  ;;  %8099 = vmatpush3.bf16.msra.mxu1 %v9593_v30 }
 0x4f1   :  { %v6677_v40 = vpop.f32.mrb[4].mxu0  ;;  %v6759_v41 = vpop.f32.mrb[4].mxu1 }
 0x4f2   :  { %v8110_v24 = vadd.f32 %v6677_v40, %v5945_v35  ;;  %v8112_v44 = vadd.f32 %v6759_v41, %v5953_v36  ;;  %v6679_v45 = vpop.f32.mrb[5].mxu0  ;;  %v6761_v46 = vpop.f32.mrb[5].mxu1 }
 0x4f3   :  { %v8111_v32 = vadd.f32 %v6679_v45, %v5949_v37  ;;  %v8113_v50 = vadd.f32 %v6761_v46, %v5957_v28  ;;  %v6681_v51 = vpop.f32.mrb[6].mxu0  ;;  %v6763_v52 = vpop.f32.mrb[6].mxu1 }
 0x4f4   :  { %v6766_v31 = vmax.f32 %v8110_v24, 0.0  ;;  %v6768_v53 = vmax.f32 %v8112_v44, 0.0  ;;  %v6682_v54 = vpop.f32.mrb[7].mxu0  ;;  %v6764_v48 = vpop.f32.mrb[7].mxu1 }
 0x4f5   :  { %v6767_v42 = vmax.f32 %v8111_v32, 0.0  ;;  %v6769_v56 = vmax.f32 %v8113_v50, 0.0 }
 0x4f6   :  { %v6770_v43 = vpack.c.bf16 %v6766_v31, %v6766_v31  ;;  %v6772_v25 = vpack.c.bf16 %v6768_v53, %v6768_v53 }
 0x4f7   :  { %v6771_v20 = vpack.c.bf16 %v6767_v42, %v6767_v42  ;;  %v6773_v33 = vpack.c.bf16 %v6769_v56, %v6769_v56 }
 0x4f9   :  { %7069 = vmatprep.mubr.bf16.mxu0 %v6771_v20  ;;  %7109 = vmatprep.mubr.bf16.mxu1 %v6773_v33 }
 0x4fa   :  { %7070 = vmatmul.mubr.bf16.vlgmr.msra.gmra.mrb[8].mxu0 %v6770_v43  ;;  %7110 = vmatmul.mubr.bf16.vlgmr.msra.gmra.mrb[8].mxu1 %v6772_v25 }
 0x5cd   :  { %v8078_v39 = vpop.f32.mrb[8].mxu0  ;;  %v8100_v58 = vpop.f32.mrb[8].mxu1 }
 0x5ce   :  { %v8079_v60 = vpop.f32.mrb[9].mxu0  ;;  %v8101_v38 = vpop.f32.mrb[9].mxu1 }
 0x5cf   :  { %v8080_v61 = vadd.f32 %v8079_v60, %v8078_v39  ;;  %v8102_v63 = vadd.f32 %v8101_v38, %v8100_v58  ;;  %v8081_v47 = vpop.f32.mrb[10].mxu0  ;;  %v8103_v0 = vpop.f32.mrb[10].mxu1 }
 0x5d0   :  { %v8082_v1 = vpop.f32.mrb[11].mxu0  ;;  %v8104_v2 = vpop.f32.mrb[11].mxu1 }
 0x5d1   :  { %v7072_v3 = vadd.f32 %v8080_v61, %v8029_v59 }
 0x5d3   :  { %v7112_v4 = vadd.f32 %v8102_v63, %v7072_v3 }
 0x5d5   :  { %7118 = vst.msk [vmem:[#allocation2] sm:$0x3] %vm7117_vm0, %v7112_v4 }
 0x5d6   :  { %9605 = shalt.err (!%p9602_p4)
}
 0x5d7   :  { %s9606_s12 = scalar_lea.hbm %s12627_s7, 32 }
 0x5d8   :  { %p9607_p5 = scmp.ne.s32.totalorder %s12627_s7, %s9606_s12  ;;  %p9610_p6 = scmp.lt.u32.totalorder %s9606_s12, %s12627_s7 }
 0x5da   :  { %p9612_p7 = pnand %p9610_p6, %p9607_p5 }
 0x5dc   :  { %9615 = shalt.err (!%p9612_p7)
}
 0x5dd   :  { %7128 = dma.vmem_to_hbm [thread:$0]  %s7126_s9, 32, %s12627_s7, [#allocation3]  }
 0x5de   :  { %9616 = dma.done.wait [#allocation3], 32  }
 0x5df   :  { %9617 = vsyncadd [#allocation3], 4294967264 }
 0x5e0   :  { %7132 = vsyncpa [#allocation3], 1 }

// kernel: xvector_forward.2
= control target key start
LH: loop header
LB: loop body
LE: loop exit
PB: predicated region body
PF: predicated region fallthrough
CT: control target
= control target key end

     0   :  { %s16677_s0 = inlined_call_operand.vmem [shape: bf16[2,1,20,205], index: 0, kind: input, shape index: {}]   ;;  %s16678_s1 = inlined_call_operand.hbm [shape: bf16[205,512], index: 1, kind: input, shape index: {}]   ;;  %s16679_s2 = inlined_call_operand.hbm [shape: f32[1,512], index: 2, kind: input, shape index: {}]   ;;  %s16680_s3 = inlined_call_operand.hbm [shape: bf16[3,512,512], index: 3, kind: input, shape index: {}]   ;;  %s16681_s4 = inlined_call_operand.hbm [shape: f32[1,512], index: 4, kind: input, shape index: {}]   ;;  %s16682_s5 = inlined_call_operand.hbm [shape: bf16[3,512,512], index: 5, kind: input, shape index: {}]   ;;  %s16683_s6 = inlined_call_operand.hbm [shape: f32[1,512], index: 6, kind: input, shape index: {}]   ;;  %s16684_s7 = inlined_call_operand.hbm [shape: bf16[512,512], index: 7, kind: input, shape index: {}]   ;;  %s16685_s8 = inlined_call_operand.hbm [shape: f32[1,512], index: 8, kind: input, shape index: {}]   ;;  %s16686_s9 = inlined_call_operand.hbm [shape: bf16[512,1536], index: 9, kind: input, shape index: {}]   ;;  %s16687_s10 = inlined_call_operand.vmem [shape: f32[1,1536], index: 10, kind: input, shape index: {}]   ;;  %s16688_s11 = inlined_call_operand.vmem [shape: f32[2,2,1536], index: 11, kind: output, shape index: {}]  }
   0x1   :  { %16693 = sst [smem:[#allocation23_spill]] %s16679_s2 }
   0x2   :  { %16694 = sst [smem:[#allocation24_spill]] %s16681_s4 }
   0x3   :  { %16 = vsyncpa [#allocation4], 0 }
   0x4   :  { %17 = vsyncpa [#allocation6], 0 }
   0x5   :  { %18 = vsyncpa [#allocation9], 0 }
   0x6   :  { %19 = vsyncpa [#allocation12], 0 }
   0x7   :  { %20 = vsyncpa [#allocation15], 0  ;;  %s15819_s17 = smov 0   ;;  %s15821_s18 = smov 0  }
   0x8   :  { %s15823_s19 = smov 0  }
   0x9 LB: > { %16695 = sst [smem:[#allocation22_spill]] %s15741_s19  ;;  %s15743_s20 = smov [#allocation5]   ;;  %s15741_s19 = sphi %s15823_s19, %s26_s19   ;;  %s15737_s18 = sphi %s15821_s18, %s16712_s18   ;;  %s15733_s17 = sphi %s15819_s17, %s16711_s17  }
   0xa   : > { %s333_s21 = sshll.u32 %s15743_s20, 4  ;;  %s11733_s22 = sadd.s32 4294967295, %s15741_s19   ;;  %s15841_s21 = int_to_ptr.vmem [resolvable:$true] %s333_s21 }
   0xb   : > { %p11735_p0 = scmp.ge.s32.totalorder %s15741_s19, 1  ;;  %p307_p1 = scmp.lt.s32.totalorder %s15741_s19, 3 }
   0xc   : > { %p15837_p2 = scmp.eq.s32.totalorder %s11733_s22, 0  ;;  %s15744_s25 = smov [#allocation8]  }
   0xd   : > { %p15843_p3 = pnand %p11735_p0, %p307_p1  ;;  %s357_s26 = sshll.u32 %s15744_s25, 4  ;;  %s15849_s26 = int_to_ptr.vmem [resolvable:$true] %s357_s26 }
   0xe   : > { %s16696_s23 = scalar_select %p15837_p2, 1, 0 }
   0xf   : > { %s16697_s24 = scalar_select %p15843_p3, 1, 0 }
  0x10   : > { %p13353_p4 = pneg %p15843_p3  ;;  %s15745_s27 = smov [#allocation11]  }
  0x11   : > { %s381_s28 = sshll.u32 %s15745_s27, 4  ;;  %s15746_s30 = smov [#allocation14]   ;;  %s15857_s28 = int_to_ptr.vmem [resolvable:$true] %s381_s28 }
  0x12   : > { %p15853_p5 = pnand %p15837_p2, %p13353_p4  ;;  %s405_s12 = sshll.u32 %s15746_s30, 4  ;;  %s15859_s12 = int_to_ptr.vmem [resolvable:$true] %s405_s12 }
  0x13   : > { %s16699_s2 = sld [smem:[#allocation23_spill]] }
  0x14   : > { %p15869_p7 = pneg %p15853_p5 }
  0x19   : > { %s15447_s15 = scalar_lea.hbm %s16699_s2, 64 }
  0x1a   : > { %p15448_p6 = scmp.ne.s32.totalorder %s16699_s2, %s15447_s15  ;;  %p15454_p10 = scmp.lt.u32.totalorder %s15447_s15, %s16699_s2 }
  0x1c   : > { %p15450_p8 = pnand %p15869_p7, %p15448_p6 }
  0x1e   : > { %p15451_p9 = pneg %p15450_p8 }
  0x20   : > { %p15456_p11 = pnand %p15454_p10, %p15451_p9 }
  0x22   : > { %15459 = shalt.err (!%p15456_p11)
}
  0x23   : > { %s15460_s30 = scalar_lea.vmem %s15841_s21, 64  ;;  %p15468_p1 = scmp.lt.s32.totalorder %s15841_s21, %s15841_s21 }
  0x24   : > { %p15461_p12 = scmp.ne.s32.totalorder %s15841_s21, %s15460_s30  ;;  %p15469_p4 = scmp.lt.s32.totalorder %s15460_s30, %s15460_s30 }
  0x26   : > { %p15463_p13 = pnand %p15461_p12, %p15869_p7  ;;  %p15470_p6 = por %p15469_p4, %p15468_p1 }
  0x28   : > { %p15464_p0 = pneg %p15463_p13 }
  0x2a   : > { %p15471_p8 = pnand %p15470_p6, %p15464_p0 }
  0x2c   : > { %15474 = shalt.err (!%p15471_p8)
}
  0x2d   : > { %13359 = dma.hbm_to_vmem [thread:$0]  (!%p15853_p5), %s16699_s2, 64, %s15841_s21, [#allocation6]  }
  0x2e   : > { %s16701_s4 = sld [smem:[#allocation24_spill]] }
  0x34   : > { %s15475_s20 = scalar_lea.hbm %s16701_s4, 64 }
  0x35   : > { %p15476_p9 = scmp.ne.s32.totalorder %s16701_s4, %s15475_s20  ;;  %p15482_p12 = scmp.lt.u32.totalorder %s15475_s20, %s16701_s4 }
  0x37   : > { %p15478_p10 = pnand %p15476_p9, %p15869_p7 }
  0x39   : > { %p15479_p11 = pneg %p15478_p10 }
  0x3b   : > { %p15484_p13 = pnand %p15482_p12, %p15479_p11 }
  0x3d   : > { %15487 = shalt.err (!%p15484_p13)
}
  0x3e   : > { %s15488_s21 = scalar_lea.vmem %s15849_s26, 64  ;;  %p15496_p6 = scmp.lt.s32.totalorder %s15849_s26, %s15849_s26 }
  0x3f   : > { %p15489_p0 = scmp.ne.s32.totalorder %s15849_s26, %s15488_s21  ;;  %p15497_p8 = scmp.lt.s32.totalorder %s15488_s21, %s15488_s21 }
  0x41   : > { %p15491_p1 = pnand %p15489_p0, %p15869_p7  ;;  %p15498_p9 = por %p15497_p8, %p15496_p6 }
  0x43   : > { %p15492_p4 = pneg %p15491_p1 }
  0x45   : > { %p15499_p10 = pnand %p15498_p9, %p15492_p4 }
  0x47   : > { %15502 = shalt.err (!%p15499_p10)
}
  0x48   : > { %13365 = dma.hbm_to_vmem [thread:$0]  (!%p15853_p5), %s16701_s4, 64, %s15849_s26, [#allocation9]  }
  0x49   : > { %s15503_s16 = scalar_lea.hbm %s16683_s6, 64 }
  0x4a   : > { %p15504_p11 = scmp.ne.s32.totalorder %s16683_s6, %s15503_s16  ;;  %p15510_p0 = scmp.lt.u32.totalorder %s15503_s16, %s16683_s6 }
  0x4c   : > { %p15506_p12 = pnand %p15504_p11, %p15869_p7 }
  0x4e   : > { %p15507_p13 = pneg %p15506_p12 }
  0x50   : > { %p15512_p1 = pnand %p15510_p0, %p15507_p13 }
  0x52   : > { %15515 = shalt.err (!%p15512_p1)
}
  0x53   : > { %s15516_s26 = scalar_lea.vmem %s15857_s28, 64  ;;  %p15524_p9 = scmp.lt.s32.totalorder %s15857_s28, %s15857_s28 }
  0x54   : > { %p15517_p4 = scmp.ne.s32.totalorder %s15857_s28, %s15516_s26  ;;  %p15525_p10 = scmp.lt.s32.totalorder %s15516_s26, %s15516_s26 }
  0x56   : > { %p15519_p6 = pnand %p15517_p4, %p15869_p7  ;;  %p15526_p11 = por %p15525_p10, %p15524_p9 }
  0x58   : > { %p15520_p8 = pneg %p15519_p6 }
  0x5a   : > { %p15527_p12 = pnand %p15526_p11, %p15520_p8 }
  0x5c   : > { %15530 = shalt.err (!%p15527_p12)
}
  0x5d   : > { %13371 = dma.hbm_to_vmem [thread:$0]  (!%p15853_p5), %s16683_s6, 64, %s15857_s28, [#allocation12]  }
  0x5e   : > { %s15531_s15 = scalar_lea.hbm %s16685_s8, 64 }
  0x5f   : > { %p15532_p13 = scmp.ne.s32.totalorder %s16685_s8, %s15531_s15  ;;  %p15538_p4 = scmp.lt.u32.totalorder %s15531_s15, %s16685_s8 }
  0x61   : > { %p15534_p0 = pnand %p15532_p13, %p15869_p7 }
  0x63   : > { %p15535_p1 = pneg %p15534_p0 }
  0x65   : > { %p15540_p6 = pnand %p15538_p4, %p15535_p1 }
  0x67   : > { %15543 = shalt.err (!%p15540_p6)
}
  0x68   : > { %s15544_s28 = scalar_lea.vmem %s15859_s12, 64  ;;  %p15552_p11 = scmp.lt.s32.totalorder %s15859_s12, %s15859_s12 }
  0x69   : > { %p15545_p8 = scmp.ne.s32.totalorder %s15859_s12, %s15544_s28  ;;  %p15553_p12 = scmp.lt.s32.totalorder %s15544_s28, %s15544_s28 }
  0x6b   : > { %p15547_p9 = pnand %p15545_p8, %p15869_p7  ;;  %p15554_p13 = por %p15553_p12, %p15552_p11 }
  0x6d   : > { %p15548_p10 = pneg %p15547_p9 }
  0x6f   : > { %p15555_p0 = pnand %p15554_p13, %p15548_p10 }
  0x71   : > { %15558 = shalt.err (!%p15555_p0)
}
  0x72   : > { %13377 = dma.hbm_to_vmem [thread:$0]  (!%p15853_p5), %s16685_s8, 64, %s15859_s12, [#allocation15]  }
  0x73   : > { %s38_s21 = sadd.s32 1, %s15737_s18  ;;  %s15747_s19 = smov [#allocation3]  }
  0x74   : > { %s319_s13 = sshll.u32 %s15747_s19, 4  ;;  %p40_p1 = scmp.ge.s32.totalorder %s38_s21, 2  ;;  %s320_s13 = int_to_ptr.vmem [resolvable:$true] %s319_s13 }
  0x75   : > { %s15559_s16 = scalar_lea.hbm %s16678_s1, 6656 }
  0x76   : > { %s16714_s21 = smov (%p40_p1, %s38_s21), 0  ;;  %p15560_p4 = scmp.ne.s32.totalorder %s16678_s1, %s15559_s16 }
  0x77   : > { %p15566_p9 = scmp.lt.u32.totalorder %s15559_s16, %s16678_s1 }
  0x78   : > { %p15562_p6 = pnand %p15560_p4, %p15869_p7 }
  0x7a   : > { %p15563_p8 = pneg %p15562_p6 }
  0x7c   : > { %p15568_p10 = pnand %p15566_p9, %p15563_p8 }
  0x7e   : > { %15571 = shalt.err (!%p15568_p10)
}
  0x7f   : > { %s15572_s28 = scalar_lea.vmem %s320_s13, 6656  ;;  %p15580_p0 = scmp.lt.s32.totalorder %s320_s13, %s320_s13 }
  0x80   : > { %p15573_p11 = scmp.ne.s32.totalorder %s320_s13, %s15572_s28  ;;  %p15581_p1 = scmp.lt.s32.totalorder %s15572_s28, %s15572_s28 }
  0x82   : > { %p15575_p12 = pnand %p15573_p11, %p15869_p7  ;;  %p15582_p2 = por %p15581_p1, %p15580_p0 }
  0x84   : > { %p15576_p13 = pneg %p15575_p12 }
  0x86   : > { %p15583_p3 = pnand %p15582_p2, %p15576_p13 }
  0x88   : > { %15586 = shalt.err (!%p15583_p3)
}
  0x89   : > { %s15748_s30 = smov 256   ;;  %s15749_s26 = smov 16  }
  0x8a   : > { %13356 = dma.hbm_to_vmem [thread:$0]  (!%p15853_p5), %s16678_s1, 6656, %s320_s13, [#allocation4], %s15748_s30, %s15748_s30, %s15749_s26  }
  0x8b   : > { %s15750_s15 = smov [#allocation7]   ;;  %s15751_s20 = smov [#allocation10]  }
  0x8c   : > { %s343_s16 = sshll.u32 %s15750_s15, 4  ;;  %s367_s25 = sshll.u32 %s15751_s20, 4  ;;  %s344_s16 = int_to_ptr.vmem [resolvable:$true] %s343_s16  ;;  %s15983_s25 = int_to_ptr.vmem [resolvable:$true] %s367_s25 }
  0x8d   : > { %s15587_s28 = scalar_lea.hbm %s16680_s3, 49152 }
  0x8e   : > { %p15588_p2 = scmp.ne.s32.totalorder %s16680_s3, %s15587_s28  ;;  %p15594_p6 = scmp.lt.u32.totalorder %s15587_s28, %s16680_s3 }
  0x90   : > { %p15590_p3 = pnand %p15588_p2, %p15869_p7 }
  0x92   : > { %p15591_p4 = pneg %p15590_p3 }
  0x94   : > { %p15596_p8 = pnand %p15594_p6, %p15591_p4 }
  0x96   : > { %15599 = shalt.err (!%p15596_p8)
}
  0x97   : > { %s15600_s14 = scalar_lea.vmem %s344_s16, 49152  ;;  %p15608_p12 = scmp.lt.s32.totalorder %s344_s16, %s344_s16 }
  0x98   : > { %p15601_p9 = scmp.ne.s32.totalorder %s344_s16, %s15600_s14  ;;  %p15609_p13 = scmp.lt.s32.totalorder %s15600_s14, %s15600_s14 }
  0x9a   : > { %p15603_p10 = pnand %p15601_p9, %p15869_p7  ;;  %p15610_p0 = por %p15609_p13, %p15608_p12 }
  0x9c   : > { %p15604_p11 = pneg %p15603_p10 }
  0x9e   : > { %p15611_p1 = pnand %p15610_p0, %p15604_p11 }
  0xa0   : > { %15614 = shalt.err (!%p15611_p1)
}
  0xa1   : > { %13362 = dma.hbm_to_vmem [thread:$0]  (!%p15853_p5), %s16680_s3, 49152, %s344_s16, [#allocation6], %s15748_s30, %s15748_s30, %s15749_s26  }
  0xa2   : > { %s15615_s27 = scalar_lea.hbm %s16682_s5, 49152 }
  0xa3   : > { %p15616_p2 = scmp.ne.s32.totalorder %s16682_s5, %s15615_s27  ;;  %p15622_p6 = scmp.lt.u32.totalorder %s15615_s27, %s16682_s5 }
  0xa5   : > { %p15618_p3 = pnand %p15616_p2, %p15869_p7 }
  0xa7   : > { %p15619_p4 = pneg %p15618_p3 }
  0xa9   : > { %p15624_p8 = pnand %p15622_p6, %p15619_p4 }
  0xab   : > { %15627 = shalt.err (!%p15624_p8)
}
  0xac   : > { %s15628_s16 = scalar_lea.vmem %s15983_s25, 49152  ;;  %p15636_p12 = scmp.lt.s32.totalorder %s15983_s25, %s15983_s25 }
  0xad   : > { %p15629_p9 = scmp.ne.s32.totalorder %s15983_s25, %s15628_s16  ;;  %p15637_p13 = scmp.lt.s32.totalorder %s15628_s16, %s15628_s16 }
  0xaf   : > { %p15631_p10 = pnand %p15629_p9, %p15869_p7  ;;  %p15638_p0 = por %p15637_p13, %p15636_p12 }
  0xb1   : > { %p15632_p11 = pneg %p15631_p10 }
  0xb3   : > { %p15639_p1 = pnand %p15638_p0, %p15632_p11 }
  0xb5   : > { %15642 = shalt.err (!%p15639_p1)
}
  0xb6   : > { %13368 = dma.hbm_to_vmem [thread:$0]  (!%p15853_p5), %s16682_s5, 49152, %s15983_s25, [#allocation9], %s15748_s30, %s15748_s30, %s15749_s26  }
  0xb7   : > { %s15752_s4 = smov [#allocation13]   ;;  %s15753_s20 = smov [#allocation16]  }
  0xb8   : > { %s391_s15 = sshll.u32 %s15752_s4, 4  ;;  %s415_s27 = sshll.u32 %s15753_s20, 4  ;;  %s392_s15 = int_to_ptr.vmem [resolvable:$true] %s391_s15  ;;  %s16032_s27 = int_to_ptr.vmem [resolvable:$true] %s415_s27 }
  0xb9   : > { %s15643_s19 = scalar_lea.hbm %s16684_s7, 16384 }
  0xba   : > { %p15644_p2 = scmp.ne.s32.totalorder %s16684_s7, %s15643_s19  ;;  %p15650_p6 = scmp.lt.u32.totalorder %s15643_s19, %s16684_s7 }
  0xbc   : > { %p15646_p3 = pnand %p15644_p2, %p15869_p7 }
  0xbe   : > { %p15647_p4 = pneg %p15646_p3 }
  0xc0   : > { %p15652_p8 = pnand %p15650_p6, %p15647_p4 }
  0xc2   : > { %15655 = shalt.err (!%p15652_p8)
}
  0xc3   : > { %s15656_s2 = scalar_lea.vmem %s392_s15, 16384  ;;  %p15664_p12 = scmp.lt.s32.totalorder %s392_s15, %s392_s15 }
  0xc4   : > { %p15657_p9 = scmp.ne.s32.totalorder %s392_s15, %s15656_s2  ;;  %p15665_p13 = scmp.lt.s32.totalorder %s15656_s2, %s15656_s2 }
  0xc6   : > { %p15659_p10 = pnand %p15657_p9, %p15869_p7  ;;  %p15666_p0 = por %p15665_p13, %p15664_p12 }
  0xc8   : > { %p15660_p11 = pneg %p15659_p10 }
  0xca   : > { %p15667_p1 = pnand %p15666_p0, %p15660_p11 }
  0xcc   : > { %15670 = shalt.err (!%p15667_p1)
}
  0xcd   : > { %13374 = dma.hbm_to_vmem [thread:$0]  (!%p15853_p5), %s16684_s7, 16384, %s392_s15, [#allocation12], %s15748_s30, %s15748_s30, %s15749_s26  }
  0xce   : > { %s15671_s19 = scalar_lea.hbm %s16686_s9, 49152 }
  0xcf   : > { %p15672_p2 = scmp.ne.s32.totalorder %s16686_s9, %s15671_s19  ;;  %p15678_p6 = scmp.lt.u32.totalorder %s15671_s19, %s16686_s9 }
  0xd1   : > { %p15674_p3 = pnand %p15672_p2, %p15869_p7 }
  0xd3   : > { %p15675_p4 = pneg %p15674_p3 }
  0xd5   : > { %p15680_p8 = pnand %p15678_p6, %p15675_p4 }
  0xd7   : > { %15683 = shalt.err (!%p15680_p8)
}
  0xd8   : > { %s15684_s30 = scalar_lea.vmem %s16032_s27, 49152  ;;  %p15692_p12 = scmp.lt.s32.totalorder %s16032_s27, %s16032_s27 }
  0xd9   : > { %p15685_p9 = scmp.ne.s32.totalorder %s16032_s27, %s15684_s30  ;;  %p15693_p13 = scmp.lt.s32.totalorder %s15684_s30, %s15684_s30 }
  0xdb   : > { %p15687_p10 = pnand %p15685_p9, %p15869_p7  ;;  %p15694_p0 = por %p15693_p13, %p15692_p12 }
  0xdd   : > { %p15688_p11 = pneg %p15687_p10 }
  0xdf   : > { %p15695_p1 = pnand %p15694_p0, %p15688_p11 }
  0xe1   : > { %15698 = shalt.err (!%p15695_p1)
}
  0xe2   : > { %s15754_s26 = smov 768   ;;  %s15755_s15 = smov 48  }
  0xe3   : > { %13380 = dma.hbm_to_vmem [thread:$0]  (!%p15853_p5), %s16686_s9, 49152, %s16032_s27, [#allocation15], %s15754_s26, %s15754_s26, %s15755_s15  }
  0xe4   : > { %p16702_p2 = scmp.ne.s32.totalorder %s16697_s24, 0 }
  0xe5   : > { %p16703_p7 = scmp.ne.s32.totalorder (!%p16702_p2), %s16696_s23, 0 }
  0xe6   : > { %446 = sbr.rel (%p16702_p2) target bundleno = 2528 (0x9e0), region = 64 }
  0xed   : > { %15712 = dma.done.wait (%p16703_p7), [#allocation4], 6656  }
  0xee   : > { %15714 = vsyncadd (%p16703_p7), [#allocation4], 4294960640 }
  0xef   : > { %15716 = dma.done.wait (%p16703_p7), [#allocation6], 49216  }
  0xf0   : > { %15718 = vsyncadd (%p16703_p7), [#allocation6], 4294918080 }
  0xf1   : > { %15720 = dma.done.wait (%p16703_p7), [#allocation9], 49216  }
  0xf2   : > { %15722 = vsyncadd (%p16703_p7), [#allocation9], 4294918080 }
  0xf3   : > { %15724 = dma.done.wait (%p16703_p7), [#allocation12], 16448  }
  0xf4   : > { %15726 = vsyncadd (%p16703_p7), [#allocation12], 4294950848 }
  0xf5   : > { %15728 = dma.done.wait (%p16703_p7), [#allocation15], 49216  }
  0xf6   : > { %15730 = vsyncadd (%p16703_p7), [#allocation15], 4294918080  ;;  %v13440_v0 = vld [vmem:[#allocation3 + $0x4] ss:$16 sps:$4 sm:$0xff]   ;;  %v13442_v1 = vld [vmem:[#allocation3] ss:$16 sps:$4 sm:$0xff]  }
  0xf7   : > { %916 = vmatprep.subr.bf16.mxu0 %v13440_v0  ;;  %v13443_v2 = vld [vmem:[#allocation3 + $0x24] ss:$16 sps:$4 sm:$0xff]   ;;  %v13445_v3 = vld [vmem:[#allocation3 + $0x20] ss:$16 sps:$4 sm:$0xff]   ;;  %p522_p5 = scmp.lt.s32.totalorder %s15733_s17, 1  ;;  %vm893_vm0 = vcmask 629760  }
  0xf8   : > { %917 = vmatpush1.bf16.msra.mxu0 %v13442_v1  ;;  %v13446_v4 = vld [vmem:[#allocation3 + $0x44] ss:$16 sps:$4 sm:$0xff]   ;;  %v13448_v5 = vld [vmem:[#allocation3 + $0x40] ss:$16 sps:$4 sm:$0xff]   ;;  %v13482_v14 = vld [vmem:[#allocation3 + $0xc] ss:$16 sps:$4 sm:$0xff]  }
  0xf9   : > { %918 = vmatprep.subr.bf16.mxu0 %v13443_v2  ;;  %s16716_s17 = smov (!%p522_p5, %s15733_s17), 1  ;;  %v13449_v6 = vld [vmem:[#allocation3 + $0x64] ss:$16 sps:$4 sm:$0xff]   ;;  %v13451_v7 = vld [vmem:[#allocation3 + $0x60] ss:$16 sps:$4 sm:$0xff]   ;;  %967 = vmatprep.subr.bf16.mxu1 %v13482_v14  ;;  %vm900_vm1 = vcmask 1045504  }
  0xfa   : > { %s13316_s23 = smul.u32 24, %s16716_s17  ;;  %v13452_v8 = vld [vmem:[#allocation3 + $0x84] ss:$16 sps:$4 sm:$0xff]   ;;  %v13454_v9 = vld [vmem:[#allocation3 + $0x80] ss:$16 sps:$4 sm:$0xff]   ;;  %vm901_vm2 = vcmask 1046528  }
  0xfb   : > { %v13455_v10 = vld [vmem:[#allocation3 + $0xa4] ss:$16 sps:$4 sm:$0xff]   ;;  %v13457_v11 = vld [vmem:[#allocation3 + $0xa0] ss:$16 sps:$4 sm:$0xff]   ;;  %v13484_v15 = vld [vmem:[#allocation3 + $0x8] ss:$16 sps:$4 sm:$0xff]  }
  0xfc   : > { %919 = vmatpush1.bf16.msra.mxu0 %v13445_v3  ;;  %s16110_s22 = scalar_lea.vmem %s16677_s0, %s13316_s23  ;;  %v13458_v12 = vld [vmem:[#allocation3 + $0xc4] ss:$16 sps:$4 sm:$0xff]   ;;  %v13485_v16 = vld [vmem:[#allocation3 + $0x2c] ss:$16 sps:$4 sm:$0xff]   ;;  %v13460_v17 = vld [vmem:[#allocation3 + $0xc0] ss:$16 sps:$4 sm:$0xff]   ;;  %968 = vmatpush1.bf16.msra.mxu1 %v13484_v15  ;;  %s16636_s19 = scalar_lea.vmem %s16688_s11, %s13316_s23 }
  0xfd   : > { %920 = vmatprep.subr.bf16.mxu0 %v13446_v4  ;;  %v13481_v13 = vld [vmem:[%s16110_s22 + $0x4] ss:$8 sps:$4 sm:$0xff]   ;;  %v13488_v18 = vld [vmem:[#allocation3 + $0x28] ss:$16 sps:$4 sm:$0xff]   ;;  %969 = vmatprep.subr.bf16.mxu1 %v13485_v16  ;;  %v13463_v21 = vld [vmem:[#allocation3 + $0xe0] ss:$16 sps:$4 sm:$0xff]  }
  0xfe   : > { %11814 = vmatprep.mubr.msk.bf16.mxu0 %vm893_vm0, %v13481_v13  ;;  %11816 = vmatprep.mubr.msk.bf16.mxu1 %vm893_vm0, %v13481_v13  ;;  %v13490_v19 = vld [vmem:[#allocation3 + $0x4c] ss:$16 sps:$4 sm:$0xff]   ;;  %v13461_v20 = vld [vmem:[#allocation3 + $0xe4] ss:$16 sps:$4 sm:$0xff]   ;;  %v13492_v22 = vld [vmem:[#allocation3 + $0x48] ss:$16 sps:$4 sm:$0xff]  }
  0xff   : > { %v13493_v23 = vld [vmem:[#allocation3 + $0x6c] ss:$16 sps:$4 sm:$0xff]   ;;  %v13464_v24 = vld [vmem:[#allocation3 + $0x104] ss:$16 sps:$4 sm:$0xff]   ;;  %v13466_v25 = vld [vmem:[#allocation3 + $0x100] ss:$16 sps:$4 sm:$0xff]  }
 0x100   : > { %921 = vmatpush1.bf16.msra.mxu0 %v13448_v5  ;;  %970 = vmatpush1.bf16.msra.mxu1 %v13488_v18  ;;  %v13495_v26 = vld [vmem:[#allocation3 + $0x68] ss:$16 sps:$4 sm:$0xff]   ;;  %v13496_v27 = vld [vmem:[#allocation3 + $0x8c] ss:$16 sps:$4 sm:$0xff]   ;;  %v13467_v28 = vld [vmem:[#allocation3 + $0x124] ss:$16 sps:$4 sm:$0xff]  }
 0x101   : > { %922 = vmatprep.subr.bf16.mxu0 %v13449_v6  ;;  %971 = vmatprep.subr.bf16.mxu1 %v13490_v19  ;;  %v13469_v29 = vld [vmem:[#allocation3 + $0x120] ss:$16 sps:$4 sm:$0xff]   ;;  %v13498_v30 = vld [vmem:[#allocation3 + $0x88] ss:$16 sps:$4 sm:$0xff]   ;;  %v13499_v31 = vld [vmem:[#allocation3 + $0xac] ss:$16 sps:$4 sm:$0xff]  }
 0x102   : > { %v13470_v32 = vld [vmem:[#allocation3 + $0x144] ss:$16 sps:$4 sm:$0xff]   ;;  %v13472_v33 = vld [vmem:[#allocation3 + $0x140] ss:$16 sps:$4 sm:$0xff]   ;;  %v15756_v35 = vmov 65535   ;;  %vm15757_vm6 = vmmov 1  }
 0x103   : > { %v13473_v34 = vld [vmem:[#allocation3 + $0x164] ss:$16 sps:$4 sm:$0xff]   ;;  %v902_v36 = vsel %vm900_vm1, 4294967295, %v15756_v35  ;;  %v13501_v37 = vld [vmem:[#allocation3 + $0xa8] ss:$16 sps:$4 sm:$0xff]   ;;  %vm11243_vm12 = vcmask 1040384  }
 0x104   : > { %923 = vmatpush1.bf16.msra.mxu0 %v13451_v7  ;;  %972 = vmatpush1.bf16.msra.mxu1 %v13492_v22  ;;  %v13502_v38 = vld [vmem:[#allocation3 + $0xcc] ss:$16 sps:$4 sm:$0xff]   ;;  %v13476_v39 = vld [vmem:[#allocation3 + $0x184] ss:$16 sps:$4 sm:$0x7f]   ;;  %v16116_v41 = vsel %vm901_vm2, %v902_v36, 0 }
 0x105   : > { %924 = vmatprep.subr.bf16.mxu0 %v13452_v8  ;;  %973 = vmatprep.subr.bf16.mxu1 %v13493_v23  ;;  %v13475_v40 = vld [vmem:[#allocation3 + $0x160] ss:$16 sps:$4 sm:$0xff]   ;;  %v13504_v43 = vld [vmem:[#allocation3 + $0xc8] ss:$16 sps:$4 sm:$0xff]   ;;  %v13505_v44 = vld [vmem:[#allocation3 + $0xec] ss:$16 sps:$4 sm:$0xff]   ;;  %v908_v45 = vand.u32 %v13476_v39, %v16116_v41 }
 0x106   : > { %v13478_v42 = vld [vmem:[#allocation3 + $0x180] ss:$16 sps:$4 sm:$0x7f]   ;;  %v547_v46 = vld [vmem:[%s16110_s22 + $0x10] sm:$0x33] }
 0x107   : > { %v13507_v47 = vld [vmem:[#allocation3 + $0xe8] ss:$16 sps:$4 sm:$0xff]   ;;  %v905_v48 = vand.u32 %v13478_v42, %v16116_v41  ;;  %v13508_v49 = vld [vmem:[#allocation3 + $0x10c] ss:$16 sps:$4 sm:$0xff]   ;;  %v11761_v53 = vcombine.high %v547_v46, %v547_v46  ;;  %v13523_v55 = vld [vmem:[#allocation7 + $0x400] ss:$16 sps:$4 sm:$0xff]   ;;  %v11760_v61 = vcombine.low %v547_v46, %v547_v46 }
 0x108   : > { %925 = vmatpush1.bf16.msra.mxu0 %v13454_v9  ;;  %974 = vmatpush1.bf16.msra.mxu1 %v13495_v26  ;;  %v13525_v50 = vld [vmem:[#allocation7 + $0x404] ss:$16 sps:$4 sm:$0xff]   ;;  %v13511_v54 = vld [vmem:[#allocation3 + $0x12c] ss:$16 sps:$4 sm:$0xff]   ;;  %v13529_v59 = vld [vmem:[#allocation7 + $0x420] ss:$16 sps:$4 sm:$0xff]  }
 0x109   : > { %926 = vmatprep.subr.bf16.mxu0 %v13455_v10  ;;  %975 = vmatprep.subr.bf16.mxu1 %v13496_v27  ;;  %v13479_v51 = vld [vmem:[%s16110_s22] ss:$8 sps:$4 sm:$0xff]   ;;  %v13514_v58 = vld [vmem:[#allocation3 + $0x14c] ss:$16 sps:$4 sm:$0xff]   ;;  %v13535_v1 = vld [vmem:[#allocation7 + $0x440] ss:$16 sps:$4 sm:$0xff]  }
 0x10a   : > { %v13510_v52 = vld [vmem:[#allocation3 + $0x108] ss:$16 sps:$4 sm:$0xff]   ;;  %v13517_v63 = vld [vmem:[#allocation3 + $0x16c] ss:$16 sps:$4 sm:$0xff]   ;;  %v13541_v6 = vld [vmem:[#allocation7 + $0x460] ss:$16 sps:$4 sm:$0xff]  }
 0x10b   : > { %v13531_v56 = vld [vmem:[#allocation7 + $0x424] ss:$16 sps:$4 sm:$0xff]   ;;  %v13520_v0 = vld [vmem:[#allocation3 + $0x18c] ss:$16 sps:$4 sm:$0x7f]  }
 0x10c   : > { %927 = vmatpush1.bf16.msra.mxu0 %v13457_v11  ;;  %976 = vmatpush1.bf16.msra.mxu1 %v13498_v30  ;;  %v13513_v57 = vld [vmem:[#allocation3 + $0x128] ss:$16 sps:$4 sm:$0xff]   ;;  %v914_v5 = vand.u32 %v13520_v0, %v16116_v41  ;;  %v13528_v7 = vld [vmem:[#allocation7 + $0x40c] ss:$16 sps:$4 sm:$0xff]   ;;  %v13547_v10 = vld [vmem:[#allocation7 + $0x480] ss:$16 sps:$4 sm:$0xff]  }
 0x10d   : > { %928 = vmatprep.subr.bf16.mxu0 %v13458_v12  ;;  %977 = vmatprep.subr.bf16.mxu1 %v13499_v31  ;;  %v13537_v60 = vld [vmem:[#allocation7 + $0x444] ss:$16 sps:$4 sm:$0xff]   ;;  %v13526_v12 = vld [vmem:[#allocation7 + $0x408] ss:$16 sps:$4 sm:$0xff]   ;;  %v13534_v13 = vld [vmem:[#allocation7 + $0x42c] ss:$16 sps:$4 sm:$0xff]  }
 0x10e   : > { %v13516_v62 = vld [vmem:[#allocation3 + $0x148] ss:$16 sps:$4 sm:$0xff]   ;;  %v13553_v14 = vld [vmem:[#allocation7 + $0x4a0] ss:$16 sps:$4 sm:$0xff]   ;;  %v13532_v16 = vld [vmem:[#allocation7 + $0x428] ss:$16 sps:$4 sm:$0xff]  }
 0x10f   : > { %v13543_v2 = vld [vmem:[#allocation7 + $0x464] ss:$16 sps:$4 sm:$0xff]   ;;  %v13559_v18 = vld [vmem:[#allocation7 + $0x4c0] ss:$16 sps:$4 sm:$0xff]   ;;  %v13562_v35 = vld [vmem:[#allocation7 + $0x4c8] ss:$16 sps:$4 sm:$0xff]  }
 0x110   : > { %929 = vmatpush1.bf16.msra.mxu0 %v13460_v17  ;;  %978 = vmatpush1.bf16.msra.mxu1 %v13501_v37  ;;  %v13519_v3 = vld [vmem:[#allocation3 + $0x168] ss:$16 sps:$4 sm:$0xff]   ;;  %v13540_v17 = vld [vmem:[#allocation7 + $0x44c] ss:$16 sps:$4 sm:$0xff]   ;;  %v13565_v22 = vld [vmem:[#allocation7 + $0x4e0] ss:$16 sps:$4 sm:$0xff]  }
 0x111   : > { %930 = vmatprep.subr.bf16.mxu0 %v13461_v20  ;;  %979 = vmatprep.subr.bf16.mxu1 %v13502_v38  ;;  %v13522_v4 = vld [vmem:[#allocation3 + $0x188] ss:$16 sps:$4 sm:$0x7f]   ;;  %v13538_v20 = vld [vmem:[#allocation7 + $0x448] ss:$16 sps:$4 sm:$0xff]  }
 0x112   : > { %v13549_v8 = vld [vmem:[#allocation7 + $0x484] ss:$16 sps:$4 sm:$0xff]   ;;  %v911_v9 = vand.u32 %v13522_v4, %v16116_v41  ;;  %v13571_v26 = vld [vmem:[#allocation7 + $0x500] ss:$16 sps:$4 sm:$0xff]   ;;  %v13570_v36 = vld [vmem:[#allocation7 + $0x4ec] ss:$16 sps:$4 sm:$0xff]  }
 0x113   : > { %v13555_v11 = vld [vmem:[#allocation7 + $0x4a4] ss:$16 sps:$4 sm:$0xff]   ;;  %v13577_v30 = vld [vmem:[#allocation7 + $0x520] ss:$16 sps:$4 sm:$0xff]   ;;  %v13568_v37 = vld [vmem:[#allocation7 + $0x4e8] ss:$16 sps:$4 sm:$0xff]  }
 0x114   : > { %931 = vmatpush1.bf16.msra.mxu0 %v13463_v21  ;;  %980 = vmatpush1.bf16.msra.mxu1 %v13504_v43  ;;  %v13561_v15 = vld [vmem:[#allocation7 + $0x4c4] ss:$16 sps:$4 sm:$0xff]   ;;  %v13546_v21 = vld [vmem:[#allocation7 + $0x46c] ss:$16 sps:$4 sm:$0xff]   ;;  %v13574_v39 = vld [vmem:[#allocation7 + $0x508] ss:$16 sps:$4 sm:$0xff]  }
 0x115   : > { %932 = vmatprep.subr.bf16.mxu0 %v13464_v24  ;;  %981 = vmatprep.subr.bf16.mxu1 %v13505_v44  ;;  %v13567_v19 = vld [vmem:[#allocation7 + $0x4e4] ss:$16 sps:$4 sm:$0xff]   ;;  %v13544_v24 = vld [vmem:[#allocation7 + $0x468] ss:$16 sps:$4 sm:$0xff]   ;;  %v13576_v38 = vld [vmem:[#allocation7 + $0x50c] ss:$16 sps:$4 sm:$0xff]  }
 0x116   : > { %v13573_v23 = vld [vmem:[#allocation7 + $0x504] ss:$16 sps:$4 sm:$0xff]   ;;  %v13580_v41 = vld [vmem:[#allocation7 + $0x528] ss:$16 sps:$4 sm:$0xff]   ;;  %v13588_v42 = vld [vmem:[#allocation7 + $0x54c] ss:$16 sps:$4 sm:$0xff]  }
 0x117   : > { %v13579_v27 = vld [vmem:[#allocation7 + $0x524] ss:$16 sps:$4 sm:$0xff]   ;;  %v13586_v43 = vld [vmem:[#allocation7 + $0x548] ss:$16 sps:$4 sm:$0xff]   ;;  %v13589_v46 = vld [vmem:[#allocation7 + $0x560] ss:$16 sps:$4 sm:$0xff]  }
 0x118   : > { %933 = vmatpush1.bf16.msra.mxu0 %v13466_v25  ;;  %982 = vmatpush1.bf16.msra.mxu1 %v13507_v47  ;;  %v13552_v25 = vld [vmem:[#allocation7 + $0x48c] ss:$16 sps:$4 sm:$0xff]   ;;  %v13585_v31 = vld [vmem:[#allocation7 + $0x544] ss:$16 sps:$4 sm:$0xff]   ;;  %v13592_v47 = vld [vmem:[#allocation7 + $0x568] ss:$16 sps:$4 sm:$0xff]  }
 0x119   : > { %934 = vmatprep.subr.bf16.mxu0 %v13467_v28  ;;  %983 = vmatprep.subr.bf16.mxu1 %v13508_v49  ;;  %v13550_v28 = vld [vmem:[#allocation7 + $0x488] ss:$16 sps:$4 sm:$0xff]   ;;  %v13591_v44 = vld [vmem:[#allocation7 + $0x564] ss:$16 sps:$4 sm:$0xff]   ;;  %v13600_v49 = vld [vmem:[#allocation7 + $0x58c] ss:$16 sps:$4 sm:$0xff]  }
 0x11a   : > { %v13621_v0 = vld [vmem:[#allocation7 + $0x604] ss:$16 sps:$4 sm:$0xff]   ;;  %vm1331_vm5 = vsmask.f32 7424 }
 0x11c   : > { %935 = vmatpush1.bf16.msra.mxu0 %v13469_v29  ;;  %984 = vmatpush1.bf16.msra.mxu1 %v13510_v52  ;;  %v13558_v29 = vld [vmem:[#allocation7 + $0x4ac] ss:$16 sps:$4 sm:$0xff]   ;;  %v13603_v52 = vld [vmem:[#allocation7 + $0x5a4] ss:$16 sps:$4 sm:$0xff]  }
 0x11d   : > { %936 = vmatprep.subr.bf16.mxu0 %v13470_v32  ;;  %985 = vmatprep.subr.bf16.mxu1 %v13511_v54  ;;  %v13556_v32 = vld [vmem:[#allocation7 + $0x4a8] ss:$16 sps:$4 sm:$0xff]   ;;  %v13601_v54 = vld [vmem:[#allocation7 + $0x5a0] ss:$16 sps:$4 sm:$0xff]  }
 0x120   : > { %937 = vmatpush1.bf16.msra.mxu0 %v13472_v33  ;;  %986 = vmatpush1.bf16.msra.mxu1 %v13513_v57  ;;  %v13564_v33 = vld [vmem:[#allocation7 + $0x4cc] ss:$16 sps:$4 sm:$0xff]  }
 0x121   : > { %938 = vmatprep.subr.bf16.mxu0 %v13473_v34  ;;  %987 = vmatprep.subr.bf16.mxu1 %v13514_v58  ;;  %v13583_v34 = vld [vmem:[#allocation7 + $0x540] ss:$16 sps:$4 sm:$0xff]   ;;  %v13612_v57 = vld [vmem:[#allocation7 + $0x5cc] ss:$16 sps:$4 sm:$0xff]  }
 0x122   : > { %v13607_v58 = vld [vmem:[#allocation7 + $0x5c0] ss:$16 sps:$4 sm:$0xff]  }
 0x124   : > { %939 = vmatpush1.bf16.msra.mxu0 %v13475_v40  ;;  %988 = vmatpush1.bf16.msra.mxu1 %v13516_v62  ;;  %v13582_v40 = vld [vmem:[#allocation7 + $0x52c] ss:$16 sps:$4 sm:$0xff]   ;;  %v13613_v62 = vld [vmem:[#allocation7 + $0x5e0] ss:$16 sps:$4 sm:$0xff]  }
 0x125   : > { %940 = vmatprep.subr.bf16.mxu0 %v908_v45  ;;  %989 = vmatprep.subr.bf16.mxu1 %v13517_v63  ;;  %v13594_v45 = vld [vmem:[#allocation7 + $0x56c] ss:$16 sps:$4 sm:$0xff]   ;;  %v13616_v63 = vld [vmem:[#allocation7 + $0x5e8] ss:$16 sps:$4 sm:$0xff]  }
 0x128   : > { %941 = vmatpush1.bf16.msra.mxu0 %v905_v48  ;;  %990 = vmatpush1.bf16.msra.mxu1 %v13519_v3  ;;  %v13597_v48 = vld [vmem:[#allocation7 + $0x584] ss:$16 sps:$4 sm:$0xff]  }
 0x129   : > { %2040 = vmatprep.subr.bf16.mxu0 %v13525_v50  ;;  %991 = vmatprep.subr.bf16.mxu1 %v914_v5  ;;  %v13595_v50 = vld [vmem:[#allocation7 + $0x580] ss:$16 sps:$4 sm:$0xff]   ;;  %v600_v5 = vld [vmem:[#allocation5] sm:$0xf] }
 0x12b   : > { %949 = vmatmul.mubr.bf16.vlgmr.msra.gmra.mrb[0].mxu0 %v13479_v51 }
 0x12c   : > { %11815 = vmatprep.mubr.msk.bf16.mxu0 %vm893_vm0, %v11761_v53  ;;  %2041 = vmatpush1.bf16.msra.mxu0 %v13523_v55  ;;  %v13604_v55 = vld [vmem:[#allocation7 + $0x5a8] ss:$16 sps:$4 sm:$0xff]  }
 0x12d   : > { %2042 = vmatprep.subr.bf16.mxu0 %v13531_v56  ;;  %992 = vmatpush1.bf16.msra.mxu1 %v911_v9  ;;  %v13609_v56 = vld [vmem:[#allocation7 + $0x5c4] ss:$16 sps:$4 sm:$0xff]  }
 0x12e   : > { %2142 = vmatprep.subr.bf16.mxu1 %v13528_v7 }
 0x130   : > { %2043 = vmatpush1.bf16.msra.mxu0 %v13529_v59  ;;  %1000 = vmatmul.mubr.bf16.vlgmr.msra.gmra.mrb[0].mxu1 %v13479_v51  ;;  %v13598_v51 = vld [vmem:[#allocation7 + $0x588] ss:$16 sps:$4 sm:$0xff]  }
 0x131   : > { %2044 = vmatprep.subr.bf16.mxu0 %v13537_v60  ;;  %11817 = vmatprep.mubr.msk.bf16.mxu1 %vm893_vm0, %v11761_v53  ;;  %v13606_v53 = vld [vmem:[#allocation7 + $0x5ac] ss:$16 sps:$4 sm:$0xff]   ;;  %v13610_v59 = vld [vmem:[#allocation7 + $0x5c8] ss:$16 sps:$4 sm:$0xff]   ;;  %v13615_v60 = vld [vmem:[#allocation7 + $0x5e4] ss:$16 sps:$4 sm:$0xff]  }
 0x132   : > { %2143 = vmatpush1.bf16.msra.mxu1 %v13526_v12 }
 0x133   : > { %959 = vmatmul.mubr.bf16.gmra.mrb[4].mxu0 %v11760_v61  ;;  %2144 = vmatprep.subr.bf16.mxu1 %v13534_v13 }
 0x134   : > { %2045 = vmatpush1.bf16.msra.mxu0 %v13535_v1  ;;  %v13624_v1 = vld [vmem:[#allocation7 + $0x60c] ss:$16 sps:$4 sm:$0xff]  }
 0x135   : > { %2046 = vmatprep.subr.bf16.mxu0 %v13543_v2  ;;  %v602_v2 = vlaneseq }
 0x136   : > { %2145 = vmatpush1.bf16.msra.mxu1 %v13532_v16 }
 0x137   : > { %2146 = vmatprep.subr.bf16.mxu1 %v13540_v17  ;;  %v16126_v3 = vshrl.u32 %v602_v2, 7 }
 0x138   : > { %2047 = vmatpush1.bf16.msra.mxu0 %v13541_v6  ;;  %1010 = vmatmul.mubr.bf16.gmra.mrb[4].mxu1 %v11760_v61  ;;  %v13618_v61 = vld [vmem:[#allocation7 + $0x5ec] ss:$16 sps:$4 sm:$0xff]  }
 0x139   : > { %2048 = vmatprep.subr.bf16.mxu0 %v13549_v8  ;;  %v16129_v4 = vsub.s32 0, %v16126_v3  ;;  %v16132_v6 = vsub.s32 1, %v16126_v3  ;;  %v16136_v8 = vadd.s32 4294967294, %v16126_v3 }
 0x13a   : > { %2147 = vmatpush1.bf16.msra.mxu1 %v13538_v20 }
 0x13b   : > { %2148 = vmatprep.subr.bf16.mxu1 %v13546_v21  ;;  %v605_v7 = vrot.slane %v600_v5, %v16129_v4  ;;  %v609_v9 = vrot.slane %v600_v5, %v16132_v6  ;;  %vm1039_vm3 = vcmp.ge.s32.totalorder %v16136_v8, 0  ;;  %v13733_v8 = vld [vmem:[#allocation7 + $0x60] ss:$16 sps:$4 sm:$0xff]  }
 0x13c   : > { %2049 = vmatpush1.bf16.msra.mxu0 %v13547_v10  ;;  %vm16253_vm7 = vmpackc.low %vm15757_vm6, %vm1039_vm3 }
 0x13d   : > { %2050 = vmatprep.subr.bf16.mxu0 %v13555_v11 }
 0x13e   : > { %2149 = vmatpush1.bf16.msra.mxu1 %v13544_v24 }
 0x13f   : > { %2150 = vmatprep.subr.bf16.mxu1 %v13552_v25 }
 0x140   : > { %2051 = vmatpush1.bf16.msra.mxu0 %v13553_v14 }
 0x141   : > { %2052 = vmatprep.subr.bf16.mxu0 %v13561_v15  ;;  %v16141_v15 = vadd.s32 16, %v16126_v3 }
 0x142   : > { %2151 = vmatpush1.bf16.msra.mxu1 %v13550_v28 }
 0x143   : > { %2152 = vmatprep.subr.bf16.mxu1 %v13558_v29  ;;  %v16148_v25 = vadd.s32 4294967294, %v16141_v15 }
 0x144   : > { %2053 = vmatpush1.bf16.msra.mxu0 %v13559_v18 }
 0x145   : > { %2054 = vmatprep.subr.bf16.mxu0 %v13567_v19  ;;  %vm1044_vm4 = vcmp.lt.s32.totalorder %v16148_v25, 16  ;;  %v13817_v25 = vld [vmem:[#allocation7 + $0x220] ss:$16 sps:$4 sm:$0xff]  }
 0x146   : > { %2153 = vmatpush1.bf16.msra.mxu1 %v13556_v32  ;;  %vm16267_vm8 = vmpackc.low %vm1044_vm4, %vm1044_vm4 }
 0x147   : > { %2154 = vmatprep.subr.bf16.mxu1 %v13564_v33 }
 0x148   : > { %2055 = vmatpush1.bf16.msra.mxu0 %v13565_v22 }
 0x149   : > { %2056 = vmatprep.subr.bf16.mxu0 %v13573_v23 }
 0x14a   : > { %2155 = vmatpush1.bf16.msra.mxu1 %v13562_v35 }
 0x14b   : > { %2156 = vmatprep.subr.bf16.mxu1 %v13570_v36 }
 0x14c   : > { %2057 = vmatpush1.bf16.msra.mxu0 %v13571_v26 }
 0x14d   : > { %2058 = vmatprep.subr.bf16.mxu0 %v13579_v27 }
 0x14e   : > { %2157 = vmatpush1.bf16.msra.mxu1 %v13568_v37 }
 0x14f   : > { %2158 = vmatprep.subr.bf16.mxu1 %v13576_v38 }
 0x150   : > { %2059 = vmatpush1.bf16.msra.mxu0 %v13577_v30 }
 0x151   : > { %2060 = vmatprep.subr.bf16.mxu0 %v13585_v31 }
 0x152   : > { %2159 = vmatpush1.bf16.msra.mxu1 %v13574_v39 }
 0x153   : > { %2160 = vmatprep.subr.bf16.mxu1 %v13582_v40  ;;  %v16160_v40 = vsub.s32 2, %v16126_v3 }
 0x154   : > { %2061 = vmatpush1.bf16.msra.mxu0 %v13583_v34 }
 0x155   : > { %2062 = vmatprep.subr.bf16.mxu0 %v13591_v44 }
 0x156   : > { %2161 = vmatpush1.bf16.msra.mxu1 %v13580_v41 }
 0x157   : > { %2162 = vmatprep.subr.bf16.mxu1 %v13588_v42  ;;  %v16166_v42 = vsub.s32 3, %v16126_v3 }
 0x158   : > { %2063 = vmatpush1.bf16.msra.mxu0 %v13589_v46 }
 0x159   : > { %2064 = vmatprep.subr.bf16.mxu0 %v13597_v48 }
 0x15a   : > { %2163 = vmatpush1.bf16.msra.mxu1 %v13586_v43 }
 0x15b   : > { %2164 = vmatprep.subr.bf16.mxu1 %v13594_v45 }
 0x15c   : > { %2065 = vmatpush1.bf16.msra.mxu0 %v13595_v50 }
 0x15d   : > { %2066 = vmatprep.subr.bf16.mxu0 %v13603_v52  ;;  %v613_v52 = vrot.slane %v600_v5, %v16160_v40 }
 0x15e   : > { %2165 = vmatpush1.bf16.msra.mxu1 %v13592_v47 }
 0x15f   : > { %2166 = vmatprep.subr.bf16.mxu1 %v13600_v49 }
 0x160   : > { %2067 = vmatpush1.bf16.msra.mxu0 %v13601_v54 }
 0x161   : > { %2068 = vmatprep.subr.bf16.mxu0 %v13609_v56 }
 0x162   : > { %2167 = vmatpush1.bf16.msra.mxu1 %v13598_v51 }
 0x163   : > { %2168 = vmatprep.subr.bf16.mxu1 %v13606_v53 }
 0x164   : > { %2069 = vmatpush1.bf16.msra.mxu0 %v13607_v58 }
 0x165   : > { %2070 = vmatprep.subr.bf16.mxu0 %v13615_v60  ;;  %v13622_v60 = vld [vmem:[#allocation7 + $0x608] ss:$16 sps:$4 sm:$0xff]  }
 0x166   : > { %2169 = vmatpush1.bf16.msra.mxu1 %v13604_v55  ;;  %v16179_v55 = vrot.slane %v600_v5, %v16166_v42 }
 0x167   : > { %2170 = vmatprep.subr.bf16.mxu1 %v13612_v57 }
 0x168   : > { %2071 = vmatpush1.bf16.msra.mxu0 %v13613_v62 }
 0x169   : > { %2091 = vmatprep.subr.bf16.mxu0 %v13621_v0 }
 0x16a   : > { %2171 = vmatpush1.bf16.msra.mxu1 %v13610_v59  ;;  %v13619_v59 = vld [vmem:[#allocation7 + $0x600] ss:$16 sps:$4 sm:$0xff]  }
 0x16b   : > { %2172 = vmatprep.subr.bf16.mxu1 %v13618_v61 }
 0x16e   : > { %2173 = vmatpush1.bf16.msra.mxu1 %v13616_v63 }
 0x16f   : > { %2193 = vmatprep.subr.bf16.mxu1 %v13624_v1 }
 0x1fe   : > { %v950_v10 = vpop.f32.mrb[0].mxu0 }
 0x1ff   : > { %v951_v11 = vadd.f32 %v950_v10, %v605_v7  ;;  %v952_v12 = vpop.f32.mrb[1].mxu0 }
 0x200   : > { %v953_v13 = vadd.f32 %v952_v12, %v609_v9  ;;  %v954_v14 = vpop.f32.mrb[2].mxu0 }
 0x201   : > { %v1018_v16 = vmax.f32 %v951_v11, 0.0  ;;  %v955_v17 = vadd.f32 %v954_v14, %v605_v7  ;;  %v956_v18 = vpop.f32.mrb[3].mxu0 }
 0x202   : > { %v1019_v19 = vmax.f32 %v953_v13, 0.0  ;;  %v957_v20 = vadd.f32 %v956_v18, %v609_v9  ;;  %v13630_v18 = vld [vmem:[#allocation7 + $0x62c] ss:$16 sps:$4 sm:$0xff]  }
 0x203   : > { %v1054_v21 = vsel %vm1039_vm3, %v1018_v16, 0.0  ;;  %v1022_v22 = vmax.f32 %v955_v17, 0.0  ;;  %v1001_v2 = vpop.f32.mrb[0].mxu1  ;;  %v13627_v17 = vld [vmem:[#allocation7 + $0x624] ss:$16 sps:$4 sm:$0xff]  }
 0x204   : > { %v1055_v23 = vsel %vm1039_vm3, %v1019_v19, 0.0  ;;  %v1023_v24 = vmax.f32 %v957_v20, 0.0  ;;  %v1003_v5 = vpop.f32.mrb[1].mxu1 }
 0x205   : > { %v1066_v26 = vpack.c.bf16 %v1022_v22, %v1054_v21  ;;  %v16150_v27 = vpack.c.bf16 %v1022_v22, %v1018_v16  ;;  %v1004_v13 = vadd.f32 %v1003_v5, %v16179_v55  ;;  %v1005_v14 = vpop.f32.mrb[2].mxu1  ;;  %v13625_v16 = vld [vmem:[#allocation7 + $0x620] ss:$16 sps:$4 sm:$0xff]   ;;  %v13628_v22 = vld [vmem:[#allocation7 + $0x628] ss:$16 sps:$4 sm:$0xff]  }
 0x206   : > { %v1067_v28 = vpack.c.bf16 %v1023_v24, %v1055_v23  ;;  %v16152_v29 = vpack.c.bf16 %v1023_v24, %v1019_v19  ;;  %v960_v30 = vpop.f32.mrb[4].mxu0  ;;  %v1006_v20 = vadd.f32 %v1005_v14, %v613_v52  ;;  %v1007_v21 = vpop.f32.mrb[3].mxu1  ;;  %v13633_v23 = vld [vmem:[#allocation7 + $0x644] ss:$16 sps:$4 sm:$0xff]   ;;  %v13643_v14 = vld [vmem:[#allocation7 + $0x680] ss:$16 sps:$4 sm:$0xff]  }
 0x207   : > { %v961_v31 = vadd.f32 %v960_v30, %v605_v7  ;;  %v962_v32 = vpop.f32.mrb[5].mxu0  ;;  %v1335_v33 = vshll.u32 %v1066_v26, 16  ;;  %v1333_v46 = vshrl.u32 %v1066_v26, 16  ;;  %v3226_v49 = vrot.slane %v1066_v26, 1 }
 0x208   : > { %v963_v34 = vadd.f32 %v962_v32, %v609_v9  ;;  %v964_v35 = vpop.f32.mrb[6].mxu0  ;;  %v1347_v36 = vshll.u32 %v1067_v28, 16  ;;  %v1345_v53 = vshrl.u32 %v1067_v28, 16  ;;  %v3229_v56 = vrot.slane %v1067_v28, 1  ;;  %v13636_v28 = vld [vmem:[#allocation7 + $0x64c] ss:$16 sps:$4 sm:$0xff]  }
 0x209   : > { %v16155_v37 = vmax.f32 %v961_v31, 0.0  ;;  %v965_v38 = vpop.f32.mrb[7].mxu0  ;;  %v1337_v43 = vrot.slane %v1335_v33, 1  ;;  %v1002_v9 = vadd.f32 %v1001_v2, %v613_v52  ;;  %v1021_v24 = vmax.f32 %v1004_v13, 0.0 }
 0x20a   : > { %v16157_v39 = vmax.f32 %v963_v34, 0.0  ;;  %v1349_v47 = vrot.slane %v1347_v36, 1  ;;  %v1008_v26 = vadd.f32 %v1007_v21, %v16179_v55  ;;  %v1024_v31 = vmax.f32 %v1006_v20, 0.0  ;;  %v13631_v34 = vld [vmem:[#allocation7 + $0x640] ss:$16 sps:$4 sm:$0xff]  }
 0x20b   : > { %v1062_v41 = vsel %vm1044_vm4, %v16155_v37, 0.0  ;;  %v1338_v57 = vor.u32 %v1337_v43, %v1333_v46  ;;  %v1020_v19 = vmax.f32 %v1002_v9, 0.0  ;;  %v1057_v32 = vsel %vm1039_vm3, %v1021_v24, 0.0  ;;  %v13634_v38 = vld [vmem:[#allocation7 + $0x648] ss:$16 sps:$4 sm:$0xff]   ;;  %v1011_v46 = vpop.f32.mrb[4].mxu1 }
 0x20c   : > { %v16168_v44 = vpack.c.bf16 %v1062_v41, %v1062_v41  ;;  %v1063_v45 = vsel %vm1044_vm4, %v16157_v39, 0.0  ;;  %v1350_v63 = vor.u32 %v1349_v47, %v1345_v53  ;;  %v1025_v33 = vmax.f32 %v1008_v26, 0.0  ;;  %v13639_v47 = vld [vmem:[#allocation7 + $0x664] ss:$16 sps:$4 sm:$0xff]  }
 0x20d   : > { %v1071_v48 = vpack.c.bf16 %v1063_v45, %v1063_v45  ;;  %v1056_v30 = vsel %vm1039_vm3, %v1020_v19, 0.0  ;;  %v16199_v36 = vpack.c.bf16 %v1024_v31, %v1020_v19  ;;  %v13651_v19 = vld [vmem:[#allocation7 + $0x6a4] ss:$16 sps:$4 sm:$0xff]  }
 0x20e   : > { %v1340_v50 = vshll.u32 %v16168_v44, 16  ;;  %v16175_v51 = vrot.slane %v16168_v44, 1  ;;  %v1068_v35 = vpack.c.bf16 %v1024_v31, %v1056_v30  ;;  %v1380_v41 = vshrl.u32 %v16168_v44, 16  ;;  %v13640_v44 = vld [vmem:[#allocation7 + $0x668] ss:$16 sps:$4 sm:$0xff]  }
 0x20f   : > { %v1352_v54 = vshll.u32 %v1071_v48, 16  ;;  %v16181_v61 = vrot.slane %v1071_v48, 1  ;;  %v1383_v1 = vshrl.u32 %v1071_v48, 16  ;;  %v1069_v43 = vpack.c.bf16 %v1025_v33, %v1057_v32  ;;  %v13649_v32 = vld [vmem:[#allocation7 + $0x6a0] ss:$16 sps:$4 sm:$0xff]  }
 0x210   : > { %v1342_v58 = vrot.slane %v1340_v50, 1  ;;  %v16185_v62 = vsel %vm901_vm2, %v3226_v49, %v16175_v51  ;;  %v16202_v45 = vpack.c.bf16 %v1025_v33, %v1021_v24  ;;  %v1359_v48 = vshll.u32 %v1068_v35, 16  ;;  %v1013_v50 = vpop.f32.mrb[5].mxu1  ;;  %v13652_v33 = vld [vmem:[#allocation7 + $0x6a8] ss:$16 sps:$4 sm:$0xff]  }
 0x211   : > { %v1354_v0 = vrot.slane %v1352_v54, 1  ;;  %v16190_v10 = vsel %vm901_vm2, %v3229_v56, %v16181_v61  ;;  %v1012_v49 = vadd.f32 %v1011_v46, %v613_v52  ;;  %v13642_v54 = vld [vmem:[#allocation7 + $0x66c] ss:$16 sps:$4 sm:$0xff]   ;;  %v1371_v56 = vshll.u32 %v1069_v43, 16 }
 0x212   : > { %v1343_v7 = vsel %vm1331_vm5, %v1338_v57, %v1342_v58  ;;  %v1382_v53 = vor.u32 %v1380_v41, %v1342_v58  ;;  %v1014_v57 = vadd.f32 %v1013_v50, %v16179_v55  ;;  %v1357_v2 = vshrl.u32 %v1068_v35, 16  ;;  %v13648_v58 = vld [vmem:[#allocation7 + $0x68c] ss:$16 sps:$4 sm:$0xff]  }
 0x213   : > { %v1355_v11 = vsel %vm1331_vm5, %v1350_v63, %v1354_v0  ;;  %v1385_v12 = vor.u32 %v1383_v1, %v1354_v0  ;;  %v16205_v63 = vmax.f32 %v1012_v49, 0.0  ;;  %v13645_v1 = vld [vmem:[#allocation7 + $0x684] ss:$16 sps:$4 sm:$0xff]   ;;  %v1369_v9 = vshrl.u32 %v1069_v43, 16  ;;  %v13660_v41 = vld [vmem:[#allocation7 + $0x6cc] ss:$16 sps:$4 sm:$0xff]  }
 0x214   : > { %2072 = vmatprep.mubr.bf16.mxu0 %v1355_v11  ;;  %2174 = vmatprep.mubr.bf16.mxu1 %v1355_v11  ;;  %v16207_v52 = vmax.f32 %v1014_v57, 0.0  ;;  %v1373_v5 = vrot.slane %v1371_v56, 1  ;;  %v3232_v11 = vrot.slane %v1068_v35, 1  ;;  %v13663_v49 = vld [vmem:[#allocation7 + $0x6e4] ss:$16 sps:$4 sm:$0xff]  }
 0x215   : > { %2073 = vmatmul.mubr.bf16.vlgmr.msra.gmra.mrb[8].mxu0 %v1343_v7  ;;  %2175 = vmatmul.mubr.bf16.vlgmr.msra.gmra.mrb[8].mxu1 %v1343_v7  ;;  %v1361_v7 = vrot.slane %v1359_v48, 1  ;;  %v1064_v55 = vsel %vm1044_vm4, %v16205_v63, 0.0  ;;  %v13658_v48 = vld [vmem:[#allocation7 + $0x6c8] ss:$16 sps:$4 sm:$0xff]   ;;  %v13666_v50 = vld [vmem:[#allocation7 + $0x6ec] ss:$16 sps:$4 sm:$0xff]  }
 0x216   : > { %2092 = vmatpush1.bf16.msra.mxu0 %v13619_v59  ;;  %2194 = vmatpush1.bf16.msra.mxu1 %v13622_v60  ;;  %v1015_v59 = vpop.f32.mrb[6].mxu1  ;;  %v13637_v60 = vld [vmem:[#allocation7 + $0x660] ss:$16 sps:$4 sm:$0xff]   ;;  %v1065_v13 = vsel %vm1044_vm4, %v16207_v52, 0.0  ;;  %v1374_v24 = vor.u32 %v1373_v5, %v1369_v9  ;;  %v13669_v56 = vld [vmem:[#allocation7 + $0x704] ss:$16 sps:$4 sm:$0xff]  }
 0x217   : > { %2082 = vmatprep.mubr.bf16.mxu0 %v1385_v12  ;;  %2184 = vmatprep.mubr.bf16.mxu1 %v1385_v12  ;;  %v1016_v0 = vpop.f32.mrb[7].mxu1  ;;  %v16212_v12 = vpack.c.bf16 %v1064_v55, %v1064_v55  ;;  %v1362_v20 = vor.u32 %v1361_v7, %v1357_v2  ;;  %v13672_v57 = vld [vmem:[#allocation7 + $0x70c] ss:$16 sps:$4 sm:$0xff]   ;;  %v13667_v59 = vld [vmem:[#allocation7 + $0x700] ss:$16 sps:$4 sm:$0xff]  }
 0x218   : > { %2093 = vmatprep.subr.bf16.mxu0 %v13627_v17  ;;  %2195 = vmatprep.subr.bf16.mxu1 %v13630_v18  ;;  %v16217_v17 = vpack.c.bf16 %v1065_v13, %v1065_v13  ;;  %v3235_v18 = vrot.slane %v1069_v43, 1  ;;  %v13678_v0 = vld [vmem:[#allocation7 + $0x72c] ss:$16 sps:$4 sm:$0xff]   ;;  %v13676_v2 = vld [vmem:[#allocation7 + $0x728] ss:$16 sps:$4 sm:$0xff]  }
 0x219   : > { %v1364_v21 = vshll.u32 %v16212_v12, 16  ;;  %v13681_v7 = vld [vmem:[#allocation7 + $0x744] ss:$16 sps:$4 sm:$0xff]   ;;  %v13679_v9 = vld [vmem:[#allocation7 + $0x740] ss:$16 sps:$4 sm:$0xff]  }
 0x21a   : > { %2094 = vmatpush1.bf16.msra.mxu0 %v13625_v16  ;;  %2196 = vmatpush1.bf16.msra.mxu1 %v13628_v22  ;;  %v13646_v16 = vld [vmem:[#allocation7 + $0x688] ss:$16 sps:$4 sm:$0xff]   ;;  %v16221_v22 = vrot.slane %v16212_v12, 1  ;;  %v1376_v26 = vshll.u32 %v16217_v17, 16  ;;  %v13687_v55 = vld [vmem:[#allocation7 + $0x764] ss:$16 sps:$4 sm:$0xff]  }
 0x21b   : > { %2095 = vmatprep.subr.bf16.mxu0 %v13633_v23  ;;  %2197 = vmatprep.subr.bf16.mxu1 %v13636_v28  ;;  %v13654_v23 = vld [vmem:[#allocation7 + $0x6ac] ss:$16 sps:$4 sm:$0xff]   ;;  %v16225_v28 = vrot.slane %v16217_v17, 1  ;;  %v16227_v30 = vrot.slane %v1364_v21, 1  ;;  %v13682_v5 = vld [vmem:[#allocation7 + $0x748] ss:$16 sps:$4 sm:$0xff]  }
 0x21c   : > { %v16231_v31 = vsel %vm901_vm2, %v3232_v11, %v16221_v22  ;;  %v13690_v11 = vld [vmem:[#allocation7 + $0x76c] ss:$16 sps:$4 sm:$0xff]   ;;  %v13685_v13 = vld [vmem:[#allocation7 + $0x760] ss:$16 sps:$4 sm:$0xff]   ;;  %v13699_v21 = vld [vmem:[#allocation7 + $0x7a4] ss:$16 sps:$4 sm:$0xff]  }
 0x21d   : > { %2083 = vmatmul.mubr.bf16.gmra.mrb[12].mxu0 %v1382_v53  ;;  %2185 = vmatmul.mubr.bf16.gmra.mrb[12].mxu1 %v1382_v53  ;;  %v16237_v35 = vsel %vm901_vm2, %v3235_v18, %v16225_v28  ;;  %v16241_v43 = vsel %vm1331_vm5, %v1362_v20, %v16227_v30  ;;  %v13661_v53 = vld [vmem:[#allocation7 + $0x6e0] ss:$16 sps:$4 sm:$0xff]   ;;  %v13696_v18 = vld [vmem:[#allocation7 + $0x78c] ss:$16 sps:$4 sm:$0xff]   ;;  %v13694_v20 = vld [vmem:[#allocation7 + $0x788] ss:$16 sps:$4 sm:$0xff]  }
 0x21e   : > { %2096 = vmatpush1.bf16.msra.mxu0 %v13631_v34  ;;  %2198 = vmatpush1.bf16.msra.mxu1 %v13634_v38  ;;  %v16233_v34 = vrot.slane %v1376_v26, 1  ;;  %v13657_v38 = vld [vmem:[#allocation7 + $0x6c4] ss:$16 sps:$4 sm:$0xff]   ;;  %v13700_v26 = vld [vmem:[#allocation7 + $0x7a8] ss:$16 sps:$4 sm:$0xff]  }
 0x21f   : > { %2097 = vmatprep.subr.bf16.mxu0 %v13639_v47  ;;  %2199 = vmatprep.subr.bf16.mxu1 %v13642_v54  ;;  %v13655_v47 = vld [vmem:[#allocation7 + $0x6c0] ss:$16 sps:$4 sm:$0xff]   ;;  %v13664_v54 = vld [vmem:[#allocation7 + $0x6e8] ss:$16 sps:$4 sm:$0xff]  }
 0x220   : > { %v1379_v46 = vsel %vm1331_vm5, %v1374_v24, %v16233_v34  ;;  %v13697_v24 = vld [vmem:[#allocation7 + $0x7a0] ss:$16 sps:$4 sm:$0xff]  }
 0x221   : > { %2123 = vmatprep.mubr.bf16.mxu0 %v1379_v46  ;;  %2225 = vmatprep.mubr.bf16.mxu1 %v1379_v46  ;;  %v13711_v46 = vld [vmem:[#allocation7 + $0x7e4] ss:$16 sps:$4 sm:$0xff]  }
 0x222   : > { %2098 = vmatpush1.bf16.msra.mxu0 %v13637_v60  ;;  %2200 = vmatpush1.bf16.msra.mxu1 %v13640_v44  ;;  %v13670_v60 = vld [vmem:[#allocation7 + $0x708] ss:$16 sps:$4 sm:$0xff]   ;;  %v13675_v44 = vld [vmem:[#allocation7 + $0x724] ss:$16 sps:$4 sm:$0xff]  }
 0x223   : > { %2099 = vmatprep.subr.bf16.mxu0 %v13645_v1  ;;  %2201 = vmatprep.subr.bf16.mxu1 %v13648_v58  ;;  %v13673_v1 = vld [vmem:[#allocation7 + $0x720] ss:$16 sps:$4 sm:$0xff]   ;;  %v13684_v58 = vld [vmem:[#allocation7 + $0x74c] ss:$16 sps:$4 sm:$0xff]  }
 0x226   : > { %2100 = vmatpush1.bf16.msra.mxu0 %v13643_v14  ;;  %2202 = vmatpush1.bf16.msra.mxu1 %v13646_v16  ;;  %v13688_v14 = vld [vmem:[#allocation7 + $0x768] ss:$16 sps:$4 sm:$0xff]   ;;  %v13693_v16 = vld [vmem:[#allocation7 + $0x784] ss:$16 sps:$4 sm:$0xff]  }
 0x227   : > { %2101 = vmatprep.subr.bf16.mxu0 %v13651_v19  ;;  %2203 = vmatprep.subr.bf16.mxu1 %v13654_v23  ;;  %v13691_v19 = vld [vmem:[#allocation7 + $0x780] ss:$16 sps:$4 sm:$0xff]   ;;  %v13702_v23 = vld [vmem:[#allocation7 + $0x7ac] ss:$16 sps:$4 sm:$0xff]  }
 0x22a   : > { %2102 = vmatpush1.bf16.msra.mxu0 %v13649_v32  ;;  %2204 = vmatpush1.bf16.msra.mxu1 %v13652_v33  ;;  %v13705_v32 = vld [vmem:[#allocation7 + $0x7c4] ss:$16 sps:$4 sm:$0xff]   ;;  %v13708_v33 = vld [vmem:[#allocation7 + $0x7cc] ss:$16 sps:$4 sm:$0xff]  }
 0x22b   : > { %2103 = vmatprep.subr.bf16.mxu0 %v13657_v38  ;;  %2205 = vmatprep.subr.bf16.mxu1 %v13660_v41  ;;  %v13703_v38 = vld [vmem:[#allocation7 + $0x7c0] ss:$16 sps:$4 sm:$0xff]   ;;  %v13706_v41 = vld [vmem:[#allocation7 + $0x7c8] ss:$16 sps:$4 sm:$0xff]  }
 0x22e   : > { %2104 = vmatpush1.bf16.msra.mxu0 %v13655_v47  ;;  %2206 = vmatpush1.bf16.msra.mxu1 %v13658_v48  ;;  %v13714_v47 = vld [vmem:[#allocation7 + $0x7ec] ss:$16 sps:$4 sm:$0xff]   ;;  %v13709_v48 = vld [vmem:[#allocation7 + $0x7e0] ss:$16 sps:$4 sm:$0xff]  }
 0x22f   : > { %2105 = vmatprep.subr.bf16.mxu0 %v13663_v49  ;;  %2207 = vmatprep.subr.bf16.mxu1 %v13666_v50  ;;  %v13712_v49 = vld [vmem:[#allocation7 + $0x7e8] ss:$16 sps:$4 sm:$0xff]   ;;  %v13717_v50 = vld [vmem:[#allocation7 + $0x4] ss:$16 sps:$4 sm:$0xff]  }
 0x232   : > { %2106 = vmatpush1.bf16.msra.mxu0 %v13661_v53  ;;  %2208 = vmatpush1.bf16.msra.mxu1 %v13664_v54  ;;  %v13720_v53 = vld [vmem:[#allocation7 + $0xc] ss:$16 sps:$4 sm:$0xff]   ;;  %v1389_v54 = vshrl.u32 %v16217_v17, 16 }
 0x233   : > { %2107 = vmatprep.subr.bf16.mxu0 %v13669_v56  ;;  %2209 = vmatprep.subr.bf16.mxu1 %v13672_v57  ;;  %v13715_v56 = vld [vmem:[#allocation7] ss:$16 sps:$4 sm:$0xff]   ;;  %v13718_v57 = vld [vmem:[#allocation7 + $0x8] ss:$16 sps:$4 sm:$0xff]   ;;  %v13732_v17 = vld [vmem:[#allocation7 + $0x4c] ss:$16 sps:$4 sm:$0xff]  }
 0x236   : > { %2108 = vmatpush1.bf16.msra.mxu0 %v13667_v59  ;;  %2210 = vmatpush1.bf16.msra.mxu1 %v13670_v60  ;;  %v13723_v59 = vld [vmem:[#allocation7 + $0x24] ss:$16 sps:$4 sm:$0xff]   ;;  %v13726_v60 = vld [vmem:[#allocation7 + $0x2c] ss:$16 sps:$4 sm:$0xff]  }
 0x237   : > { %2109 = vmatprep.subr.bf16.mxu0 %v13675_v44  ;;  %2211 = vmatprep.subr.bf16.mxu1 %v13678_v0  ;;  %v1391_v44 = vor.u32 %v1389_v54, %v16233_v34  ;;  %v13721_v0 = vld [vmem:[#allocation7 + $0x20] ss:$16 sps:$4 sm:$0xff]   ;;  %v13772_v54 = vld [vmem:[#allocation7 + $0x128] ss:$16 sps:$4 sm:$0xff]   ;;  %v12096_v34 = vpack.c.bf16 %v16205_v63, %v16205_v63  ;;  %v13936_v63 = vld [vmem:[#allocation7 + $0x88c] ss:$16 sps:$4 sm:$0xff]  }
 0x23a   : > { %2110 = vmatpush1.bf16.msra.mxu0 %v13673_v1  ;;  %2212 = vmatpush1.bf16.msra.mxu1 %v13676_v2  ;;  %v13724_v1 = vld [vmem:[#allocation7 + $0x28] ss:$16 sps:$4 sm:$0xff]   ;;  %v13729_v2 = vld [vmem:[#allocation7 + $0x44] ss:$16 sps:$4 sm:$0xff]  }
 0x23b   : > { %2111 = vmatprep.subr.bf16.mxu0 %v13681_v7  ;;  %2213 = vmatprep.subr.bf16.mxu1 %v13684_v58  ;;  %v1386_v7 = vshrl.u32 %v16212_v12, 16  ;;  %v13727_v58 = vld [vmem:[#allocation7 + $0x40] ss:$16 sps:$4 sm:$0xff]   ;;  %v13736_v12 = vld [vmem:[#allocation7 + $0x68] ss:$16 sps:$4 sm:$0xff]  }
 0x23e   : > { %2112 = vmatpush1.bf16.msra.mxu0 %v13679_v9  ;;  %2214 = vmatpush1.bf16.msra.mxu1 %v13682_v5  ;;  %v13730_v9 = vld [vmem:[#allocation7 + $0x48] ss:$16 sps:$4 sm:$0xff]   ;;  %v13738_v5 = vld [vmem:[#allocation7 + $0x6c] ss:$16 sps:$4 sm:$0xff]  }
 0x23f   : > { %2113 = vmatprep.subr.bf16.mxu0 %v13687_v55  ;;  %2215 = vmatprep.subr.bf16.mxu1 %v13690_v11  ;;  %v1388_v55 = vor.u32 %v1386_v7, %v16227_v30  ;;  %v13741_v11 = vld [vmem:[#allocation7 + $0x84] ss:$16 sps:$4 sm:$0xff]   ;;  %v13739_v30 = vld [vmem:[#allocation7 + $0x80] ss:$16 sps:$4 sm:$0xff]   ;;  %v13792_v7 = vld [vmem:[#allocation7 + $0x18c] ss:$16 sps:$4 sm:$0xff]  }
 0x242   : > { %2114 = vmatpush1.bf16.msra.mxu0 %v13685_v13  ;;  %2216 = vmatpush1.bf16.msra.mxu1 %v13688_v14  ;;  %v13744_v13 = vld [vmem:[#allocation7 + $0x8c] ss:$16 sps:$4 sm:$0xff]   ;;  %v13742_v14 = vld [vmem:[#allocation7 + $0x88] ss:$16 sps:$4 sm:$0xff]  }
 0x243   : > { %2115 = vmatprep.subr.bf16.mxu0 %v13693_v16  ;;  %2217 = vmatprep.subr.bf16.mxu1 %v13696_v18  ;;  %v13747_v16 = vld [vmem:[#allocation7 + $0xa4] ss:$16 sps:$4 sm:$0xff]   ;;  %v13750_v18 = vld [vmem:[#allocation7 + $0xac] ss:$16 sps:$4 sm:$0xff]  }
 0x246   : > { %2116 = vmatpush1.bf16.msra.mxu0 %v13691_v19  ;;  %2218 = vmatpush1.bf16.msra.mxu1 %v13694_v20  ;;  %v13745_v19 = vld [vmem:[#allocation7 + $0xa0] ss:$16 sps:$4 sm:$0xff]   ;;  %v13748_v20 = vld [vmem:[#allocation7 + $0xa8] ss:$16 sps:$4 sm:$0xff]  }
 0x247   : > { %2117 = vmatprep.subr.bf16.mxu0 %v13699_v21  ;;  %2219 = vmatprep.subr.bf16.mxu1 %v13702_v23  ;;  %v13753_v21 = vld [vmem:[#allocation7 + $0xc4] ss:$16 sps:$4 sm:$0xff]   ;;  %v13751_v23 = vld [vmem:[#allocation7 + $0xc0] ss:$16 sps:$4 sm:$0xff]  }
 0x24a   : > { %2118 = vmatpush1.bf16.msra.mxu0 %v13697_v24  ;;  %2220 = vmatpush1.bf16.msra.mxu1 %v13700_v26  ;;  %v13754_v24 = vld [vmem:[#allocation7 + $0xc8] ss:$16 sps:$4 sm:$0xff]   ;;  %v13759_v26 = vld [vmem:[#allocation7 + $0xe4] ss:$16 sps:$4 sm:$0xff]  }
 0x24b   : > { %2119 = vmatprep.subr.bf16.mxu0 %v13705_v32  ;;  %2221 = vmatprep.subr.bf16.mxu1 %v13708_v33  ;;  %v13762_v32 = vld [vmem:[#allocation7 + $0xec] ss:$16 sps:$4 sm:$0xff]   ;;  %v13757_v33 = vld [vmem:[#allocation7 + $0xe0] ss:$16 sps:$4 sm:$0xff]  }
 0x24e   : > { %2120 = vmatpush1.bf16.msra.mxu0 %v13703_v38  ;;  %2222 = vmatpush1.bf16.msra.mxu1 %v13706_v41  ;;  %v13760_v38 = vld [vmem:[#allocation7 + $0xe8] ss:$16 sps:$4 sm:$0xff]   ;;  %v13765_v41 = vld [vmem:[#allocation7 + $0x104] ss:$16 sps:$4 sm:$0xff]  }
 0x24f   : > { %2121 = vmatprep.subr.bf16.mxu0 %v13711_v46  ;;  %2223 = vmatprep.subr.bf16.mxu1 %v13714_v47  ;;  %v13768_v46 = vld [vmem:[#allocation7 + $0x10c] ss:$16 sps:$4 sm:$0xff]   ;;  %v13763_v47 = vld [vmem:[#allocation7 + $0x100] ss:$16 sps:$4 sm:$0xff]  }
 0x252   : > { %2122 = vmatpush1.bf16.msra.mxu0 %v13709_v48  ;;  %2224 = vmatpush1.bf16.msra.mxu1 %v13712_v49  ;;  %v13766_v48 = vld [vmem:[#allocation7 + $0x108] ss:$16 sps:$4 sm:$0xff]   ;;  %v13771_v49 = vld [vmem:[#allocation7 + $0x124] ss:$16 sps:$4 sm:$0xff]  }
 0x253   : > { %2884 = vmatprep.subr.bf16.mxu0 %v13717_v50  ;;  %2986 = vmatprep.subr.bf16.mxu1 %v13720_v53  ;;  %v13774_v50 = vld [vmem:[#allocation7 + $0x12c] ss:$16 sps:$4 sm:$0xff]   ;;  %v13769_v53 = vld [vmem:[#allocation7 + $0x120] ss:$16 sps:$4 sm:$0xff]  }
 0x255   : > { %2124 = vmatmul.mubr.bf16.vlgmr.msra.gmra.mrb[8].mxu0 %v16241_v43  ;;  %2226 = vmatmul.mubr.bf16.vlgmr.msra.gmra.mrb[8].mxu1 %v16241_v43  ;;  %v13735_v43 = vld [vmem:[#allocation7 + $0x64] ss:$16 sps:$4 sm:$0xff]  }
 0x256   : > { %2133 = vmatprep.mubr.bf16.mxu0 %v1391_v44  ;;  %2235 = vmatprep.mubr.bf16.mxu1 %v1391_v44  ;;  %v13783_v44 = vld [vmem:[#allocation7 + $0x164] ss:$16 sps:$4 sm:$0xff]  }
 0x257   : > { %2885 = vmatpush1.bf16.msra.mxu0 %v13715_v56  ;;  %2987 = vmatpush1.bf16.msra.mxu1 %v13718_v57  ;;  %v13777_v56 = vld [vmem:[#allocation7 + $0x144] ss:$16 sps:$4 sm:$0xff]   ;;  %v13780_v57 = vld [vmem:[#allocation7 + $0x14c] ss:$16 sps:$4 sm:$0xff]  }
 0x258   : > { %2886 = vmatprep.subr.bf16.mxu0 %v13723_v59  ;;  %2988 = vmatprep.subr.bf16.mxu1 %v13726_v60  ;;  %v13775_v59 = vld [vmem:[#allocation7 + $0x140] ss:$16 sps:$4 sm:$0xff]   ;;  %v13778_v60 = vld [vmem:[#allocation7 + $0x148] ss:$16 sps:$4 sm:$0xff]  }
 0x25b   : > { %2887 = vmatpush1.bf16.msra.mxu0 %v13721_v0  ;;  %2989 = vmatpush1.bf16.msra.mxu1 %v13724_v1  ;;  %v13786_v0 = vld [vmem:[#allocation7 + $0x16c] ss:$16 sps:$4 sm:$0xff]   ;;  %v13781_v1 = vld [vmem:[#allocation7 + $0x160] ss:$16 sps:$4 sm:$0xff]  }
 0x25c   : > { %2888 = vmatprep.subr.bf16.mxu0 %v13729_v2  ;;  %2990 = vmatprep.subr.bf16.mxu1 %v13732_v17  ;;  %v13784_v2 = vld [vmem:[#allocation7 + $0x168] ss:$16 sps:$4 sm:$0xff]   ;;  %v13789_v17 = vld [vmem:[#allocation7 + $0x184] ss:$16 sps:$4 sm:$0xff]  }
 0x25d   : > { %2134 = vmatmul.mubr.bf16.gmra.mrb[16].mxu0 %v1388_v55  ;;  %2236 = vmatmul.mubr.bf16.gmra.mrb[16].mxu1 %v1388_v55  ;;  %v13793_v55 = vld [vmem:[#allocation7 + $0x1a0] ss:$16 sps:$4 sm:$0xff]  }
 0x25e   : > { %12076 = vmatprep.mubr.msk.bf16.mxu0 %vm16253_vm7, %v16152_v29  ;;  %12100 = vmatprep.mubr.msk.bf16.mxu1 %vm16253_vm7, %v16152_v29  ;;  %v13756_v29 = vld [vmem:[#allocation7 + $0xcc] ss:$16 sps:$4 sm:$0xff]  }
 0x25f   : > { %2889 = vmatpush1.bf16.msra.mxu0 %v13727_v58  ;;  %2991 = vmatpush1.bf16.msra.mxu1 %v13730_v9  ;;  %v13787_v58 = vld [vmem:[#allocation7 + $0x180] ss:$16 sps:$4 sm:$0xff]   ;;  %v13790_v9 = vld [vmem:[#allocation7 + $0x188] ss:$16 sps:$4 sm:$0xff]  }
 0x260   : > { %2890 = vmatprep.subr.bf16.mxu0 %v13735_v43  ;;  %2992 = vmatprep.subr.bf16.mxu1 %v13738_v5  ;;  %v13795_v43 = vld [vmem:[#allocation7 + $0x1a4] ss:$16 sps:$4 sm:$0xff]   ;;  %v13798_v5 = vld [vmem:[#allocation7 + $0x1ac] ss:$16 sps:$4 sm:$0xff]  }
 0x263   : > { %2891 = vmatpush1.bf16.msra.mxu0 %v13733_v8  ;;  %2993 = vmatpush1.bf16.msra.mxu1 %v13736_v12  ;;  %v13796_v8 = vld [vmem:[#allocation7 + $0x1a8] ss:$16 sps:$4 sm:$0xff]   ;;  %v13801_v12 = vld [vmem:[#allocation7 + $0x1c4] ss:$16 sps:$4 sm:$0xff]  }
 0x264   : > { %2892 = vmatprep.subr.bf16.mxu0 %v13741_v11  ;;  %2994 = vmatprep.subr.bf16.mxu1 %v13744_v13  ;;  %v13804_v11 = vld [vmem:[#allocation7 + $0x1cc] ss:$16 sps:$4 sm:$0xff]   ;;  %v13799_v13 = vld [vmem:[#allocation7 + $0x1c0] ss:$16 sps:$4 sm:$0xff]  }
 0x267   : > { %2893 = vmatpush1.bf16.msra.mxu0 %v13739_v30  ;;  %2995 = vmatpush1.bf16.msra.mxu1 %v13742_v14  ;;  %v13802_v30 = vld [vmem:[#allocation7 + $0x1c8] ss:$16 sps:$4 sm:$0xff]   ;;  %v13807_v14 = vld [vmem:[#allocation7 + $0x1e4] ss:$16 sps:$4 sm:$0xff]  }
 0x268   : > { %2894 = vmatprep.subr.bf16.mxu0 %v13747_v16  ;;  %2996 = vmatprep.subr.bf16.mxu1 %v13750_v18  ;;  %v13810_v16 = vld [vmem:[#allocation7 + $0x1ec] ss:$16 sps:$4 sm:$0xff]   ;;  %v13805_v18 = vld [vmem:[#allocation7 + $0x1e0] ss:$16 sps:$4 sm:$0xff]  }
 0x26b   : > { %2895 = vmatpush1.bf16.msra.mxu0 %v13745_v19  ;;  %2997 = vmatpush1.bf16.msra.mxu1 %v13748_v20  ;;  %v13808_v19 = vld [vmem:[#allocation7 + $0x1e8] ss:$16 sps:$4 sm:$0xff]   ;;  %v13813_v20 = vld [vmem:[#allocation7 + $0x204] ss:$16 sps:$4 sm:$0xff]  }
 0x26c   : > { %2896 = vmatprep.subr.bf16.mxu0 %v13753_v21  ;;  %2998 = vmatprep.subr.bf16.mxu1 %v13756_v29  ;;  %v13816_v21 = vld [vmem:[#allocation7 + $0x20c] ss:$16 sps:$4 sm:$0xff]   ;;  %v13811_v29 = vld [vmem:[#allocation7 + $0x200] ss:$16 sps:$4 sm:$0xff]  }
 0x26f   : > { %2897 = vmatpush1.bf16.msra.mxu0 %v13751_v23  ;;  %2999 = vmatpush1.bf16.msra.mxu1 %v13754_v24  ;;  %v13814_v23 = vld [vmem:[#allocation7 + $0x208] ss:$16 sps:$4 sm:$0xff]   ;;  %v13937_v24 = vld [vmem:[#allocation7 + $0x8a0] ss:$16 sps:$4 sm:$0xff]  }
 0x270   : > { %2898 = vmatprep.subr.bf16.mxu0 %v13759_v26  ;;  %3000 = vmatprep.subr.bf16.mxu1 %v13762_v32  ;;  %v13819_v26 = vld [vmem:[#allocation7 + $0x224] ss:$16 sps:$4 sm:$0xff]   ;;  %v13822_v32 = vld [vmem:[#allocation7 + $0x22c] ss:$16 sps:$4 sm:$0xff]  }
 0x273   : > { %2899 = vmatpush1.bf16.msra.mxu0 %v13757_v33  ;;  %3001 = vmatpush1.bf16.msra.mxu1 %v13760_v38  ;;  %v12081_v33 = vpack.c.bf16 %v16157_v39, %v16157_v39  ;;  %v13820_v38 = vld [vmem:[#allocation7 + $0x228] ss:$16 sps:$4 sm:$0xff]   ;;  %v13823_v39 = vld [vmem:[#allocation7 + $0x240] ss:$16 sps:$4 sm:$0xff]  }
 0x274   : > { %2900 = vmatprep.subr.bf16.mxu0 %v13765_v41  ;;  %3002 = vmatprep.subr.bf16.mxu1 %v13768_v46  ;;  %v13825_v41 = vld [vmem:[#allocation7 + $0x244] ss:$16 sps:$4 sm:$0xff]   ;;  %v13828_v46 = vld [vmem:[#allocation7 + $0x24c] ss:$16 sps:$4 sm:$0xff]  }
 0x277   : > { %2901 = vmatpush1.bf16.msra.mxu0 %v13763_v47  ;;  %3003 = vmatpush1.bf16.msra.mxu1 %v13766_v48  ;;  %v13826_v47 = vld [vmem:[#allocation7 + $0x248] ss:$16 sps:$4 sm:$0xff]   ;;  %v13831_v48 = vld [vmem:[#allocation7 + $0x264] ss:$16 sps:$4 sm:$0xff]  }
 0x278   : > { %2902 = vmatprep.subr.bf16.mxu0 %v13771_v49  ;;  %3004 = vmatprep.subr.bf16.mxu1 %v13774_v50  ;;  %v13834_v49 = vld [vmem:[#allocation7 + $0x26c] ss:$16 sps:$4 sm:$0xff]   ;;  %v13829_v50 = vld [vmem:[#allocation7 + $0x260] ss:$16 sps:$4 sm:$0xff]  }
 0x27b   : > { %2903 = vmatpush1.bf16.msra.mxu0 %v13769_v53  ;;  %3005 = vmatpush1.bf16.msra.mxu1 %v13772_v54  ;;  %v13832_v53 = vld [vmem:[#allocation7 + $0x268] ss:$16 sps:$4 sm:$0xff]   ;;  %v13837_v54 = vld [vmem:[#allocation7 + $0x284] ss:$16 sps:$4 sm:$0xff]  }
 0x27c   : > { %2904 = vmatprep.subr.bf16.mxu0 %v13777_v56  ;;  %3006 = vmatprep.subr.bf16.mxu1 %v13780_v57  ;;  %v13835_v56 = vld [vmem:[#allocation7 + $0x280] ss:$16 sps:$4 sm:$0xff]   ;;  %v13838_v57 = vld [vmem:[#allocation7 + $0x288] ss:$16 sps:$4 sm:$0xff]  }
 0x27f   : > { %2905 = vmatpush1.bf16.msra.mxu0 %v13775_v59  ;;  %3007 = vmatpush1.bf16.msra.mxu1 %v13778_v60  ;;  %v13843_v59 = vld [vmem:[#allocation7 + $0x2a4] ss:$16 sps:$4 sm:$0xff]   ;;  %v13846_v60 = vld [vmem:[#allocation7 + $0x2ac] ss:$16 sps:$4 sm:$0xff]  }
 0x280   : > { %2906 = vmatprep.subr.bf16.mxu0 %v13783_v44  ;;  %3008 = vmatprep.subr.bf16.mxu1 %v13786_v0  ;;  %v13841_v44 = vld [vmem:[#allocation7 + $0x2a0] ss:$16 sps:$4 sm:$0xff]   ;;  %v13844_v0 = vld [vmem:[#allocation7 + $0x2a8] ss:$16 sps:$4 sm:$0xff]  }
 0x283   : > { %2907 = vmatpush1.bf16.msra.mxu0 %v13781_v1  ;;  %3009 = vmatpush1.bf16.msra.mxu1 %v13784_v2  ;;  %v13849_v1 = vld [vmem:[#allocation7 + $0x2c4] ss:$16 sps:$4 sm:$0xff]   ;;  %v13852_v2 = vld [vmem:[#allocation7 + $0x2cc] ss:$16 sps:$4 sm:$0xff]  }
 0x284   : > { %2908 = vmatprep.subr.bf16.mxu0 %v13789_v17  ;;  %3010 = vmatprep.subr.bf16.mxu1 %v13792_v7  ;;  %v13850_v17 = vld [vmem:[#allocation7 + $0x2c8] ss:$16 sps:$4 sm:$0xff]   ;;  %v13855_v7 = vld [vmem:[#allocation7 + $0x2e4] ss:$16 sps:$4 sm:$0xff]  }
 0x287   : > { %2909 = vmatpush1.bf16.msra.mxu0 %v13787_v58  ;;  %3011 = vmatpush1.bf16.msra.mxu1 %v13790_v9  ;;  %v13858_v58 = vld [vmem:[#allocation7 + $0x2ec] ss:$16 sps:$4 sm:$0xff]   ;;  %v13853_v9 = vld [vmem:[#allocation7 + $0x2e0] ss:$16 sps:$4 sm:$0xff]  }
 0x288   : > { %2910 = vmatprep.subr.bf16.mxu0 %v13795_v43  ;;  %3012 = vmatprep.subr.bf16.mxu1 %v13798_v5  ;;  %v13856_v43 = vld [vmem:[#allocation7 + $0x2e8] ss:$16 sps:$4 sm:$0xff]   ;;  %v13861_v5 = vld [vmem:[#allocation7 + $0x304] ss:$16 sps:$4 sm:$0xff]  }
 0x28b   : > { %2911 = vmatpush1.bf16.msra.mxu0 %v13793_v55  ;;  %3013 = vmatpush1.bf16.msra.mxu1 %v13796_v8  ;;  %v13864_v55 = vld [vmem:[#allocation7 + $0x30c] ss:$16 sps:$4 sm:$0xff]   ;;  %v13859_v8 = vld [vmem:[#allocation7 + $0x300] ss:$16 sps:$4 sm:$0xff]  }
 0x28c   : > { %2912 = vmatprep.subr.bf16.mxu0 %v13801_v12  ;;  %3014 = vmatprep.subr.bf16.mxu1 %v13804_v11  ;;  %v13862_v12 = vld [vmem:[#allocation7 + $0x308] ss:$16 sps:$4 sm:$0xff]   ;;  %v13867_v11 = vld [vmem:[#allocation7 + $0x324] ss:$16 sps:$4 sm:$0xff]  }
 0x28f   : > { %2913 = vmatpush1.bf16.msra.mxu0 %v13799_v13  ;;  %3015 = vmatpush1.bf16.msra.mxu1 %v13802_v30  ;;  %v13870_v13 = vld [vmem:[#allocation7 + $0x32c] ss:$16 sps:$4 sm:$0xff]   ;;  %v13865_v30 = vld [vmem:[#allocation7 + $0x320] ss:$16 sps:$4 sm:$0xff]  }
 0x290   : > { %2914 = vmatprep.subr.bf16.mxu0 %v13807_v14  ;;  %3016 = vmatprep.subr.bf16.mxu1 %v13810_v16  ;;  %v13868_v14 = vld [vmem:[#allocation7 + $0x328] ss:$16 sps:$4 sm:$0xff]   ;;  %v13873_v16 = vld [vmem:[#allocation7 + $0x344] ss:$16 sps:$4 sm:$0xff]  }
 0x293   : > { %2915 = vmatpush1.bf16.msra.mxu0 %v13805_v18  ;;  %3017 = vmatpush1.bf16.msra.mxu1 %v13808_v19  ;;  %v13876_v18 = vld [vmem:[#allocation7 + $0x34c] ss:$16 sps:$4 sm:$0xff]   ;;  %v13871_v19 = vld [vmem:[#allocation7 + $0x340] ss:$16 sps:$4 sm:$0xff]  }
 0x294   : > { %2935 = vmatprep.subr.bf16.mxu0 %v13813_v20  ;;  %3037 = vmatprep.subr.bf16.mxu1 %v13816_v21  ;;  %v13874_v20 = vld [vmem:[#allocation7 + $0x348] ss:$16 sps:$4 sm:$0xff]   ;;  %v13879_v21 = vld [vmem:[#allocation7 + $0x364] ss:$16 sps:$4 sm:$0xff]  }
 0x296   : > { %12079 = vmatmul.mubr.msk.bf16.vlgmr.msra.gmra.mrb[8].mxu0 %vm16253_vm7, %v16150_v27  ;;  %12103 = vmatmul.mubr.msk.bf16.vlgmr.msra.gmra.mrb[8].mxu1 %vm16253_vm7, %v16150_v27  ;;  %v12084_v27 = vpack.c.bf16 %v16155_v37, %v16155_v37  ;;  %v13840_v37 = vld [vmem:[#allocation7 + $0x28c] ss:$16 sps:$4 sm:$0xff]  }
 0x297   : > { %12082 = vmatprep.mubr.msk.bf16.mxu0 %vm16267_vm8, %v12081_v33  ;;  %2936 = vmatpush1.bf16.msra.mxu0 %v13811_v29  ;;  %v13882_v29 = vld [vmem:[#allocation7 + $0x36c] ss:$16 sps:$4 sm:$0xff]  }
 0x298   : > { %12106 = vmatprep.mubr.msk.bf16.mxu1 %vm16267_vm8, %v12081_v33  ;;  %3038 = vmatpush1.bf16.msra.mxu1 %v13814_v23  ;;  %v13877_v23 = vld [vmem:[#allocation7 + $0x360] ss:$16 sps:$4 sm:$0xff]   ;;  %v13888_v33 = vld [vmem:[#allocation7 + $0x38c] ss:$16 sps:$4 sm:$0xff]  }
 0x299   : > { %2937 = vmatprep.subr.bf16.mxu0 %v13819_v26  ;;  %3039 = vmatprep.subr.bf16.mxu1 %v13822_v32  ;;  %v13880_v26 = vld [vmem:[#allocation7 + $0x368] ss:$16 sps:$4 sm:$0xff]   ;;  %v13885_v32 = vld [vmem:[#allocation7 + $0x384] ss:$16 sps:$4 sm:$0xff]  }
 0x29b   : > { %2938 = vmatpush1.bf16.msra.mxu0 %v13817_v25  ;;  %v13883_v25 = vld [vmem:[#allocation7 + $0x380] ss:$16 sps:$4 sm:$0xff]  }
 0x29c   : > { %3040 = vmatpush1.bf16.msra.mxu1 %v13820_v38  ;;  %2939 = vmatprep.subr.bf16.mxu0 %v13825_v41  ;;  %v13886_v38 = vld [vmem:[#allocation7 + $0x388] ss:$16 sps:$4 sm:$0xff]   ;;  %v13891_v41 = vld [vmem:[#allocation7 + $0x3a4] ss:$16 sps:$4 sm:$0xff]  }
 0x29d   : > { %3041 = vmatprep.subr.bf16.mxu1 %v13828_v46  ;;  %v13894_v46 = vld [vmem:[#allocation7 + $0x3ac] ss:$16 sps:$4 sm:$0xff]  }
 0x29e   : > { %12085 = vmatmul.mubr.msk.bf16.gmra.mrb[20].mxu0 %vm16267_vm8, %v12084_v27  ;;  %12109 = vmatmul.mubr.msk.bf16.gmra.mrb[20].mxu1 %vm16267_vm8, %v12084_v27  ;;  %v13895_v27 = vld [vmem:[#allocation7 + $0x3c0] ss:$16 sps:$4 sm:$0xff]  }
 0x29f   : > { %2940 = vmatpush1.bf16.msra.mxu0 %v13823_v39  ;;  %12088 = vmatprep.mubr.msk.bf16.mxu0 %vm16253_vm7, %v16202_v45  ;;  %v13889_v39 = vld [vmem:[#allocation7 + $0x3a0] ss:$16 sps:$4 sm:$0xff]  }
 0x2a0   : > { %3042 = vmatpush1.bf16.msra.mxu1 %v13826_v47  ;;  %12112 = vmatprep.mubr.msk.bf16.mxu1 %vm16253_vm7, %v16202_v45  ;;  %v13847_v45 = vld [vmem:[#allocation7 + $0x2c0] ss:$16 sps:$4 sm:$0xff]   ;;  %v13892_v47 = vld [vmem:[#allocation7 + $0x3a8] ss:$16 sps:$4 sm:$0xff]  }
 0x2a1   : > { %2941 = vmatprep.subr.bf16.mxu0 %v13831_v48  ;;  %3043 = vmatprep.subr.bf16.mxu1 %v13834_v49  ;;  %v13897_v48 = vld [vmem:[#allocation7 + $0x3c4] ss:$16 sps:$4 sm:$0xff]   ;;  %v13900_v49 = vld [vmem:[#allocation7 + $0x3cc] ss:$16 sps:$4 sm:$0xff]  }
 0x2a3   : > { %2942 = vmatpush1.bf16.msra.mxu0 %v13829_v50  ;;  %v13898_v50 = vld [vmem:[#allocation7 + $0x3c8] ss:$16 sps:$4 sm:$0xff]  }
 0x2a4   : > { %3044 = vmatpush1.bf16.msra.mxu1 %v13832_v53  ;;  %2943 = vmatprep.subr.bf16.mxu0 %v13837_v54  ;;  %v13903_v53 = vld [vmem:[#allocation7 + $0x3e4] ss:$16 sps:$4 sm:$0xff]   ;;  %v13906_v54 = vld [vmem:[#allocation7 + $0x3ec] ss:$16 sps:$4 sm:$0xff]  }
 0x2a5   : > { %3045 = vmatprep.subr.bf16.mxu1 %v13840_v37  ;;  %v13901_v37 = vld [vmem:[#allocation7 + $0x3e0] ss:$16 sps:$4 sm:$0xff]  }
 0x2a7   : > { %2944 = vmatpush1.bf16.msra.mxu0 %v13835_v56  ;;  %v13904_v56 = vld [vmem:[#allocation7 + $0x3e8] ss:$16 sps:$4 sm:$0xff]  }
 0x2a8   : > { %3046 = vmatpush1.bf16.msra.mxu1 %v13838_v57  ;;  %2945 = vmatprep.subr.bf16.mxu0 %v13843_v59  ;;  %v13909_v57 = vld [vmem:[#allocation7 + $0x804] ss:$16 sps:$4 sm:$0xff]   ;;  %v13912_v59 = vld [vmem:[#allocation7 + $0x80c] ss:$16 sps:$4 sm:$0xff]  }
 0x2a9   : > { %3047 = vmatprep.subr.bf16.mxu1 %v13846_v60  ;;  %v13907_v60 = vld [vmem:[#allocation7 + $0x800] ss:$16 sps:$4 sm:$0xff]  }
 0x2ab   : > { %2946 = vmatpush1.bf16.msra.mxu0 %v13841_v44  ;;  %v13910_v44 = vld [vmem:[#allocation7 + $0x808] ss:$16 sps:$4 sm:$0xff]  }
 0x2ac   : > { %3048 = vmatpush1.bf16.msra.mxu1 %v13844_v0  ;;  %2947 = vmatprep.subr.bf16.mxu0 %v13849_v1  ;;  %v13915_v0 = vld [vmem:[#allocation7 + $0x824] ss:$16 sps:$4 sm:$0xff]   ;;  %v13918_v1 = vld [vmem:[#allocation7 + $0x82c] ss:$16 sps:$4 sm:$0xff]  }
 0x2ad   : > { %3049 = vmatprep.subr.bf16.mxu1 %v13852_v2  ;;  %v12093_v2 = vpack.c.bf16 %v16207_v52, %v16207_v52  ;;  %v13924_v52 = vld [vmem:[#allocation7 + $0x84c] ss:$16 sps:$4 sm:$0xff]  }
 0x2af   : > { %2948 = vmatpush1.bf16.msra.mxu0 %v13847_v45  ;;  %v13913_v45 = vld [vmem:[#allocation7 + $0x820] ss:$16 sps:$4 sm:$0xff]  }
 0x2b0   : > { %3050 = vmatpush1.bf16.msra.mxu1 %v13850_v17  ;;  %2949 = vmatprep.subr.bf16.mxu0 %v13855_v7  ;;  %v13916_v17 = vld [vmem:[#allocation7 + $0x828] ss:$16 sps:$4 sm:$0xff]   ;;  %v13921_v7 = vld [vmem:[#allocation7 + $0x844] ss:$16 sps:$4 sm:$0xff]  }
 0x2b1   : > { %3051 = vmatprep.subr.bf16.mxu1 %v13858_v58  ;;  %v13919_v58 = vld [vmem:[#allocation7 + $0x840] ss:$16 sps:$4 sm:$0xff]  }
 0x2b3   : > { %2950 = vmatpush1.bf16.msra.mxu0 %v13853_v9  ;;  %v13922_v9 = vld [vmem:[#allocation7 + $0x848] ss:$16 sps:$4 sm:$0xff]  }
 0x2b4   : > { %3052 = vmatpush1.bf16.msra.mxu1 %v13856_v43  ;;  %2951 = vmatprep.subr.bf16.mxu0 %v13861_v5  ;;  %v13927_v43 = vld [vmem:[#allocation7 + $0x864] ss:$16 sps:$4 sm:$0xff]   ;;  %v13925_v5 = vld [vmem:[#allocation7 + $0x860] ss:$16 sps:$4 sm:$0xff]  }
 0x2b5   : > { %3053 = vmatprep.subr.bf16.mxu1 %v13864_v55  ;;  %v13928_v55 = vld [vmem:[#allocation7 + $0x868] ss:$16 sps:$4 sm:$0xff]  }
 0x2b7   : > { %2952 = vmatpush1.bf16.msra.mxu0 %v13859_v8  ;;  %v13933_v8 = vld [vmem:[#allocation7 + $0x884] ss:$16 sps:$4 sm:$0xff]  }
 0x2b8   : > { %3054 = vmatpush1.bf16.msra.mxu1 %v13862_v12  ;;  %2953 = vmatprep.subr.bf16.mxu0 %v13867_v11  ;;  %v13931_v12 = vld [vmem:[#allocation7 + $0x880] ss:$16 sps:$4 sm:$0xff]   ;;  %v13934_v11 = vld [vmem:[#allocation7 + $0x888] ss:$16 sps:$4 sm:$0xff]  }
 0x2b9   : > { %3055 = vmatprep.subr.bf16.mxu1 %v13870_v13  ;;  %v13939_v13 = vld [vmem:[#allocation7 + $0x8a4] ss:$16 sps:$4 sm:$0xff]  }
 0x2bb   : > { %2954 = vmatpush1.bf16.msra.mxu0 %v13865_v30  ;;  %v13942_v30 = vld [vmem:[#allocation7 + $0x8ac] ss:$16 sps:$4 sm:$0xff]  }
 0x2bc   : > { %3056 = vmatpush1.bf16.msra.mxu1 %v13868_v14  ;;  %2955 = vmatprep.subr.bf16.mxu0 %v13873_v16  ;;  %v13940_v14 = vld [vmem:[#allocation7 + $0x8a8] ss:$16 sps:$4 sm:$0xff]   ;;  %v13945_v16 = vld [vmem:[#allocation7 + $0x8c4] ss:$16 sps:$4 sm:$0xff]  }
 0x2bd   : > { %3057 = vmatprep.subr.bf16.mxu1 %v13876_v18  ;;  %v13948_v18 = vld [vmem:[#allocation7 + $0x8cc] ss:$16 sps:$4 sm:$0xff]  }
 0x2bf   : > { %2956 = vmatpush1.bf16.msra.mxu0 %v13871_v19  ;;  %v13946_v19 = vld [vmem:[#allocation7 + $0x8c8] ss:$16 sps:$4 sm:$0xff]  }
 0x2c0   : > { %3058 = vmatpush1.bf16.msra.mxu1 %v13874_v20  ;;  %2957 = vmatprep.subr.bf16.mxu0 %v13879_v21  ;;  %v13951_v20 = vld [vmem:[#allocation7 + $0x8e4] ss:$16 sps:$4 sm:$0xff]   ;;  %v13954_v21 = vld [vmem:[#allocation7 + $0x8ec] ss:$16 sps:$4 sm:$0xff]  }
 0x2c1   : > { %3059 = vmatprep.subr.bf16.mxu1 %v13882_v29  ;;  %v13949_v29 = vld [vmem:[#allocation7 + $0x8e0] ss:$16 sps:$4 sm:$0xff]  }
 0x2c3   : > { %2958 = vmatpush1.bf16.msra.mxu0 %v13877_v23  ;;  %v13952_v23 = vld [vmem:[#allocation7 + $0x8e8] ss:$16 sps:$4 sm:$0xff]  }
 0x2c4   : > { %3060 = vmatpush1.bf16.msra.mxu1 %v13880_v26  ;;  %2959 = vmatprep.subr.bf16.mxu0 %v13885_v32  ;;  %v13957_v26 = vld [vmem:[#allocation7 + $0x904] ss:$16 sps:$4 sm:$0xff]  }
 0x2c5   : > { %3061 = vmatprep.subr.bf16.mxu1 %v13888_v33 }
 0x2c7   : > { %2960 = vmatpush1.bf16.msra.mxu0 %v13883_v25  ;;  %v13960_v25 = vld [vmem:[#allocation7 + $0x90c] ss:$16 sps:$4 sm:$0xff]  }
 0x2c8   : > { %3062 = vmatpush1.bf16.msra.mxu1 %v13886_v38  ;;  %2961 = vmatprep.subr.bf16.mxu0 %v13891_v41 }
 0x2c9   : > { %3063 = vmatprep.subr.bf16.mxu1 %v13894_v46 }
 0x2cb   : > { %2962 = vmatpush1.bf16.msra.mxu0 %v13889_v39 }
 0x2cc   : > { %3064 = vmatpush1.bf16.msra.mxu1 %v13892_v47  ;;  %2963 = vmatprep.subr.bf16.mxu0 %v13897_v48  ;;  %v13955_v47 = vld [vmem:[#allocation7 + $0x900] ss:$16 sps:$4 sm:$0xff]  }
 0x2cd   : > { %3065 = vmatprep.subr.bf16.mxu1 %v13900_v49 }
 0x2cf   : > { %2964 = vmatpush1.bf16.msra.mxu0 %v13895_v27  ;;  %v13958_v27 = vld [vmem:[#allocation7 + $0x908] ss:$16 sps:$4 sm:$0xff]  }
 0x2d0   : > { %3066 = vmatpush1.bf16.msra.mxu1 %v13898_v50  ;;  %2965 = vmatprep.subr.bf16.mxu0 %v13903_v53  ;;  %v13963_v50 = vld [vmem:[#allocation7 + $0x924] ss:$16 sps:$4 sm:$0xff]   ;;  %v13966_v53 = vld [vmem:[#allocation7 + $0x92c] ss:$16 sps:$4 sm:$0xff]  }
 0x2d1   : > { %3067 = vmatprep.subr.bf16.mxu1 %v13906_v54  ;;  %v13961_v54 = vld [vmem:[#allocation7 + $0x920] ss:$16 sps:$4 sm:$0xff]  }
 0x2d3   : > { %2966 = vmatpush1.bf16.msra.mxu0 %v13901_v37  ;;  %v13964_v37 = vld [vmem:[#allocation7 + $0x928] ss:$16 sps:$4 sm:$0xff]  }
 0x2d4   : > { %3068 = vmatpush1.bf16.msra.mxu1 %v13904_v56  ;;  %3886 = vmatprep.subr.bf16.mxu0 %v13909_v57  ;;  %v13969_v56 = vld [vmem:[#allocation7 + $0x944] ss:$16 sps:$4 sm:$0xff]   ;;  %v13972_v57 = vld [vmem:[#allocation7 + $0x94c] ss:$16 sps:$4 sm:$0xff]  }
 0x2d5   : > { %3988 = vmatprep.subr.bf16.mxu1 %v13912_v59  ;;  %v13967_v59 = vld [vmem:[#allocation7 + $0x940] ss:$16 sps:$4 sm:$0xff]  }
 0x2d6   : > { %12091 = vmatmul.mubr.msk.bf16.vlgmr.msra.gmra.mrb[8].mxu0 %vm16253_vm7, %v16199_v36 }
 0x2d7   : > { %12115 = vmatmul.mubr.msk.bf16.vlgmr.msra.gmra.mrb[8].mxu1 %vm16253_vm7, %v16199_v36  ;;  %12094 = vmatprep.mubr.msk.bf16.mxu0 %vm16267_vm8, %v12093_v2  ;;  %v13930_v36 = vld [vmem:[#allocation7 + $0x86c] ss:$16 sps:$4 sm:$0xff]  }
 0x2d8   : > { %12118 = vmatprep.mubr.msk.bf16.mxu1 %vm16267_vm8, %v12093_v2  ;;  %3887 = vmatpush1.bf16.msra.mxu0 %v13907_v60  ;;  %v13970_v60 = vld [vmem:[#allocation7 + $0x948] ss:$16 sps:$4 sm:$0xff]  }
 0x2d9   : > { %3989 = vmatpush1.bf16.msra.mxu1 %v13910_v44  ;;  %3888 = vmatprep.subr.bf16.mxu0 %v13915_v0  ;;  %v13975_v44 = vld [vmem:[#allocation7 + $0x964] ss:$16 sps:$4 sm:$0xff]   ;;  %v13978_v0 = vld [vmem:[#allocation7 + $0x96c] ss:$16 sps:$4 sm:$0xff]   ;;  %v13976_v2 = vld [vmem:[#allocation7 + $0x968] ss:$16 sps:$4 sm:$0xff]  }
 0x2da   : > { %3990 = vmatprep.subr.bf16.mxu1 %v13918_v1  ;;  %v13973_v1 = vld [vmem:[#allocation7 + $0x960] ss:$16 sps:$4 sm:$0xff]  }
 0x2dc   : > { %3889 = vmatpush1.bf16.msra.mxu0 %v13913_v45  ;;  %v13981_v45 = vld [vmem:[#allocation7 + $0x984] ss:$16 sps:$4 sm:$0xff]  }
 0x2dd   : > { %3991 = vmatpush1.bf16.msra.mxu1 %v13916_v17  ;;  %3890 = vmatprep.subr.bf16.mxu0 %v13921_v7  ;;  %v13984_v17 = vld [vmem:[#allocation7 + $0x98c] ss:$16 sps:$4 sm:$0xff]   ;;  %v13979_v7 = vld [vmem:[#allocation7 + $0x980] ss:$16 sps:$4 sm:$0xff]  }
 0x2de   : > { %12097 = vmatmul.mubr.msk.bf16.gmra.mrb[24].mxu0 %vm16267_vm8, %v12096_v34  ;;  %3992 = vmatprep.subr.bf16.mxu1 %v13924_v52  ;;  %v13982_v52 = vld [vmem:[#allocation7 + $0x988] ss:$16 sps:$4 sm:$0xff]  }
 0x2df   : > { %12121 = vmatmul.mubr.msk.bf16.gmra.mrb[24].mxu1 %vm16267_vm8, %v12096_v34  ;;  %3918 = vmatprep.mubr.bf16.mxu0 %v16190_v10  ;;  %v13988_v34 = vld [vmem:[#allocation7 + $0x9a8] ss:$16 sps:$4 sm:$0xff]  }
 0x2e0   : > { %3891 = vmatpush1.bf16.msra.mxu0 %v13919_v58  ;;  %4020 = vmatprep.mubr.bf16.mxu1 %v16190_v10  ;;  %v13943_v10 = vld [vmem:[#allocation7 + $0x8c0] ss:$16 sps:$4 sm:$0xff]   ;;  %v13987_v58 = vld [vmem:[#allocation7 + $0x9a4] ss:$16 sps:$4 sm:$0xff]  }
 0x2e1   : > { %3993 = vmatpush1.bf16.msra.mxu1 %v13922_v9  ;;  %3892 = vmatprep.subr.bf16.mxu0 %v13927_v43  ;;  %v13990_v9 = vld [vmem:[#allocation7 + $0x9ac] ss:$16 sps:$4 sm:$0xff]   ;;  %v13985_v43 = vld [vmem:[#allocation7 + $0x9a0] ss:$16 sps:$4 sm:$0xff]  }
 0x2e2   : > { %3994 = vmatprep.subr.bf16.mxu1 %v13930_v36  ;;  %v13993_v36 = vld [vmem:[#allocation7 + $0x9c4] ss:$16 sps:$4 sm:$0xff]  }
 0x2e4   : > { %3893 = vmatpush1.bf16.msra.mxu0 %v13925_v5  ;;  %v13996_v5 = vld [vmem:[#allocation7 + $0x9cc] ss:$16 sps:$4 sm:$0xff]  }
 0x2e5   : > { %3995 = vmatpush1.bf16.msra.mxu1 %v13928_v55  ;;  %3894 = vmatprep.subr.bf16.mxu0 %v13933_v8  ;;  %v13991_v55 = vld [vmem:[#allocation7 + $0x9c0] ss:$16 sps:$4 sm:$0xff]   ;;  %v13994_v8 = vld [vmem:[#allocation7 + $0x9c8] ss:$16 sps:$4 sm:$0xff]  }
 0x2e6   : > { %3996 = vmatprep.subr.bf16.mxu1 %v13936_v63  ;;  %v13999_v63 = vld [vmem:[#allocation7 + $0x9e4] ss:$16 sps:$4 sm:$0xff]  }
 0x2e8   : > { %3895 = vmatpush1.bf16.msra.mxu0 %v13931_v12  ;;  %v14002_v12 = vld [vmem:[#allocation7 + $0x9ec] ss:$16 sps:$4 sm:$0xff]  }
 0x2e9   : > { %3997 = vmatpush1.bf16.msra.mxu1 %v13934_v11  ;;  %3896 = vmatprep.subr.bf16.mxu0 %v13939_v13  ;;  %v13997_v11 = vld [vmem:[#allocation7 + $0x9e0] ss:$16 sps:$4 sm:$0xff]   ;;  %v14000_v13 = vld [vmem:[#allocation7 + $0x9e8] ss:$16 sps:$4 sm:$0xff]  }
 0x2ea   : > { %3998 = vmatprep.subr.bf16.mxu1 %v13942_v30  ;;  %v14005_v30 = vld [vmem:[#allocation7 + $0xa04] ss:$16 sps:$4 sm:$0xff]  }
 0x2ec   : > { %3897 = vmatpush1.bf16.msra.mxu0 %v13937_v24  ;;  %v14008_v24 = vld [vmem:[#allocation7 + $0xa0c] ss:$16 sps:$4 sm:$0xff]  }
 0x2ed   : > { %3999 = vmatpush1.bf16.msra.mxu1 %v13940_v14  ;;  %3898 = vmatprep.subr.bf16.mxu0 %v13945_v16  ;;  %v14003_v14 = vld [vmem:[#allocation7 + $0xa00] ss:$16 sps:$4 sm:$0xff]   ;;  %v14006_v16 = vld [vmem:[#allocation7 + $0xa08] ss:$16 sps:$4 sm:$0xff]  }
 0x2ee   : > { %4000 = vmatprep.subr.bf16.mxu1 %v13948_v18  ;;  %v14011_v18 = vld [vmem:[#allocation7 + $0xa24] ss:$16 sps:$4 sm:$0xff]  }
 0x2f0   : > { %3899 = vmatpush1.bf16.msra.mxu0 %v13943_v10  ;;  %v16315_v32 = vpop.f32.mrb[12].mxu0  ;;  %v16317_v33 = vpop.f32.mrb[12].mxu1  ;;  %v14014_v10 = vld [vmem:[#allocation7 + $0xa2c] ss:$16 sps:$4 sm:$0xff]  }
 0x2f1   : > { %4001 = vmatpush1.bf16.msra.mxu1 %v13946_v19  ;;  %3900 = vmatprep.subr.bf16.mxu0 %v13951_v20  ;;  %v16319_v38 = vpop.f32.mrb[13].mxu0  ;;  %v16321_v41 = vpop.f32.mrb[13].mxu1  ;;  %v14009_v19 = vld [vmem:[#allocation7 + $0xa20] ss:$16 sps:$4 sm:$0xff]   ;;  %v14012_v20 = vld [vmem:[#allocation7 + $0xa28] ss:$16 sps:$4 sm:$0xff]  }
 0x2f2   : > { %4002 = vmatprep.subr.bf16.mxu1 %v13954_v21  ;;  %v2088_v46 = vpop.f32.mrb[14].mxu0  ;;  %v2190_v39 = vpop.f32.mrb[14].mxu1  ;;  %v14017_v21 = vld [vmem:[#allocation7 + $0xa44] ss:$16 sps:$4 sm:$0xff]  }
 0x2f3   : > { %v2089_v48 = vpop.f32.mrb[15].mxu0  ;;  %v2191_v49 = vpop.f32.mrb[15].mxu1  ;;  %v14026_v46 = vld [vmem:[#allocation7 + $0xa6c] ss:$16 sps:$4 sm:$0xff]   ;;  %v14029_v39 = vld [vmem:[#allocation7 + $0xa84] ss:$16 sps:$4 sm:$0xff]  }
 0x2f4   : > { %3901 = vmatpush1.bf16.msra.mxu0 %v13949_v29  ;;  %v14020_v29 = vld [vmem:[#allocation7 + $0xa4c] ss:$16 sps:$4 sm:$0xff]   ;;  %v14027_v48 = vld [vmem:[#allocation7 + $0xa80] ss:$16 sps:$4 sm:$0xff]   ;;  %v14030_v49 = vld [vmem:[#allocation7 + $0xa88] ss:$16 sps:$4 sm:$0xff]  }
 0x2f5   : > { %4003 = vmatpush1.bf16.msra.mxu1 %v13952_v23  ;;  %3902 = vmatprep.subr.bf16.mxu0 %v13957_v26  ;;  %v14015_v23 = vld [vmem:[#allocation7 + $0xa40] ss:$16 sps:$4 sm:$0xff]   ;;  %v14018_v26 = vld [vmem:[#allocation7 + $0xa48] ss:$16 sps:$4 sm:$0xff]  }
 0x2f6   : > { %4004 = vmatprep.subr.bf16.mxu1 %v13960_v25  ;;  %v14023_v25 = vld [vmem:[#allocation7 + $0xa64] ss:$16 sps:$4 sm:$0xff]  }
 0x2f8   : > { %3903 = vmatpush1.bf16.msra.mxu0 %v13955_v47  ;;  %v14032_v47 = vld [vmem:[#allocation7 + $0xa8c] ss:$16 sps:$4 sm:$0xff]  }
 0x2f9   : > { %4005 = vmatpush1.bf16.msra.mxu1 %v13958_v27  ;;  %3904 = vmatprep.subr.bf16.mxu0 %v13963_v50  ;;  %v14035_v27 = vld [vmem:[#allocation7 + $0xaa4] ss:$16 sps:$4 sm:$0xff]   ;;  %v14038_v50 = vld [vmem:[#allocation7 + $0xaac] ss:$16 sps:$4 sm:$0xff]  }
 0x2fa   : > { %4006 = vmatprep.subr.bf16.mxu1 %v13966_v53  ;;  %v14036_v53 = vld [vmem:[#allocation7 + $0xaa8] ss:$16 sps:$4 sm:$0xff]  }
 0x2fc   : > { %3905 = vmatpush1.bf16.msra.mxu0 %v13961_v54  ;;  %v14041_v54 = vld [vmem:[#allocation7 + $0xac4] ss:$16 sps:$4 sm:$0xff]  }
 0x2fd   : > { %4007 = vmatpush1.bf16.msra.mxu1 %v13964_v37  ;;  %3906 = vmatprep.subr.bf16.mxu0 %v13969_v56  ;;  %v14044_v37 = vld [vmem:[#allocation7 + $0xacc] ss:$16 sps:$4 sm:$0xff]   ;;  %v14042_v56 = vld [vmem:[#allocation7 + $0xac8] ss:$16 sps:$4 sm:$0xff]  }
 0x2fe   : > { %4008 = vmatprep.subr.bf16.mxu1 %v13972_v57  ;;  %v14047_v57 = vld [vmem:[#allocation7 + $0xae4] ss:$16 sps:$4 sm:$0xff]  }
 0x300   : > { %3907 = vmatpush1.bf16.msra.mxu0 %v13967_v59  ;;  %v14050_v59 = vld [vmem:[#allocation7 + $0xaec] ss:$16 sps:$4 sm:$0xff]  }
 0x301   : > { %4009 = vmatpush1.bf16.msra.mxu1 %v13970_v60  ;;  %3908 = vmatprep.subr.bf16.mxu0 %v13975_v44  ;;  %v14045_v60 = vld [vmem:[#allocation7 + $0xae0] ss:$16 sps:$4 sm:$0xff]  }
 0x302   : > { %4010 = vmatprep.subr.bf16.mxu1 %v13978_v0 }
 0x304   : > { %3909 = vmatpush1.bf16.msra.mxu0 %v13973_v1  ;;  %v14048_v1 = vld [vmem:[#allocation7 + $0xae8] ss:$16 sps:$4 sm:$0xff]  }
 0x305   : > { %4011 = vmatpush1.bf16.msra.mxu1 %v13976_v2  ;;  %3910 = vmatprep.subr.bf16.mxu0 %v13981_v45  ;;  %v14053_v2 = vld [vmem:[#allocation7 + $0xb04] ss:$16 sps:$4 sm:$0xff]  }
 0x306   : > { %4012 = vmatprep.subr.bf16.mxu1 %v13984_v17 }
 0x308   : > { %3911 = vmatpush1.bf16.msra.mxu0 %v13979_v7 }
 0x309   : > { %4013 = vmatpush1.bf16.msra.mxu1 %v13982_v52  ;;  %3912 = vmatprep.subr.bf16.mxu0 %v13987_v58  ;;  %v14056_v58 = vld [vmem:[#allocation7 + $0xb0c] ss:$16 sps:$4 sm:$0xff]  }
 0x30a   : > { %4014 = vmatprep.subr.bf16.mxu1 %v13990_v9 }
 0x30c   : > { %3913 = vmatpush1.bf16.msra.mxu0 %v13985_v43 }
 0x30d   : > { %4015 = vmatpush1.bf16.msra.mxu1 %v13988_v34  ;;  %3914 = vmatprep.subr.bf16.mxu0 %v13993_v36 }
 0x30e   : > { %4016 = vmatprep.subr.bf16.mxu1 %v13996_v5 }
 0x310   : > { %3915 = vmatpush1.bf16.msra.mxu0 %v13991_v55  ;;  %v14051_v55 = vld [vmem:[#allocation7 + $0xb00] ss:$16 sps:$4 sm:$0xff]  }
 0x311   : > { %4017 = vmatpush1.bf16.msra.mxu1 %v13994_v8  ;;  %3916 = vmatprep.subr.bf16.mxu0 %v13999_v63  ;;  %v14054_v8 = vld [vmem:[#allocation7 + $0xb08] ss:$16 sps:$4 sm:$0xff]   ;;  %v14062_v63 = vld [vmem:[#allocation7 + $0xb2c] ss:$16 sps:$4 sm:$0xff]  }
 0x312   : > { %4018 = vmatprep.subr.bf16.mxu1 %v14002_v12  ;;  %v14057_v12 = vld [vmem:[#allocation7 + $0xb20] ss:$16 sps:$4 sm:$0xff]  }
 0x314   : > { %3917 = vmatpush1.bf16.msra.mxu0 %v13997_v11  ;;  %v14065_v11 = vld [vmem:[#allocation7 + $0xb44] ss:$16 sps:$4 sm:$0xff]  }
 0x315   : > { %4019 = vmatpush1.bf16.msra.mxu1 %v14000_v13  ;;  %3937 = vmatprep.subr.bf16.mxu0 %v14005_v30  ;;  %v14063_v13 = vld [vmem:[#allocation7 + $0xb40] ss:$16 sps:$4 sm:$0xff]   ;;  %v14066_v30 = vld [vmem:[#allocation7 + $0xb48] ss:$16 sps:$4 sm:$0xff]  }
 0x316   : > { %4039 = vmatprep.subr.bf16.mxu1 %v14008_v24  ;;  %v14071_v24 = vld [vmem:[#allocation7 + $0xb64] ss:$16 sps:$4 sm:$0xff]  }
 0x317   : > { %3919 = vmatmul.mubr.bf16.vlgmr.msra.gmra.mrb[8].mxu0 %v16185_v62 }
 0x318   : > { %4021 = vmatmul.mubr.bf16.vlgmr.msra.gmra.mrb[8].mxu1 %v16185_v62  ;;  %3928 = vmatprep.mubr.bf16.mxu0 %v16181_v61  ;;  %v14021_v62 = vld [vmem:[#allocation7 + $0xa60] ss:$16 sps:$4 sm:$0xff]  }
 0x319   : > { %3938 = vmatpush1.bf16.msra.mxu0 %v14003_v14  ;;  %4030 = vmatprep.mubr.bf16.mxu1 %v16181_v61  ;;  %v14024_v61 = vld [vmem:[#allocation7 + $0xa68] ss:$16 sps:$4 sm:$0xff]   ;;  %v14074_v14 = vld [vmem:[#allocation7 + $0xb6c] ss:$16 sps:$4 sm:$0xff]  }
 0x31a   : > { %4040 = vmatpush1.bf16.msra.mxu1 %v14006_v16  ;;  %3939 = vmatprep.subr.bf16.mxu0 %v14011_v18  ;;  %v14069_v16 = vld [vmem:[#allocation7 + $0xb60] ss:$16 sps:$4 sm:$0xff]   ;;  %v14072_v18 = vld [vmem:[#allocation7 + $0xb68] ss:$16 sps:$4 sm:$0xff]  }
 0x31b   : > { %4041 = vmatprep.subr.bf16.mxu1 %v14014_v10  ;;  %v14077_v10 = vld [vmem:[#allocation7 + $0xb84] ss:$16 sps:$4 sm:$0xff]  }
 0x31d   : > { %3940 = vmatpush1.bf16.msra.mxu0 %v14009_v19  ;;  %v14080_v19 = vld [vmem:[#allocation7 + $0xb8c] ss:$16 sps:$4 sm:$0xff]  }
 0x31e   : > { %4042 = vmatpush1.bf16.msra.mxu1 %v14012_v20  ;;  %3941 = vmatprep.subr.bf16.mxu0 %v14017_v21  ;;  %v14075_v20 = vld [vmem:[#allocation7 + $0xb80] ss:$16 sps:$4 sm:$0xff]   ;;  %v14078_v21 = vld [vmem:[#allocation7 + $0xb88] ss:$16 sps:$4 sm:$0xff]  }
 0x31f   : > { %3929 = vmatmul.mubr.bf16.gmra.mrb[28].mxu0 %v16175_v51  ;;  %4043 = vmatprep.subr.bf16.mxu1 %v14020_v29  ;;  %v14083_v29 = vld [vmem:[#allocation7 + $0xba4] ss:$16 sps:$4 sm:$0xff]  }
 0x320   : > { %4031 = vmatmul.mubr.bf16.gmra.mrb[28].mxu1 %v16175_v51  ;;  %3969 = vmatprep.mubr.bf16.mxu0 %v16237_v35  ;;  %v14033_v51 = vld [vmem:[#allocation7 + $0xaa0] ss:$16 sps:$4 sm:$0xff]  }
 0x321   : > { %3942 = vmatpush1.bf16.msra.mxu0 %v14015_v23  ;;  %4071 = vmatprep.mubr.bf16.mxu1 %v16237_v35  ;;  %v14039_v35 = vld [vmem:[#allocation7 + $0xac0] ss:$16 sps:$4 sm:$0xff]   ;;  %v14086_v23 = vld [vmem:[#allocation7 + $0xbac] ss:$16 sps:$4 sm:$0xff]  }
 0x322   : > { %4044 = vmatpush1.bf16.msra.mxu1 %v14018_v26  ;;  %3943 = vmatprep.subr.bf16.mxu0 %v14023_v25  ;;  %v14081_v26 = vld [vmem:[#allocation7 + $0xba0] ss:$16 sps:$4 sm:$0xff]   ;;  %v14084_v25 = vld [vmem:[#allocation7 + $0xba8] ss:$16 sps:$4 sm:$0xff]  }
 0x323   : > { %4045 = vmatprep.subr.bf16.mxu1 %v14026_v46  ;;  %v14089_v46 = vld [vmem:[#allocation7 + $0xbc4] ss:$16 sps:$4 sm:$0xff]  }
 0x325   : > { %3944 = vmatpush1.bf16.msra.mxu0 %v14021_v62  ;;  %v14092_v62 = vld [vmem:[#allocation7 + $0xbcc] ss:$16 sps:$4 sm:$0xff]  }
 0x326   : > { %4046 = vmatpush1.bf16.msra.mxu1 %v14024_v61  ;;  %3945 = vmatprep.subr.bf16.mxu0 %v14029_v39  ;;  %v14087_v61 = vld [vmem:[#allocation7 + $0xbc0] ss:$16 sps:$4 sm:$0xff]   ;;  %v14090_v39 = vld [vmem:[#allocation7 + $0xbc8] ss:$16 sps:$4 sm:$0xff]  }
 0x327   : > { %4047 = vmatprep.subr.bf16.mxu1 %v14032_v47  ;;  %v14095_v47 = vld [vmem:[#allocation7 + $0xbe4] ss:$16 sps:$4 sm:$0xff]  }
 0x329   : > { %3946 = vmatpush1.bf16.msra.mxu0 %v14027_v48  ;;  %v14098_v48 = vld [vmem:[#allocation7 + $0xbec] ss:$16 sps:$4 sm:$0xff]  }
 0x32a   : > { %4048 = vmatpush1.bf16.msra.mxu1 %v14030_v49  ;;  %3947 = vmatprep.subr.bf16.mxu0 %v14035_v27  ;;  %v14093_v49 = vld [vmem:[#allocation7 + $0xbe0] ss:$16 sps:$4 sm:$0xff]   ;;  %v14096_v27 = vld [vmem:[#allocation7 + $0xbe8] ss:$16 sps:$4 sm:$0xff]  }
 0x32b   : > { %4049 = vmatprep.subr.bf16.mxu1 %v14038_v50 }
 0x32d   : > { %3948 = vmatpush1.bf16.msra.mxu0 %v14033_v51 }
 0x32e   : > { %4050 = vmatpush1.bf16.msra.mxu1 %v14036_v53  ;;  %3949 = vmatprep.subr.bf16.mxu0 %v14041_v54 }
 0x32f   : > { %4051 = vmatprep.subr.bf16.mxu1 %v14044_v37 }
 0x330   : > { %v2135_v44 = vpop.f32.mrb[16].mxu0  ;;  %v2237_v0 = vpop.f32.mrb[16].mxu1 }
 0x331   : > { %3950 = vmatpush1.bf16.msra.mxu0 %v14039_v35  ;;  %v16332_v45 = vadd.f32 %v2135_v44, %v16315_v32  ;;  %v16335_v17 = vadd.f32 %v2237_v0, %v16317_v33  ;;  %v2137_v7 = vpop.f32.mrb[17].mxu0  ;;  %v2239_v52 = vpop.f32.mrb[17].mxu1  ;;  %v14059_v33 = vld [vmem:[#allocation7 + $0xb24] ss:$16 sps:$4 sm:$0xff]   ;;  %v14101_v44 = vld [vmem:[#allocation10 + $0x404] ss:$16 sps:$4 sm:$0xff]  }
 0x332   : > { %4052 = vmatpush1.bf16.msra.mxu1 %v14042_v56  ;;  %v16338_v9 = vadd.f32 %v2137_v7, %v16319_v38  ;;  %v16341_v43 = vadd.f32 %v2239_v52, %v16321_v41  ;;  %3951 = vmatprep.subr.bf16.mxu0 %v14047_v57  ;;  %v2139_v34 = vpop.f32.mrb[18].mxu0  ;;  %v2241_v36 = vpop.f32.mrb[18].mxu1  ;;  %v14060_v38 = vld [vmem:[#allocation7 + $0xb28] ss:$16 sps:$4 sm:$0xff]   ;;  %v14068_v41 = vld [vmem:[#allocation7 + $0xb4c] ss:$16 sps:$4 sm:$0xff]  }
 0x333   : > { %4053 = vmatprep.subr.bf16.mxu1 %v14050_v59  ;;  %v2140_v5 = vpop.f32.mrb[19].mxu0  ;;  %v2242_v32 = vpop.f32.mrb[19].mxu1  ;;  %v14102_v0 = vld [vmem:[#allocation10 + $0x408] ss:$16 sps:$4 sm:$0xff]   ;;  %v14113_v52 = vld [vmem:[#allocation10 + $0x444] ss:$16 sps:$4 sm:$0xff]  }
 0x334   : > { %v14108_v7 = vld [vmem:[#allocation10 + $0x428] ss:$16 sps:$4 sm:$0xff]   ;;  %v14119_v34 = vld [vmem:[#allocation10 + $0x464] ss:$16 sps:$4 sm:$0xff]   ;;  %v14122_v36 = vld [vmem:[#allocation10 + $0x46c] ss:$16 sps:$4 sm:$0xff]  }
 0x335   : > { %3952 = vmatpush1.bf16.msra.mxu0 %v14045_v60  ;;  %v14099_v60 = vld [vmem:[#allocation10 + $0x400] ss:$16 sps:$4 sm:$0xff]   ;;  %v14120_v32 = vld [vmem:[#allocation10 + $0x468] ss:$16 sps:$4 sm:$0xff]  }
 0x336   : > { %4054 = vmatpush1.bf16.msra.mxu1 %v14048_v1  ;;  %3953 = vmatprep.subr.bf16.mxu0 %v14053_v2  ;;  %v14104_v1 = vld [vmem:[#allocation10 + $0x40c] ss:$16 sps:$4 sm:$0xff]   ;;  %v14107_v2 = vld [vmem:[#allocation10 + $0x424] ss:$16 sps:$4 sm:$0xff]   ;;  %v14117_v5 = vld [vmem:[#allocation10 + $0x460] ss:$16 sps:$4 sm:$0xff]  }
 0x337   : > { %4055 = vmatprep.subr.bf16.mxu1 %v14056_v58  ;;  %v14116_v58 = vld [vmem:[#allocation10 + $0x44c] ss:$16 sps:$4 sm:$0xff]  }
 0x339   : > { %3954 = vmatpush1.bf16.msra.mxu0 %v14051_v55  ;;  %v14125_v55 = vld [vmem:[#allocation10 + $0x484] ss:$16 sps:$4 sm:$0xff]  }
 0x33a   : > { %4056 = vmatpush1.bf16.msra.mxu1 %v14054_v8  ;;  %3955 = vmatprep.subr.bf16.mxu0 %v14059_v33  ;;  %v14128_v8 = vld [vmem:[#allocation10 + $0x48c] ss:$16 sps:$4 sm:$0xff]   ;;  %v14123_v33 = vld [vmem:[#allocation10 + $0x480] ss:$16 sps:$4 sm:$0xff]  }
 0x33b   : > { %4057 = vmatprep.subr.bf16.mxu1 %v14062_v63  ;;  %v14126_v63 = vld [vmem:[#allocation10 + $0x488] ss:$16 sps:$4 sm:$0xff]  }
 0x33d   : > { %3956 = vmatpush1.bf16.msra.mxu0 %v14057_v12  ;;  %v14131_v12 = vld [vmem:[#allocation10 + $0x4a4] ss:$16 sps:$4 sm:$0xff]  }
 0x33e   : > { %4058 = vmatpush1.bf16.msra.mxu1 %v14060_v38  ;;  %3957 = vmatprep.subr.bf16.mxu0 %v14065_v11  ;;  %v14134_v38 = vld [vmem:[#allocation10 + $0x4ac] ss:$16 sps:$4 sm:$0xff]   ;;  %v14129_v11 = vld [vmem:[#allocation10 + $0x4a0] ss:$16 sps:$4 sm:$0xff]  }
 0x33f   : > { %4059 = vmatprep.subr.bf16.mxu1 %v14068_v41  ;;  %v14132_v41 = vld [vmem:[#allocation10 + $0x4a8] ss:$16 sps:$4 sm:$0xff]  }
 0x341   : > { %3958 = vmatpush1.bf16.msra.mxu0 %v14063_v13  ;;  %v14137_v13 = vld [vmem:[#allocation10 + $0x4c4] ss:$16 sps:$4 sm:$0xff]  }
 0x342   : > { %4060 = vmatpush1.bf16.msra.mxu1 %v14066_v30  ;;  %3959 = vmatprep.subr.bf16.mxu0 %v14071_v24  ;;  %v14140_v30 = vld [vmem:[#allocation10 + $0x4cc] ss:$16 sps:$4 sm:$0xff]   ;;  %v14135_v24 = vld [vmem:[#allocation10 + $0x4c0] ss:$16 sps:$4 sm:$0xff]  }
 0x343   : > { %4061 = vmatprep.subr.bf16.mxu1 %v14074_v14  ;;  %v14138_v14 = vld [vmem:[#allocation10 + $0x4c8] ss:$16 sps:$4 sm:$0xff]  }
 0x345   : > { %3960 = vmatpush1.bf16.msra.mxu0 %v14069_v16  ;;  %v14143_v16 = vld [vmem:[#allocation10 + $0x4e4] ss:$16 sps:$4 sm:$0xff]  }
 0x346   : > { %4062 = vmatpush1.bf16.msra.mxu1 %v14072_v18  ;;  %3961 = vmatprep.subr.bf16.mxu0 %v14077_v10  ;;  %v14146_v18 = vld [vmem:[#allocation10 + $0x4ec] ss:$16 sps:$4 sm:$0xff]   ;;  %v14141_v10 = vld [vmem:[#allocation10 + $0x4e0] ss:$16 sps:$4 sm:$0xff]  }
 0x347   : > { %4063 = vmatprep.subr.bf16.mxu1 %v14080_v19  ;;  %v14144_v19 = vld [vmem:[#allocation10 + $0x4e8] ss:$16 sps:$4 sm:$0xff]  }
 0x349   : > { %3962 = vmatpush1.bf16.msra.mxu0 %v14075_v20  ;;  %v14149_v20 = vld [vmem:[#allocation10 + $0x504] ss:$16 sps:$4 sm:$0xff]  }
 0x34a   : > { %4064 = vmatpush1.bf16.msra.mxu1 %v14078_v21  ;;  %3963 = vmatprep.subr.bf16.mxu0 %v14083_v29  ;;  %v14152_v21 = vld [vmem:[#allocation10 + $0x50c] ss:$16 sps:$4 sm:$0xff]   ;;  %v14147_v29 = vld [vmem:[#allocation10 + $0x500] ss:$16 sps:$4 sm:$0xff]  }
 0x34b   : > { %4065 = vmatprep.subr.bf16.mxu1 %v14086_v23  ;;  %v14150_v23 = vld [vmem:[#allocation10 + $0x508] ss:$16 sps:$4 sm:$0xff]  }
 0x34d   : > { %3964 = vmatpush1.bf16.msra.mxu0 %v14081_v26  ;;  %v14155_v26 = vld [vmem:[#allocation10 + $0x524] ss:$16 sps:$4 sm:$0xff]  }
 0x34e   : > { %4066 = vmatpush1.bf16.msra.mxu1 %v14084_v25  ;;  %3965 = vmatprep.subr.bf16.mxu0 %v14089_v46  ;;  %v14158_v25 = vld [vmem:[#allocation10 + $0x52c] ss:$16 sps:$4 sm:$0xff]   ;;  %v14153_v46 = vld [vmem:[#allocation10 + $0x520] ss:$16 sps:$4 sm:$0xff]  }
 0x34f   : > { %4067 = vmatprep.subr.bf16.mxu1 %v14092_v62  ;;  %v14156_v62 = vld [vmem:[#allocation10 + $0x528] ss:$16 sps:$4 sm:$0xff]  }
 0x351   : > { %3966 = vmatpush1.bf16.msra.mxu0 %v14087_v61  ;;  %v14161_v61 = vld [vmem:[#allocation10 + $0x544] ss:$16 sps:$4 sm:$0xff]  }
 0x352   : > { %4068 = vmatpush1.bf16.msra.mxu1 %v14090_v39  ;;  %3967 = vmatprep.subr.bf16.mxu0 %v14095_v47  ;;  %v14164_v39 = vld [vmem:[#allocation10 + $0x54c] ss:$16 sps:$4 sm:$0xff]   ;;  %v14159_v47 = vld [vmem:[#allocation10 + $0x540] ss:$16 sps:$4 sm:$0xff]  }
 0x353   : > { %4069 = vmatprep.subr.bf16.mxu1 %v14098_v48  ;;  %v14162_v48 = vld [vmem:[#allocation10 + $0x548] ss:$16 sps:$4 sm:$0xff]  }
 0x355   : > { %3968 = vmatpush1.bf16.msra.mxu0 %v14093_v49 }
 0x356   : > { %4070 = vmatpush1.bf16.msra.mxu1 %v14096_v27  ;;  %5137 = vmatprep.subr.bf16.mxu0 %v14101_v44 }
 0x357   : > { %5223 = vmatprep.subr.bf16.mxu1 %v14104_v1  ;;  %v14165_v1 = vld [vmem:[#allocation10 + $0x560] ss:$16 sps:$4 sm:$0xff]  }
 0x358   : > { %3970 = vmatmul.mubr.bf16.vlgmr.msra.gmra.mrb[8].mxu0 %v16231_v31 }
 0x359   : > { %4072 = vmatmul.mubr.bf16.vlgmr.msra.gmra.mrb[8].mxu1 %v16231_v31  ;;  %3979 = vmatprep.mubr.bf16.mxu0 %v16225_v28 }
 0x35a   : > { %4081 = vmatprep.mubr.bf16.mxu1 %v16225_v28  ;;  %5138 = vmatpush1.bf16.msra.mxu0 %v14099_v60 }
 0x35b   : > { %5224 = vmatpush1.bf16.msra.mxu1 %v14102_v0  ;;  %5139 = vmatprep.subr.bf16.mxu0 %v14107_v2 }
 0x360   : > { %3980 = vmatmul.mubr.bf16.gmra.mrb[32].mxu0 %v16221_v22 }
 0x361   : > { %4082 = vmatmul.mubr.bf16.gmra.mrb[32].mxu1 %v16221_v22 }
 0x371   : > { %v2928_v50 = vpop.f32.mrb[20].mxu0  ;;  %v3030_v51 = vpop.f32.mrb[20].mxu1 }
 0x372   : > { %v16350_v53 = vadd.f32 %v2928_v50, %v16332_v45  ;;  %v16353_v54 = vadd.f32 %v3030_v51, %v16335_v17  ;;  %v2930_v37 = vpop.f32.mrb[21].mxu0  ;;  %v3032_v35 = vpop.f32.mrb[21].mxu1  ;;  %v14110_v45 = vld [vmem:[#allocation10 + $0x42c] ss:$16 sps:$4 sm:$0xff]   ;;  %v14105_v17 = vld [vmem:[#allocation10 + $0x420] ss:$16 sps:$4 sm:$0xff]  }
 0x373   : > { %v16356_v31 = vadd.f32 %v2930_v37, %v16338_v9  ;;  %v16359_v56 = vadd.f32 %v3032_v35, %v16341_v43  ;;  %v2932_v28 = vpop.f32.mrb[22].mxu0  ;;  %v3034_v57 = vpop.f32.mrb[22].mxu1  ;;  %5225 = vmatprep.subr.bf16.mxu1 %v14110_v45  ;;  %5140 = vmatpush1.bf16.msra.mxu0 %v14105_v17  ;;  %v14111_v9 = vld [vmem:[#allocation10 + $0x440] ss:$16 sps:$4 sm:$0xff]   ;;  %v14114_v43 = vld [vmem:[#allocation10 + $0x448] ss:$16 sps:$4 sm:$0xff]  }
 0x374   : > { %v2933_v59 = vpop.f32.mrb[23].mxu0  ;;  %v3035_v22 = vpop.f32.mrb[23].mxu1  ;;  %5226 = vmatpush1.bf16.msra.mxu1 %v14108_v7  ;;  %5141 = vmatprep.subr.bf16.mxu0 %v14113_v52  ;;  %v14176_v45 = vld [vmem:[#allocation10 + $0x58c] ss:$16 sps:$4 sm:$0xff]   ;;  %v14174_v17 = vld [vmem:[#allocation10 + $0x588] ss:$16 sps:$4 sm:$0xff]  }
 0x375   : > { %5227 = vmatprep.subr.bf16.mxu1 %v14116_v58  ;;  %v14167_v59 = vld [vmem:[#allocation10 + $0x564] ss:$16 sps:$4 sm:$0xff]   ;;  %v14170_v22 = vld [vmem:[#allocation10 + $0x56c] ss:$16 sps:$4 sm:$0xff]   ;;  %v14177_v52 = vld [vmem:[#allocation10 + $0x5a0] ss:$16 sps:$4 sm:$0xff]  }
 0x376   : > { %v14179_v7 = vld [vmem:[#allocation10 + $0x5a4] ss:$16 sps:$4 sm:$0xff]   ;;  %v14180_v58 = vld [vmem:[#allocation10 + $0x5a8] ss:$16 sps:$4 sm:$0xff]  }
 0x377   : > { %5142 = vmatpush1.bf16.msra.mxu0 %v14111_v9  ;;  %v14185_v9 = vld [vmem:[#allocation10 + $0x5c4] ss:$16 sps:$4 sm:$0xff]  }
 0x378   : > { %5228 = vmatpush1.bf16.msra.mxu1 %v14114_v43  ;;  %5143 = vmatprep.subr.bf16.mxu0 %v14119_v34  ;;  %v14188_v43 = vld [vmem:[#allocation10 + $0x5cc] ss:$16 sps:$4 sm:$0xff]   ;;  %v14183_v34 = vld [vmem:[#allocation10 + $0x5c0] ss:$16 sps:$4 sm:$0xff]  }
 0x379   : > { %5229 = vmatprep.subr.bf16.mxu1 %v14122_v36  ;;  %v14186_v36 = vld [vmem:[#allocation10 + $0x5c8] ss:$16 sps:$4 sm:$0xff]  }
 0x37b   : > { %5144 = vmatpush1.bf16.msra.mxu0 %v14117_v5  ;;  %v14191_v5 = vld [vmem:[#allocation10 + $0x5e4] ss:$16 sps:$4 sm:$0xff]  }
 0x37c   : > { %5230 = vmatpush1.bf16.msra.mxu1 %v14120_v32  ;;  %5145 = vmatprep.subr.bf16.mxu0 %v14125_v55  ;;  %v14194_v32 = vld [vmem:[#allocation10 + $0x5ec] ss:$16 sps:$4 sm:$0xff]   ;;  %v14189_v55 = vld [vmem:[#allocation10 + $0x5e0] ss:$16 sps:$4 sm:$0xff]  }
 0x37d   : > { %5231 = vmatprep.subr.bf16.mxu1 %v14128_v8  ;;  %v14192_v8 = vld [vmem:[#allocation10 + $0x5e8] ss:$16 sps:$4 sm:$0xff]  }
 0x37f   : > { %5146 = vmatpush1.bf16.msra.mxu0 %v14123_v33  ;;  %v14197_v33 = vld [vmem:[#allocation10 + $0x604] ss:$16 sps:$4 sm:$0xff]  }
 0x380   : > { %5232 = vmatpush1.bf16.msra.mxu1 %v14126_v63  ;;  %5147 = vmatprep.subr.bf16.mxu0 %v14131_v12  ;;  %v14200_v63 = vld [vmem:[#allocation10 + $0x60c] ss:$16 sps:$4 sm:$0xff]  }
 0x381   : > { %5233 = vmatprep.subr.bf16.mxu1 %v14134_v38 }
 0x383   : > { %5148 = vmatpush1.bf16.msra.mxu0 %v14129_v11 }
 0x384   : > { %5234 = vmatpush1.bf16.msra.mxu1 %v14132_v41  ;;  %5149 = vmatprep.subr.bf16.mxu0 %v14137_v13 }
 0x385   : > { %5235 = vmatprep.subr.bf16.mxu1 %v14140_v30 }
 0x387   : > { %5150 = vmatpush1.bf16.msra.mxu0 %v14135_v24 }
 0x388   : > { %5236 = vmatpush1.bf16.msra.mxu1 %v14138_v14  ;;  %5151 = vmatprep.subr.bf16.mxu0 %v14143_v16  ;;  %v4102_v16 = vld [vmem:[#allocation8] sm:$0xf] }
 0x389   : > { %5237 = vmatprep.subr.bf16.mxu1 %v14146_v18  ;;  %v16376_v18 = vrot.slane %v4102_v16, %v16129_v4 }
 0x38b   : > { %5152 = vmatpush1.bf16.msra.mxu0 %v14141_v10  ;;  %v16379_v10 = vadd.s32 4294967295, %v16126_v3 }
 0x38c   : > { %5238 = vmatpush1.bf16.msra.mxu1 %v14144_v19  ;;  %5153 = vmatprep.subr.bf16.mxu0 %v14149_v20  ;;  %v16382_v19 = vrot.slane %v4102_v16, %v16160_v40  ;;  %v16385_v20 = vrot.slane %v4102_v16, %v16132_v6 }
 0x38d   : > { %5239 = vmatprep.subr.bf16.mxu1 %v14152_v21  ;;  %v16388_v21 = vrot.slane %v4102_v16, %v16166_v42  ;;  %vm4153_vm9 = vcmp.ge.s32.totalorder %v16379_v10, 0  ;;  %v14300_v10 = vld [vmem:[#allocation10 + $0x28] ss:$16 sps:$4 sm:$0xff]  }
 0x38e   : > { %vm16470_vm11 = vmpackc.low %vm15757_vm6, %vm4153_vm9 }
 0x38f   : > { %5154 = vmatpush1.bf16.msra.mxu0 %v14147_v29 }
 0x390   : > { %5240 = vmatpush1.bf16.msra.mxu1 %v14150_v23  ;;  %5155 = vmatprep.subr.bf16.mxu0 %v14155_v26 }
 0x391   : > { %5241 = vmatprep.subr.bf16.mxu1 %v14158_v25 }
 0x393   : > { %5156 = vmatpush1.bf16.msra.mxu0 %v14153_v46 }
 0x394   : > { %5242 = vmatpush1.bf16.msra.mxu1 %v14156_v62  ;;  %5157 = vmatprep.subr.bf16.mxu0 %v14161_v61 }
 0x395   : > { %5243 = vmatprep.subr.bf16.mxu1 %v14164_v39 }
 0x397   : > { %5158 = vmatpush1.bf16.msra.mxu0 %v14159_v47 }
 0x398   : > { %5244 = vmatpush1.bf16.msra.mxu1 %v14162_v48  ;;  %5159 = vmatprep.subr.bf16.mxu0 %v14167_v59 }
 0x399   : > { %5245 = vmatprep.subr.bf16.mxu1 %v14170_v22 }
 0x39b   : > { %5160 = vmatpush1.bf16.msra.mxu0 %v14165_v1 }
 0x3b1   : > { %v2979_v49 = vpop.f32.mrb[24].mxu0 }
 0x3b2   : > { %v16362_v27 = vadd.f32 %v2979_v49, %v16350_v53  ;;  %v3081_v50 = vpop.f32.mrb[24].mxu1  ;;  %v2981_v51 = vpop.f32.mrb[25].mxu0  ;;  %v14168_v53 = vld [vmem:[#allocation10 + $0x568] ss:$16 sps:$4 sm:$0xff]  }
 0x3b3   : > { %v16365_v37 = vadd.f32 %v3081_v50, %v16353_v54  ;;  %v16368_v35 = vadd.f32 %v2981_v51, %v16356_v31  ;;  %v3083_v28 = vpop.f32.mrb[25].mxu1  ;;  %v2983_v57 = vpop.f32.mrb[26].mxu0  ;;  %5246 = vmatpush1.bf16.msra.mxu1 %v14168_v53  ;;  %v14173_v54 = vld [vmem:[#allocation10 + $0x584] ss:$16 sps:$4 sm:$0xff]   ;;  %v14171_v31 = vld [vmem:[#allocation10 + $0x580] ss:$16 sps:$4 sm:$0xff]  }
 0x3b4   : > { %v16371_v60 = vadd.f32 %v3083_v28, %v16359_v56  ;;  %v3085_v44 = vpop.f32.mrb[26].mxu1  ;;  %v2984_v0 = vpop.f32.mrb[27].mxu0  ;;  %5161 = vmatprep.subr.bf16.mxu0 %v14173_v54  ;;  %5247 = vmatprep.subr.bf16.mxu1 %v14176_v45  ;;  %v14182_v56 = vld [vmem:[#allocation10 + $0x5ac] ss:$16 sps:$4 sm:$0xff]  }
 0x3b5   : > { %v3086_v2 = vpop.f32.mrb[27].mxu1  ;;  %5162 = vmatpush1.bf16.msra.mxu0 %v14171_v31 }
 0x3b6   : > { %5163 = vmatprep.subr.bf16.mxu0 %v14179_v7 }
 0x3b7   : > { %5248 = vmatpush1.bf16.msra.mxu1 %v14174_v17 }
 0x3b8   : > { %5249 = vmatprep.subr.bf16.mxu1 %v14182_v56 }
 0x3b9   : > { %5164 = vmatpush1.bf16.msra.mxu0 %v14177_v52 }
 0x3ba   : > { %5165 = vmatprep.subr.bf16.mxu0 %v14185_v9 }
 0x3bb   : > { %5250 = vmatpush1.bf16.msra.mxu1 %v14180_v58 }
 0x3bc   : > { %5251 = vmatprep.subr.bf16.mxu1 %v14188_v43 }
 0x3bd   : > { %5166 = vmatpush1.bf16.msra.mxu0 %v14183_v34 }
 0x3be   : > { %5167 = vmatprep.subr.bf16.mxu0 %v14191_v5 }
 0x3bf   : > { %5252 = vmatpush1.bf16.msra.mxu1 %v14186_v36 }
 0x3c0   : > { %5253 = vmatprep.subr.bf16.mxu1 %v14194_v32 }
 0x3c1   : > { %5168 = vmatpush1.bf16.msra.mxu0 %v14189_v55 }
 0x3c2   : > { %5180 = vmatprep.subr.bf16.mxu0 %v14197_v33 }
 0x3c3   : > { %5254 = vmatpush1.bf16.msra.mxu1 %v14192_v8 }
 0x3c4   : > { %5266 = vmatprep.subr.bf16.mxu1 %v14200_v63 }
 0x3f2   : > { %v3930_v12 = vpop.f32.mrb[28].mxu0 }
 0x3f3   : > { %v4032_v38 = vpop.f32.mrb[28].mxu1  ;;  %v3932_v11 = vpop.f32.mrb[29].mxu0 }
 0x3f4   : > { %v16373_v41 = vpop.f32.mrb[29].mxu1  ;;  %v3934_v13 = vpop.f32.mrb[30].mxu0 }
 0x3f5   : > { %v4036_v30 = vpop.f32.mrb[30].mxu1  ;;  %v3935_v24 = vpop.f32.mrb[31].mxu0  ;;  %v4152_v13 = vadd.s32 4294967295, %v16141_v15 }
 0x3f6   : > { %v4037_v14 = vpop.f32.mrb[31].mxu1 }
 0x3f7   : > { %vm4158_vm10 = vcmp.lt.s32.totalorder %v4152_v13, 16 }
 0x42b   : > { %v3971_v29 = vpop.f32.mrb[8].mxu0 }
 0x42c   : > { %v4124_v23 = vadd.f32 %v16376_v18, %v3971_v29  ;;  %v4073_v26 = vpop.f32.mrb[8].mxu1  ;;  %v3973_v25 = vpop.f32.mrb[9].mxu0 }
 0x42d   : > { %v4126_v46 = vadd.f32 %v16382_v19, %v4073_v26  ;;  %v4125_v62 = vadd.f32 %v16385_v20, %v3973_v25  ;;  %v4075_v61 = vpop.f32.mrb[9].mxu1  ;;  %v3975_v39 = vpop.f32.mrb[10].mxu0 }
 0x42e   : > { %v4136_v47 = vmax.f32 %v4124_v23, 0.0  ;;  %v4127_v48 = vadd.f32 %v16388_v21, %v4075_v61  ;;  %v4128_v49 = vadd.f32 %v16376_v18, %v3975_v39  ;;  %v4077_v50 = vpop.f32.mrb[10].mxu1  ;;  %v3977_v51 = vpop.f32.mrb[11].mxu0 }
 0x42f   : > { %v4138_v28 = vmax.f32 %v4126_v46, 0.0  ;;  %v4137_v57 = vmax.f32 %v4125_v62, 0.0  ;;  %v4130_v59 = vadd.f32 %v16382_v19, %v4077_v50  ;;  %v4129_v22 = vadd.f32 %v16385_v20, %v3977_v51  ;;  %v4079_v44 = vpop.f32.mrb[11].mxu1 }
 0x430   : > { %v4168_v0 = vsel %vm4153_vm9, %v4136_v47, 0.0  ;;  %v4139_v1 = vmax.f32 %v4127_v48, 0.0  ;;  %v4140_v53 = vmax.f32 %v4128_v49, 0.0  ;;  %v4131_v2 = vadd.f32 %v16388_v21, %v4079_v44 }
 0x431   : > { %v4170_v54 = vsel %vm4153_vm9, %v4138_v28, 0.0  ;;  %v4169_v45 = vsel %vm4153_vm9, %v4137_v57, 0.0  ;;  %v4142_v31 = vmax.f32 %v4130_v59, 0.0  ;;  %v4141_v17 = vmax.f32 %v4129_v22, 0.0 }
 0x432   : > { %v4171_v7 = vsel %vm4153_vm9, %v4139_v1, 0.0  ;;  %v16407_v56 = vpack.c.bf16 %v4140_v53, %v4168_v0  ;;  %v16409_v52 = vpack.c.bf16 %v4140_v53, %v4136_v47  ;;  %v4143_v58 = vmax.f32 %v4131_v2, 0.0 }
 0x433   : > { %v16411_v9 = vpack.c.bf16 %v4142_v31, %v4170_v54  ;;  %v16413_v43 = vpack.c.bf16 %v4142_v31, %v4138_v28  ;;  %v16415_v34 = vpack.c.bf16 %v4141_v17, %v4169_v45  ;;  %v16417_v36 = vpack.c.bf16 %v4141_v17, %v4137_v57  ;;  %v3981_v5 = vpop.f32.mrb[32].mxu0 }
 0x434   : > { %v16419_v32 = vpack.c.bf16 %v4143_v58, %v4171_v7  ;;  %v4083_v55 = vpop.f32.mrb[32].mxu1  ;;  %v3983_v8 = vpop.f32.mrb[33].mxu0  ;;  %v4448_v14 = vshll.u32 %v16407_v56, 16  ;;  %v16423_v16 = vpack.c.bf16 %v4143_v58, %v4139_v1  ;;  %v3982_v29 = vadd.f32 %v3981_v5, %v3930_v12 }
 0x435   : > { %v4085_v33 = vpop.f32.mrb[33].mxu1  ;;  %v3985_v63 = vpop.f32.mrb[34].mxu0  ;;  %v4084_v23 = vadd.f32 %v4083_v55, %v4032_v38  ;;  %v4472_v25 = vshll.u32 %v16411_v9, 16  ;;  %v3984_v46 = vadd.f32 %v3983_v8, %v3932_v11  ;;  %v4460_v62 = vshll.u32 %v16415_v34, 16 }
 0x436   : > { %v4087_v30 = vpop.f32.mrb[34].mxu1  ;;  %v3986_v24 = vpop.f32.mrb[35].mxu0  ;;  %v4098_v61 = vadd.f32 %v3982_v29, %v16362_v27  ;;  %v4086_v15 = vadd.f32 %v4085_v33, %v16373_v41  ;;  %v4446_v47 = vshrl.u32 %v16407_v56, 16  ;;  %v6258_v48 = vrot.slane %v16407_v56, 1 }
 0x437   : > { %v4088_v26 = vpop.f32.mrb[35].mxu1  ;;  %v4100_v39 = vadd.f32 %v4084_v23, %v16365_v37  ;;  %v4099_v12 = vadd.f32 %v3984_v46, %v16368_v35  ;;  %v4450_v38 = vrot.slane %v4448_v14, 1  ;;  %v4470_v27 = vshrl.u32 %v16411_v9, 16  ;;  %v14195_v46 = vld [vmem:[#allocation10 + $0x600] ss:$16 sps:$4 sm:$0xff]  }
 0x438   : > { %v4132_v49 = vadd.f32 %v16376_v18, %v4098_v61  ;;  %v4101_v50 = vadd.f32 %v4086_v15, %v16371_v60  ;;  %v4474_v51 = vrot.slane %v4472_v25, 1  ;;  %v4484_v37 = vshll.u32 %v16419_v32, 16 }
 0x439   : > { %v4134_v11 = vadd.f32 %v16382_v19, %v4100_v39  ;;  %v4133_v41 = vadd.f32 %v16385_v20, %v4099_v12  ;;  %v4462_v28 = vrot.slane %v4460_v62, 1  ;;  %v6264_v35 = vrot.slane %v16411_v9, 1  ;;  %v14198_v62 = vld [vmem:[#allocation10 + $0x608] ss:$16 sps:$4 sm:$0xff]  }
 0x43a   : > { %v4144_v57 = vmax.f32 %v4132_v49, 0.0  ;;  %v4135_v22 = vadd.f32 %v16388_v21, %v4101_v50  ;;  %v4458_v18 = vshrl.u32 %v16415_v34, 16  ;;  %v4482_v19 = vshrl.u32 %v16419_v32, 16  ;;  %v14206_v49 = vld [vmem:[#allocation10 + $0x62c] ss:$16 sps:$4 sm:$0xff]  }
 0x43b   : > { %v4146_v59 = vmax.f32 %v4134_v11, 0.0  ;;  %v4145_v44 = vmax.f32 %v4133_v41, 0.0  ;;  %v4451_v60 = vor.u32 %v4450_v38, %v4446_v47  ;;  %v4486_v2 = vrot.slane %v4484_v37, 1  ;;  %v14203_v38 = vld [vmem:[#allocation10 + $0x624] ss:$16 sps:$4 sm:$0xff]  }
 0x43c   : > { %v4176_v0 = vsel %vm4158_vm10, %v4144_v57, 0.0  ;;  %v4147_v53 = vmax.f32 %v4135_v22, 0.0  ;;  %v4463_v17 = vor.u32 %v4462_v28, %v4458_v18  ;;  %v4475_v7 = vor.u32 %v4474_v51, %v4470_v27  ;;  %v14201_v11 = vld [vmem:[#allocation10 + $0x620] ss:$16 sps:$4 sm:$0xff]   ;;  %v14204_v50 = vld [vmem:[#allocation10 + $0x628] ss:$16 sps:$4 sm:$0xff]  }
 0x43d   : > { %v4178_v1 = vsel %vm4158_vm10, %v4146_v59, 0.0  ;;  %v4184_v20 = vpack.c.bf16 %v4176_v0, %v4176_v0  ;;  %v4177_v45 = vsel %vm4158_vm10, %v4145_v44, 0.0  ;;  %v6261_v8 = vrot.slane %v16415_v34, 1  ;;  %v14209_v27 = vld [vmem:[#allocation10 + $0x644] ss:$16 sps:$4 sm:$0xff]  }
 0x43e   : > { %v4186_v54 = vpack.c.bf16 %v4178_v1, %v4178_v1  ;;  %v4185_v31 = vpack.c.bf16 %v4177_v45, %v4177_v45  ;;  %v4179_v21 = vsel %vm4158_vm10, %v4147_v53, 0.0  ;;  %v6267_v63 = vrot.slane %v16419_v32, 1  ;;  %v14212_v51 = vld [vmem:[#allocation10 + $0x64c] ss:$16 sps:$4 sm:$0xff]   ;;  %v14207_v37 = vld [vmem:[#allocation10 + $0x640] ss:$16 sps:$4 sm:$0xff]  }
 0x43f   : > { %v4453_v56 = vshll.u32 %v4184_v20, 16  ;;  %v4187_v58 = vpack.c.bf16 %v4179_v21, %v4179_v21  ;;  %v6259_v5 = vrot.slane %v4184_v20, 1  ;;  %v4487_v34 = vor.u32 %v4486_v2, %v4482_v19  ;;  %v14210_v41 = vld [vmem:[#allocation10 + $0x648] ss:$16 sps:$4 sm:$0xff]   ;;  %v14215_v28 = vld [vmem:[#allocation10 + $0x664] ss:$16 sps:$4 sm:$0xff]  }
 0x440   : > { %v4477_v9 = vshll.u32 %v4186_v54, 16  ;;  %v4465_v55 = vshll.u32 %v4185_v31, 16  ;;  %v6262_v33 = vrot.slane %v4185_v31, 1  ;;  %v6265_v25 = vrot.slane %v4186_v54, 1  ;;  %v14218_v57 = vld [vmem:[#allocation10 + $0x66c] ss:$16 sps:$4 sm:$0xff]  }
 0x441   : > { %v4455_v30 = vrot.slane %v4453_v56, 1  ;;  %v4489_v24 = vshll.u32 %v4187_v58, 16  ;;  %v16450_v29 = vsel %vm901_vm2, %v6258_v48, %v6259_v5  ;;  %v6268_v26 = vrot.slane %v4187_v58, 1  ;;  %v14213_v59 = vld [vmem:[#allocation10 + $0x660] ss:$16 sps:$4 sm:$0xff]  }
 0x442   : > { %v4479_v14 = vrot.slane %v4477_v9, 1  ;;  %v4467_v13 = vrot.slane %v4465_v55, 1  ;;  %v16453_v23 = vsel %vm901_vm2, %v6261_v8, %v6262_v33  ;;  %v16464_v48 = vsel %vm901_vm2, %v6264_v35, %v6265_v25  ;;  %v14216_v22 = vld [vmem:[#allocation10 + $0x668] ss:$16 sps:$4 sm:$0xff]   ;;  %v14221_v35 = vld [vmem:[#allocation10 + $0x684] ss:$16 sps:$4 sm:$0xff]  }
 0x443   : > { %v4456_v61 = vsel %vm1331_vm5, %v4451_v60, %v4455_v30  ;;  %v4491_v39 = vrot.slane %v4489_v24, 1  ;;  %v16461_v47 = vsel %vm901_vm2, %v6267_v63, %v6268_v26  ;;  %v14224_v18 = vld [vmem:[#allocation10 + $0x68c] ss:$16 sps:$4 sm:$0xff]   ;;  %v14219_v19 = vld [vmem:[#allocation10 + $0x680] ss:$16 sps:$4 sm:$0xff]  }
 0x444   : > { %v16457_v32 = vsel %vm1331_vm5, %v4475_v7, %v4479_v14  ;;  %v4468_v15 = vsel %vm1331_vm5, %v4463_v17, %v4467_v13  ;;  %v14222_v44 = vld [vmem:[#allocation10 + $0x688] ss:$16 sps:$4 sm:$0xff]   ;;  %v14227_v60 = vld [vmem:[#allocation10 + $0x6a4] ss:$16 sps:$4 sm:$0xff]   ;;  %v14230_v0 = vld [vmem:[#allocation10 + $0x6ac] ss:$16 sps:$4 sm:$0xff]  }
 0x445   : > { %5169 = vmatprep.mubr.bf16.mxu0 %v4468_v15  ;;  %5255 = vmatprep.mubr.bf16.mxu1 %v4468_v15  ;;  %v4492_v12 = vsel %vm1331_vm5, %v4487_v34, %v4491_v39  ;;  %v14225_v1 = vld [vmem:[#allocation10 + $0x6a0] ss:$16 sps:$4 sm:$0xff]   ;;  %v14228_v53 = vld [vmem:[#allocation10 + $0x6a8] ss:$16 sps:$4 sm:$0xff]   ;;  %v14233_v2 = vld [vmem:[#allocation10 + $0x6c4] ss:$16 sps:$4 sm:$0xff]  }
 0x446   : > { %5170 = vmatmul.mubr.bf16.vlgmr.msra.gmra.mrb[36].mxu0 %v4456_v61  ;;  %5256 = vmatmul.mubr.bf16.vlgmr.msra.gmra.mrb[36].mxu1 %v4456_v61  ;;  %v14236_v20 = vld [vmem:[#allocation10 + $0x6cc] ss:$16 sps:$4 sm:$0xff]   ;;  %v14231_v54 = vld [vmem:[#allocation10 + $0x6c0] ss:$16 sps:$4 sm:$0xff]   ;;  %v14234_v45 = vld [vmem:[#allocation10 + $0x6c8] ss:$16 sps:$4 sm:$0xff]  }
 0x447   : > { %5181 = vmatpush1.bf16.msra.mxu0 %v14195_v46  ;;  %5267 = vmatpush1.bf16.msra.mxu1 %v14198_v62  ;;  %v14239_v31 = vld [vmem:[#allocation10 + $0x6e4] ss:$16 sps:$4 sm:$0xff]   ;;  %v14242_v21 = vld [vmem:[#allocation10 + $0x6ec] ss:$16 sps:$4 sm:$0xff]   ;;  %v14237_v17 = vld [vmem:[#allocation10 + $0x6e0] ss:$16 sps:$4 sm:$0xff]  }
 0x448   : > { %5212 = vmatprep.mubr.bf16.mxu0 %v4492_v12  ;;  %5298 = vmatprep.mubr.bf16.mxu1 %v4492_v12  ;;  %v14240_v7 = vld [vmem:[#allocation10 + $0x6e8] ss:$16 sps:$4 sm:$0xff]   ;;  %v14245_v56 = vld [vmem:[#allocation10 + $0x704] ss:$16 sps:$4 sm:$0xff]   ;;  %v14248_v58 = vld [vmem:[#allocation10 + $0x70c] ss:$16 sps:$4 sm:$0xff]  }
 0x449   : > { %5182 = vmatprep.subr.bf16.mxu0 %v14203_v38  ;;  %5268 = vmatprep.subr.bf16.mxu1 %v14206_v49  ;;  %v14243_v9 = vld [vmem:[#allocation10 + $0x700] ss:$16 sps:$4 sm:$0xff]   ;;  %v14246_v5 = vld [vmem:[#allocation10 + $0x708] ss:$16 sps:$4 sm:$0xff]   ;;  %v14251_v55 = vld [vmem:[#allocation10 + $0x724] ss:$16 sps:$4 sm:$0xff]  }
 0x44a   : > { %v14254_v8 = vld [vmem:[#allocation10 + $0x72c] ss:$16 sps:$4 sm:$0xff]   ;;  %v14249_v33 = vld [vmem:[#allocation10 + $0x720] ss:$16 sps:$4 sm:$0xff]   ;;  %v14252_v63 = vld [vmem:[#allocation10 + $0x728] ss:$16 sps:$4 sm:$0xff]  }
 0x44b   : > { %5183 = vmatpush1.bf16.msra.mxu0 %v14201_v11  ;;  %5269 = vmatpush1.bf16.msra.mxu1 %v14204_v50  ;;  %v14257_v30 = vld [vmem:[#allocation10 + $0x744] ss:$16 sps:$4 sm:$0xff]   ;;  %v14260_v24 = vld [vmem:[#allocation10 + $0x74c] ss:$16 sps:$4 sm:$0xff]   ;;  %v14255_v14 = vld [vmem:[#allocation10 + $0x740] ss:$16 sps:$4 sm:$0xff]  }
 0x44c   : > { %5184 = vmatprep.subr.bf16.mxu0 %v14209_v27  ;;  %5270 = vmatprep.subr.bf16.mxu1 %v14212_v51  ;;  %v14258_v13 = vld [vmem:[#allocation10 + $0x748] ss:$16 sps:$4 sm:$0xff]   ;;  %v14263_v26 = vld [vmem:[#allocation10 + $0x764] ss:$16 sps:$4 sm:$0xff]   ;;  %v14266_v25 = vld [vmem:[#allocation10 + $0x76c] ss:$16 sps:$4 sm:$0xff]  }
 0x44d   : > { %v14261_v46 = vld [vmem:[#allocation10 + $0x760] ss:$16 sps:$4 sm:$0xff]   ;;  %v14264_v62 = vld [vmem:[#allocation10 + $0x768] ss:$16 sps:$4 sm:$0xff]   ;;  %v14269_v61 = vld [vmem:[#allocation10 + $0x784] ss:$16 sps:$4 sm:$0xff]  }
 0x44e   : > { %v14272_v34 = vld [vmem:[#allocation10 + $0x78c] ss:$16 sps:$4 sm:$0xff]   ;;  %v14267_v39 = vld [vmem:[#allocation10 + $0x780] ss:$16 sps:$4 sm:$0xff]   ;;  %v14270_v15 = vld [vmem:[#allocation10 + $0x788] ss:$16 sps:$4 sm:$0xff]  }
 0x44f   : > { %5185 = vmatpush1.bf16.msra.mxu0 %v14207_v37  ;;  %5271 = vmatpush1.bf16.msra.mxu1 %v14210_v41  ;;  %v14275_v12 = vld [vmem:[#allocation10 + $0x7a4] ss:$16 sps:$4 sm:$0xff]   ;;  %v14278_v38 = vld [vmem:[#allocation10 + $0x7ac] ss:$16 sps:$4 sm:$0xff]   ;;  %v14273_v49 = vld [vmem:[#allocation10 + $0x7a0] ss:$16 sps:$4 sm:$0xff]  }
 0x450   : > { %5186 = vmatprep.subr.bf16.mxu0 %v14215_v28  ;;  %5272 = vmatprep.subr.bf16.mxu1 %v14218_v57  ;;  %v14276_v11 = vld [vmem:[#allocation10 + $0x7a8] ss:$16 sps:$4 sm:$0xff]   ;;  %v14281_v50 = vld [vmem:[#allocation10 + $0x7c4] ss:$16 sps:$4 sm:$0xff]   ;;  %v14284_v27 = vld [vmem:[#allocation10 + $0x7cc] ss:$16 sps:$4 sm:$0xff]  }
 0x451   : > { %v14279_v51 = vld [vmem:[#allocation10 + $0x7c0] ss:$16 sps:$4 sm:$0xff]   ;;  %v14282_v37 = vld [vmem:[#allocation10 + $0x7c8] ss:$16 sps:$4 sm:$0xff]   ;;  %v14287_v41 = vld [vmem:[#allocation10 + $0x7e4] ss:$16 sps:$4 sm:$0xff]  }
 0x452   : > { %v14290_v28 = vld [vmem:[#allocation10 + $0x7ec] ss:$16 sps:$4 sm:$0xff]   ;;  %v14285_v57 = vld [vmem:[#allocation10 + $0x7e0] ss:$16 sps:$4 sm:$0xff]  }
 0x453   : > { %5187 = vmatpush1.bf16.msra.mxu0 %v14213_v59  ;;  %5273 = vmatpush1.bf16.msra.mxu1 %v14216_v22  ;;  %v14288_v59 = vld [vmem:[#allocation10 + $0x7e8] ss:$16 sps:$4 sm:$0xff]   ;;  %v14293_v22 = vld [vmem:[#allocation10 + $0x4] ss:$16 sps:$4 sm:$0xff]  }
 0x454   : > { %5188 = vmatprep.subr.bf16.mxu0 %v14221_v35  ;;  %5274 = vmatprep.subr.bf16.mxu1 %v14224_v18  ;;  %v14296_v35 = vld [vmem:[#allocation10 + $0xc] ss:$16 sps:$4 sm:$0xff]   ;;  %v14291_v18 = vld [vmem:[#allocation10] ss:$16 sps:$4 sm:$0xff]  }
 0x457   : > { %5189 = vmatpush1.bf16.msra.mxu0 %v14219_v19  ;;  %5275 = vmatpush1.bf16.msra.mxu1 %v14222_v44  ;;  %v14294_v19 = vld [vmem:[#allocation10 + $0x8] ss:$16 sps:$4 sm:$0xff]   ;;  %v14501_v44 = vld [vmem:[#allocation10 + $0x860] ss:$16 sps:$4 sm:$0xff]  }
 0x458   : > { %5190 = vmatprep.subr.bf16.mxu0 %v14227_v60  ;;  %5276 = vmatprep.subr.bf16.mxu1 %v14230_v0  ;;  %v14299_v60 = vld [vmem:[#allocation10 + $0x24] ss:$16 sps:$4 sm:$0xff]   ;;  %v14302_v0 = vld [vmem:[#allocation10 + $0x2c] ss:$16 sps:$4 sm:$0xff]  }
 0x45b   : > { %5191 = vmatpush1.bf16.msra.mxu0 %v14225_v1  ;;  %5277 = vmatpush1.bf16.msra.mxu1 %v14228_v53  ;;  %v14297_v1 = vld [vmem:[#allocation10 + $0x20] ss:$16 sps:$4 sm:$0xff]   ;;  %v14305_v53 = vld [vmem:[#allocation10 + $0x44] ss:$16 sps:$4 sm:$0xff]  }
 0x45c   : > { %5192 = vmatprep.subr.bf16.mxu0 %v14233_v2  ;;  %5278 = vmatprep.subr.bf16.mxu1 %v14236_v20  ;;  %v14308_v2 = vld [vmem:[#allocation10 + $0x4c] ss:$16 sps:$4 sm:$0xff]   ;;  %v14303_v20 = vld [vmem:[#allocation10 + $0x40] ss:$16 sps:$4 sm:$0xff]  }
 0x45f   : > { %5193 = vmatpush1.bf16.msra.mxu0 %v14231_v54  ;;  %5279 = vmatpush1.bf16.msra.mxu1 %v14234_v45  ;;  %v14311_v54 = vld [vmem:[#allocation10 + $0x64] ss:$16 sps:$4 sm:$0xff]   ;;  %v14314_v45 = vld [vmem:[#allocation10 + $0x6c] ss:$16 sps:$4 sm:$0xff]  }
 0x460   : > { %5194 = vmatprep.subr.bf16.mxu0 %v14239_v31  ;;  %5280 = vmatprep.subr.bf16.mxu1 %v14242_v21  ;;  %v14309_v31 = vld [vmem:[#allocation10 + $0x60] ss:$16 sps:$4 sm:$0xff]   ;;  %v14312_v21 = vld [vmem:[#allocation10 + $0x68] ss:$16 sps:$4 sm:$0xff]  }
 0x463   : > { %5195 = vmatpush1.bf16.msra.mxu0 %v14237_v17  ;;  %5281 = vmatpush1.bf16.msra.mxu1 %v14240_v7  ;;  %v14317_v17 = vld [vmem:[#allocation10 + $0x84] ss:$16 sps:$4 sm:$0xff]   ;;  %v14315_v7 = vld [vmem:[#allocation10 + $0x80] ss:$16 sps:$4 sm:$0xff]  }
 0x464   : > { %5196 = vmatprep.subr.bf16.mxu0 %v14245_v56  ;;  %5282 = vmatprep.subr.bf16.mxu1 %v14248_v58  ;;  %v14318_v56 = vld [vmem:[#allocation10 + $0x88] ss:$16 sps:$4 sm:$0xff]   ;;  %v14323_v58 = vld [vmem:[#allocation10 + $0xa4] ss:$16 sps:$4 sm:$0xff]  }
 0x467   : > { %5197 = vmatpush1.bf16.msra.mxu0 %v14243_v9  ;;  %5283 = vmatpush1.bf16.msra.mxu1 %v14246_v5  ;;  %v14326_v9 = vld [vmem:[#allocation10 + $0xac] ss:$16 sps:$4 sm:$0xff]   ;;  %v14321_v5 = vld [vmem:[#allocation10 + $0xa0] ss:$16 sps:$4 sm:$0xff]  }
 0x468   : > { %5198 = vmatprep.subr.bf16.mxu0 %v14251_v55  ;;  %5284 = vmatprep.subr.bf16.mxu1 %v14254_v8  ;;  %v14324_v55 = vld [vmem:[#allocation10 + $0xa8] ss:$16 sps:$4 sm:$0xff]   ;;  %v14329_v8 = vld [vmem:[#allocation10 + $0xc4] ss:$16 sps:$4 sm:$0xff]  }
 0x46b   : > { %5199 = vmatpush1.bf16.msra.mxu0 %v14249_v33  ;;  %5285 = vmatpush1.bf16.msra.mxu1 %v14252_v63  ;;  %v14332_v33 = vld [vmem:[#allocation10 + $0xcc] ss:$16 sps:$4 sm:$0xff]   ;;  %v14327_v63 = vld [vmem:[#allocation10 + $0xc0] ss:$16 sps:$4 sm:$0xff]  }
 0x46c   : > { %5200 = vmatprep.subr.bf16.mxu0 %v14257_v30  ;;  %5286 = vmatprep.subr.bf16.mxu1 %v14260_v24  ;;  %v14330_v30 = vld [vmem:[#allocation10 + $0xc8] ss:$16 sps:$4 sm:$0xff]   ;;  %v14335_v24 = vld [vmem:[#allocation10 + $0xe4] ss:$16 sps:$4 sm:$0xff]  }
 0x46f   : > { %5201 = vmatpush1.bf16.msra.mxu0 %v14255_v14  ;;  %5287 = vmatpush1.bf16.msra.mxu1 %v14258_v13  ;;  %v14338_v14 = vld [vmem:[#allocation10 + $0xec] ss:$16 sps:$4 sm:$0xff]   ;;  %v14333_v13 = vld [vmem:[#allocation10 + $0xe0] ss:$16 sps:$4 sm:$0xff]  }
 0x470   : > { %5202 = vmatprep.subr.bf16.mxu0 %v14263_v26  ;;  %5288 = vmatprep.subr.bf16.mxu1 %v14266_v25  ;;  %v14336_v26 = vld [vmem:[#allocation10 + $0xe8] ss:$16 sps:$4 sm:$0xff]   ;;  %v14341_v25 = vld [vmem:[#allocation10 + $0x104] ss:$16 sps:$4 sm:$0xff]  }
 0x473   : > { %5203 = vmatpush1.bf16.msra.mxu0 %v14261_v46  ;;  %5289 = vmatpush1.bf16.msra.mxu1 %v14264_v62  ;;  %v14344_v46 = vld [vmem:[#allocation10 + $0x10c] ss:$16 sps:$4 sm:$0xff]   ;;  %v14339_v62 = vld [vmem:[#allocation10 + $0x100] ss:$16 sps:$4 sm:$0xff]  }
 0x474   : > { %5204 = vmatprep.subr.bf16.mxu0 %v14269_v61  ;;  %5290 = vmatprep.subr.bf16.mxu1 %v14272_v34  ;;  %v14342_v61 = vld [vmem:[#allocation10 + $0x108] ss:$16 sps:$4 sm:$0xff]   ;;  %v14347_v34 = vld [vmem:[#allocation10 + $0x124] ss:$16 sps:$4 sm:$0xff]  }
 0x477   : > { %5205 = vmatpush1.bf16.msra.mxu0 %v14267_v39  ;;  %5291 = vmatpush1.bf16.msra.mxu1 %v14270_v15  ;;  %v14350_v39 = vld [vmem:[#allocation10 + $0x12c] ss:$16 sps:$4 sm:$0xff]   ;;  %v14345_v15 = vld [vmem:[#allocation10 + $0x120] ss:$16 sps:$4 sm:$0xff]  }
 0x478   : > { %5206 = vmatprep.subr.bf16.mxu0 %v14275_v12  ;;  %5292 = vmatprep.subr.bf16.mxu1 %v14278_v38  ;;  %v14348_v12 = vld [vmem:[#allocation10 + $0x128] ss:$16 sps:$4 sm:$0xff]   ;;  %v14353_v38 = vld [vmem:[#allocation10 + $0x144] ss:$16 sps:$4 sm:$0xff]  }
 0x47b   : > { %5207 = vmatpush1.bf16.msra.mxu0 %v14273_v49  ;;  %5293 = vmatpush1.bf16.msra.mxu1 %v14276_v11  ;;  %v14356_v49 = vld [vmem:[#allocation10 + $0x14c] ss:$16 sps:$4 sm:$0xff]   ;;  %v14351_v11 = vld [vmem:[#allocation10 + $0x140] ss:$16 sps:$4 sm:$0xff]  }
 0x47c   : > { %5208 = vmatprep.subr.bf16.mxu0 %v14281_v50  ;;  %5294 = vmatprep.subr.bf16.mxu1 %v14284_v27  ;;  %v14354_v50 = vld [vmem:[#allocation10 + $0x148] ss:$16 sps:$4 sm:$0xff]   ;;  %v14359_v27 = vld [vmem:[#allocation10 + $0x164] ss:$16 sps:$4 sm:$0xff]  }
 0x47f   : > { %5209 = vmatpush1.bf16.msra.mxu0 %v14279_v51  ;;  %5295 = vmatpush1.bf16.msra.mxu1 %v14282_v37  ;;  %v14362_v51 = vld [vmem:[#allocation10 + $0x16c] ss:$16 sps:$4 sm:$0xff]   ;;  %v14357_v37 = vld [vmem:[#allocation10 + $0x160] ss:$16 sps:$4 sm:$0xff]  }
 0x480   : > { %5210 = vmatprep.subr.bf16.mxu0 %v14287_v41  ;;  %5296 = vmatprep.subr.bf16.mxu1 %v14290_v28  ;;  %v14360_v41 = vld [vmem:[#allocation10 + $0x168] ss:$16 sps:$4 sm:$0xff]   ;;  %v14365_v28 = vld [vmem:[#allocation10 + $0x184] ss:$16 sps:$4 sm:$0xff]  }
 0x483   : > { %5211 = vmatpush1.bf16.msra.mxu0 %v14285_v57  ;;  %5297 = vmatpush1.bf16.msra.mxu1 %v14288_v59  ;;  %v14368_v57 = vld [vmem:[#allocation10 + $0x18c] ss:$16 sps:$4 sm:$0xff]   ;;  %v14363_v59 = vld [vmem:[#allocation10 + $0x180] ss:$16 sps:$4 sm:$0xff]  }
 0x484   : > { %5949 = vmatprep.subr.bf16.mxu0 %v14293_v22  ;;  %6035 = vmatprep.subr.bf16.mxu1 %v14296_v35  ;;  %v14366_v22 = vld [vmem:[#allocation10 + $0x188] ss:$16 sps:$4 sm:$0xff]   ;;  %v14371_v35 = vld [vmem:[#allocation10 + $0x1a4] ss:$16 sps:$4 sm:$0xff]  }
 0x486   : > { %5213 = vmatmul.mubr.bf16.vlgmr.msra.gmra.mrb[36].mxu0 %v16457_v32  ;;  %5299 = vmatmul.mubr.bf16.vlgmr.msra.gmra.mrb[36].mxu1 %v16457_v32  ;;  %v14306_v32 = vld [vmem:[#allocation10 + $0x48] ss:$16 sps:$4 sm:$0xff]  }
 0x487   : > { %5950 = vmatpush1.bf16.msra.mxu0 %v14291_v18  ;;  %12508 = vmatprep.mubr.msk.bf16.mxu0 %vm16470_vm11, %v16417_v36  ;;  %v14374_v18 = vld [vmem:[#allocation10 + $0x1ac] ss:$16 sps:$4 sm:$0xff]  }
 0x488   : > { %6036 = vmatpush1.bf16.msra.mxu1 %v14294_v19  ;;  %12520 = vmatprep.mubr.msk.bf16.mxu1 %vm16470_vm11, %v16417_v36  ;;  %v14320_v36 = vld [vmem:[#allocation10 + $0x8c] ss:$16 sps:$4 sm:$0xff]   ;;  %v14369_v19 = vld [vmem:[#allocation10 + $0x1a0] ss:$16 sps:$4 sm:$0xff]  }
 0x489   : > { %5951 = vmatprep.subr.bf16.mxu0 %v14299_v60  ;;  %6037 = vmatprep.subr.bf16.mxu1 %v14302_v0  ;;  %v14372_v60 = vld [vmem:[#allocation10 + $0x1a8] ss:$16 sps:$4 sm:$0xff]   ;;  %v14377_v0 = vld [vmem:[#allocation10 + $0x1c4] ss:$16 sps:$4 sm:$0xff]  }
 0x48b   : > { %5952 = vmatpush1.bf16.msra.mxu0 %v14297_v1  ;;  %v14380_v1 = vld [vmem:[#allocation10 + $0x1cc] ss:$16 sps:$4 sm:$0xff]  }
 0x48c   : > { %6038 = vmatpush1.bf16.msra.mxu1 %v14300_v10  ;;  %5953 = vmatprep.subr.bf16.mxu0 %v14305_v53  ;;  %v14375_v10 = vld [vmem:[#allocation10 + $0x1c0] ss:$16 sps:$4 sm:$0xff]   ;;  %v14378_v53 = vld [vmem:[#allocation10 + $0x1c8] ss:$16 sps:$4 sm:$0xff]  }
 0x48d   : > { %6039 = vmatprep.subr.bf16.mxu1 %v14308_v2  ;;  %v14383_v2 = vld [vmem:[#allocation10 + $0x1e4] ss:$16 sps:$4 sm:$0xff]  }
 0x48f   : > { %5954 = vmatpush1.bf16.msra.mxu0 %v14303_v20  ;;  %v14386_v20 = vld [vmem:[#allocation10 + $0x1ec] ss:$16 sps:$4 sm:$0xff]  }
 0x490   : > { %6040 = vmatpush1.bf16.msra.mxu1 %v14306_v32  ;;  %5955 = vmatprep.subr.bf16.mxu0 %v14311_v54  ;;  %v14381_v32 = vld [vmem:[#allocation10 + $0x1e0] ss:$16 sps:$4 sm:$0xff]   ;;  %v14384_v54 = vld [vmem:[#allocation10 + $0x1e8] ss:$16 sps:$4 sm:$0xff]  }
 0x491   : > { %6041 = vmatprep.subr.bf16.mxu1 %v14314_v45  ;;  %v14389_v45 = vld [vmem:[#allocation10 + $0x204] ss:$16 sps:$4 sm:$0xff]  }
 0x493   : > { %5956 = vmatpush1.bf16.msra.mxu0 %v14309_v31  ;;  %v14392_v31 = vld [vmem:[#allocation10 + $0x20c] ss:$16 sps:$4 sm:$0xff]  }
 0x494   : > { %6042 = vmatpush1.bf16.msra.mxu1 %v14312_v21  ;;  %5957 = vmatprep.subr.bf16.mxu0 %v14317_v17  ;;  %v14387_v21 = vld [vmem:[#allocation10 + $0x200] ss:$16 sps:$4 sm:$0xff]   ;;  %v14390_v17 = vld [vmem:[#allocation10 + $0x208] ss:$16 sps:$4 sm:$0xff]  }
 0x495   : > { %6043 = vmatprep.subr.bf16.mxu1 %v14320_v36  ;;  %v14395_v36 = vld [vmem:[#allocation10 + $0x224] ss:$16 sps:$4 sm:$0xff]  }
 0x497   : > { %5958 = vmatpush1.bf16.msra.mxu0 %v14315_v7  ;;  %v14398_v7 = vld [vmem:[#allocation10 + $0x22c] ss:$16 sps:$4 sm:$0xff]  }
 0x498   : > { %6044 = vmatpush1.bf16.msra.mxu1 %v14318_v56  ;;  %5959 = vmatprep.subr.bf16.mxu0 %v14323_v58  ;;  %v14393_v56 = vld [vmem:[#allocation10 + $0x220] ss:$16 sps:$4 sm:$0xff]   ;;  %v14396_v58 = vld [vmem:[#allocation10 + $0x228] ss:$16 sps:$4 sm:$0xff]  }
 0x499   : > { %6045 = vmatprep.subr.bf16.mxu1 %v14326_v9  ;;  %v14401_v9 = vld [vmem:[#allocation10 + $0x244] ss:$16 sps:$4 sm:$0xff]  }
 0x49b   : > { %5960 = vmatpush1.bf16.msra.mxu0 %v14321_v5  ;;  %v14404_v5 = vld [vmem:[#allocation10 + $0x24c] ss:$16 sps:$4 sm:$0xff]  }
 0x49c   : > { %6046 = vmatpush1.bf16.msra.mxu1 %v14324_v55  ;;  %5961 = vmatprep.subr.bf16.mxu0 %v14329_v8  ;;  %v14399_v55 = vld [vmem:[#allocation10 + $0x240] ss:$16 sps:$4 sm:$0xff]   ;;  %v14407_v8 = vld [vmem:[#allocation10 + $0x264] ss:$16 sps:$4 sm:$0xff]  }
 0x49d   : > { %6047 = vmatprep.subr.bf16.mxu1 %v14332_v33  ;;  %v14410_v33 = vld [vmem:[#allocation10 + $0x26c] ss:$16 sps:$4 sm:$0xff]  }
 0x49f   : > { %5962 = vmatpush1.bf16.msra.mxu0 %v14327_v63  ;;  %v14405_v63 = vld [vmem:[#allocation10 + $0x260] ss:$16 sps:$4 sm:$0xff]  }
 0x4a0   : > { %6048 = vmatpush1.bf16.msra.mxu1 %v14330_v30  ;;  %5963 = vmatprep.subr.bf16.mxu0 %v14335_v24  ;;  %v14408_v30 = vld [vmem:[#allocation10 + $0x268] ss:$16 sps:$4 sm:$0xff]   ;;  %v14413_v24 = vld [vmem:[#allocation10 + $0x284] ss:$16 sps:$4 sm:$0xff]  }
 0x4a1   : > { %6049 = vmatprep.subr.bf16.mxu1 %v14338_v14  ;;  %v14416_v14 = vld [vmem:[#allocation10 + $0x28c] ss:$16 sps:$4 sm:$0xff]  }
 0x4a3   : > { %5964 = vmatpush1.bf16.msra.mxu0 %v14333_v13  ;;  %v14414_v13 = vld [vmem:[#allocation10 + $0x288] ss:$16 sps:$4 sm:$0xff]  }
 0x4a4   : > { %6050 = vmatpush1.bf16.msra.mxu1 %v14336_v26  ;;  %5965 = vmatprep.subr.bf16.mxu0 %v14341_v25  ;;  %v14419_v26 = vld [vmem:[#allocation10 + $0x2a4] ss:$16 sps:$4 sm:$0xff]   ;;  %v14422_v25 = vld [vmem:[#allocation10 + $0x2ac] ss:$16 sps:$4 sm:$0xff]  }
 0x4a5   : > { %6051 = vmatprep.subr.bf16.mxu1 %v14344_v46  ;;  %v14417_v46 = vld [vmem:[#allocation10 + $0x2a0] ss:$16 sps:$4 sm:$0xff]  }
 0x4a7   : > { %5966 = vmatpush1.bf16.msra.mxu0 %v14339_v62  ;;  %v14420_v62 = vld [vmem:[#allocation10 + $0x2a8] ss:$16 sps:$4 sm:$0xff]  }
 0x4a8   : > { %6052 = vmatpush1.bf16.msra.mxu1 %v14342_v61  ;;  %5967 = vmatprep.subr.bf16.mxu0 %v14347_v34  ;;  %v14425_v61 = vld [vmem:[#allocation10 + $0x2c4] ss:$16 sps:$4 sm:$0xff]   ;;  %v14428_v34 = vld [vmem:[#allocation10 + $0x2cc] ss:$16 sps:$4 sm:$0xff]  }
 0x4a9   : > { %6053 = vmatprep.subr.bf16.mxu1 %v14350_v39  ;;  %v14423_v39 = vld [vmem:[#allocation10 + $0x2c0] ss:$16 sps:$4 sm:$0xff]  }
 0x4ab   : > { %5968 = vmatpush1.bf16.msra.mxu0 %v14345_v15  ;;  %v14426_v15 = vld [vmem:[#allocation10 + $0x2c8] ss:$16 sps:$4 sm:$0xff]  }
 0x4ac   : > { %6054 = vmatpush1.bf16.msra.mxu1 %v14348_v12  ;;  %5969 = vmatprep.subr.bf16.mxu0 %v14353_v38  ;;  %v14431_v12 = vld [vmem:[#allocation10 + $0x2e4] ss:$16 sps:$4 sm:$0xff]   ;;  %v14434_v38 = vld [vmem:[#allocation10 + $0x2ec] ss:$16 sps:$4 sm:$0xff]  }
 0x4ad   : > { %6055 = vmatprep.subr.bf16.mxu1 %v14356_v49  ;;  %v14429_v49 = vld [vmem:[#allocation10 + $0x2e0] ss:$16 sps:$4 sm:$0xff]  }
 0x4af   : > { %5970 = vmatpush1.bf16.msra.mxu0 %v14351_v11  ;;  %v14432_v11 = vld [vmem:[#allocation10 + $0x2e8] ss:$16 sps:$4 sm:$0xff]  }
 0x4b0   : > { %6056 = vmatpush1.bf16.msra.mxu1 %v14354_v50  ;;  %5971 = vmatprep.subr.bf16.mxu0 %v14359_v27  ;;  %v14437_v50 = vld [vmem:[#allocation10 + $0x304] ss:$16 sps:$4 sm:$0xff]   ;;  %v14440_v27 = vld [vmem:[#allocation10 + $0x30c] ss:$16 sps:$4 sm:$0xff]  }
 0x4b1   : > { %6057 = vmatprep.subr.bf16.mxu1 %v14362_v51  ;;  %v14435_v51 = vld [vmem:[#allocation10 + $0x300] ss:$16 sps:$4 sm:$0xff]  }
 0x4b3   : > { %5972 = vmatpush1.bf16.msra.mxu0 %v14357_v37  ;;  %v14438_v37 = vld [vmem:[#allocation10 + $0x308] ss:$16 sps:$4 sm:$0xff]  }
 0x4b4   : > { %6058 = vmatpush1.bf16.msra.mxu1 %v14360_v41  ;;  %5973 = vmatprep.subr.bf16.mxu0 %v14365_v28  ;;  %v14443_v41 = vld [vmem:[#allocation10 + $0x324] ss:$16 sps:$4 sm:$0xff]   ;;  %v14446_v28 = vld [vmem:[#allocation10 + $0x32c] ss:$16 sps:$4 sm:$0xff]  }
 0x4b5   : > { %6059 = vmatprep.subr.bf16.mxu1 %v14368_v57  ;;  %v14441_v57 = vld [vmem:[#allocation10 + $0x320] ss:$16 sps:$4 sm:$0xff]  }
 0x4b7   : > { %5974 = vmatpush1.bf16.msra.mxu0 %v14363_v59  ;;  %v14444_v59 = vld [vmem:[#allocation10 + $0x328] ss:$16 sps:$4 sm:$0xff]  }
 0x4b8   : > { %6060 = vmatpush1.bf16.msra.mxu1 %v14366_v22  ;;  %5975 = vmatprep.subr.bf16.mxu0 %v14371_v35  ;;  %v14449_v22 = vld [vmem:[#allocation10 + $0x344] ss:$16 sps:$4 sm:$0xff]   ;;  %v14452_v35 = vld [vmem:[#allocation10 + $0x34c] ss:$16 sps:$4 sm:$0xff]  }
 0x4b9   : > { %6061 = vmatprep.subr.bf16.mxu1 %v14374_v18  ;;  %v14447_v18 = vld [vmem:[#allocation10 + $0x340] ss:$16 sps:$4 sm:$0xff]  }
 0x4bb   : > { %5976 = vmatpush1.bf16.msra.mxu0 %v14369_v19  ;;  %v14450_v19 = vld [vmem:[#allocation10 + $0x348] ss:$16 sps:$4 sm:$0xff]  }
 0x4bc   : > { %6062 = vmatpush1.bf16.msra.mxu1 %v14372_v60  ;;  %5977 = vmatprep.subr.bf16.mxu0 %v14377_v0  ;;  %v14455_v60 = vld [vmem:[#allocation10 + $0x364] ss:$16 sps:$4 sm:$0xff]   ;;  %v14458_v0 = vld [vmem:[#allocation10 + $0x36c] ss:$16 sps:$4 sm:$0xff]  }
 0x4bd   : > { %6063 = vmatprep.subr.bf16.mxu1 %v14380_v1  ;;  %v14453_v1 = vld [vmem:[#allocation10 + $0x360] ss:$16 sps:$4 sm:$0xff]  }
 0x4bf   : > { %5978 = vmatpush1.bf16.msra.mxu0 %v14375_v10  ;;  %v14456_v10 = vld [vmem:[#allocation10 + $0x368] ss:$16 sps:$4 sm:$0xff]  }
 0x4c0   : > { %6064 = vmatpush1.bf16.msra.mxu1 %v14378_v53  ;;  %5979 = vmatprep.subr.bf16.mxu0 %v14383_v2  ;;  %v14461_v53 = vld [vmem:[#allocation10 + $0x384] ss:$16 sps:$4 sm:$0xff]   ;;  %v14464_v2 = vld [vmem:[#allocation10 + $0x38c] ss:$16 sps:$4 sm:$0xff]  }
 0x4c1   : > { %6065 = vmatprep.subr.bf16.mxu1 %v14386_v20  ;;  %v14459_v20 = vld [vmem:[#allocation10 + $0x380] ss:$16 sps:$4 sm:$0xff]  }
 0x4c3   : > { %5980 = vmatpush1.bf16.msra.mxu0 %v14381_v32  ;;  %v14462_v32 = vld [vmem:[#allocation10 + $0x388] ss:$16 sps:$4 sm:$0xff]  }
 0x4c4   : > { %6066 = vmatpush1.bf16.msra.mxu1 %v14384_v54  ;;  %5992 = vmatprep.subr.bf16.mxu0 %v14389_v45  ;;  %v14467_v54 = vld [vmem:[#allocation10 + $0x3a4] ss:$16 sps:$4 sm:$0xff]   ;;  %v14470_v45 = vld [vmem:[#allocation10 + $0x3ac] ss:$16 sps:$4 sm:$0xff]  }
 0x4c5   : > { %6078 = vmatprep.subr.bf16.mxu1 %v14392_v31  ;;  %v14465_v31 = vld [vmem:[#allocation10 + $0x3a0] ss:$16 sps:$4 sm:$0xff]  }
 0x4c6   : > { %12511 = vmatmul.mubr.msk.bf16.vlgmr.msra.gmra.mrb[36].mxu0 %vm16470_vm11, %v16409_v52 }
 0x4c7   : > { %12523 = vmatmul.mubr.msk.bf16.vlgmr.msra.gmra.mrb[36].mxu1 %vm16470_vm11, %v16409_v52  ;;  %5993 = vmatpush1.bf16.msra.mxu0 %v14387_v21  ;;  %v14402_v52 = vld [vmem:[#allocation10 + $0x248] ss:$16 sps:$4 sm:$0xff]  }
 0x4c8   : > { %12514 = vmatprep.mubr.msk.bf16.mxu0 %vm16470_vm11, %v16423_v16  ;;  %6079 = vmatpush1.bf16.msra.mxu1 %v14390_v17  ;;  %v14468_v21 = vld [vmem:[#allocation10 + $0x3a8] ss:$16 sps:$4 sm:$0xff]   ;;  %v14473_v17 = vld [vmem:[#allocation10 + $0x3c4] ss:$16 sps:$4 sm:$0xff]  }
 0x4c9   : > { %12526 = vmatprep.mubr.msk.bf16.mxu1 %vm16470_vm11, %v16423_v16  ;;  %5994 = vmatprep.subr.bf16.mxu0 %v14395_v36  ;;  %v14411_v16 = vld [vmem:[#allocation10 + $0x280] ss:$16 sps:$4 sm:$0xff]   ;;  %v14476_v36 = vld [vmem:[#allocation10 + $0x3cc] ss:$16 sps:$4 sm:$0xff]  }
 0x4ca   : > { %6080 = vmatprep.subr.bf16.mxu1 %v14398_v7  ;;  %v14471_v7 = vld [vmem:[#allocation10 + $0x3c0] ss:$16 sps:$4 sm:$0xff]  }
 0x4cb   : > { %5995 = vmatpush1.bf16.msra.mxu0 %v14393_v56  ;;  %v14474_v56 = vld [vmem:[#allocation10 + $0x3c8] ss:$16 sps:$4 sm:$0xff]  }
 0x4cc   : > { %6081 = vmatpush1.bf16.msra.mxu1 %v14396_v58  ;;  %5996 = vmatprep.subr.bf16.mxu0 %v14401_v9  ;;  %v14479_v58 = vld [vmem:[#allocation10 + $0x3e4] ss:$16 sps:$4 sm:$0xff]   ;;  %v14482_v9 = vld [vmem:[#allocation10 + $0x3ec] ss:$16 sps:$4 sm:$0xff]  }
 0x4cd   : > { %6082 = vmatprep.subr.bf16.mxu1 %v14404_v5  ;;  %v14477_v5 = vld [vmem:[#allocation10 + $0x3e0] ss:$16 sps:$4 sm:$0xff]  }
 0x4cf   : > { %5997 = vmatpush1.bf16.msra.mxu0 %v14399_v55  ;;  %v14480_v55 = vld [vmem:[#allocation10 + $0x3e8] ss:$16 sps:$4 sm:$0xff]  }
 0x4d0   : > { %6083 = vmatpush1.bf16.msra.mxu1 %v14402_v52  ;;  %5998 = vmatprep.subr.bf16.mxu0 %v14407_v8  ;;  %v14485_v52 = vld [vmem:[#allocation10 + $0x804] ss:$16 sps:$4 sm:$0xff]   ;;  %v14488_v8 = vld [vmem:[#allocation10 + $0x80c] ss:$16 sps:$4 sm:$0xff]  }
 0x4d1   : > { %6084 = vmatprep.subr.bf16.mxu1 %v14410_v33  ;;  %v14483_v33 = vld [vmem:[#allocation10 + $0x800] ss:$16 sps:$4 sm:$0xff]  }
 0x4d3   : > { %5999 = vmatpush1.bf16.msra.mxu0 %v14405_v63  ;;  %v14486_v63 = vld [vmem:[#allocation10 + $0x808] ss:$16 sps:$4 sm:$0xff]  }
 0x4d4   : > { %6085 = vmatpush1.bf16.msra.mxu1 %v14408_v30  ;;  %6000 = vmatprep.subr.bf16.mxu0 %v14413_v24  ;;  %v14491_v30 = vld [vmem:[#allocation10 + $0x824] ss:$16 sps:$4 sm:$0xff]   ;;  %v14494_v24 = vld [vmem:[#allocation10 + $0x82c] ss:$16 sps:$4 sm:$0xff]  }
 0x4d5   : > { %6086 = vmatprep.subr.bf16.mxu1 %v14416_v14  ;;  %v14489_v14 = vld [vmem:[#allocation10 + $0x820] ss:$16 sps:$4 sm:$0xff]  }
 0x4d7   : > { %6001 = vmatpush1.bf16.msra.mxu0 %v14411_v16  ;;  %v14492_v16 = vld [vmem:[#allocation10 + $0x828] ss:$16 sps:$4 sm:$0xff]  }
 0x4d8   : > { %6087 = vmatpush1.bf16.msra.mxu1 %v14414_v13  ;;  %6002 = vmatprep.subr.bf16.mxu0 %v14419_v26  ;;  %v14497_v13 = vld [vmem:[#allocation10 + $0x844] ss:$16 sps:$4 sm:$0xff]   ;;  %v14500_v26 = vld [vmem:[#allocation10 + $0x84c] ss:$16 sps:$4 sm:$0xff]  }
 0x4d9   : > { %6088 = vmatprep.subr.bf16.mxu1 %v14422_v25  ;;  %v14495_v25 = vld [vmem:[#allocation10 + $0x840] ss:$16 sps:$4 sm:$0xff]  }
 0x4db   : > { %6003 = vmatpush1.bf16.msra.mxu0 %v14417_v46  ;;  %v14498_v46 = vld [vmem:[#allocation10 + $0x848] ss:$16 sps:$4 sm:$0xff]  }
 0x4dc   : > { %6089 = vmatpush1.bf16.msra.mxu1 %v14420_v62  ;;  %6004 = vmatprep.subr.bf16.mxu0 %v14425_v61  ;;  %v14503_v62 = vld [vmem:[#allocation10 + $0x864] ss:$16 sps:$4 sm:$0xff]   ;;  %v14504_v61 = vld [vmem:[#allocation10 + $0x868] ss:$16 sps:$4 sm:$0xff]  }
 0x4dd   : > { %6090 = vmatprep.subr.bf16.mxu1 %v14428_v34  ;;  %v14509_v34 = vld [vmem:[#allocation10 + $0x884] ss:$16 sps:$4 sm:$0xff]  }
 0x4df   : > { %6005 = vmatpush1.bf16.msra.mxu0 %v14423_v39  ;;  %v14512_v39 = vld [vmem:[#allocation10 + $0x88c] ss:$16 sps:$4 sm:$0xff]  }
 0x4e0   : > { %6091 = vmatpush1.bf16.msra.mxu1 %v14426_v15  ;;  %6006 = vmatprep.subr.bf16.mxu0 %v14431_v12  ;;  %v14510_v15 = vld [vmem:[#allocation10 + $0x888] ss:$16 sps:$4 sm:$0xff]   ;;  %v14515_v12 = vld [vmem:[#allocation10 + $0x8a4] ss:$16 sps:$4 sm:$0xff]  }
 0x4e1   : > { %6092 = vmatprep.subr.bf16.mxu1 %v14434_v38  ;;  %v14518_v38 = vld [vmem:[#allocation10 + $0x8ac] ss:$16 sps:$4 sm:$0xff]  }
 0x4e3   : > { %6007 = vmatpush1.bf16.msra.mxu0 %v14429_v49  ;;  %v14513_v49 = vld [vmem:[#allocation10 + $0x8a0] ss:$16 sps:$4 sm:$0xff]  }
 0x4e4   : > { %6093 = vmatpush1.bf16.msra.mxu1 %v14432_v11  ;;  %6008 = vmatprep.subr.bf16.mxu0 %v14437_v50  ;;  %v14516_v11 = vld [vmem:[#allocation10 + $0x8a8] ss:$16 sps:$4 sm:$0xff]   ;;  %v14521_v50 = vld [vmem:[#allocation10 + $0x8c4] ss:$16 sps:$4 sm:$0xff]  }
 0x4e5   : > { %6094 = vmatprep.subr.bf16.mxu1 %v14440_v27  ;;  %v14524_v27 = vld [vmem:[#allocation10 + $0x8cc] ss:$16 sps:$4 sm:$0xff]  }
 0x4e7   : > { %6009 = vmatpush1.bf16.msra.mxu0 %v14435_v51  ;;  %v14519_v51 = vld [vmem:[#allocation10 + $0x8c0] ss:$16 sps:$4 sm:$0xff]  }
 0x4e8   : > { %6095 = vmatpush1.bf16.msra.mxu1 %v14438_v37  ;;  %6010 = vmatprep.subr.bf16.mxu0 %v14443_v41  ;;  %v14522_v37 = vld [vmem:[#allocation10 + $0x8c8] ss:$16 sps:$4 sm:$0xff]   ;;  %v14527_v41 = vld [vmem:[#allocation10 + $0x8e4] ss:$16 sps:$4 sm:$0xff]  }
 0x4e9   : > { %6096 = vmatprep.subr.bf16.mxu1 %v14446_v28  ;;  %v14530_v28 = vld [vmem:[#allocation10 + $0x8ec] ss:$16 sps:$4 sm:$0xff]  }
 0x4eb   : > { %6011 = vmatpush1.bf16.msra.mxu0 %v14441_v57  ;;  %v14525_v57 = vld [vmem:[#allocation10 + $0x8e0] ss:$16 sps:$4 sm:$0xff]  }
 0x4ec   : > { %6097 = vmatpush1.bf16.msra.mxu1 %v14444_v59  ;;  %6012 = vmatprep.subr.bf16.mxu0 %v14449_v22  ;;  %v14528_v59 = vld [vmem:[#allocation10 + $0x8e8] ss:$16 sps:$4 sm:$0xff]   ;;  %v14533_v22 = vld [vmem:[#allocation10 + $0x904] ss:$16 sps:$4 sm:$0xff]  }
 0x4ed   : > { %6098 = vmatprep.subr.bf16.mxu1 %v14452_v35  ;;  %v14536_v35 = vld [vmem:[#allocation10 + $0x90c] ss:$16 sps:$4 sm:$0xff]  }
 0x4ef   : > { %6013 = vmatpush1.bf16.msra.mxu0 %v14447_v18  ;;  %v14531_v18 = vld [vmem:[#allocation10 + $0x900] ss:$16 sps:$4 sm:$0xff]  }
 0x4f0   : > { %6099 = vmatpush1.bf16.msra.mxu1 %v14450_v19  ;;  %6014 = vmatprep.subr.bf16.mxu0 %v14455_v60  ;;  %v14534_v19 = vld [vmem:[#allocation10 + $0x908] ss:$16 sps:$4 sm:$0xff]   ;;  %v14539_v60 = vld [vmem:[#allocation10 + $0x924] ss:$16 sps:$4 sm:$0xff]  }
 0x4f1   : > { %6100 = vmatprep.subr.bf16.mxu1 %v14458_v0  ;;  %v14542_v0 = vld [vmem:[#allocation10 + $0x92c] ss:$16 sps:$4 sm:$0xff]  }
 0x4f3   : > { %6015 = vmatpush1.bf16.msra.mxu0 %v14453_v1  ;;  %v14537_v1 = vld [vmem:[#allocation10 + $0x920] ss:$16 sps:$4 sm:$0xff]  }
 0x4f4   : > { %6101 = vmatpush1.bf16.msra.mxu1 %v14456_v10  ;;  %6016 = vmatprep.subr.bf16.mxu0 %v14461_v53  ;;  %v14540_v10 = vld [vmem:[#allocation10 + $0x928] ss:$16 sps:$4 sm:$0xff]   ;;  %v14545_v53 = vld [vmem:[#allocation10 + $0x944] ss:$16 sps:$4 sm:$0xff]  }
 0x4f5   : > { %6102 = vmatprep.subr.bf16.mxu1 %v14464_v2  ;;  %v14548_v2 = vld [vmem:[#allocation10 + $0x94c] ss:$16 sps:$4 sm:$0xff]  }
 0x4f7   : > { %6017 = vmatpush1.bf16.msra.mxu0 %v14459_v20  ;;  %v14543_v20 = vld [vmem:[#allocation10 + $0x940] ss:$16 sps:$4 sm:$0xff]  }
 0x4f8   : > { %6103 = vmatpush1.bf16.msra.mxu1 %v14462_v32  ;;  %6018 = vmatprep.subr.bf16.mxu0 %v14467_v54  ;;  %v14546_v32 = vld [vmem:[#allocation10 + $0x948] ss:$16 sps:$4 sm:$0xff]   ;;  %v14551_v54 = vld [vmem:[#allocation10 + $0x964] ss:$16 sps:$4 sm:$0xff]  }
 0x4f9   : > { %6104 = vmatprep.subr.bf16.mxu1 %v14470_v45  ;;  %v14554_v45 = vld [vmem:[#allocation10 + $0x96c] ss:$16 sps:$4 sm:$0xff]  }
 0x4fb   : > { %6019 = vmatpush1.bf16.msra.mxu0 %v14465_v31  ;;  %v14549_v31 = vld [vmem:[#allocation10 + $0x960] ss:$16 sps:$4 sm:$0xff]  }
 0x4fc   : > { %6105 = vmatpush1.bf16.msra.mxu1 %v14468_v21  ;;  %6020 = vmatprep.subr.bf16.mxu0 %v14473_v17  ;;  %v14552_v21 = vld [vmem:[#allocation10 + $0x968] ss:$16 sps:$4 sm:$0xff]   ;;  %v14557_v17 = vld [vmem:[#allocation10 + $0x984] ss:$16 sps:$4 sm:$0xff]  }
 0x4fd   : > { %6106 = vmatprep.subr.bf16.mxu1 %v14476_v36  ;;  %v14560_v36 = vld [vmem:[#allocation10 + $0x98c] ss:$16 sps:$4 sm:$0xff]  }
 0x4ff   : > { %6021 = vmatpush1.bf16.msra.mxu0 %v14471_v7  ;;  %v14555_v7 = vld [vmem:[#allocation10 + $0x980] ss:$16 sps:$4 sm:$0xff]  }
 0x500   : > { %6107 = vmatpush1.bf16.msra.mxu1 %v14474_v56  ;;  %6022 = vmatprep.subr.bf16.mxu0 %v14479_v58  ;;  %v14558_v56 = vld [vmem:[#allocation10 + $0x988] ss:$16 sps:$4 sm:$0xff]   ;;  %v14563_v58 = vld [vmem:[#allocation10 + $0x9a4] ss:$16 sps:$4 sm:$0xff]  }
 0x501   : > { %6108 = vmatprep.subr.bf16.mxu1 %v14482_v9  ;;  %v14566_v9 = vld [vmem:[#allocation10 + $0x9ac] ss:$16 sps:$4 sm:$0xff]  }
 0x503   : > { %6023 = vmatpush1.bf16.msra.mxu0 %v14477_v5  ;;  %v14561_v5 = vld [vmem:[#allocation10 + $0x9a0] ss:$16 sps:$4 sm:$0xff]  }
 0x504   : > { %6109 = vmatpush1.bf16.msra.mxu1 %v14480_v55  ;;  %6914 = vmatprep.subr.bf16.mxu0 %v14485_v52  ;;  %v14564_v55 = vld [vmem:[#allocation10 + $0x9a8] ss:$16 sps:$4 sm:$0xff]   ;;  %v14569_v52 = vld [vmem:[#allocation10 + $0x9c4] ss:$16 sps:$4 sm:$0xff]  }
 0x505   : > { %7000 = vmatprep.subr.bf16.mxu1 %v14488_v8  ;;  %v14572_v8 = vld [vmem:[#allocation10 + $0x9cc] ss:$16 sps:$4 sm:$0xff]  }
 0x506   : > { %12517 = vmatmul.mubr.msk.bf16.vlgmr.msra.gmra.mrb[36].mxu0 %vm16470_vm11, %v16413_v43 }
 0x507   : > { %12529 = vmatmul.mubr.msk.bf16.vlgmr.msra.gmra.mrb[36].mxu1 %vm16470_vm11, %v16413_v43  ;;  %6915 = vmatpush1.bf16.msra.mxu0 %v14483_v33  ;;  %v14506_v43 = vld [vmem:[#allocation10 + $0x86c] ss:$16 sps:$4 sm:$0xff]   ;;  %v14567_v33 = vld [vmem:[#allocation10 + $0x9c0] ss:$16 sps:$4 sm:$0xff]  }
 0x508   : > { %6946 = vmatprep.mubr.bf16.mxu0 %v16453_v23  ;;  %7001 = vmatpush1.bf16.msra.mxu1 %v14486_v63  ;;  %v14570_v63 = vld [vmem:[#allocation10 + $0x9c8] ss:$16 sps:$4 sm:$0xff]  }
 0x509   : > { %7032 = vmatprep.mubr.bf16.mxu1 %v16453_v23  ;;  %6916 = vmatprep.subr.bf16.mxu0 %v14491_v30  ;;  %v14507_v23 = vld [vmem:[#allocation10 + $0x880] ss:$16 sps:$4 sm:$0xff]   ;;  %v14575_v30 = vld [vmem:[#allocation10 + $0x9e4] ss:$16 sps:$4 sm:$0xff]  }
 0x50a   : > { %7002 = vmatprep.subr.bf16.mxu1 %v14494_v24  ;;  %v14578_v24 = vld [vmem:[#allocation10 + $0x9ec] ss:$16 sps:$4 sm:$0xff]  }
 0x50b   : > { %6917 = vmatpush1.bf16.msra.mxu0 %v14489_v14  ;;  %v14573_v14 = vld [vmem:[#allocation10 + $0x9e0] ss:$16 sps:$4 sm:$0xff]  }
 0x50c   : > { %7003 = vmatpush1.bf16.msra.mxu1 %v14492_v16  ;;  %6918 = vmatprep.subr.bf16.mxu0 %v14497_v13  ;;  %v14576_v16 = vld [vmem:[#allocation10 + $0x9e8] ss:$16 sps:$4 sm:$0xff]   ;;  %v14581_v13 = vld [vmem:[#allocation10 + $0xa04] ss:$16 sps:$4 sm:$0xff]  }
 0x50d   : > { %7004 = vmatprep.subr.bf16.mxu1 %v14500_v26  ;;  %v14584_v26 = vld [vmem:[#allocation10 + $0xa0c] ss:$16 sps:$4 sm:$0xff]  }
 0x50f   : > { %6919 = vmatpush1.bf16.msra.mxu0 %v14495_v25  ;;  %v14579_v25 = vld [vmem:[#allocation10 + $0xa00] ss:$16 sps:$4 sm:$0xff]  }
 0x510   : > { %7005 = vmatpush1.bf16.msra.mxu1 %v14498_v46  ;;  %6920 = vmatprep.subr.bf16.mxu0 %v14503_v62  ;;  %v14582_v46 = vld [vmem:[#allocation10 + $0xa08] ss:$16 sps:$4 sm:$0xff]   ;;  %v14587_v62 = vld [vmem:[#allocation10 + $0xa24] ss:$16 sps:$4 sm:$0xff]  }
 0x511   : > { %7006 = vmatprep.subr.bf16.mxu1 %v14506_v43  ;;  %v14590_v43 = vld [vmem:[#allocation10 + $0xa2c] ss:$16 sps:$4 sm:$0xff]  }
 0x513   : > { %6921 = vmatpush1.bf16.msra.mxu0 %v14501_v44  ;;  %v14585_v44 = vld [vmem:[#allocation10 + $0xa20] ss:$16 sps:$4 sm:$0xff]  }
 0x514   : > { %7007 = vmatpush1.bf16.msra.mxu1 %v14504_v61  ;;  %6922 = vmatprep.subr.bf16.mxu0 %v14509_v34  ;;  %v14588_v61 = vld [vmem:[#allocation10 + $0xa28] ss:$16 sps:$4 sm:$0xff]   ;;  %v14593_v34 = vld [vmem:[#allocation10 + $0xa44] ss:$16 sps:$4 sm:$0xff]  }
 0x515   : > { %7008 = vmatprep.subr.bf16.mxu1 %v14512_v39  ;;  %v14596_v39 = vld [vmem:[#allocation10 + $0xa4c] ss:$16 sps:$4 sm:$0xff]  }
 0x517   : > { %6923 = vmatpush1.bf16.msra.mxu0 %v14507_v23  ;;  %v14591_v23 = vld [vmem:[#allocation10 + $0xa40] ss:$16 sps:$4 sm:$0xff]  }
 0x518   : > { %7009 = vmatpush1.bf16.msra.mxu1 %v14510_v15  ;;  %6924 = vmatprep.subr.bf16.mxu0 %v14515_v12  ;;  %v14594_v15 = vld [vmem:[#allocation10 + $0xa48] ss:$16 sps:$4 sm:$0xff]   ;;  %v14599_v12 = vld [vmem:[#allocation10 + $0xa64] ss:$16 sps:$4 sm:$0xff]  }
 0x519   : > { %7010 = vmatprep.subr.bf16.mxu1 %v14518_v38  ;;  %v14597_v38 = vld [vmem:[#allocation10 + $0xa60] ss:$16 sps:$4 sm:$0xff]  }
 0x51b   : > { %6925 = vmatpush1.bf16.msra.mxu0 %v14513_v49  ;;  %v14600_v49 = vld [vmem:[#allocation10 + $0xa68] ss:$16 sps:$4 sm:$0xff]  }
 0x51c   : > { %7011 = vmatpush1.bf16.msra.mxu1 %v14516_v11  ;;  %6926 = vmatprep.subr.bf16.mxu0 %v14521_v50  ;;  %v14605_v11 = vld [vmem:[#allocation10 + $0xa84] ss:$16 sps:$4 sm:$0xff]   ;;  %v14608_v50 = vld [vmem:[#allocation10 + $0xa8c] ss:$16 sps:$4 sm:$0xff]  }
 0x51d   : > { %7012 = vmatprep.subr.bf16.mxu1 %v14524_v27  ;;  %v14606_v27 = vld [vmem:[#allocation10 + $0xa88] ss:$16 sps:$4 sm:$0xff]  }
 0x51f   : > { %6927 = vmatpush1.bf16.msra.mxu0 %v14519_v51  ;;  %v14611_v51 = vld [vmem:[#allocation10 + $0xaa4] ss:$16 sps:$4 sm:$0xff]  }
 0x520   : > { %7013 = vmatpush1.bf16.msra.mxu1 %v14522_v37  ;;  %6928 = vmatprep.subr.bf16.mxu0 %v14527_v41  ;;  %v14614_v37 = vld [vmem:[#allocation10 + $0xaac] ss:$16 sps:$4 sm:$0xff]   ;;  %v14609_v41 = vld [vmem:[#allocation10 + $0xaa0] ss:$16 sps:$4 sm:$0xff]  }
 0x521   : > { %7014 = vmatprep.subr.bf16.mxu1 %v14530_v28  ;;  %v14612_v28 = vld [vmem:[#allocation10 + $0xaa8] ss:$16 sps:$4 sm:$0xff]  }
 0x523   : > { %6929 = vmatpush1.bf16.msra.mxu0 %v14525_v57  ;;  %v14617_v57 = vld [vmem:[#allocation10 + $0xac4] ss:$16 sps:$4 sm:$0xff]  }
 0x524   : > { %7015 = vmatpush1.bf16.msra.mxu1 %v14528_v59  ;;  %6930 = vmatprep.subr.bf16.mxu0 %v14533_v22  ;;  %v14620_v59 = vld [vmem:[#allocation10 + $0xacc] ss:$16 sps:$4 sm:$0xff]   ;;  %v14615_v22 = vld [vmem:[#allocation10 + $0xac0] ss:$16 sps:$4 sm:$0xff]  }
 0x525   : > { %7016 = vmatprep.subr.bf16.mxu1 %v14536_v35  ;;  %v14618_v35 = vld [vmem:[#allocation10 + $0xac8] ss:$16 sps:$4 sm:$0xff]  }
 0x527   : > { %6931 = vmatpush1.bf16.msra.mxu0 %v14531_v18  ;;  %v14623_v18 = vld [vmem:[#allocation10 + $0xae4] ss:$16 sps:$4 sm:$0xff]  }
 0x528   : > { %7017 = vmatpush1.bf16.msra.mxu1 %v14534_v19  ;;  %6932 = vmatprep.subr.bf16.mxu0 %v14539_v60  ;;  %v14626_v19 = vld [vmem:[#allocation10 + $0xaec] ss:$16 sps:$4 sm:$0xff]   ;;  %v14621_v60 = vld [vmem:[#allocation10 + $0xae0] ss:$16 sps:$4 sm:$0xff]  }
 0x529   : > { %7018 = vmatprep.subr.bf16.mxu1 %v14542_v0  ;;  %v14624_v0 = vld [vmem:[#allocation10 + $0xae8] ss:$16 sps:$4 sm:$0xff]  }
 0x52b   : > { %6933 = vmatpush1.bf16.msra.mxu0 %v14537_v1  ;;  %v14629_v1 = vld [vmem:[#allocation10 + $0xb04] ss:$16 sps:$4 sm:$0xff]  }
 0x52c   : > { %7019 = vmatpush1.bf16.msra.mxu1 %v14540_v10  ;;  %6934 = vmatprep.subr.bf16.mxu0 %v14545_v53  ;;  %v14632_v10 = vld [vmem:[#allocation10 + $0xb0c] ss:$16 sps:$4 sm:$0xff]   ;;  %v14627_v53 = vld [vmem:[#allocation10 + $0xb00] ss:$16 sps:$4 sm:$0xff]  }
 0x52d   : > { %7020 = vmatprep.subr.bf16.mxu1 %v14548_v2  ;;  %v14630_v2 = vld [vmem:[#allocation10 + $0xb08] ss:$16 sps:$4 sm:$0xff]  }
 0x52f   : > { %6935 = vmatpush1.bf16.msra.mxu0 %v14543_v20  ;;  %v14635_v20 = vld [vmem:[#allocation10 + $0xb24] ss:$16 sps:$4 sm:$0xff]  }
 0x530   : > { %7021 = vmatpush1.bf16.msra.mxu1 %v14546_v32  ;;  %6936 = vmatprep.subr.bf16.mxu0 %v14551_v54  ;;  %v14638_v32 = vld [vmem:[#allocation10 + $0xb2c] ss:$16 sps:$4 sm:$0xff]   ;;  %v14633_v54 = vld [vmem:[#allocation10 + $0xb20] ss:$16 sps:$4 sm:$0xff]  }
 0x531   : > { %7022 = vmatprep.subr.bf16.mxu1 %v14554_v45  ;;  %v14636_v45 = vld [vmem:[#allocation10 + $0xb28] ss:$16 sps:$4 sm:$0xff]  }
 0x533   : > { %6937 = vmatpush1.bf16.msra.mxu0 %v14549_v31  ;;  %v14641_v31 = vld [vmem:[#allocation10 + $0xb44] ss:$16 sps:$4 sm:$0xff]  }
 0x534   : > { %7023 = vmatpush1.bf16.msra.mxu1 %v14552_v21  ;;  %6938 = vmatprep.subr.bf16.mxu0 %v14557_v17  ;;  %v14644_v21 = vld [vmem:[#allocation10 + $0xb4c] ss:$16 sps:$4 sm:$0xff]   ;;  %v14639_v17 = vld [vmem:[#allocation10 + $0xb40] ss:$16 sps:$4 sm:$0xff]  }
 0x535   : > { %7024 = vmatprep.subr.bf16.mxu1 %v14560_v36  ;;  %v14642_v36 = vld [vmem:[#allocation10 + $0xb48] ss:$16 sps:$4 sm:$0xff]  }
 0x537   : > { %6939 = vmatpush1.bf16.msra.mxu0 %v14555_v7  ;;  %v14647_v7 = vld [vmem:[#allocation10 + $0xb64] ss:$16 sps:$4 sm:$0xff]  }
 0x538   : > { %7025 = vmatpush1.bf16.msra.mxu1 %v14558_v56  ;;  %6940 = vmatprep.subr.bf16.mxu0 %v14563_v58  ;;  %v14650_v56 = vld [vmem:[#allocation10 + $0xb6c] ss:$16 sps:$4 sm:$0xff]   ;;  %v14645_v58 = vld [vmem:[#allocation10 + $0xb60] ss:$16 sps:$4 sm:$0xff]  }
 0x539   : > { %7026 = vmatprep.subr.bf16.mxu1 %v14566_v9  ;;  %v14648_v9 = vld [vmem:[#allocation10 + $0xb68] ss:$16 sps:$4 sm:$0xff]  }
 0x53b   : > { %6941 = vmatpush1.bf16.msra.mxu0 %v14561_v5  ;;  %v14653_v5 = vld [vmem:[#allocation10 + $0xb84] ss:$16 sps:$4 sm:$0xff]  }
 0x53c   : > { %7027 = vmatpush1.bf16.msra.mxu1 %v14564_v55  ;;  %6942 = vmatprep.subr.bf16.mxu0 %v14569_v52  ;;  %v14656_v55 = vld [vmem:[#allocation10 + $0xb8c] ss:$16 sps:$4 sm:$0xff]   ;;  %v14651_v52 = vld [vmem:[#allocation10 + $0xb80] ss:$16 sps:$4 sm:$0xff]  }
 0x53d   : > { %7028 = vmatprep.subr.bf16.mxu1 %v14572_v8  ;;  %v14654_v8 = vld [vmem:[#allocation10 + $0xb88] ss:$16 sps:$4 sm:$0xff]  }
 0x53f   : > { %6943 = vmatpush1.bf16.msra.mxu0 %v14567_v33  ;;  %v14659_v33 = vld [vmem:[#allocation10 + $0xba4] ss:$16 sps:$4 sm:$0xff]  }
 0x540   : > { %7029 = vmatpush1.bf16.msra.mxu1 %v14570_v63  ;;  %6944 = vmatprep.subr.bf16.mxu0 %v14575_v30  ;;  %v14662_v63 = vld [vmem:[#allocation10 + $0xbac] ss:$16 sps:$4 sm:$0xff]   ;;  %v14657_v30 = vld [vmem:[#allocation10 + $0xba0] ss:$16 sps:$4 sm:$0xff]  }
 0x541   : > { %7030 = vmatprep.subr.bf16.mxu1 %v14578_v24  ;;  %v14660_v24 = vld [vmem:[#allocation10 + $0xba8] ss:$16 sps:$4 sm:$0xff]  }
 0x543   : > { %6945 = vmatpush1.bf16.msra.mxu0 %v14573_v14  ;;  %v14665_v14 = vld [vmem:[#allocation10 + $0xbc4] ss:$16 sps:$4 sm:$0xff]  }
 0x544   : > { %7031 = vmatpush1.bf16.msra.mxu1 %v14576_v16  ;;  %6957 = vmatprep.subr.bf16.mxu0 %v14581_v13  ;;  %v14668_v16 = vld [vmem:[#allocation10 + $0xbcc] ss:$16 sps:$4 sm:$0xff]   ;;  %v14663_v13 = vld [vmem:[#allocation10 + $0xbc0] ss:$16 sps:$4 sm:$0xff]  }
 0x545   : > { %7043 = vmatprep.subr.bf16.mxu1 %v14584_v26  ;;  %v14666_v26 = vld [vmem:[#allocation10 + $0xbc8] ss:$16 sps:$4 sm:$0xff]  }
 0x546   : > { %6947 = vmatmul.mubr.bf16.vlgmr.msra.gmra.mrb[36].mxu0 %v16450_v29 }
 0x547   : > { %7033 = vmatmul.mubr.bf16.vlgmr.msra.gmra.mrb[36].mxu1 %v16450_v29  ;;  %6958 = vmatpush1.bf16.msra.mxu0 %v14579_v25  ;;  %v14602_v29 = vld [vmem:[#allocation10 + $0xa6c] ss:$16 sps:$4 sm:$0xff]   ;;  %v14671_v25 = vld [vmem:[#allocation10 + $0xbe4] ss:$16 sps:$4 sm:$0xff]  }
 0x548   : > { %6989 = vmatprep.mubr.bf16.mxu0 %v16461_v47  ;;  %7044 = vmatpush1.bf16.msra.mxu1 %v14582_v46  ;;  %v14674_v46 = vld [vmem:[#allocation10 + $0xbec] ss:$16 sps:$4 sm:$0xff]  }
 0x549   : > { %7075 = vmatprep.mubr.bf16.mxu1 %v16461_v47  ;;  %6959 = vmatprep.subr.bf16.mxu0 %v14587_v62  ;;  %v14603_v47 = vld [vmem:[#allocation10 + $0xa80] ss:$16 sps:$4 sm:$0xff]  }
 0x54a   : > { %7045 = vmatprep.subr.bf16.mxu1 %v14590_v43  ;;  %v14669_v62 = vld [vmem:[#allocation10 + $0xbe0] ss:$16 sps:$4 sm:$0xff]   ;;  %v14672_v43 = vld [vmem:[#allocation10 + $0xbe8] ss:$16 sps:$4 sm:$0xff]  }
 0x54b   : > { %6960 = vmatpush1.bf16.msra.mxu0 %v14585_v44  ;;  %v14677_v44 = vld [vmem:[#allocation13 + $0x4] ss:$16 sps:$4 sm:$0xff]  }
 0x54c   : > { %7046 = vmatpush1.bf16.msra.mxu1 %v14588_v61  ;;  %6961 = vmatprep.subr.bf16.mxu0 %v14593_v34  ;;  %v14680_v61 = vld [vmem:[#allocation13 + $0xc] ss:$16 sps:$4 sm:$0xff]   ;;  %v14675_v34 = vld [vmem:[#allocation13] ss:$16 sps:$4 sm:$0xff]  }
 0x54d   : > { %7047 = vmatprep.subr.bf16.mxu1 %v14596_v39  ;;  %v14678_v39 = vld [vmem:[#allocation13 + $0x8] ss:$16 sps:$4 sm:$0xff]  }
 0x54f   : > { %6962 = vmatpush1.bf16.msra.mxu0 %v14591_v23  ;;  %v14683_v23 = vld [vmem:[#allocation13 + $0x24] ss:$16 sps:$4 sm:$0xff]  }
 0x550   : > { %7048 = vmatpush1.bf16.msra.mxu1 %v14594_v15  ;;  %6963 = vmatprep.subr.bf16.mxu0 %v14599_v12  ;;  %v14686_v15 = vld [vmem:[#allocation13 + $0x2c] ss:$16 sps:$4 sm:$0xff]   ;;  %v14681_v12 = vld [vmem:[#allocation13 + $0x20] ss:$16 sps:$4 sm:$0xff]  }
 0x551   : > { %7049 = vmatprep.subr.bf16.mxu1 %v14602_v29  ;;  %v14684_v29 = vld [vmem:[#allocation13 + $0x28] ss:$16 sps:$4 sm:$0xff]  }
 0x553   : > { %6964 = vmatpush1.bf16.msra.mxu0 %v14597_v38  ;;  %v14689_v38 = vld [vmem:[#allocation13 + $0x44] ss:$16 sps:$4 sm:$0xff]  }
 0x554   : > { %7050 = vmatpush1.bf16.msra.mxu1 %v14600_v49  ;;  %6965 = vmatprep.subr.bf16.mxu0 %v14605_v11  ;;  %v14692_v49 = vld [vmem:[#allocation13 + $0x4c] ss:$16 sps:$4 sm:$0xff]   ;;  %v14687_v11 = vld [vmem:[#allocation13 + $0x40] ss:$16 sps:$4 sm:$0xff]  }
 0x555   : > { %7051 = vmatprep.subr.bf16.mxu1 %v14608_v50  ;;  %v14690_v50 = vld [vmem:[#allocation13 + $0x48] ss:$16 sps:$4 sm:$0xff]  }
 0x557   : > { %6966 = vmatpush1.bf16.msra.mxu0 %v14603_v47  ;;  %v14695_v47 = vld [vmem:[#allocation13 + $0x64] ss:$16 sps:$4 sm:$0xff]  }
 0x558   : > { %7052 = vmatpush1.bf16.msra.mxu1 %v14606_v27  ;;  %6967 = vmatprep.subr.bf16.mxu0 %v14611_v51  ;;  %v14698_v27 = vld [vmem:[#allocation13 + $0x6c] ss:$16 sps:$4 sm:$0xff]   ;;  %v14693_v51 = vld [vmem:[#allocation13 + $0x60] ss:$16 sps:$4 sm:$0xff]  }
 0x559   : > { %7053 = vmatprep.subr.bf16.mxu1 %v14614_v37  ;;  %v14701_v37 = vld [vmem:[#allocation13 + $0x84] ss:$16 sps:$4 sm:$0xff]  }
 0x55b   : > { %6968 = vmatpush1.bf16.msra.mxu0 %v14609_v41  ;;  %v14704_v41 = vld [vmem:[#allocation13 + $0x8c] ss:$16 sps:$4 sm:$0xff]  }
 0x55c   : > { %7054 = vmatpush1.bf16.msra.mxu1 %v14612_v28  ;;  %6969 = vmatprep.subr.bf16.mxu0 %v14617_v57  ;;  %v14699_v28 = vld [vmem:[#allocation13 + $0x80] ss:$16 sps:$4 sm:$0xff]   ;;  %v14702_v57 = vld [vmem:[#allocation13 + $0x88] ss:$16 sps:$4 sm:$0xff]  }
 0x55d   : > { %7055 = vmatprep.subr.bf16.mxu1 %v14620_v59  ;;  %v14707_v59 = vld [vmem:[#allocation13 + $0xa4] ss:$16 sps:$4 sm:$0xff]  }
 0x55f   : > { %6970 = vmatpush1.bf16.msra.mxu0 %v14615_v22  ;;  %v14710_v22 = vld [vmem:[#allocation13 + $0xac] ss:$16 sps:$4 sm:$0xff]  }
 0x560   : > { %7056 = vmatpush1.bf16.msra.mxu1 %v14618_v35  ;;  %6971 = vmatprep.subr.bf16.mxu0 %v14623_v18  ;;  %v14705_v35 = vld [vmem:[#allocation13 + $0xa0] ss:$16 sps:$4 sm:$0xff]   ;;  %v14708_v18 = vld [vmem:[#allocation13 + $0xa8] ss:$16 sps:$4 sm:$0xff]  }
 0x561   : > { %7057 = vmatprep.subr.bf16.mxu1 %v14626_v19  ;;  %v14713_v19 = vld [vmem:[#allocation13 + $0xc4] ss:$16 sps:$4 sm:$0xff]  }
 0x563   : > { %6972 = vmatpush1.bf16.msra.mxu0 %v14621_v60  ;;  %v14716_v60 = vld [vmem:[#allocation13 + $0xcc] ss:$16 sps:$4 sm:$0xff]  }
 0x564   : > { %7058 = vmatpush1.bf16.msra.mxu1 %v14624_v0  ;;  %6973 = vmatprep.subr.bf16.mxu0 %v14629_v1  ;;  %v14711_v0 = vld [vmem:[#allocation13 + $0xc0] ss:$16 sps:$4 sm:$0xff]   ;;  %v14714_v1 = vld [vmem:[#allocation13 + $0xc8] ss:$16 sps:$4 sm:$0xff]  }
 0x565   : > { %7059 = vmatprep.subr.bf16.mxu1 %v14632_v10  ;;  %v14719_v10 = vld [vmem:[#allocation13 + $0xe4] ss:$16 sps:$4 sm:$0xff]  }
 0x567   : > { %6974 = vmatpush1.bf16.msra.mxu0 %v14627_v53  ;;  %v14722_v53 = vld [vmem:[#allocation13 + $0xec] ss:$16 sps:$4 sm:$0xff]  }
 0x568   : > { %7060 = vmatpush1.bf16.msra.mxu1 %v14630_v2  ;;  %6975 = vmatprep.subr.bf16.mxu0 %v14635_v20  ;;  %v14717_v2 = vld [vmem:[#allocation13 + $0xe0] ss:$16 sps:$4 sm:$0xff]   ;;  %v14720_v20 = vld [vmem:[#allocation13 + $0xe8] ss:$16 sps:$4 sm:$0xff]  }
 0x569   : > { %7061 = vmatprep.subr.bf16.mxu1 %v14638_v32  ;;  %v14725_v32 = vld [vmem:[#allocation13 + $0x104] ss:$16 sps:$4 sm:$0xff]  }
 0x56b   : > { %6976 = vmatpush1.bf16.msra.mxu0 %v14633_v54  ;;  %v14728_v54 = vld [vmem:[#allocation13 + $0x10c] ss:$16 sps:$4 sm:$0xff]  }
 0x56c   : > { %7062 = vmatpush1.bf16.msra.mxu1 %v14636_v45  ;;  %6977 = vmatprep.subr.bf16.mxu0 %v14641_v31  ;;  %v14723_v45 = vld [vmem:[#allocation13 + $0x100] ss:$16 sps:$4 sm:$0xff]   ;;  %v14726_v31 = vld [vmem:[#allocation13 + $0x108] ss:$16 sps:$4 sm:$0xff]  }
 0x56d   : > { %7063 = vmatprep.subr.bf16.mxu1 %v14644_v21  ;;  %v14731_v21 = vld [vmem:[#allocation13 + $0x124] ss:$16 sps:$4 sm:$0xff]  }
 0x56f   : > { %6978 = vmatpush1.bf16.msra.mxu0 %v14639_v17  ;;  %v14734_v17 = vld [vmem:[#allocation13 + $0x12c] ss:$16 sps:$4 sm:$0xff]  }
 0x570   : > { %7064 = vmatpush1.bf16.msra.mxu1 %v14642_v36  ;;  %6979 = vmatprep.subr.bf16.mxu0 %v14647_v7  ;;  %v14729_v36 = vld [vmem:[#allocation13 + $0x120] ss:$16 sps:$4 sm:$0xff]   ;;  %v14732_v7 = vld [vmem:[#allocation13 + $0x128] ss:$16 sps:$4 sm:$0xff]  }
 0x571   : > { %7065 = vmatprep.subr.bf16.mxu1 %v14650_v56  ;;  %v14737_v56 = vld [vmem:[#allocation13 + $0x144] ss:$16 sps:$4 sm:$0xff]  }
 0x573   : > { %6980 = vmatpush1.bf16.msra.mxu0 %v14645_v58  ;;  %v14740_v58 = vld [vmem:[#allocation13 + $0x14c] ss:$16 sps:$4 sm:$0xff]  }
 0x574   : > { %7066 = vmatpush1.bf16.msra.mxu1 %v14648_v9  ;;  %6981 = vmatprep.subr.bf16.mxu0 %v14653_v5  ;;  %v14735_v9 = vld [vmem:[#allocation13 + $0x140] ss:$16 sps:$4 sm:$0xff]   ;;  %v14738_v5 = vld [vmem:[#allocation13 + $0x148] ss:$16 sps:$4 sm:$0xff]  }
 0x575   : > { %7067 = vmatprep.subr.bf16.mxu1 %v14656_v55  ;;  %v14743_v55 = vld [vmem:[#allocation13 + $0x164] ss:$16 sps:$4 sm:$0xff]  }
 0x577   : > { %6982 = vmatpush1.bf16.msra.mxu0 %v14651_v52  ;;  %v14746_v52 = vld [vmem:[#allocation13 + $0x16c] ss:$16 sps:$4 sm:$0xff]  }
 0x578   : > { %7068 = vmatpush1.bf16.msra.mxu1 %v14654_v8  ;;  %6983 = vmatprep.subr.bf16.mxu0 %v14659_v33  ;;  %v14741_v8 = vld [vmem:[#allocation13 + $0x160] ss:$16 sps:$4 sm:$0xff]   ;;  %v14744_v33 = vld [vmem:[#allocation13 + $0x168] ss:$16 sps:$4 sm:$0xff]  }
 0x579   : > { %7069 = vmatprep.subr.bf16.mxu1 %v14662_v63  ;;  %v14749_v63 = vld [vmem:[#allocation13 + $0x184] ss:$16 sps:$4 sm:$0xff]  }
 0x57b   : > { %6984 = vmatpush1.bf16.msra.mxu0 %v14657_v30  ;;  %v14752_v30 = vld [vmem:[#allocation13 + $0x18c] ss:$16 sps:$4 sm:$0xff]  }
 0x57c   : > { %7070 = vmatpush1.bf16.msra.mxu1 %v14660_v24  ;;  %6985 = vmatprep.subr.bf16.mxu0 %v14665_v14  ;;  %v14747_v24 = vld [vmem:[#allocation13 + $0x180] ss:$16 sps:$4 sm:$0xff]   ;;  %v14750_v14 = vld [vmem:[#allocation13 + $0x188] ss:$16 sps:$4 sm:$0xff]  }
 0x57d   : > { %7071 = vmatprep.subr.bf16.mxu1 %v14668_v16  ;;  %v14755_v16 = vld [vmem:[#allocation13 + $0x1a4] ss:$16 sps:$4 sm:$0xff]  }
 0x57f   : > { %6986 = vmatpush1.bf16.msra.mxu0 %v14663_v13  ;;  %v14758_v13 = vld [vmem:[#allocation13 + $0x1ac] ss:$16 sps:$4 sm:$0xff]  }
 0x580   : > { %7072 = vmatpush1.bf16.msra.mxu1 %v14666_v26  ;;  %6987 = vmatprep.subr.bf16.mxu0 %v14671_v25  ;;  %v14753_v26 = vld [vmem:[#allocation13 + $0x1a0] ss:$16 sps:$4 sm:$0xff]   ;;  %v14756_v25 = vld [vmem:[#allocation13 + $0x1a8] ss:$16 sps:$4 sm:$0xff]  }
 0x581   : > { %7073 = vmatprep.subr.bf16.mxu1 %v14674_v46  ;;  %v14761_v46 = vld [vmem:[#allocation13 + $0x1c4] ss:$16 sps:$4 sm:$0xff]  }
 0x583   : > { %6988 = vmatpush1.bf16.msra.mxu0 %v14669_v62  ;;  %v14764_v62 = vld [vmem:[#allocation13 + $0x1cc] ss:$16 sps:$4 sm:$0xff]  }
 0x584   : > { %7074 = vmatpush1.bf16.msra.mxu1 %v14672_v43  ;;  %7926 = vmatprep.subr.bf16.mxu0 %v14677_v44  ;;  %v14759_v43 = vld [vmem:[#allocation13 + $0x1c0] ss:$16 sps:$4 sm:$0xff]   ;;  %v14762_v44 = vld [vmem:[#allocation13 + $0x1c8] ss:$16 sps:$4 sm:$0xff]  }
 0x585   : > { %8012 = vmatprep.subr.bf16.mxu1 %v14680_v61  ;;  %v14767_v61 = vld [vmem:[#allocation13 + $0x1e4] ss:$16 sps:$4 sm:$0xff]  }
 0x586   : > { %6990 = vmatmul.mubr.bf16.vlgmr.msra.gmra.mrb[36].mxu0 %v16464_v48 }
 0x587   : > { %7076 = vmatmul.mubr.bf16.vlgmr.msra.gmra.mrb[36].mxu1 %v16464_v48  ;;  %7927 = vmatpush1.bf16.msra.mxu0 %v14675_v34  ;;  %v14696_v48 = vld [vmem:[#allocation13 + $0x68] ss:$16 sps:$4 sm:$0xff]   ;;  %v14770_v34 = vld [vmem:[#allocation13 + $0x1ec] ss:$16 sps:$4 sm:$0xff]  }
 0x588   : > { %8013 = vmatpush1.bf16.msra.mxu1 %v14678_v39  ;;  %7928 = vmatprep.subr.bf16.mxu0 %v14683_v23  ;;  %v14765_v39 = vld [vmem:[#allocation13 + $0x1e0] ss:$16 sps:$4 sm:$0xff]   ;;  %v14768_v23 = vld [vmem:[#allocation13 + $0x1e8] ss:$16 sps:$4 sm:$0xff]  }
 0x589   : > { %8014 = vmatprep.subr.bf16.mxu1 %v14686_v15  ;;  %v14773_v15 = vld [vmem:[#allocation13 + $0x204] ss:$16 sps:$4 sm:$0xff]  }
 0x58b   : > { %7929 = vmatpush1.bf16.msra.mxu0 %v14681_v12  ;;  %v14776_v12 = vld [vmem:[#allocation13 + $0x20c] ss:$16 sps:$4 sm:$0xff]  }
 0x58c   : > { %8015 = vmatpush1.bf16.msra.mxu1 %v14684_v29  ;;  %7930 = vmatprep.subr.bf16.mxu0 %v14689_v38  ;;  %v7094_v29 = vld [vmem:[#allocation11] sm:$0xf] }
 0x58d   : > { %8016 = vmatprep.subr.bf16.mxu1 %v14692_v49  ;;  %v7099_v38 = vrot.slane %v7094_v29, %v16129_v4  ;;  %v7107_v49 = vrot.slane %v7094_v29, %v16160_v40 }
 0x58f   : > { %7931 = vmatpush1.bf16.msra.mxu0 %v14687_v11  ;;  %v7103_v11 = vrot.slane %v7094_v29, %v16132_v6 }
 0x590   : > { %8017 = vmatpush1.bf16.msra.mxu1 %v14690_v50  ;;  %7932 = vmatprep.subr.bf16.mxu0 %v14695_v47  ;;  %v7111_v50 = vrot.slane %v7094_v29, %v16166_v42  ;;  %v14815_v29 = vld [vmem:[#allocation13 + $0x2e4] ss:$16 sps:$4 sm:$0xff]  }
 0x591   : > { %8018 = vmatprep.subr.bf16.mxu1 %v14698_v27 }
 0x593   : > { %7933 = vmatpush1.bf16.msra.mxu0 %v14693_v51 }
 0x594   : > { %8019 = vmatpush1.bf16.msra.mxu1 %v14696_v48  ;;  %7934 = vmatprep.subr.bf16.mxu0 %v14701_v37 }
 0x595   : > { %8020 = vmatprep.subr.bf16.mxu1 %v14704_v41 }
 0x597   : > { %7935 = vmatpush1.bf16.msra.mxu0 %v14699_v28 }
 0x598   : > { %8021 = vmatpush1.bf16.msra.mxu1 %v14702_v57  ;;  %7936 = vmatprep.subr.bf16.mxu0 %v14707_v59 }
 0x599   : > { %8022 = vmatprep.subr.bf16.mxu1 %v14710_v22 }
 0x59b   : > { %7937 = vmatpush1.bf16.msra.mxu0 %v14705_v35 }
 0x59c   : > { %8023 = vmatpush1.bf16.msra.mxu1 %v14708_v18  ;;  %7938 = vmatprep.subr.bf16.mxu0 %v14713_v19 }
 0x59d   : > { %8024 = vmatprep.subr.bf16.mxu1 %v14716_v60 }
 0x59f   : > { %7939 = vmatpush1.bf16.msra.mxu0 %v14711_v0 }
 0x5a0   : > { %8025 = vmatpush1.bf16.msra.mxu1 %v14714_v1  ;;  %7940 = vmatprep.subr.bf16.mxu0 %v14719_v10 }
 0x5a1   : > { %8026 = vmatprep.subr.bf16.mxu1 %v14722_v53 }
 0x5a3   : > { %7941 = vmatpush1.bf16.msra.mxu0 %v14717_v2 }
 0x5a4   : > { %8027 = vmatpush1.bf16.msra.mxu1 %v14720_v20  ;;  %7942 = vmatprep.subr.bf16.mxu0 %v14725_v32 }
 0x5a5   : > { %8028 = vmatprep.subr.bf16.mxu1 %v14728_v54 }
 0x5a7   : > { %7943 = vmatpush1.bf16.msra.mxu0 %v14723_v45 }
 0x5a8   : > { %8029 = vmatpush1.bf16.msra.mxu1 %v14726_v31  ;;  %7944 = vmatprep.subr.bf16.mxu0 %v14731_v21 }
 0x5a9   : > { %8030 = vmatprep.subr.bf16.mxu1 %v14734_v17 }
 0x5ab   : > { %7945 = vmatpush1.bf16.msra.mxu0 %v14729_v36 }
 0x5ac   : > { %8031 = vmatpush1.bf16.msra.mxu1 %v14732_v7  ;;  %7946 = vmatprep.subr.bf16.mxu0 %v14737_v56  ;;  %v14771_v7 = vld [vmem:[#allocation13 + $0x200] ss:$16 sps:$4 sm:$0xff]   ;;  %v14774_v56 = vld [vmem:[#allocation13 + $0x208] ss:$16 sps:$4 sm:$0xff]  }
 0x5ad   : > { %8032 = vmatprep.subr.bf16.mxu1 %v14740_v58 }
 0x5af   : > { %7947 = vmatpush1.bf16.msra.mxu0 %v14735_v9  ;;  %v14779_v9 = vld [vmem:[#allocation13 + $0x224] ss:$16 sps:$4 sm:$0xff]  }
 0x5b0   : > { %8033 = vmatpush1.bf16.msra.mxu1 %v14738_v5  ;;  %7948 = vmatprep.subr.bf16.mxu0 %v14743_v55  ;;  %v14782_v5 = vld [vmem:[#allocation13 + $0x22c] ss:$16 sps:$4 sm:$0xff]   ;;  %v14777_v55 = vld [vmem:[#allocation13 + $0x220] ss:$16 sps:$4 sm:$0xff]  }
 0x5b1   : > { %8034 = vmatprep.subr.bf16.mxu1 %v14746_v52  ;;  %v14780_v52 = vld [vmem:[#allocation13 + $0x228] ss:$16 sps:$4 sm:$0xff]  }
 0x5b3   : > { %7949 = vmatpush1.bf16.msra.mxu0 %v14741_v8  ;;  %v14785_v8 = vld [vmem:[#allocation13 + $0x244] ss:$16 sps:$4 sm:$0xff]  }
 0x5b4   : > { %8035 = vmatpush1.bf16.msra.mxu1 %v14744_v33  ;;  %7950 = vmatprep.subr.bf16.mxu0 %v14749_v63  ;;  %v14788_v33 = vld [vmem:[#allocation13 + $0x24c] ss:$16 sps:$4 sm:$0xff]   ;;  %v14783_v63 = vld [vmem:[#allocation13 + $0x240] ss:$16 sps:$4 sm:$0xff]  }
 0x5b5   : > { %8036 = vmatprep.subr.bf16.mxu1 %v14752_v30  ;;  %v14786_v30 = vld [vmem:[#allocation13 + $0x248] ss:$16 sps:$4 sm:$0xff]  }
 0x5b7   : > { %7951 = vmatpush1.bf16.msra.mxu0 %v14747_v24  ;;  %v14791_v24 = vld [vmem:[#allocation13 + $0x264] ss:$16 sps:$4 sm:$0xff]  }
 0x5b8   : > { %8037 = vmatpush1.bf16.msra.mxu1 %v14750_v14  ;;  %7952 = vmatprep.subr.bf16.mxu0 %v14755_v16  ;;  %v14794_v14 = vld [vmem:[#allocation13 + $0x26c] ss:$16 sps:$4 sm:$0xff]   ;;  %v14789_v16 = vld [vmem:[#allocation13 + $0x260] ss:$16 sps:$4 sm:$0xff]  }
 0x5b9   : > { %8038 = vmatprep.subr.bf16.mxu1 %v14758_v13  ;;  %v14792_v13 = vld [vmem:[#allocation13 + $0x268] ss:$16 sps:$4 sm:$0xff]  }
 0x5bb   : > { %7953 = vmatpush1.bf16.msra.mxu0 %v14753_v26  ;;  %v14797_v26 = vld [vmem:[#allocation13 + $0x284] ss:$16 sps:$4 sm:$0xff]  }
 0x5bc   : > { %8039 = vmatpush1.bf16.msra.mxu1 %v14756_v25  ;;  %7954 = vmatprep.subr.bf16.mxu0 %v14761_v46  ;;  %v14800_v25 = vld [vmem:[#allocation13 + $0x28c] ss:$16 sps:$4 sm:$0xff]   ;;  %v14795_v46 = vld [vmem:[#allocation13 + $0x280] ss:$16 sps:$4 sm:$0xff]  }
 0x5bd   : > { %8040 = vmatprep.subr.bf16.mxu1 %v14764_v62  ;;  %v14798_v62 = vld [vmem:[#allocation13 + $0x288] ss:$16 sps:$4 sm:$0xff]  }
 0x5bf   : > { %7955 = vmatpush1.bf16.msra.mxu0 %v14759_v43  ;;  %v14803_v43 = vld [vmem:[#allocation13 + $0x2a4] ss:$16 sps:$4 sm:$0xff]  }
 0x5c0   : > { %8041 = vmatpush1.bf16.msra.mxu1 %v14762_v44  ;;  %7956 = vmatprep.subr.bf16.mxu0 %v14767_v61  ;;  %v14806_v44 = vld [vmem:[#allocation13 + $0x2ac] ss:$16 sps:$4 sm:$0xff]   ;;  %v14801_v61 = vld [vmem:[#allocation13 + $0x2a0] ss:$16 sps:$4 sm:$0xff]  }
 0x5c1   : > { %8042 = vmatprep.subr.bf16.mxu1 %v14770_v34  ;;  %v14804_v34 = vld [vmem:[#allocation13 + $0x2a8] ss:$16 sps:$4 sm:$0xff]  }
 0x5c3   : > { %7957 = vmatpush1.bf16.msra.mxu0 %v14765_v39  ;;  %v14809_v39 = vld [vmem:[#allocation13 + $0x2c4] ss:$16 sps:$4 sm:$0xff]  }
 0x5c4   : > { %8043 = vmatpush1.bf16.msra.mxu1 %v14768_v23  ;;  %7969 = vmatprep.subr.bf16.mxu0 %v14773_v15  ;;  %v14812_v23 = vld [vmem:[#allocation13 + $0x2cc] ss:$16 sps:$4 sm:$0xff]   ;;  %v14807_v15 = vld [vmem:[#allocation13 + $0x2c0] ss:$16 sps:$4 sm:$0xff]  }
 0x5c5   : > { %8055 = vmatprep.subr.bf16.mxu1 %v14776_v12  ;;  %v14810_v12 = vld [vmem:[#allocation13 + $0x2c8] ss:$16 sps:$4 sm:$0xff]  }
 0x659   : > { %v6991_v47 = vpop.f32.mrb[36].mxu0 }
 0x65a   : > { %v7116_v27 = vadd.f32 %v7099_v38, %v6991_v47  ;;  %v7077_v51 = vpop.f32.mrb[36].mxu1  ;;  %v6993_v48 = vpop.f32.mrb[37].mxu0  ;;  %v14824_v47 = vld [vmem:[#allocation13 + $0x30c] ss:$16 sps:$4 sm:$0xff]  }
 0x65b   : > { %v7118_v37 = vadd.f32 %v7107_v49, %v7077_v51  ;;  %v7117_v41 = vadd.f32 %v7103_v11, %v6993_v48  ;;  %v7079_v28 = vpop.f32.mrb[37].mxu1  ;;  %v6995_v57 = vpop.f32.mrb[38].mxu0  ;;  %v14822_v51 = vld [vmem:[#allocation13 + $0x308] ss:$16 sps:$4 sm:$0xff]   ;;  %v14827_v48 = vld [vmem:[#allocation13 + $0x324] ss:$16 sps:$4 sm:$0xff]  }
 0x65c   : > { %v7119_v59 = vadd.f32 %v7111_v50, %v7079_v28  ;;  %v7120_v22 = vadd.f32 %v7099_v38, %v6995_v57  ;;  %v7081_v35 = vpop.f32.mrb[38].mxu1  ;;  %v6997_v18 = vpop.f32.mrb[39].mxu0  ;;  %v7124_v1 = vmax.f32 %v7116_v27, 0.0  ;;  %v14818_v38 = vld [vmem:[#allocation13 + $0x2ec] ss:$16 sps:$4 sm:$0xff]  }
 0x65d   : > { %v7122_v19 = vadd.f32 %v7107_v49, %v7081_v35  ;;  %v7121_v60 = vadd.f32 %v7103_v11, %v6997_v18  ;;  %v7083_v0 = vpop.f32.mrb[39].mxu1  ;;  %v7126_v2 = vmax.f32 %v7118_v37, 0.0  ;;  %v7125_v20 = vmax.f32 %v7117_v41, 0.0  ;;  %v14813_v49 = vld [vmem:[#allocation13 + $0x2e0] ss:$16 sps:$4 sm:$0xff]  }
 0x65e   : > { %v7128_v10 = vmax.f32 %v7120_v22, 0.0  ;;  %v7123_v53 = vadd.f32 %v7111_v50, %v7083_v0  ;;  %v7127_v45 = vmax.f32 %v7119_v59, 0.0  ;;  %v14816_v11 = vld [vmem:[#allocation13 + $0x2e8] ss:$16 sps:$4 sm:$0xff]   ;;  %v14821_v50 = vld [vmem:[#allocation13 + $0x304] ss:$16 sps:$4 sm:$0xff]  }
 0x65f   : > { %v7130_v32 = vmax.f32 %v7122_v19, 0.0  ;;  %v7129_v54 = vmax.f32 %v7121_v60, 0.0  ;;  %v14819_v27 = vld [vmem:[#allocation13 + $0x300] ss:$16 sps:$4 sm:$0xff]   ;;  %v14830_v37 = vld [vmem:[#allocation13 + $0x32c] ss:$16 sps:$4 sm:$0xff]  }
 0x660   : > { %v7132_v31 = vpack.c.bf16 %v7128_v10, %v7124_v1  ;;  %v7131_v21 = vmax.f32 %v7123_v53, 0.0  ;;  %v14825_v41 = vld [vmem:[#allocation13 + $0x320] ss:$16 sps:$4 sm:$0xff]   ;;  %v14828_v28 = vld [vmem:[#allocation13 + $0x328] ss:$16 sps:$4 sm:$0xff]  }
 0x661   : > { %v16512_v17 = vpack.c.bf16 %v7130_v32, %v7126_v2  ;;  %v7133_v36 = vpack.c.bf16 %v7129_v54, %v7125_v20  ;;  %v14833_v57 = vld [vmem:[#allocation13 + $0x344] ss:$16 sps:$4 sm:$0xff]   ;;  %v14836_v59 = vld [vmem:[#allocation13 + $0x34c] ss:$16 sps:$4 sm:$0xff]   ;;  %v14831_v22 = vld [vmem:[#allocation13 + $0x340] ss:$16 sps:$4 sm:$0xff]  }
 0x662   : > { %v7135_v58 = vpack.c.bf16 %v7131_v21, %v7127_v45  ;;  %v14834_v35 = vld [vmem:[#allocation13 + $0x348] ss:$16 sps:$4 sm:$0xff]   ;;  %v14839_v18 = vld [vmem:[#allocation13 + $0x364] ss:$16 sps:$4 sm:$0xff]   ;;  %v14842_v19 = vld [vmem:[#allocation13 + $0x36c] ss:$16 sps:$4 sm:$0xff]  }
 0x663   : > { %7958 = vmatprep.mubr.bf16.mxu0 %v7133_v36  ;;  %8044 = vmatprep.mubr.bf16.mxu1 %v7133_v36  ;;  %v14837_v60 = vld [vmem:[#allocation13 + $0x360] ss:$16 sps:$4 sm:$0xff]   ;;  %v14840_v0 = vld [vmem:[#allocation13 + $0x368] ss:$16 sps:$4 sm:$0xff]   ;;  %v14845_v1 = vld [vmem:[#allocation13 + $0x384] ss:$16 sps:$4 sm:$0xff]  }
 0x664   : > { %7959 = vmatmul.mubr.bf16.vlgmr.msra.gmra.mrb[40].mxu0 %v7132_v31  ;;  %8045 = vmatmul.mubr.bf16.vlgmr.msra.gmra.mrb[40].mxu1 %v7132_v31  ;;  %v14848_v10 = vld [vmem:[#allocation13 + $0x38c] ss:$16 sps:$4 sm:$0xff]   ;;  %v14843_v53 = vld [vmem:[#allocation13 + $0x380] ss:$16 sps:$4 sm:$0xff]   ;;  %v14846_v2 = vld [vmem:[#allocation13 + $0x388] ss:$16 sps:$4 sm:$0xff]  }
 0x665   : > { %7970 = vmatpush1.bf16.msra.mxu0 %v14771_v7  ;;  %8056 = vmatpush1.bf16.msra.mxu1 %v14774_v56  ;;  %v14851_v20 = vld [vmem:[#allocation13 + $0x3a4] ss:$16 sps:$4 sm:$0xff]   ;;  %v14854_v32 = vld [vmem:[#allocation13 + $0x3ac] ss:$16 sps:$4 sm:$0xff]   ;;  %v14849_v54 = vld [vmem:[#allocation13 + $0x3a0] ss:$16 sps:$4 sm:$0xff]  }
 0x666   : > { %8001 = vmatprep.mubr.bf16.mxu0 %v7135_v58  ;;  %8087 = vmatprep.mubr.bf16.mxu1 %v7135_v58  ;;  %v14852_v45 = vld [vmem:[#allocation13 + $0x3a8] ss:$16 sps:$4 sm:$0xff]   ;;  %v14857_v31 = vld [vmem:[#allocation13 + $0x3c4] ss:$16 sps:$4 sm:$0xff]   ;;  %v14860_v21 = vld [vmem:[#allocation13 + $0x3cc] ss:$16 sps:$4 sm:$0xff]  }
 0x667   : > { %7971 = vmatprep.subr.bf16.mxu0 %v14779_v9  ;;  %8057 = vmatprep.subr.bf16.mxu1 %v14782_v5  ;;  %v14855_v36 = vld [vmem:[#allocation13 + $0x3c0] ss:$16 sps:$4 sm:$0xff]   ;;  %v14858_v7 = vld [vmem:[#allocation13 + $0x3c8] ss:$16 sps:$4 sm:$0xff]   ;;  %v14863_v56 = vld [vmem:[#allocation13 + $0x3e4] ss:$16 sps:$4 sm:$0xff]  }
 0x668   : > { %v14866_v58 = vld [vmem:[#allocation13 + $0x3ec] ss:$16 sps:$4 sm:$0xff]   ;;  %v14861_v9 = vld [vmem:[#allocation13 + $0x3e0] ss:$16 sps:$4 sm:$0xff]   ;;  %v14864_v5 = vld [vmem:[#allocation13 + $0x3e8] ss:$16 sps:$4 sm:$0xff]  }
 0x669   : > { %7972 = vmatpush1.bf16.msra.mxu0 %v14777_v55  ;;  %8058 = vmatpush1.bf16.msra.mxu1 %v14780_v52  ;;  %v14869_v55 = vld [vmem:[#allocation16 + $0x4] ss:$48 sps:$4 sm:$0xff]   ;;  %v14872_v52 = vld [vmem:[#allocation16 + $0xc] ss:$48 sps:$4 sm:$0xff]  }
 0x66a   : > { %7973 = vmatprep.subr.bf16.mxu0 %v14785_v8  ;;  %8059 = vmatprep.subr.bf16.mxu1 %v14788_v33  ;;  %v14867_v8 = vld [vmem:[#allocation16] ss:$48 sps:$4 sm:$0xff]   ;;  %v14870_v33 = vld [vmem:[#allocation16 + $0x8] ss:$48 sps:$4 sm:$0xff]  }
 0x66d   : > { %7974 = vmatpush1.bf16.msra.mxu0 %v14783_v63  ;;  %8060 = vmatpush1.bf16.msra.mxu1 %v14786_v30  ;;  %v14875_v63 = vld [vmem:[#allocation16 + $0x64] ss:$48 sps:$4 sm:$0xff]   ;;  %v14878_v30 = vld [vmem:[#allocation16 + $0x6c] ss:$48 sps:$4 sm:$0xff]  }
 0x66e   : > { %7975 = vmatprep.subr.bf16.mxu0 %v14791_v24  ;;  %8061 = vmatprep.subr.bf16.mxu1 %v14794_v14  ;;  %v14873_v24 = vld [vmem:[#allocation16 + $0x60] ss:$48 sps:$4 sm:$0xff]   ;;  %v14876_v14 = vld [vmem:[#allocation16 + $0x68] ss:$48 sps:$4 sm:$0xff]  }
 0x671   : > { %7976 = vmatpush1.bf16.msra.mxu0 %v14789_v16  ;;  %8062 = vmatpush1.bf16.msra.mxu1 %v14792_v13  ;;  %v14881_v16 = vld [vmem:[#allocation16 + $0xc4] ss:$48 sps:$4 sm:$0xff]   ;;  %v14884_v13 = vld [vmem:[#allocation16 + $0xcc] ss:$48 sps:$4 sm:$0xff]  }
 0x672   : > { %7977 = vmatprep.subr.bf16.mxu0 %v14797_v26  ;;  %8063 = vmatprep.subr.bf16.mxu1 %v14800_v25  ;;  %v14879_v26 = vld [vmem:[#allocation16 + $0xc0] ss:$48 sps:$4 sm:$0xff]   ;;  %v14882_v25 = vld [vmem:[#allocation16 + $0xc8] ss:$48 sps:$4 sm:$0xff]  }
 0x675   : > { %7978 = vmatpush1.bf16.msra.mxu0 %v14795_v46  ;;  %8064 = vmatpush1.bf16.msra.mxu1 %v14798_v62  ;;  %v14887_v46 = vld [vmem:[#allocation16 + $0x124] ss:$48 sps:$4 sm:$0xff]   ;;  %v14890_v62 = vld [vmem:[#allocation16 + $0x12c] ss:$48 sps:$4 sm:$0xff]  }
 0x676   : > { %7979 = vmatprep.subr.bf16.mxu0 %v14803_v43  ;;  %8065 = vmatprep.subr.bf16.mxu1 %v14806_v44  ;;  %v14885_v43 = vld [vmem:[#allocation16 + $0x120] ss:$48 sps:$4 sm:$0xff]   ;;  %v14893_v44 = vld [vmem:[#allocation16 + $0x184] ss:$48 sps:$4 sm:$0xff]  }
 0x679   : > { %7980 = vmatpush1.bf16.msra.mxu0 %v14801_v61  ;;  %8066 = vmatpush1.bf16.msra.mxu1 %v14804_v34  ;;  %v14896_v61 = vld [vmem:[#allocation16 + $0x18c] ss:$48 sps:$4 sm:$0xff]   ;;  %v14891_v34 = vld [vmem:[#allocation16 + $0x180] ss:$48 sps:$4 sm:$0xff]  }
 0x67a   : > { %7981 = vmatprep.subr.bf16.mxu0 %v14809_v39  ;;  %8067 = vmatprep.subr.bf16.mxu1 %v14812_v23  ;;  %v14894_v39 = vld [vmem:[#allocation16 + $0x188] ss:$48 sps:$4 sm:$0xff]   ;;  %v14899_v23 = vld [vmem:[#allocation16 + $0x1e4] ss:$48 sps:$4 sm:$0xff]  }
 0x67d   : > { %7982 = vmatpush1.bf16.msra.mxu0 %v14807_v15  ;;  %8068 = vmatpush1.bf16.msra.mxu1 %v14810_v12  ;;  %v14902_v15 = vld [vmem:[#allocation16 + $0x1ec] ss:$48 sps:$4 sm:$0xff]   ;;  %v14897_v12 = vld [vmem:[#allocation16 + $0x1e0] ss:$48 sps:$4 sm:$0xff]  }
 0x67e   : > { %7983 = vmatprep.subr.bf16.mxu0 %v14815_v29  ;;  %8069 = vmatprep.subr.bf16.mxu1 %v14818_v38  ;;  %v14900_v29 = vld [vmem:[#allocation16 + $0x1e8] ss:$48 sps:$4 sm:$0xff]   ;;  %v14905_v38 = vld [vmem:[#allocation16 + $0x244] ss:$48 sps:$4 sm:$0xff]  }
 0x681   : > { %7984 = vmatpush1.bf16.msra.mxu0 %v14813_v49  ;;  %8070 = vmatpush1.bf16.msra.mxu1 %v14816_v11  ;;  %v14908_v49 = vld [vmem:[#allocation16 + $0x24c] ss:$48 sps:$4 sm:$0xff]   ;;  %v14903_v11 = vld [vmem:[#allocation16 + $0x240] ss:$48 sps:$4 sm:$0xff]  }
 0x682   : > { %7985 = vmatprep.subr.bf16.mxu0 %v14821_v50  ;;  %8071 = vmatprep.subr.bf16.mxu1 %v14824_v47  ;;  %v14906_v50 = vld [vmem:[#allocation16 + $0x248] ss:$48 sps:$4 sm:$0xff]   ;;  %v14911_v47 = vld [vmem:[#allocation16 + $0x2a4] ss:$48 sps:$4 sm:$0xff]  }
 0x685   : > { %7986 = vmatpush1.bf16.msra.mxu0 %v14819_v27  ;;  %8072 = vmatpush1.bf16.msra.mxu1 %v14822_v51  ;;  %v14914_v27 = vld [vmem:[#allocation16 + $0x2ac] ss:$48 sps:$4 sm:$0xff]   ;;  %v14909_v51 = vld [vmem:[#allocation16 + $0x2a0] ss:$48 sps:$4 sm:$0xff]  }
 0x686   : > { %7987 = vmatprep.subr.bf16.mxu0 %v14827_v48  ;;  %8073 = vmatprep.subr.bf16.mxu1 %v14830_v37  ;;  %v14912_v48 = vld [vmem:[#allocation16 + $0x2a8] ss:$48 sps:$4 sm:$0xff]   ;;  %v14917_v37 = vld [vmem:[#allocation16 + $0x304] ss:$48 sps:$4 sm:$0xff]  }
 0x689   : > { %7988 = vmatpush1.bf16.msra.mxu0 %v14825_v41  ;;  %8074 = vmatpush1.bf16.msra.mxu1 %v14828_v28  ;;  %v14920_v41 = vld [vmem:[#allocation16 + $0x30c] ss:$48 sps:$4 sm:$0xff]   ;;  %v14915_v28 = vld [vmem:[#allocation16 + $0x300] ss:$48 sps:$4 sm:$0xff]  }
 0x68a   : > { %7989 = vmatprep.subr.bf16.mxu0 %v14833_v57  ;;  %8075 = vmatprep.subr.bf16.mxu1 %v14836_v59  ;;  %v14918_v57 = vld [vmem:[#allocation16 + $0x308] ss:$48 sps:$4 sm:$0xff]   ;;  %v14923_v59 = vld [vmem:[#allocation16 + $0x364] ss:$48 sps:$4 sm:$0xff]  }
 0x68d   : > { %7990 = vmatpush1.bf16.msra.mxu0 %v14831_v22  ;;  %8076 = vmatpush1.bf16.msra.mxu1 %v14834_v35  ;;  %v14926_v22 = vld [vmem:[#allocation16 + $0x36c] ss:$48 sps:$4 sm:$0xff]   ;;  %v14921_v35 = vld [vmem:[#allocation16 + $0x360] ss:$48 sps:$4 sm:$0xff]  }
 0x68e   : > { %7991 = vmatprep.subr.bf16.mxu0 %v14839_v18  ;;  %8077 = vmatprep.subr.bf16.mxu1 %v14842_v19  ;;  %v14924_v18 = vld [vmem:[#allocation16 + $0x368] ss:$48 sps:$4 sm:$0xff]   ;;  %v14929_v19 = vld [vmem:[#allocation16 + $0x3c4] ss:$48 sps:$4 sm:$0xff]  }
 0x691   : > { %7992 = vmatpush1.bf16.msra.mxu0 %v14837_v60  ;;  %8078 = vmatpush1.bf16.msra.mxu1 %v14840_v0  ;;  %v14932_v60 = vld [vmem:[#allocation16 + $0x3cc] ss:$48 sps:$4 sm:$0xff]   ;;  %v14927_v0 = vld [vmem:[#allocation16 + $0x3c0] ss:$48 sps:$4 sm:$0xff]  }
 0x692   : > { %7993 = vmatprep.subr.bf16.mxu0 %v14845_v1  ;;  %8079 = vmatprep.subr.bf16.mxu1 %v14848_v10  ;;  %v14930_v1 = vld [vmem:[#allocation16 + $0x3c8] ss:$48 sps:$4 sm:$0xff]   ;;  %v14935_v10 = vld [vmem:[#allocation16 + $0x424] ss:$48 sps:$4 sm:$0xff]  }
 0x695   : > { %7994 = vmatpush1.bf16.msra.mxu0 %v14843_v53  ;;  %8080 = vmatpush1.bf16.msra.mxu1 %v14846_v2  ;;  %v14938_v53 = vld [vmem:[#allocation16 + $0x42c] ss:$48 sps:$4 sm:$0xff]   ;;  %v14933_v2 = vld [vmem:[#allocation16 + $0x420] ss:$48 sps:$4 sm:$0xff]  }
 0x696   : > { %7995 = vmatprep.subr.bf16.mxu0 %v14851_v20  ;;  %8081 = vmatprep.subr.bf16.mxu1 %v14854_v32  ;;  %v14936_v20 = vld [vmem:[#allocation16 + $0x428] ss:$48 sps:$4 sm:$0xff]   ;;  %v14941_v32 = vld [vmem:[#allocation16 + $0x484] ss:$48 sps:$4 sm:$0xff]  }
 0x699   : > { %7996 = vmatpush1.bf16.msra.mxu0 %v14849_v54  ;;  %8082 = vmatpush1.bf16.msra.mxu1 %v14852_v45  ;;  %v14944_v54 = vld [vmem:[#allocation16 + $0x48c] ss:$48 sps:$4 sm:$0xff]   ;;  %v14939_v45 = vld [vmem:[#allocation16 + $0x480] ss:$48 sps:$4 sm:$0xff]  }
 0x69a   : > { %7997 = vmatprep.subr.bf16.mxu0 %v14857_v31  ;;  %8083 = vmatprep.subr.bf16.mxu1 %v14860_v21  ;;  %v14942_v31 = vld [vmem:[#allocation16 + $0x488] ss:$48 sps:$4 sm:$0xff]   ;;  %v14947_v21 = vld [vmem:[#allocation16 + $0x4e4] ss:$48 sps:$4 sm:$0xff]  }
 0x69d   : > { %7998 = vmatpush1.bf16.msra.mxu0 %v14855_v36  ;;  %8084 = vmatpush1.bf16.msra.mxu1 %v14858_v7  ;;  %v14950_v36 = vld [vmem:[#allocation16 + $0x4ec] ss:$48 sps:$4 sm:$0xff]   ;;  %v14945_v7 = vld [vmem:[#allocation16 + $0x4e0] ss:$48 sps:$4 sm:$0xff]  }
 0x69e   : > { %7999 = vmatprep.subr.bf16.mxu0 %v14863_v56  ;;  %8085 = vmatprep.subr.bf16.mxu1 %v14866_v58  ;;  %v14948_v56 = vld [vmem:[#allocation16 + $0x4e8] ss:$48 sps:$4 sm:$0xff]   ;;  %v14953_v58 = vld [vmem:[#allocation16 + $0x544] ss:$48 sps:$4 sm:$0xff]  }
 0x6a1   : > { %8000 = vmatpush1.bf16.msra.mxu0 %v14861_v9  ;;  %8086 = vmatpush1.bf16.msra.mxu1 %v14864_v5  ;;  %v14956_v9 = vld [vmem:[#allocation16 + $0x54c] ss:$48 sps:$4 sm:$0xff]   ;;  %v14951_v5 = vld [vmem:[#allocation16 + $0x540] ss:$48 sps:$4 sm:$0xff]  }
 0x6a2   : > { %10478 = vmatprep.subr.bf16.mxu0 %v14869_v55  ;;  %10564 = vmatprep.subr.bf16.mxu1 %v14872_v52  ;;  %v14954_v55 = vld [vmem:[#allocation16 + $0x548] ss:$48 sps:$4 sm:$0xff]   ;;  %v14959_v52 = vld [vmem:[#allocation16 + $0x5a4] ss:$48 sps:$4 sm:$0xff]  }
 0x6a4   : > { %8002 = vmatmul.mubr.bf16.vlgmr.msra.gmra.mrb[40].mxu0 %v16512_v17  ;;  %8088 = vmatmul.mubr.bf16.vlgmr.msra.gmra.mrb[40].mxu1 %v16512_v17  ;;  %v14888_v17 = vld [vmem:[#allocation16 + $0x128] ss:$48 sps:$4 sm:$0xff]  }
 0x6a5   : > { %10479 = vmatpush1.bf16.msra.mxu0 %v14867_v8  ;;  %10565 = vmatpush1.bf16.msra.mxu1 %v14870_v33  ;;  %v14962_v8 = vld [vmem:[#allocation16 + $0x5ac] ss:$48 sps:$4 sm:$0xff]   ;;  %v14957_v33 = vld [vmem:[#allocation16 + $0x5a0] ss:$48 sps:$4 sm:$0xff]  }
 0x6a6   : > { %10480 = vmatprep.subr.bf16.mxu0 %v14875_v63  ;;  %10566 = vmatprep.subr.bf16.mxu1 %v14878_v30  ;;  %v14960_v63 = vld [vmem:[#allocation16 + $0x5a8] ss:$48 sps:$4 sm:$0xff]   ;;  %v14965_v30 = vld [vmem:[#allocation16 + $0x604] ss:$48 sps:$4 sm:$0xff]  }
 0x6a9   : > { %10481 = vmatpush1.bf16.msra.mxu0 %v14873_v24  ;;  %10567 = vmatpush1.bf16.msra.mxu1 %v14876_v14  ;;  %v14968_v24 = vld [vmem:[#allocation16 + $0x60c] ss:$48 sps:$4 sm:$0xff]  }
 0x6aa   : > { %10482 = vmatprep.subr.bf16.mxu0 %v14881_v16  ;;  %10568 = vmatprep.subr.bf16.mxu1 %v14884_v13  ;;  %v7264_v14 = vld [vmem:[#allocation14] sm:$0xf] }
 0x6ab   : > { %v7269_v16 = vrot.slane %v7264_v14, %v16129_v4  ;;  %v7277_v13 = vrot.slane %v7264_v14, %v16160_v40 }
 0x6ad   : > { %10483 = vmatpush1.bf16.msra.mxu0 %v14879_v26  ;;  %10569 = vmatpush1.bf16.msra.mxu1 %v14882_v25  ;;  %v7273_v26 = vrot.slane %v7264_v14, %v16132_v6  ;;  %v7281_v25 = vrot.slane %v7264_v14, %v16166_v42  ;;  %v15007_v14 = vld [vmem:[#allocation16 + $0x8a4] ss:$48 sps:$4 sm:$0xff]  }
 0x6ae   : > { %10484 = vmatprep.subr.bf16.mxu0 %v14887_v46  ;;  %10570 = vmatprep.subr.bf16.mxu1 %v14890_v62 }
 0x6b1   : > { %10485 = vmatpush1.bf16.msra.mxu0 %v14885_v43  ;;  %10571 = vmatpush1.bf16.msra.mxu1 %v14888_v17 }
 0x6b2   : > { %10486 = vmatprep.subr.bf16.mxu0 %v14893_v44  ;;  %10572 = vmatprep.subr.bf16.mxu1 %v14896_v61 }
 0x6b5   : > { %10487 = vmatpush1.bf16.msra.mxu0 %v14891_v34  ;;  %10573 = vmatpush1.bf16.msra.mxu1 %v14894_v39 }
 0x6b6   : > { %10488 = vmatprep.subr.bf16.mxu0 %v14899_v23  ;;  %10574 = vmatprep.subr.bf16.mxu1 %v14902_v15 }
 0x6b9   : > { %10489 = vmatpush1.bf16.msra.mxu0 %v14897_v12  ;;  %10575 = vmatpush1.bf16.msra.mxu1 %v14900_v29 }
 0x6ba   : > { %10490 = vmatprep.subr.bf16.mxu0 %v14905_v38  ;;  %10576 = vmatprep.subr.bf16.mxu1 %v14908_v49 }
 0x6bd   : > { %10491 = vmatpush1.bf16.msra.mxu0 %v14903_v11  ;;  %10577 = vmatpush1.bf16.msra.mxu1 %v14906_v50 }
 0x6be   : > { %10492 = vmatprep.subr.bf16.mxu0 %v14911_v47  ;;  %10578 = vmatprep.subr.bf16.mxu1 %v14914_v27 }
 0x6c1   : > { %10493 = vmatpush1.bf16.msra.mxu0 %v14909_v51  ;;  %10579 = vmatpush1.bf16.msra.mxu1 %v14912_v48 }
 0x6c2   : > { %10494 = vmatprep.subr.bf16.mxu0 %v14917_v37  ;;  %10580 = vmatprep.subr.bf16.mxu1 %v14920_v41 }
 0x6c5   : > { %10495 = vmatpush1.bf16.msra.mxu0 %v14915_v28  ;;  %10581 = vmatpush1.bf16.msra.mxu1 %v14918_v57 }
 0x6c6   : > { %10496 = vmatprep.subr.bf16.mxu0 %v14923_v59  ;;  %10582 = vmatprep.subr.bf16.mxu1 %v14926_v22 }
 0x6c9   : > { %10497 = vmatpush1.bf16.msra.mxu0 %v14921_v35  ;;  %10583 = vmatpush1.bf16.msra.mxu1 %v14924_v18 }
 0x6ca   : > { %10498 = vmatprep.subr.bf16.mxu0 %v14929_v19  ;;  %10584 = vmatprep.subr.bf16.mxu1 %v14932_v60  ;;  %v14963_v19 = vld [vmem:[#allocation16 + $0x600] ss:$48 sps:$4 sm:$0xff]   ;;  %v14966_v60 = vld [vmem:[#allocation16 + $0x608] ss:$48 sps:$4 sm:$0xff]  }
 0x6cd   : > { %10499 = vmatpush1.bf16.msra.mxu0 %v14927_v0  ;;  %10585 = vmatpush1.bf16.msra.mxu1 %v14930_v1  ;;  %v14971_v0 = vld [vmem:[#allocation16 + $0x664] ss:$48 sps:$4 sm:$0xff]   ;;  %v14974_v1 = vld [vmem:[#allocation16 + $0x66c] ss:$48 sps:$4 sm:$0xff]  }
 0x6ce   : > { %10500 = vmatprep.subr.bf16.mxu0 %v14935_v10  ;;  %10586 = vmatprep.subr.bf16.mxu1 %v14938_v53  ;;  %v14969_v10 = vld [vmem:[#allocation16 + $0x660] ss:$48 sps:$4 sm:$0xff]   ;;  %v14972_v53 = vld [vmem:[#allocation16 + $0x668] ss:$48 sps:$4 sm:$0xff]  }
 0x6d1   : > { %10501 = vmatpush1.bf16.msra.mxu0 %v14933_v2  ;;  %10587 = vmatpush1.bf16.msra.mxu1 %v14936_v20  ;;  %v14977_v2 = vld [vmem:[#allocation16 + $0x6c4] ss:$48 sps:$4 sm:$0xff]   ;;  %v14980_v20 = vld [vmem:[#allocation16 + $0x6cc] ss:$48 sps:$4 sm:$0xff]  }
 0x6d2   : > { %10502 = vmatprep.subr.bf16.mxu0 %v14941_v32  ;;  %10588 = vmatprep.subr.bf16.mxu1 %v14944_v54  ;;  %v14975_v32 = vld [vmem:[#allocation16 + $0x6c0] ss:$48 sps:$4 sm:$0xff]   ;;  %v14978_v54 = vld [vmem:[#allocation16 + $0x6c8] ss:$48 sps:$4 sm:$0xff]  }
 0x6d5   : > { %10503 = vmatpush1.bf16.msra.mxu0 %v14939_v45  ;;  %10589 = vmatpush1.bf16.msra.mxu1 %v14942_v31  ;;  %v14983_v45 = vld [vmem:[#allocation16 + $0x724] ss:$48 sps:$4 sm:$0xff]   ;;  %v14986_v31 = vld [vmem:[#allocation16 + $0x72c] ss:$48 sps:$4 sm:$0xff]  }
 0x6d6   : > { %10504 = vmatprep.subr.bf16.mxu0 %v14947_v21  ;;  %10590 = vmatprep.subr.bf16.mxu1 %v14950_v36  ;;  %v14981_v21 = vld [vmem:[#allocation16 + $0x720] ss:$48 sps:$4 sm:$0xff]   ;;  %v14984_v36 = vld [vmem:[#allocation16 + $0x728] ss:$48 sps:$4 sm:$0xff]  }
 0x6d9   : > { %10505 = vmatpush1.bf16.msra.mxu0 %v14945_v7  ;;  %10591 = vmatpush1.bf16.msra.mxu1 %v14948_v56  ;;  %v14989_v7 = vld [vmem:[#allocation16 + $0x784] ss:$48 sps:$4 sm:$0xff]   ;;  %v14992_v56 = vld [vmem:[#allocation16 + $0x78c] ss:$48 sps:$4 sm:$0xff]  }
 0x6da   : > { %10506 = vmatprep.subr.bf16.mxu0 %v14953_v58  ;;  %10592 = vmatprep.subr.bf16.mxu1 %v14956_v9  ;;  %v14987_v58 = vld [vmem:[#allocation16 + $0x780] ss:$48 sps:$4 sm:$0xff]   ;;  %v14990_v9 = vld [vmem:[#allocation16 + $0x788] ss:$48 sps:$4 sm:$0xff]  }
 0x6dd   : > { %10507 = vmatpush1.bf16.msra.mxu0 %v14951_v5  ;;  %10593 = vmatpush1.bf16.msra.mxu1 %v14954_v55  ;;  %v14995_v5 = vld [vmem:[#allocation16 + $0x7e4] ss:$48 sps:$4 sm:$0xff]   ;;  %v14998_v55 = vld [vmem:[#allocation16 + $0x7ec] ss:$48 sps:$4 sm:$0xff]  }
 0x6de   : > { %10508 = vmatprep.subr.bf16.mxu0 %v14959_v52  ;;  %10594 = vmatprep.subr.bf16.mxu1 %v14962_v8  ;;  %v14993_v52 = vld [vmem:[#allocation16 + $0x7e0] ss:$48 sps:$4 sm:$0xff]   ;;  %v14996_v8 = vld [vmem:[#allocation16 + $0x7e8] ss:$48 sps:$4 sm:$0xff]  }
 0x6e1   : > { %10509 = vmatpush1.bf16.msra.mxu0 %v14957_v33  ;;  %10595 = vmatpush1.bf16.msra.mxu1 %v14960_v63  ;;  %v15001_v33 = vld [vmem:[#allocation16 + $0x844] ss:$48 sps:$4 sm:$0xff]   ;;  %v15004_v63 = vld [vmem:[#allocation16 + $0x84c] ss:$48 sps:$4 sm:$0xff]  }
 0x6e2   : > { %10521 = vmatprep.subr.bf16.mxu0 %v14965_v30  ;;  %10607 = vmatprep.subr.bf16.mxu1 %v14968_v24  ;;  %v14999_v30 = vld [vmem:[#allocation16 + $0x840] ss:$48 sps:$4 sm:$0xff]   ;;  %v15002_v24 = vld [vmem:[#allocation16 + $0x848] ss:$48 sps:$4 sm:$0xff]  }
 0x777   : > { %v8003_v46 = vpop.f32.mrb[40].mxu0  ;;  %v8089_v62 = vpop.f32.mrb[40].mxu1 }
 0x778   : > { %v13172_v43 = vadd.f32 %v8003_v46, %v7269_v16  ;;  %v13176_v17 = vadd.f32 %v8089_v62, %v7277_v13  ;;  %v8005_v44 = vpop.f32.mrb[41].mxu0  ;;  %v8091_v61 = vpop.f32.mrb[41].mxu1  ;;  %v15016_v46 = vld [vmem:[#allocation16 + $0x90c] ss:$48 sps:$4 sm:$0xff]   ;;  %v15011_v62 = vld [vmem:[#allocation16 + $0x900] ss:$48 sps:$4 sm:$0xff]  }
 0x779   : > { %v13173_v34 = vadd.f32 %v8005_v44, %v7273_v26  ;;  %v13177_v39 = vadd.f32 %v8091_v61, %v7281_v25  ;;  %v8007_v23 = vpop.f32.mrb[42].mxu0  ;;  %v8093_v15 = vpop.f32.mrb[42].mxu1  ;;  %v15022_v44 = vld [vmem:[#allocation16 + $0x96c] ss:$48 sps:$4 sm:$0xff]   ;;  %v15017_v61 = vld [vmem:[#allocation16 + $0x960] ss:$48 sps:$4 sm:$0xff]  }
 0x77a   : > { %v13174_v12 = vadd.f32 %v8007_v23, %v7269_v16  ;;  %v13178_v29 = vadd.f32 %v8093_v15, %v7277_v13  ;;  %v8009_v38 = vpop.f32.mrb[43].mxu0  ;;  %v8095_v49 = vpop.f32.mrb[43].mxu1  ;;  %v8098_v47 = vmax.f32 %v13172_v43, 0.0  ;;  %v8100_v27 = vmax.f32 %v13176_v17, 0.0  ;;  %v15010_v16 = vld [vmem:[#allocation16 + $0x8ac] ss:$48 sps:$4 sm:$0xff]  }
 0x77b   : > { %v13175_v11 = vadd.f32 %v8009_v38, %v7273_v26  ;;  %v13179_v50 = vadd.f32 %v8095_v49, %v7281_v25  ;;  %v8099_v37 = vmax.f32 %v13173_v34, 0.0  ;;  %v8101_v41 = vmax.f32 %v13177_v39, 0.0  ;;  %v15005_v13 = vld [vmem:[#allocation16 + $0x8a0] ss:$48 sps:$4 sm:$0xff]   ;;  %v15008_v26 = vld [vmem:[#allocation16 + $0x8a8] ss:$48 sps:$4 sm:$0xff]  }
 0x77c   : > { %v8102_v51 = vmax.f32 %v13174_v12, 0.0  ;;  %v8104_v48 = vmax.f32 %v13178_v29, 0.0  ;;  %v15013_v25 = vld [vmem:[#allocation16 + $0x904] ss:$48 sps:$4 sm:$0xff]   ;;  %v15014_v43 = vld [vmem:[#allocation16 + $0x908] ss:$48 sps:$4 sm:$0xff]  }
 0x77d   : > { %v8103_v28 = vmax.f32 %v13175_v11, 0.0  ;;  %v8105_v57 = vmax.f32 %v13179_v50, 0.0  ;;  %v15019_v17 = vld [vmem:[#allocation16 + $0x964] ss:$48 sps:$4 sm:$0xff]   ;;  %v15020_v34 = vld [vmem:[#allocation16 + $0x968] ss:$48 sps:$4 sm:$0xff]  }
 0x77e   : > { %v16520_v59 = vpack.c.bf16 %v8102_v51, %v8098_v47  ;;  %v16522_v22 = vpack.c.bf16 %v8104_v48, %v8100_v27  ;;  %v15025_v39 = vld [vmem:[#allocation16 + $0x9c4] ss:$48 sps:$4 sm:$0xff]   ;;  %v15028_v23 = vld [vmem:[#allocation16 + $0x9cc] ss:$48 sps:$4 sm:$0xff]   ;;  %v15023_v15 = vld [vmem:[#allocation16 + $0x9c0] ss:$48 sps:$4 sm:$0xff]  }
 0x77f   : > { %v16524_v35 = vpack.c.bf16 %v8103_v28, %v8099_v37  ;;  %v16526_v18 = vpack.c.bf16 %v8105_v57, %v8101_v41  ;;  %v15026_v12 = vld [vmem:[#allocation16 + $0x9c8] ss:$48 sps:$4 sm:$0xff]   ;;  %v15031_v29 = vld [vmem:[#allocation16 + $0xa24] ss:$48 sps:$4 sm:$0xff]   ;;  %v15034_v38 = vld [vmem:[#allocation16 + $0xa2c] ss:$48 sps:$4 sm:$0xff]  }
 0x780   : > { %v15029_v49 = vld [vmem:[#allocation16 + $0xa20] ss:$48 sps:$4 sm:$0xff]   ;;  %v15032_v11 = vld [vmem:[#allocation16 + $0xa28] ss:$48 sps:$4 sm:$0xff]   ;;  %v15037_v50 = vld [vmem:[#allocation16 + $0xa84] ss:$48 sps:$4 sm:$0xff]  }
 0x781   : > { %10510 = vmatprep.mubr.bf16.mxu0 %v16524_v35  ;;  %10596 = vmatprep.mubr.bf16.mxu1 %v16524_v35  ;;  %v15040_v47 = vld [vmem:[#allocation16 + $0xa8c] ss:$48 sps:$4 sm:$0xff]   ;;  %v15035_v27 = vld [vmem:[#allocation16 + $0xa80] ss:$48 sps:$4 sm:$0xff]   ;;  %v15038_v51 = vld [vmem:[#allocation16 + $0xa88] ss:$48 sps:$4 sm:$0xff]  }
 0x782   : > { %10511 = vmatmul.mubr.bf16.vlgmr.msra.gmra.mrb[44].mxu0 %v16520_v59  ;;  %10597 = vmatmul.mubr.bf16.vlgmr.msra.gmra.mrb[44].mxu1 %v16520_v59  ;;  %v15043_v48 = vld [vmem:[#allocation16 + $0xae4] ss:$48 sps:$4 sm:$0xff]   ;;  %v15046_v37 = vld [vmem:[#allocation16 + $0xaec] ss:$48 sps:$4 sm:$0xff]   ;;  %v15041_v41 = vld [vmem:[#allocation16 + $0xae0] ss:$48 sps:$4 sm:$0xff]  }
 0x783   : > { %10522 = vmatpush1.bf16.msra.mxu0 %v14963_v19  ;;  %10608 = vmatpush1.bf16.msra.mxu1 %v14966_v60  ;;  %v15044_v28 = vld [vmem:[#allocation16 + $0xae8] ss:$48 sps:$4 sm:$0xff]   ;;  %v15049_v57 = vld [vmem:[#allocation16 + $0xb44] ss:$48 sps:$4 sm:$0xff]   ;;  %v15052_v19 = vld [vmem:[#allocation16 + $0xb4c] ss:$48 sps:$4 sm:$0xff]  }
 0x784   : > { %10553 = vmatprep.mubr.bf16.mxu0 %v16526_v18  ;;  %10639 = vmatprep.mubr.bf16.mxu1 %v16526_v18  ;;  %v15047_v60 = vld [vmem:[#allocation16 + $0xb40] ss:$48 sps:$4 sm:$0xff]  }
 0x785   : > { %10523 = vmatprep.subr.bf16.mxu0 %v14971_v0  ;;  %10609 = vmatprep.subr.bf16.mxu1 %v14974_v1  ;;  %v15050_v0 = vld [vmem:[#allocation16 + $0xb48] ss:$48 sps:$4 sm:$0xff]   ;;  %v15055_v1 = vld [vmem:[#allocation16 + $0xba4] ss:$48 sps:$4 sm:$0xff]  }
 0x787   : > { %10524 = vmatpush1.bf16.msra.mxu0 %v14969_v10  ;;  %10610 = vmatpush1.bf16.msra.mxu1 %v14972_v53  ;;  %v15058_v10 = vld [vmem:[#allocation16 + $0xbac] ss:$48 sps:$4 sm:$0xff]   ;;  %v15053_v53 = vld [vmem:[#allocation16 + $0xba0] ss:$48 sps:$4 sm:$0xff]  }
 0x788   : > { %10525 = vmatprep.subr.bf16.mxu0 %v14977_v2  ;;  %10611 = vmatprep.subr.bf16.mxu1 %v14980_v20  ;;  %v15056_v2 = vld [vmem:[#allocation16 + $0xba8] ss:$48 sps:$4 sm:$0xff]   ;;  %v15061_v20 = vld [vmem:[#allocation16 + $0x14] ss:$48 sps:$4 sm:$0xff]  }
 0x78b   : > { %10526 = vmatpush1.bf16.msra.mxu0 %v14975_v32  ;;  %10612 = vmatpush1.bf16.msra.mxu1 %v14978_v54  ;;  %v15064_v32 = vld [vmem:[#allocation16 + $0x1c] ss:$48 sps:$4 sm:$0xff]   ;;  %v15059_v54 = vld [vmem:[#allocation16 + $0x10] ss:$48 sps:$4 sm:$0xff]  }
 0x78c   : > { %10527 = vmatprep.subr.bf16.mxu0 %v14983_v45  ;;  %10613 = vmatprep.subr.bf16.mxu1 %v14986_v31  ;;  %v15062_v45 = vld [vmem:[#allocation16 + $0x18] ss:$48 sps:$4 sm:$0xff]   ;;  %v15067_v31 = vld [vmem:[#allocation16 + $0x74] ss:$48 sps:$4 sm:$0xff]  }
 0x78f   : > { %10528 = vmatpush1.bf16.msra.mxu0 %v14981_v21  ;;  %10614 = vmatpush1.bf16.msra.mxu1 %v14984_v36  ;;  %v15070_v21 = vld [vmem:[#allocation16 + $0x7c] ss:$48 sps:$4 sm:$0xff]   ;;  %v15065_v36 = vld [vmem:[#allocation16 + $0x70] ss:$48 sps:$4 sm:$0xff]  }
 0x790   : > { %10529 = vmatprep.subr.bf16.mxu0 %v14989_v7  ;;  %10615 = vmatprep.subr.bf16.mxu1 %v14992_v56  ;;  %v15068_v7 = vld [vmem:[#allocation16 + $0x78] ss:$48 sps:$4 sm:$0xff]   ;;  %v15073_v56 = vld [vmem:[#allocation16 + $0xd4] ss:$48 sps:$4 sm:$0xff]  }
 0x793   : > { %10530 = vmatpush1.bf16.msra.mxu0 %v14987_v58  ;;  %10616 = vmatpush1.bf16.msra.mxu1 %v14990_v9  ;;  %v15076_v58 = vld [vmem:[#allocation16 + $0xdc] ss:$48 sps:$4 sm:$0xff]   ;;  %v15071_v9 = vld [vmem:[#allocation16 + $0xd0] ss:$48 sps:$4 sm:$0xff]  }
 0x794   : > { %10531 = vmatprep.subr.bf16.mxu0 %v14995_v5  ;;  %10617 = vmatprep.subr.bf16.mxu1 %v14998_v55  ;;  %v15074_v5 = vld [vmem:[#allocation16 + $0xd8] ss:$48 sps:$4 sm:$0xff]   ;;  %v15079_v55 = vld [vmem:[#allocation16 + $0x134] ss:$48 sps:$4 sm:$0xff]  }
 0x797   : > { %10532 = vmatpush1.bf16.msra.mxu0 %v14993_v52  ;;  %10618 = vmatpush1.bf16.msra.mxu1 %v14996_v8  ;;  %v15082_v52 = vld [vmem:[#allocation16 + $0x13c] ss:$48 sps:$4 sm:$0xff]   ;;  %v15077_v8 = vld [vmem:[#allocation16 + $0x130] ss:$48 sps:$4 sm:$0xff]  }
 0x798   : > { %10533 = vmatprep.subr.bf16.mxu0 %v15001_v33  ;;  %10619 = vmatprep.subr.bf16.mxu1 %v15004_v63  ;;  %v15080_v33 = vld [vmem:[#allocation16 + $0x138] ss:$48 sps:$4 sm:$0xff]   ;;  %v15085_v63 = vld [vmem:[#allocation16 + $0x194] ss:$48 sps:$4 sm:$0xff]  }
 0x79b   : > { %10534 = vmatpush1.bf16.msra.mxu0 %v14999_v30  ;;  %10620 = vmatpush1.bf16.msra.mxu1 %v15002_v24  ;;  %v15088_v30 = vld [vmem:[#allocation16 + $0x19c] ss:$48 sps:$4 sm:$0xff]   ;;  %v15083_v24 = vld [vmem:[#allocation16 + $0x190] ss:$48 sps:$4 sm:$0xff]  }
 0x79c   : > { %10535 = vmatprep.subr.bf16.mxu0 %v15007_v14  ;;  %10621 = vmatprep.subr.bf16.mxu1 %v15010_v16  ;;  %v15086_v14 = vld [vmem:[#allocation16 + $0x198] ss:$48 sps:$4 sm:$0xff]   ;;  %v15091_v16 = vld [vmem:[#allocation16 + $0x1f4] ss:$48 sps:$4 sm:$0xff]  }
 0x79f   : > { %10536 = vmatpush1.bf16.msra.mxu0 %v15005_v13  ;;  %10622 = vmatpush1.bf16.msra.mxu1 %v15008_v26  ;;  %v15094_v13 = vld [vmem:[#allocation16 + $0x1fc] ss:$48 sps:$4 sm:$0xff]   ;;  %v15089_v26 = vld [vmem:[#allocation16 + $0x1f0] ss:$48 sps:$4 sm:$0xff]  }
 0x7a0   : > { %10537 = vmatprep.subr.bf16.mxu0 %v15013_v25  ;;  %10623 = vmatprep.subr.bf16.mxu1 %v15016_v46  ;;  %v15092_v25 = vld [vmem:[#allocation16 + $0x1f8] ss:$48 sps:$4 sm:$0xff]   ;;  %v15097_v46 = vld [vmem:[#allocation16 + $0x254] ss:$48 sps:$4 sm:$0xff]  }
 0x7a3   : > { %10538 = vmatpush1.bf16.msra.mxu0 %v15011_v62  ;;  %10624 = vmatpush1.bf16.msra.mxu1 %v15014_v43  ;;  %v15100_v62 = vld [vmem:[#allocation16 + $0x25c] ss:$48 sps:$4 sm:$0xff]   ;;  %v15095_v43 = vld [vmem:[#allocation16 + $0x250] ss:$48 sps:$4 sm:$0xff]  }
 0x7a4   : > { %10539 = vmatprep.subr.bf16.mxu0 %v15019_v17  ;;  %10625 = vmatprep.subr.bf16.mxu1 %v15022_v44  ;;  %v15098_v17 = vld [vmem:[#allocation16 + $0x258] ss:$48 sps:$4 sm:$0xff]   ;;  %v15103_v44 = vld [vmem:[#allocation16 + $0x2b4] ss:$48 sps:$4 sm:$0xff]  }
 0x7a7   : > { %10540 = vmatpush1.bf16.msra.mxu0 %v15017_v61  ;;  %10626 = vmatpush1.bf16.msra.mxu1 %v15020_v34  ;;  %v15106_v61 = vld [vmem:[#allocation16 + $0x2bc] ss:$48 sps:$4 sm:$0xff]   ;;  %v15101_v34 = vld [vmem:[#allocation16 + $0x2b0] ss:$48 sps:$4 sm:$0xff]  }
 0x7a8   : > { %10541 = vmatprep.subr.bf16.mxu0 %v15025_v39  ;;  %10627 = vmatprep.subr.bf16.mxu1 %v15028_v23  ;;  %v15104_v39 = vld [vmem:[#allocation16 + $0x2b8] ss:$48 sps:$4 sm:$0xff]   ;;  %v15109_v23 = vld [vmem:[#allocation16 + $0x314] ss:$48 sps:$4 sm:$0xff]  }
 0x7ab   : > { %10542 = vmatpush1.bf16.msra.mxu0 %v15023_v15  ;;  %10628 = vmatpush1.bf16.msra.mxu1 %v15026_v12  ;;  %v15112_v15 = vld [vmem:[#allocation16 + $0x31c] ss:$48 sps:$4 sm:$0xff]   ;;  %v15107_v12 = vld [vmem:[#allocation16 + $0x310] ss:$48 sps:$4 sm:$0xff]  }
 0x7ac   : > { %10543 = vmatprep.subr.bf16.mxu0 %v15031_v29  ;;  %10629 = vmatprep.subr.bf16.mxu1 %v15034_v38  ;;  %v15110_v29 = vld [vmem:[#allocation16 + $0x318] ss:$48 sps:$4 sm:$0xff]   ;;  %v15115_v38 = vld [vmem:[#allocation16 + $0x374] ss:$48 sps:$4 sm:$0xff]  }
 0x7af   : > { %10544 = vmatpush1.bf16.msra.mxu0 %v15029_v49  ;;  %10630 = vmatpush1.bf16.msra.mxu1 %v15032_v11  ;;  %v15118_v49 = vld [vmem:[#allocation16 + $0x37c] ss:$48 sps:$4 sm:$0xff]   ;;  %v15113_v11 = vld [vmem:[#allocation16 + $0x370] ss:$48 sps:$4 sm:$0xff]  }
 0x7b0   : > { %10545 = vmatprep.subr.bf16.mxu0 %v15037_v50  ;;  %10631 = vmatprep.subr.bf16.mxu1 %v15040_v47  ;;  %v15116_v50 = vld [vmem:[#allocation16 + $0x378] ss:$48 sps:$4 sm:$0xff]   ;;  %v15121_v47 = vld [vmem:[#allocation16 + $0x3d4] ss:$48 sps:$4 sm:$0xff]  }
 0x7b3   : > { %10546 = vmatpush1.bf16.msra.mxu0 %v15035_v27  ;;  %10632 = vmatpush1.bf16.msra.mxu1 %v15038_v51  ;;  %v15124_v27 = vld [vmem:[#allocation16 + $0x3dc] ss:$48 sps:$4 sm:$0xff]   ;;  %v15119_v51 = vld [vmem:[#allocation16 + $0x3d0] ss:$48 sps:$4 sm:$0xff]  }
 0x7b4   : > { %10547 = vmatprep.subr.bf16.mxu0 %v15043_v48  ;;  %10633 = vmatprep.subr.bf16.mxu1 %v15046_v37  ;;  %v15122_v48 = vld [vmem:[#allocation16 + $0x3d8] ss:$48 sps:$4 sm:$0xff]   ;;  %v15127_v37 = vld [vmem:[#allocation16 + $0x434] ss:$48 sps:$4 sm:$0xff]  }
 0x7b7   : > { %10548 = vmatpush1.bf16.msra.mxu0 %v15041_v41  ;;  %10634 = vmatpush1.bf16.msra.mxu1 %v15044_v28  ;;  %v15130_v41 = vld [vmem:[#allocation16 + $0x43c] ss:$48 sps:$4 sm:$0xff]   ;;  %v15125_v28 = vld [vmem:[#allocation16 + $0x430] ss:$48 sps:$4 sm:$0xff]  }
 0x7b8   : > { %10549 = vmatprep.subr.bf16.mxu0 %v15049_v57  ;;  %10635 = vmatprep.subr.bf16.mxu1 %v15052_v19  ;;  %v15128_v57 = vld [vmem:[#allocation16 + $0x438] ss:$48 sps:$4 sm:$0xff]   ;;  %v15133_v19 = vld [vmem:[#allocation16 + $0x494] ss:$48 sps:$4 sm:$0xff]  }
 0x7bb   : > { %10550 = vmatpush1.bf16.msra.mxu0 %v15047_v60  ;;  %10636 = vmatpush1.bf16.msra.mxu1 %v15050_v0  ;;  %v15136_v60 = vld [vmem:[#allocation16 + $0x49c] ss:$48 sps:$4 sm:$0xff]   ;;  %v15131_v0 = vld [vmem:[#allocation16 + $0x490] ss:$48 sps:$4 sm:$0xff]  }
 0x7bc   : > { %10551 = vmatprep.subr.bf16.mxu0 %v15055_v1  ;;  %10637 = vmatprep.subr.bf16.mxu1 %v15058_v10  ;;  %v15134_v1 = vld [vmem:[#allocation16 + $0x498] ss:$48 sps:$4 sm:$0xff]   ;;  %v15139_v10 = vld [vmem:[#allocation16 + $0x4f4] ss:$48 sps:$4 sm:$0xff]  }
 0x7bf   : > { %10552 = vmatpush1.bf16.msra.mxu0 %v15053_v53  ;;  %10638 = vmatpush1.bf16.msra.mxu1 %v15056_v2  ;;  %v15142_v53 = vld [vmem:[#allocation16 + $0x4fc] ss:$48 sps:$4 sm:$0xff]   ;;  %v15137_v2 = vld [vmem:[#allocation16 + $0x4f0] ss:$48 sps:$4 sm:$0xff]  }
 0x7c0   : > { %10650 = vmatprep.subr.bf16.mxu0 %v15061_v20  ;;  %10736 = vmatprep.subr.bf16.mxu1 %v15064_v32  ;;  %v15140_v20 = vld [vmem:[#allocation16 + $0x4f8] ss:$48 sps:$4 sm:$0xff]   ;;  %v15145_v32 = vld [vmem:[#allocation16 + $0x554] ss:$48 sps:$4 sm:$0xff]  }
 0x7c2   : > { %10554 = vmatmul.mubr.bf16.vlgmr.msra.gmra.mrb[44].mxu0 %v16522_v22  ;;  %10640 = vmatmul.mubr.bf16.vlgmr.msra.gmra.mrb[44].mxu1 %v16522_v22 }
 0x7c3   : > { %10651 = vmatpush1.bf16.msra.mxu0 %v15059_v54  ;;  %10682 = vmatprep.mubr.bf16.mxu0 %v16524_v35  ;;  %v15148_v54 = vld [vmem:[#allocation16 + $0x55c] ss:$48 sps:$4 sm:$0xff]  }
 0x7c4   : > { %10737 = vmatpush1.bf16.msra.mxu1 %v15062_v45  ;;  %10768 = vmatprep.mubr.bf16.mxu1 %v16524_v35  ;;  %v15143_v45 = vld [vmem:[#allocation16 + $0x550] ss:$48 sps:$4 sm:$0xff]  }
 0x7c5   : > { %10652 = vmatprep.subr.bf16.mxu0 %v15067_v31  ;;  %10738 = vmatprep.subr.bf16.mxu1 %v15070_v21  ;;  %v15146_v31 = vld [vmem:[#allocation16 + $0x558] ss:$48 sps:$4 sm:$0xff]   ;;  %v15151_v21 = vld [vmem:[#allocation16 + $0x5b4] ss:$48 sps:$4 sm:$0xff]  }
 0x7c7   : > { %10653 = vmatpush1.bf16.msra.mxu0 %v15065_v36  ;;  %v15154_v36 = vld [vmem:[#allocation16 + $0x5bc] ss:$48 sps:$4 sm:$0xff]  }
 0x7c8   : > { %10739 = vmatpush1.bf16.msra.mxu1 %v15068_v7  ;;  %10654 = vmatprep.subr.bf16.mxu0 %v15073_v56  ;;  %v15149_v7 = vld [vmem:[#allocation16 + $0x5b0] ss:$48 sps:$4 sm:$0xff]   ;;  %v15152_v56 = vld [vmem:[#allocation16 + $0x5b8] ss:$48 sps:$4 sm:$0xff]  }
 0x7c9   : > { %10740 = vmatprep.subr.bf16.mxu1 %v15076_v58  ;;  %v15157_v58 = vld [vmem:[#allocation16 + $0x614] ss:$48 sps:$4 sm:$0xff]  }
 0x7cb   : > { %10655 = vmatpush1.bf16.msra.mxu0 %v15071_v9  ;;  %v15160_v9 = vld [vmem:[#allocation16 + $0x61c] ss:$48 sps:$4 sm:$0xff]  }
 0x7cc   : > { %10741 = vmatpush1.bf16.msra.mxu1 %v15074_v5  ;;  %10656 = vmatprep.subr.bf16.mxu0 %v15079_v55  ;;  %v15155_v5 = vld [vmem:[#allocation16 + $0x610] ss:$48 sps:$4 sm:$0xff]   ;;  %v15158_v55 = vld [vmem:[#allocation16 + $0x618] ss:$48 sps:$4 sm:$0xff]  }
 0x7cd   : > { %10742 = vmatprep.subr.bf16.mxu1 %v15082_v52  ;;  %v15163_v52 = vld [vmem:[#allocation16 + $0x674] ss:$48 sps:$4 sm:$0xff]  }
 0x7cf   : > { %10657 = vmatpush1.bf16.msra.mxu0 %v15077_v8  ;;  %v15166_v8 = vld [vmem:[#allocation16 + $0x67c] ss:$48 sps:$4 sm:$0xff]  }
 0x7d0   : > { %10743 = vmatpush1.bf16.msra.mxu1 %v15080_v33  ;;  %10658 = vmatprep.subr.bf16.mxu0 %v15085_v63  ;;  %v15161_v33 = vld [vmem:[#allocation16 + $0x670] ss:$48 sps:$4 sm:$0xff]   ;;  %v15164_v63 = vld [vmem:[#allocation16 + $0x678] ss:$48 sps:$4 sm:$0xff]  }
 0x7d1   : > { %10744 = vmatprep.subr.bf16.mxu1 %v15088_v30  ;;  %v15169_v30 = vld [vmem:[#allocation16 + $0x6d4] ss:$48 sps:$4 sm:$0xff]  }
 0x7d3   : > { %10659 = vmatpush1.bf16.msra.mxu0 %v15083_v24  ;;  %v15172_v24 = vld [vmem:[#allocation16 + $0x6dc] ss:$48 sps:$4 sm:$0xff]  }
 0x7d4   : > { %10745 = vmatpush1.bf16.msra.mxu1 %v15086_v14  ;;  %10660 = vmatprep.subr.bf16.mxu0 %v15091_v16  ;;  %v15167_v14 = vld [vmem:[#allocation16 + $0x6d0] ss:$48 sps:$4 sm:$0xff]   ;;  %v15170_v16 = vld [vmem:[#allocation16 + $0x6d8] ss:$48 sps:$4 sm:$0xff]  }
 0x7d5   : > { %10746 = vmatprep.subr.bf16.mxu1 %v15094_v13  ;;  %v15175_v13 = vld [vmem:[#allocation16 + $0x734] ss:$48 sps:$4 sm:$0xff]  }
 0x7d7   : > { %10661 = vmatpush1.bf16.msra.mxu0 %v15089_v26  ;;  %v15178_v26 = vld [vmem:[#allocation16 + $0x73c] ss:$48 sps:$4 sm:$0xff]  }
 0x7d8   : > { %10747 = vmatpush1.bf16.msra.mxu1 %v15092_v25  ;;  %10662 = vmatprep.subr.bf16.mxu0 %v15097_v46  ;;  %v15173_v25 = vld [vmem:[#allocation16 + $0x730] ss:$48 sps:$4 sm:$0xff]   ;;  %v15176_v46 = vld [vmem:[#allocation16 + $0x738] ss:$48 sps:$4 sm:$0xff]  }
 0x7d9   : > { %10748 = vmatprep.subr.bf16.mxu1 %v15100_v62  ;;  %v15181_v62 = vld [vmem:[#allocation16 + $0x794] ss:$48 sps:$4 sm:$0xff]  }
 0x7db   : > { %10663 = vmatpush1.bf16.msra.mxu0 %v15095_v43  ;;  %v15184_v43 = vld [vmem:[#allocation16 + $0x79c] ss:$48 sps:$4 sm:$0xff]  }
 0x7dc   : > { %10749 = vmatpush1.bf16.msra.mxu1 %v15098_v17  ;;  %10664 = vmatprep.subr.bf16.mxu0 %v15103_v44  ;;  %v15179_v17 = vld [vmem:[#allocation16 + $0x790] ss:$48 sps:$4 sm:$0xff]   ;;  %v15182_v44 = vld [vmem:[#allocation16 + $0x798] ss:$48 sps:$4 sm:$0xff]  }
 0x7dd   : > { %10750 = vmatprep.subr.bf16.mxu1 %v15106_v61  ;;  %v15187_v61 = vld [vmem:[#allocation16 + $0x7f4] ss:$48 sps:$4 sm:$0xff]  }
 0x7df   : > { %10665 = vmatpush1.bf16.msra.mxu0 %v15101_v34  ;;  %v15190_v34 = vld [vmem:[#allocation16 + $0x7fc] ss:$48 sps:$4 sm:$0xff]  }
 0x7e0   : > { %10751 = vmatpush1.bf16.msra.mxu1 %v15104_v39  ;;  %10666 = vmatprep.subr.bf16.mxu0 %v15109_v23  ;;  %v15185_v39 = vld [vmem:[#allocation16 + $0x7f0] ss:$48 sps:$4 sm:$0xff]   ;;  %v15188_v23 = vld [vmem:[#allocation16 + $0x7f8] ss:$48 sps:$4 sm:$0xff]  }
 0x7e1   : > { %10752 = vmatprep.subr.bf16.mxu1 %v15112_v15  ;;  %v15193_v15 = vld [vmem:[#allocation16 + $0x854] ss:$48 sps:$4 sm:$0xff]  }
 0x7e3   : > { %10667 = vmatpush1.bf16.msra.mxu0 %v15107_v12  ;;  %v15196_v12 = vld [vmem:[#allocation16 + $0x85c] ss:$48 sps:$4 sm:$0xff]  }
 0x7e4   : > { %10753 = vmatpush1.bf16.msra.mxu1 %v15110_v29  ;;  %10668 = vmatprep.subr.bf16.mxu0 %v15115_v38  ;;  %v15191_v29 = vld [vmem:[#allocation16 + $0x850] ss:$48 sps:$4 sm:$0xff]   ;;  %v15194_v38 = vld [vmem:[#allocation16 + $0x858] ss:$48 sps:$4 sm:$0xff]  }
 0x7e5   : > { %10754 = vmatprep.subr.bf16.mxu1 %v15118_v49  ;;  %v15199_v49 = vld [vmem:[#allocation16 + $0x8b4] ss:$48 sps:$4 sm:$0xff]  }
 0x7e7   : > { %10669 = vmatpush1.bf16.msra.mxu0 %v15113_v11  ;;  %v15202_v11 = vld [vmem:[#allocation16 + $0x8bc] ss:$48 sps:$4 sm:$0xff]  }
 0x7e8   : > { %10755 = vmatpush1.bf16.msra.mxu1 %v15116_v50  ;;  %10670 = vmatprep.subr.bf16.mxu0 %v15121_v47  ;;  %v15197_v50 = vld [vmem:[#allocation16 + $0x8b0] ss:$48 sps:$4 sm:$0xff]   ;;  %v15200_v47 = vld [vmem:[#allocation16 + $0x8b8] ss:$48 sps:$4 sm:$0xff]  }
 0x7e9   : > { %10756 = vmatprep.subr.bf16.mxu1 %v15124_v27  ;;  %v15205_v27 = vld [vmem:[#allocation16 + $0x914] ss:$48 sps:$4 sm:$0xff]  }
 0x7eb   : > { %10671 = vmatpush1.bf16.msra.mxu0 %v15119_v51  ;;  %v15208_v51 = vld [vmem:[#allocation16 + $0x91c] ss:$48 sps:$4 sm:$0xff]  }
 0x7ec   : > { %10757 = vmatpush1.bf16.msra.mxu1 %v15122_v48  ;;  %10672 = vmatprep.subr.bf16.mxu0 %v15127_v37  ;;  %v15203_v48 = vld [vmem:[#allocation16 + $0x910] ss:$48 sps:$4 sm:$0xff]   ;;  %v15206_v37 = vld [vmem:[#allocation16 + $0x918] ss:$48 sps:$4 sm:$0xff]  }
 0x7ed   : > { %10758 = vmatprep.subr.bf16.mxu1 %v15130_v41  ;;  %v15211_v41 = vld [vmem:[#allocation16 + $0x974] ss:$48 sps:$4 sm:$0xff]  }
 0x7ef   : > { %10673 = vmatpush1.bf16.msra.mxu0 %v15125_v28  ;;  %v15214_v28 = vld [vmem:[#allocation16 + $0x97c] ss:$48 sps:$4 sm:$0xff]  }
 0x7f0   : > { %10759 = vmatpush1.bf16.msra.mxu1 %v15128_v57  ;;  %10674 = vmatprep.subr.bf16.mxu0 %v15133_v19  ;;  %v15209_v57 = vld [vmem:[#allocation16 + $0x970] ss:$48 sps:$4 sm:$0xff]   ;;  %v15212_v19 = vld [vmem:[#allocation16 + $0x978] ss:$48 sps:$4 sm:$0xff]  }
 0x7f1   : > { %10760 = vmatprep.subr.bf16.mxu1 %v15136_v60  ;;  %v15217_v60 = vld [vmem:[#allocation16 + $0x9d4] ss:$48 sps:$4 sm:$0xff]  }
 0x7f3   : > { %10675 = vmatpush1.bf16.msra.mxu0 %v15131_v0  ;;  %v15220_v0 = vld [vmem:[#allocation16 + $0x9dc] ss:$48 sps:$4 sm:$0xff]  }
 0x7f4   : > { %10761 = vmatpush1.bf16.msra.mxu1 %v15134_v1  ;;  %10676 = vmatprep.subr.bf16.mxu0 %v15139_v10  ;;  %v15215_v1 = vld [vmem:[#allocation16 + $0x9d0] ss:$48 sps:$4 sm:$0xff]   ;;  %v15218_v10 = vld [vmem:[#allocation16 + $0x9d8] ss:$48 sps:$4 sm:$0xff]  }
 0x7f5   : > { %10762 = vmatprep.subr.bf16.mxu1 %v15142_v53  ;;  %v15223_v53 = vld [vmem:[#allocation16 + $0xa34] ss:$48 sps:$4 sm:$0xff]  }
 0x7f7   : > { %10677 = vmatpush1.bf16.msra.mxu0 %v15137_v2  ;;  %v15226_v2 = vld [vmem:[#allocation16 + $0xa3c] ss:$48 sps:$4 sm:$0xff]  }
 0x7f8   : > { %10763 = vmatpush1.bf16.msra.mxu1 %v15140_v20  ;;  %10678 = vmatprep.subr.bf16.mxu0 %v15145_v32  ;;  %v15221_v20 = vld [vmem:[#allocation16 + $0xa30] ss:$48 sps:$4 sm:$0xff]   ;;  %v15224_v32 = vld [vmem:[#allocation16 + $0xa38] ss:$48 sps:$4 sm:$0xff]  }
 0x7f9   : > { %10764 = vmatprep.subr.bf16.mxu1 %v15148_v54  ;;  %v15229_v54 = vld [vmem:[#allocation16 + $0xa94] ss:$48 sps:$4 sm:$0xff]  }
 0x7fb   : > { %10679 = vmatpush1.bf16.msra.mxu0 %v15143_v45  ;;  %v15232_v45 = vld [vmem:[#allocation16 + $0xa9c] ss:$48 sps:$4 sm:$0xff]  }
 0x7fc   : > { %10765 = vmatpush1.bf16.msra.mxu1 %v15146_v31  ;;  %10680 = vmatprep.subr.bf16.mxu0 %v15151_v21  ;;  %v15227_v31 = vld [vmem:[#allocation16 + $0xa90] ss:$48 sps:$4 sm:$0xff]   ;;  %v15230_v21 = vld [vmem:[#allocation16 + $0xa98] ss:$48 sps:$4 sm:$0xff]  }
 0x7fd   : > { %10766 = vmatprep.subr.bf16.mxu1 %v15154_v36  ;;  %v15235_v36 = vld [vmem:[#allocation16 + $0xaf4] ss:$48 sps:$4 sm:$0xff]  }
 0x7ff   : > { %10681 = vmatpush1.bf16.msra.mxu0 %v15149_v7  ;;  %v15238_v7 = vld [vmem:[#allocation16 + $0xafc] ss:$48 sps:$4 sm:$0xff]  }
 0x800   : > { %10767 = vmatpush1.bf16.msra.mxu1 %v15152_v56  ;;  %10693 = vmatprep.subr.bf16.mxu0 %v15157_v58  ;;  %v15233_v56 = vld [vmem:[#allocation16 + $0xaf0] ss:$48 sps:$4 sm:$0xff]   ;;  %v15236_v58 = vld [vmem:[#allocation16 + $0xaf8] ss:$48 sps:$4 sm:$0xff]  }
 0x801   : > { %10779 = vmatprep.subr.bf16.mxu1 %v15160_v9  ;;  %v15241_v9 = vld [vmem:[#allocation16 + $0xb54] ss:$48 sps:$4 sm:$0xff]  }
 0x802   : > { %10683 = vmatmul.mubr.bf16.vlgmr.msra.gmra.mrb[48].mxu0 %v16520_v59 }
 0x803   : > { %10769 = vmatmul.mubr.bf16.vlgmr.msra.gmra.mrb[48].mxu1 %v16520_v59  ;;  %10694 = vmatpush1.bf16.msra.mxu0 %v15155_v5  ;;  %v15244_v5 = vld [vmem:[#allocation16 + $0xb5c] ss:$48 sps:$4 sm:$0xff]  }
 0x804   : > { %10725 = vmatprep.mubr.bf16.mxu0 %v16526_v18  ;;  %10780 = vmatpush1.bf16.msra.mxu1 %v15158_v55  ;;  %v15239_v55 = vld [vmem:[#allocation16 + $0xb50] ss:$48 sps:$4 sm:$0xff]  }
 0x805   : > { %10811 = vmatprep.mubr.bf16.mxu1 %v16526_v18  ;;  %10695 = vmatprep.subr.bf16.mxu0 %v15163_v52  ;;  %v15242_v52 = vld [vmem:[#allocation16 + $0xb58] ss:$48 sps:$4 sm:$0xff]  }
 0x806   : > { %10781 = vmatprep.subr.bf16.mxu1 %v15166_v8  ;;  %v15247_v8 = vld [vmem:[#allocation16 + $0xbb4] ss:$48 sps:$4 sm:$0xff]  }
 0x807   : > { %10696 = vmatpush1.bf16.msra.mxu0 %v15161_v33  ;;  %v15250_v33 = vld [vmem:[#allocation16 + $0xbbc] ss:$48 sps:$4 sm:$0xff]  }
 0x808   : > { %10782 = vmatpush1.bf16.msra.mxu1 %v15164_v63  ;;  %10697 = vmatprep.subr.bf16.mxu0 %v15169_v30  ;;  %v15245_v63 = vld [vmem:[#allocation16 + $0xbb0] ss:$48 sps:$4 sm:$0xff]   ;;  %v15248_v30 = vld [vmem:[#allocation16 + $0xbb8] ss:$48 sps:$4 sm:$0xff]  }
 0x809   : > { %10783 = vmatprep.subr.bf16.mxu1 %v15172_v24  ;;  %v15253_v24 = vld [vmem:[#allocation16 + $0x24] ss:$48 sps:$4 sm:$0xff]  }
 0x80b   : > { %10698 = vmatpush1.bf16.msra.mxu0 %v15167_v14  ;;  %v15256_v14 = vld [vmem:[#allocation16 + $0x2c] ss:$48 sps:$4 sm:$0xff]  }
 0x80c   : > { %10784 = vmatpush1.bf16.msra.mxu1 %v15170_v16  ;;  %10699 = vmatprep.subr.bf16.mxu0 %v15175_v13  ;;  %v15251_v16 = vld [vmem:[#allocation16 + $0x20] ss:$48 sps:$4 sm:$0xff]   ;;  %v15254_v13 = vld [vmem:[#allocation16 + $0x28] ss:$48 sps:$4 sm:$0xff]  }
 0x80d   : > { %10785 = vmatprep.subr.bf16.mxu1 %v15178_v26  ;;  %v15259_v26 = vld [vmem:[#allocation16 + $0x84] ss:$48 sps:$4 sm:$0xff]  }
 0x80f   : > { %10700 = vmatpush1.bf16.msra.mxu0 %v15173_v25  ;;  %v15262_v25 = vld [vmem:[#allocation16 + $0x8c] ss:$48 sps:$4 sm:$0xff]  }
 0x810   : > { %10786 = vmatpush1.bf16.msra.mxu1 %v15176_v46  ;;  %10701 = vmatprep.subr.bf16.mxu0 %v15181_v62  ;;  %v15257_v46 = vld [vmem:[#allocation16 + $0x80] ss:$48 sps:$4 sm:$0xff]   ;;  %v15260_v62 = vld [vmem:[#allocation16 + $0x88] ss:$48 sps:$4 sm:$0xff]  }
 0x811   : > { %10787 = vmatprep.subr.bf16.mxu1 %v15184_v43  ;;  %v15265_v43 = vld [vmem:[#allocation16 + $0xe4] ss:$48 sps:$4 sm:$0xff]  }
 0x813   : > { %10702 = vmatpush1.bf16.msra.mxu0 %v15179_v17  ;;  %v15268_v17 = vld [vmem:[#allocation16 + $0xec] ss:$48 sps:$4 sm:$0xff]  }
 0x814   : > { %10788 = vmatpush1.bf16.msra.mxu1 %v15182_v44  ;;  %10703 = vmatprep.subr.bf16.mxu0 %v15187_v61  ;;  %v15263_v44 = vld [vmem:[#allocation16 + $0xe0] ss:$48 sps:$4 sm:$0xff]   ;;  %v15266_v61 = vld [vmem:[#allocation16 + $0xe8] ss:$48 sps:$4 sm:$0xff]  }
 0x815   : > { %10789 = vmatprep.subr.bf16.mxu1 %v15190_v34  ;;  %v15271_v34 = vld [vmem:[#allocation16 + $0x144] ss:$48 sps:$4 sm:$0xff]  }
 0x817   : > { %10704 = vmatpush1.bf16.msra.mxu0 %v15185_v39  ;;  %v15274_v39 = vld [vmem:[#allocation16 + $0x14c] ss:$48 sps:$4 sm:$0xff]  }
 0x818   : > { %10790 = vmatpush1.bf16.msra.mxu1 %v15188_v23  ;;  %10705 = vmatprep.subr.bf16.mxu0 %v15193_v15  ;;  %v15269_v23 = vld [vmem:[#allocation16 + $0x140] ss:$48 sps:$4 sm:$0xff]   ;;  %v15272_v15 = vld [vmem:[#allocation16 + $0x148] ss:$48 sps:$4 sm:$0xff]  }
 0x819   : > { %10791 = vmatprep.subr.bf16.mxu1 %v15196_v12  ;;  %v15277_v12 = vld [vmem:[#allocation16 + $0x1a4] ss:$48 sps:$4 sm:$0xff]  }
 0x81b   : > { %10706 = vmatpush1.bf16.msra.mxu0 %v15191_v29  ;;  %v15280_v29 = vld [vmem:[#allocation16 + $0x1ac] ss:$48 sps:$4 sm:$0xff]  }
 0x81c   : > { %10792 = vmatpush1.bf16.msra.mxu1 %v15194_v38  ;;  %10707 = vmatprep.subr.bf16.mxu0 %v15199_v49  ;;  %v15278_v38 = vld [vmem:[#allocation16 + $0x1a8] ss:$48 sps:$4 sm:$0xff]   ;;  %v15283_v49 = vld [vmem:[#allocation16 + $0x204] ss:$48 sps:$4 sm:$0xff]  }
 0x81d   : > { %10793 = vmatprep.subr.bf16.mxu1 %v15202_v11  ;;  %v15286_v11 = vld [vmem:[#allocation16 + $0x20c] ss:$48 sps:$4 sm:$0xff]  }
 0x81f   : > { %10708 = vmatpush1.bf16.msra.mxu0 %v15197_v50  ;;  %v15281_v50 = vld [vmem:[#allocation16 + $0x200] ss:$48 sps:$4 sm:$0xff]  }
 0x820   : > { %10794 = vmatpush1.bf16.msra.mxu1 %v15200_v47  ;;  %10709 = vmatprep.subr.bf16.mxu0 %v15205_v27  ;;  %v15284_v47 = vld [vmem:[#allocation16 + $0x208] ss:$48 sps:$4 sm:$0xff]   ;;  %v15289_v27 = vld [vmem:[#allocation16 + $0x264] ss:$48 sps:$4 sm:$0xff]  }
 0x821   : > { %10795 = vmatprep.subr.bf16.mxu1 %v15208_v51  ;;  %v15292_v51 = vld [vmem:[#allocation16 + $0x26c] ss:$48 sps:$4 sm:$0xff]  }
 0x823   : > { %10710 = vmatpush1.bf16.msra.mxu0 %v15203_v48  ;;  %v15287_v48 = vld [vmem:[#allocation16 + $0x260] ss:$48 sps:$4 sm:$0xff]  }
 0x824   : > { %10796 = vmatpush1.bf16.msra.mxu1 %v15206_v37  ;;  %10711 = vmatprep.subr.bf16.mxu0 %v15211_v41  ;;  %v15290_v37 = vld [vmem:[#allocation16 + $0x268] ss:$48 sps:$4 sm:$0xff]   ;;  %v15295_v41 = vld [vmem:[#allocation16 + $0x2c4] ss:$48 sps:$4 sm:$0xff]  }
 0x825   : > { %10797 = vmatprep.subr.bf16.mxu1 %v15214_v28  ;;  %v15298_v28 = vld [vmem:[#allocation16 + $0x2cc] ss:$48 sps:$4 sm:$0xff]  }
 0x827   : > { %10712 = vmatpush1.bf16.msra.mxu0 %v15209_v57  ;;  %v15293_v57 = vld [vmem:[#allocation16 + $0x2c0] ss:$48 sps:$4 sm:$0xff]  }
 0x828   : > { %10798 = vmatpush1.bf16.msra.mxu1 %v15212_v19  ;;  %10713 = vmatprep.subr.bf16.mxu0 %v15217_v60  ;;  %v15296_v19 = vld [vmem:[#allocation16 + $0x2c8] ss:$48 sps:$4 sm:$0xff]   ;;  %v15301_v60 = vld [vmem:[#allocation16 + $0x324] ss:$48 sps:$4 sm:$0xff]  }
 0x829   : > { %10799 = vmatprep.subr.bf16.mxu1 %v15220_v0  ;;  %v15304_v0 = vld [vmem:[#allocation16 + $0x32c] ss:$48 sps:$4 sm:$0xff]  }
 0x82b   : > { %10714 = vmatpush1.bf16.msra.mxu0 %v15215_v1  ;;  %v15299_v1 = vld [vmem:[#allocation16 + $0x320] ss:$48 sps:$4 sm:$0xff]  }
 0x82c   : > { %10800 = vmatpush1.bf16.msra.mxu1 %v15218_v10  ;;  %10715 = vmatprep.subr.bf16.mxu0 %v15223_v53  ;;  %v15302_v10 = vld [vmem:[#allocation16 + $0x328] ss:$48 sps:$4 sm:$0xff]   ;;  %v15307_v53 = vld [vmem:[#allocation16 + $0x384] ss:$48 sps:$4 sm:$0xff]  }
 0x82d   : > { %10801 = vmatprep.subr.bf16.mxu1 %v15226_v2  ;;  %v15310_v2 = vld [vmem:[#allocation16 + $0x38c] ss:$48 sps:$4 sm:$0xff]  }
 0x82f   : > { %10716 = vmatpush1.bf16.msra.mxu0 %v15221_v20  ;;  %v15305_v20 = vld [vmem:[#allocation16 + $0x380] ss:$48 sps:$4 sm:$0xff]  }
 0x830   : > { %10802 = vmatpush1.bf16.msra.mxu1 %v15224_v32  ;;  %10717 = vmatprep.subr.bf16.mxu0 %v15229_v54  ;;  %v15308_v32 = vld [vmem:[#allocation16 + $0x388] ss:$48 sps:$4 sm:$0xff]   ;;  %v15313_v54 = vld [vmem:[#allocation16 + $0x3e4] ss:$48 sps:$4 sm:$0xff]  }
 0x831   : > { %10803 = vmatprep.subr.bf16.mxu1 %v15232_v45  ;;  %v15316_v45 = vld [vmem:[#allocation16 + $0x3ec] ss:$48 sps:$4 sm:$0xff]  }
 0x833   : > { %10718 = vmatpush1.bf16.msra.mxu0 %v15227_v31  ;;  %v15311_v31 = vld [vmem:[#allocation16 + $0x3e0] ss:$48 sps:$4 sm:$0xff]  }
 0x834   : > { %10804 = vmatpush1.bf16.msra.mxu1 %v15230_v21  ;;  %10719 = vmatprep.subr.bf16.mxu0 %v15235_v36  ;;  %v15314_v21 = vld [vmem:[#allocation16 + $0x3e8] ss:$48 sps:$4 sm:$0xff]   ;;  %v15319_v36 = vld [vmem:[#allocation16 + $0x444] ss:$48 sps:$4 sm:$0xff]  }
 0x835   : > { %10805 = vmatprep.subr.bf16.mxu1 %v15238_v7  ;;  %v15322_v7 = vld [vmem:[#allocation16 + $0x44c] ss:$48 sps:$4 sm:$0xff]  }
 0x837   : > { %10720 = vmatpush1.bf16.msra.mxu0 %v15233_v56  ;;  %v15317_v56 = vld [vmem:[#allocation16 + $0x440] ss:$48 sps:$4 sm:$0xff]  }
 0x838   : > { %10806 = vmatpush1.bf16.msra.mxu1 %v15236_v58  ;;  %10721 = vmatprep.subr.bf16.mxu0 %v15241_v9  ;;  %v15320_v58 = vld [vmem:[#allocation16 + $0x448] ss:$48 sps:$4 sm:$0xff]   ;;  %v15325_v9 = vld [vmem:[#allocation16 + $0x4a4] ss:$48 sps:$4 sm:$0xff]  }
 0x839   : > { %10807 = vmatprep.subr.bf16.mxu1 %v15244_v5  ;;  %v15328_v5 = vld [vmem:[#allocation16 + $0x4ac] ss:$48 sps:$4 sm:$0xff]  }
 0x83b   : > { %10722 = vmatpush1.bf16.msra.mxu0 %v15239_v55  ;;  %v15323_v55 = vld [vmem:[#allocation16 + $0x4a0] ss:$48 sps:$4 sm:$0xff]  }
 0x83c   : > { %10808 = vmatpush1.bf16.msra.mxu1 %v15242_v52  ;;  %10723 = vmatprep.subr.bf16.mxu0 %v15247_v8  ;;  %v15326_v52 = vld [vmem:[#allocation16 + $0x4a8] ss:$48 sps:$4 sm:$0xff]   ;;  %v15331_v8 = vld [vmem:[#allocation16 + $0x504] ss:$48 sps:$4 sm:$0xff]  }
 0x83d   : > { %10809 = vmatprep.subr.bf16.mxu1 %v15250_v33  ;;  %v15334_v33 = vld [vmem:[#allocation16 + $0x50c] ss:$48 sps:$4 sm:$0xff]  }
 0x83f   : > { %10724 = vmatpush1.bf16.msra.mxu0 %v15245_v63  ;;  %v15329_v63 = vld [vmem:[#allocation16 + $0x500] ss:$48 sps:$4 sm:$0xff]  }
 0x840   : > { %10810 = vmatpush1.bf16.msra.mxu1 %v15248_v30  ;;  %10822 = vmatprep.subr.bf16.mxu0 %v15253_v24  ;;  %v15332_v30 = vld [vmem:[#allocation16 + $0x508] ss:$48 sps:$4 sm:$0xff]   ;;  %v15337_v24 = vld [vmem:[#allocation16 + $0x564] ss:$48 sps:$4 sm:$0xff]  }
 0x841   : > { %10908 = vmatprep.subr.bf16.mxu1 %v15256_v14  ;;  %v15340_v14 = vld [vmem:[#allocation16 + $0x56c] ss:$48 sps:$4 sm:$0xff]  }
 0x842   : > { %10726 = vmatmul.mubr.bf16.vlgmr.msra.gmra.mrb[48].mxu0 %v16522_v22 }
 0x843   : > { %10812 = vmatmul.mubr.bf16.vlgmr.msra.gmra.mrb[48].mxu1 %v16522_v22  ;;  %10823 = vmatpush1.bf16.msra.mxu0 %v15251_v16  ;;  %v15335_v16 = vld [vmem:[#allocation16 + $0x560] ss:$48 sps:$4 sm:$0xff]  }
 0x844   : > { %10854 = vmatprep.mubr.bf16.mxu0 %v16524_v35  ;;  %10909 = vmatpush1.bf16.msra.mxu1 %v15254_v13  ;;  %v15338_v13 = vld [vmem:[#allocation16 + $0x568] ss:$48 sps:$4 sm:$0xff]  }
 0x845   : > { %10940 = vmatprep.mubr.bf16.mxu1 %v16524_v35  ;;  %10824 = vmatprep.subr.bf16.mxu0 %v15259_v26  ;;  %v15275_v35 = vld [vmem:[#allocation16 + $0x1a0] ss:$48 sps:$4 sm:$0xff]   ;;  %v15343_v26 = vld [vmem:[#allocation16 + $0x5c4] ss:$48 sps:$4 sm:$0xff]  }
 0x846   : > { %10910 = vmatprep.subr.bf16.mxu1 %v15262_v25  ;;  %v15346_v25 = vld [vmem:[#allocation16 + $0x5cc] ss:$48 sps:$4 sm:$0xff]  }
 0x847   : > { %10825 = vmatpush1.bf16.msra.mxu0 %v15257_v46  ;;  %v15341_v46 = vld [vmem:[#allocation16 + $0x5c0] ss:$48 sps:$4 sm:$0xff]  }
 0x848   : > { %10911 = vmatpush1.bf16.msra.mxu1 %v15260_v62  ;;  %10826 = vmatprep.subr.bf16.mxu0 %v15265_v43  ;;  %v15344_v62 = vld [vmem:[#allocation16 + $0x5c8] ss:$48 sps:$4 sm:$0xff]   ;;  %v15349_v43 = vld [vmem:[#allocation16 + $0x624] ss:$48 sps:$4 sm:$0xff]  }
 0x849   : > { %10912 = vmatprep.subr.bf16.mxu1 %v15268_v17  ;;  %v15352_v17 = vld [vmem:[#allocation16 + $0x62c] ss:$48 sps:$4 sm:$0xff]  }
 0x84b   : > { %10827 = vmatpush1.bf16.msra.mxu0 %v15263_v44  ;;  %v15347_v44 = vld [vmem:[#allocation16 + $0x620] ss:$48 sps:$4 sm:$0xff]  }
 0x84c   : > { %10913 = vmatpush1.bf16.msra.mxu1 %v15266_v61  ;;  %10828 = vmatprep.subr.bf16.mxu0 %v15271_v34  ;;  %v15350_v61 = vld [vmem:[#allocation16 + $0x628] ss:$48 sps:$4 sm:$0xff]   ;;  %v15355_v34 = vld [vmem:[#allocation16 + $0x684] ss:$48 sps:$4 sm:$0xff]  }
 0x84d   : > { %10914 = vmatprep.subr.bf16.mxu1 %v15274_v39  ;;  %v15358_v39 = vld [vmem:[#allocation16 + $0x68c] ss:$48 sps:$4 sm:$0xff]  }
 0x84f   : > { %10829 = vmatpush1.bf16.msra.mxu0 %v15269_v23  ;;  %v15353_v23 = vld [vmem:[#allocation16 + $0x680] ss:$48 sps:$4 sm:$0xff]  }
 0x850   : > { %10915 = vmatpush1.bf16.msra.mxu1 %v15272_v15  ;;  %10830 = vmatprep.subr.bf16.mxu0 %v15277_v12  ;;  %v15356_v15 = vld [vmem:[#allocation16 + $0x688] ss:$48 sps:$4 sm:$0xff]   ;;  %v15361_v12 = vld [vmem:[#allocation16 + $0x6e4] ss:$48 sps:$4 sm:$0xff]  }
 0x851   : > { %10916 = vmatprep.subr.bf16.mxu1 %v15280_v29  ;;  %v15364_v29 = vld [vmem:[#allocation16 + $0x6ec] ss:$48 sps:$4 sm:$0xff]  }
 0x853   : > { %10831 = vmatpush1.bf16.msra.mxu0 %v15275_v35  ;;  %v15359_v35 = vld [vmem:[#allocation16 + $0x6e0] ss:$48 sps:$4 sm:$0xff]  }
 0x854   : > { %10917 = vmatpush1.bf16.msra.mxu1 %v15278_v38  ;;  %10832 = vmatprep.subr.bf16.mxu0 %v15283_v49  ;;  %v15362_v38 = vld [vmem:[#allocation16 + $0x6e8] ss:$48 sps:$4 sm:$0xff]   ;;  %v15367_v49 = vld [vmem:[#allocation16 + $0x744] ss:$48 sps:$4 sm:$0xff]  }
 0x855   : > { %10918 = vmatprep.subr.bf16.mxu1 %v15286_v11  ;;  %v15365_v11 = vld [vmem:[#allocation16 + $0x740] ss:$48 sps:$4 sm:$0xff]  }
 0x857   : > { %10833 = vmatpush1.bf16.msra.mxu0 %v15281_v50  ;;  %v15368_v50 = vld [vmem:[#allocation16 + $0x748] ss:$48 sps:$4 sm:$0xff]  }
 0x858   : > { %10919 = vmatpush1.bf16.msra.mxu1 %v15284_v47  ;;  %10834 = vmatprep.subr.bf16.mxu0 %v15289_v27  ;;  %v15373_v47 = vld [vmem:[#allocation16 + $0x7a4] ss:$48 sps:$4 sm:$0xff]   ;;  %v15376_v27 = vld [vmem:[#allocation16 + $0x7ac] ss:$48 sps:$4 sm:$0xff]  }
 0x859   : > { %10920 = vmatprep.subr.bf16.mxu1 %v15292_v51  ;;  %v16553_v51 = vld [vmem:[%s16687_s10] sm:$0xff] }
 0x85b   : > { %10835 = vmatpush1.bf16.msra.mxu0 %v15287_v48  ;;  %v15374_v48 = vld [vmem:[#allocation16 + $0x7a8] ss:$48 sps:$4 sm:$0xff]  }
 0x85c   : > { %10921 = vmatpush1.bf16.msra.mxu1 %v15290_v37  ;;  %10836 = vmatprep.subr.bf16.mxu0 %v15295_v41  ;;  %v15379_v37 = vld [vmem:[#allocation16 + $0x804] ss:$48 sps:$4 sm:$0xff]   ;;  %v15382_v41 = vld [vmem:[#allocation16 + $0x80c] ss:$48 sps:$4 sm:$0xff]  }
 0x85d   : > { %10922 = vmatprep.subr.bf16.mxu1 %v15298_v28  ;;  %v8501_v28 = vrot.slane %v16553_v51, %v16129_v4 }
 0x85f   : > { %10837 = vmatpush1.bf16.msra.mxu0 %v15293_v57  ;;  %v8509_v57 = vrot.slane %v16553_v51, %v16160_v40 }
 0x860   : > { %10923 = vmatpush1.bf16.msra.mxu1 %v15296_v19  ;;  %10838 = vmatprep.subr.bf16.mxu0 %v15301_v60  ;;  %v8505_v19 = vrot.slane %v16553_v51, %v16132_v6  ;;  %v8513_v60 = vrot.slane %v16553_v51, %v16166_v42 }
 0x861   : > { %10924 = vmatprep.subr.bf16.mxu1 %v15304_v0  ;;  %v15377_v0 = vld [vmem:[#allocation16 + $0x800] ss:$48 sps:$4 sm:$0xff]  }
 0x863   : > { %10839 = vmatpush1.bf16.msra.mxu0 %v15299_v1  ;;  %v15380_v1 = vld [vmem:[#allocation16 + $0x808] ss:$48 sps:$4 sm:$0xff]  }
 0x864   : > { %10925 = vmatpush1.bf16.msra.mxu1 %v15302_v10  ;;  %10840 = vmatprep.subr.bf16.mxu0 %v15307_v53  ;;  %v15385_v10 = vld [vmem:[#allocation16 + $0x864] ss:$48 sps:$4 sm:$0xff]  }
 0x865   : > { %10926 = vmatprep.subr.bf16.mxu1 %v15310_v2 }
 0x867   : > { %10841 = vmatpush1.bf16.msra.mxu0 %v15305_v20  ;;  %v15388_v20 = vld [vmem:[#allocation16 + $0x86c] ss:$48 sps:$4 sm:$0xff]  }
 0x868   : > { %10927 = vmatpush1.bf16.msra.mxu1 %v15308_v32  ;;  %10842 = vmatprep.subr.bf16.mxu0 %v15313_v54 }
 0x869   : > { %10928 = vmatprep.subr.bf16.mxu1 %v15316_v45 }
 0x86b   : > { %10843 = vmatpush1.bf16.msra.mxu0 %v15311_v31 }
 0x86c   : > { %10929 = vmatpush1.bf16.msra.mxu1 %v15314_v21  ;;  %10844 = vmatprep.subr.bf16.mxu0 %v15319_v36 }
 0x86d   : > { %10930 = vmatprep.subr.bf16.mxu1 %v15322_v7 }
 0x86f   : > { %10845 = vmatpush1.bf16.msra.mxu0 %v15317_v56 }
 0x870   : > { %10931 = vmatpush1.bf16.msra.mxu1 %v15320_v58  ;;  %10846 = vmatprep.subr.bf16.mxu0 %v15325_v9  ;;  %v15758_v58 = vmov 1983009808  }
 0x871   : > { %10932 = vmatprep.subr.bf16.mxu1 %v15328_v5  ;;  %v16563_v9 = vunpack.c.l.s4 %v15758_v58  ;;  %v15383_v5 = vld [vmem:[#allocation16 + $0x860] ss:$48 sps:$4 sm:$0xff]  }
 0x873   : > { %10847 = vmatpush1.bf16.msra.mxu0 %v15323_v55 }
 0x874   : > { %10933 = vmatpush1.bf16.msra.mxu1 %v15326_v52  ;;  %10848 = vmatprep.subr.bf16.mxu0 %v15331_v8 }
 0x875   : > { %10934 = vmatprep.subr.bf16.mxu1 %v15334_v33 }
 0x877   : > { %10849 = vmatpush1.bf16.msra.mxu0 %v15329_v63 }
 0x878   : > { %10935 = vmatpush1.bf16.msra.mxu1 %v15332_v30  ;;  %10850 = vmatprep.subr.bf16.mxu0 %v15337_v24  ;;  %v15386_v24 = vld [vmem:[#allocation16 + $0x868] ss:$48 sps:$4 sm:$0xff]  }
 0x879   : > { %10936 = vmatprep.subr.bf16.mxu1 %v15340_v14 }
 0x87b   : > { %10851 = vmatpush1.bf16.msra.mxu0 %v15335_v16 }
 0x87c   : > { %10937 = vmatpush1.bf16.msra.mxu1 %v15338_v13  ;;  %10852 = vmatprep.subr.bf16.mxu0 %v15343_v26 }
 0x87d   : > { %10938 = vmatprep.subr.bf16.mxu1 %v15346_v25  ;;  %v15391_v25 = vld [vmem:[#allocation16 + $0x8c4] ss:$48 sps:$4 sm:$0xff]  }
 0x87f   : > { %10853 = vmatpush1.bf16.msra.mxu0 %v15341_v46 }
 0x880   : > { %10939 = vmatpush1.bf16.msra.mxu1 %v15344_v62  ;;  %10865 = vmatprep.subr.bf16.mxu0 %v15349_v43 }
 0x881   : > { %10951 = vmatprep.subr.bf16.mxu1 %v15352_v17 }
 0x882   : > { %10855 = vmatmul.mubr.bf16.vlgmr.msra.gmra.mrb[52].mxu0 %v16520_v59 }
 0x883   : > { %10941 = vmatmul.mubr.bf16.vlgmr.msra.gmra.mrb[52].mxu1 %v16520_v59  ;;  %10866 = vmatpush1.bf16.msra.mxu0 %v15347_v44  ;;  %v15370_v59 = vld [vmem:[#allocation16 + $0x74c] ss:$48 sps:$4 sm:$0xff]  }
 0x884   : > { %10897 = vmatprep.mubr.bf16.mxu0 %v16526_v18  ;;  %10952 = vmatpush1.bf16.msra.mxu1 %v15350_v61  ;;  %v15394_v44 = vld [vmem:[#allocation16 + $0x8cc] ss:$48 sps:$4 sm:$0xff]  }
 0x885   : > { %10983 = vmatprep.mubr.bf16.mxu1 %v16526_v18  ;;  %10867 = vmatprep.subr.bf16.mxu0 %v15355_v34  ;;  %v15371_v18 = vld [vmem:[#allocation16 + $0x7a0] ss:$48 sps:$4 sm:$0xff]  }
 0x886   : > { %10953 = vmatprep.subr.bf16.mxu1 %v15358_v39 }
 0x887   : > { %10868 = vmatpush1.bf16.msra.mxu0 %v15353_v23 }
 0x888   : > { %10954 = vmatpush1.bf16.msra.mxu1 %v15356_v15  ;;  %10869 = vmatprep.subr.bf16.mxu0 %v15361_v12  ;;  %v15389_v15 = vld [vmem:[#allocation16 + $0x8c0] ss:$48 sps:$4 sm:$0xff]  }
 0x889   : > { %10955 = vmatprep.subr.bf16.mxu1 %v15364_v29 }
 0x88b   : > { %10870 = vmatpush1.bf16.msra.mxu0 %v15359_v35 }
 0x88c   : > { %10956 = vmatpush1.bf16.msra.mxu1 %v15362_v38  ;;  %10871 = vmatprep.subr.bf16.mxu0 %v15367_v49  ;;  %v15392_v49 = vld [vmem:[#allocation16 + $0x8c8] ss:$48 sps:$4 sm:$0xff]  }
 0x88d   : > { %10957 = vmatprep.subr.bf16.mxu1 %v15370_v59  ;;  %v15397_v59 = vld [vmem:[#allocation16 + $0x924] ss:$48 sps:$4 sm:$0xff]  }
 0x88f   : > { %10872 = vmatpush1.bf16.msra.mxu0 %v15365_v11 }
 0x890   : > { %10958 = vmatpush1.bf16.msra.mxu1 %v15368_v50  ;;  %10873 = vmatprep.subr.bf16.mxu0 %v15373_v47 }
 0x891   : > { %10959 = vmatprep.subr.bf16.mxu1 %v15376_v27 }
 0x893   : > { %10874 = vmatpush1.bf16.msra.mxu0 %v15371_v18  ;;  %v15400_v18 = vld [vmem:[#allocation16 + $0x92c] ss:$48 sps:$4 sm:$0xff]  }
 0x894   : > { %10960 = vmatpush1.bf16.msra.mxu1 %v15374_v48  ;;  %10875 = vmatprep.subr.bf16.mxu0 %v15379_v37 }
 0x895   : > { %v10555_v53 = vpop.f32.mrb[44].mxu0  ;;  %v10641_v2 = vpop.f32.mrb[44].mxu1  ;;  %10961 = vmatprep.subr.bf16.mxu1 %v15382_v41 }
 0x896   : > { %v13180_v32 = vadd.f32 %v10555_v53, %v8501_v28  ;;  %v13184_v54 = vadd.f32 %v10641_v2, %v8509_v57  ;;  %v10557_v45 = vpop.f32.mrb[45].mxu0  ;;  %v10643_v31 = vpop.f32.mrb[45].mxu1 }
 0x897   : > { %v13181_v21 = vadd.f32 %v10557_v45, %v8505_v19  ;;  %v13185_v36 = vadd.f32 %v10643_v31, %v8513_v60  ;;  %v10559_v7 = vpop.f32.mrb[46].mxu0  ;;  %v10645_v56 = vpop.f32.mrb[46].mxu1  ;;  %10876 = vmatpush1.bf16.msra.mxu0 %v15377_v0 }
 0x898   : > { %v10994_v55 = vmax.f32 %v13180_v32, 0.0  ;;  %v10996_v52 = vmax.f32 %v13184_v54, 0.0  ;;  %v13182_v8 = vadd.f32 %v10559_v7, %v8501_v28  ;;  %v13186_v33 = vadd.f32 %v10645_v56, %v8509_v57  ;;  %10962 = vmatpush1.bf16.msra.mxu1 %v15380_v1  ;;  %v10561_v63 = vpop.f32.mrb[47].mxu0  ;;  %v10647_v30 = vpop.f32.mrb[47].mxu1  ;;  %10877 = vmatprep.subr.bf16.mxu0 %v15385_v10  ;;  %v15395_v1 = vld [vmem:[#allocation16 + $0x920] ss:$48 sps:$4 sm:$0xff]  }
 0x899   : > { %v10995_v14 = vmax.f32 %v13181_v21, 0.0  ;;  %v10997_v16 = vmax.f32 %v13185_v36, 0.0  ;;  %v13183_v13 = vadd.f32 %v10561_v63, %v8505_v19  ;;  %v13187_v26 = vadd.f32 %v10647_v30, %v8513_v60  ;;  %10963 = vmatprep.subr.bf16.mxu1 %v15388_v20  ;;  %v15398_v32 = vld [vmem:[#allocation16 + $0x928] ss:$48 sps:$4 sm:$0xff]   ;;  %v15403_v54 = vld [vmem:[#allocation16 + $0x984] ss:$48 sps:$4 sm:$0xff]  }
 0x89a   : > { %v11135_v46 = vmul.f32 %v10994_v55, %v10994_v55  ;;  %v11137_v62 = vmul.f32 %v10996_v52, %v10996_v52  ;;  %v11006_v43 = vmax.f32 %v13182_v8, 0.0  ;;  %v11008_v17 = vmax.f32 %v13186_v33, 0.0  ;;  %v15406_v7 = vld [vmem:[#allocation16 + $0x98c] ss:$48 sps:$4 sm:$0xff]   ;;  %v15401_v30 = vld [vmem:[#allocation16 + $0x980] ss:$48 sps:$4 sm:$0xff]  }
 0x89b   : > { %v11136_v61 = vmul.f32 %v10995_v14, %v10995_v14  ;;  %v11138_v34 = vmul.f32 %v10997_v16, %v10997_v16  ;;  %v11007_v39 = vmax.f32 %v13183_v13, 0.0  ;;  %v11009_v23 = vmax.f32 %v13187_v26, 0.0  ;;  %10878 = vmatpush1.bf16.msra.mxu0 %v15383_v5  ;;  %v15404_v26 = vld [vmem:[#allocation16 + $0x988] ss:$48 sps:$4 sm:$0xff]  }
 0x89c   : > { %v11051_v12 = vadd.f32 %v11006_v43, %v10994_v55  ;;  %v11147_v29 = vmul.f32 %v11006_v43, %v11006_v43  ;;  %v11065_v35 = vadd.f32 %v11008_v17, %v10996_v52  ;;  %v11149_v38 = vmul.f32 %v11008_v17, %v11008_v17  ;;  %10964 = vmatpush1.bf16.msra.mxu1 %v15386_v24 }
 0x89d   : > { %v11058_v11 = vadd.f32 %v11007_v39, %v10995_v14  ;;  %v11148_v50 = vmul.f32 %v11007_v39, %v11007_v39  ;;  %v11072_v47 = vadd.f32 %v11009_v23, %v10997_v16  ;;  %v11150_v27 = vmul.f32 %v11009_v23, %v11009_v23  ;;  %10879 = vmatprep.subr.bf16.mxu0 %v15391_v25  ;;  %v15409_v25 = vld [vmem:[#allocation16 + $0x9e4] ss:$48 sps:$4 sm:$0xff]  }
 0x89e   : > { %v11052_v48 = vrot.slane %v11051_v12, 4  ;;  %v11159_v37 = vadd.f32 %v11147_v29, %v11135_v46  ;;  %v11066_v41 = vrot.slane %v11065_v35, 4  ;;  %v11173_v28 = vadd.f32 %v11149_v38, %v11137_v62  ;;  %10965 = vmatprep.subr.bf16.mxu1 %v15394_v44  ;;  %v15412_v44 = vld [vmem:[#allocation16 + $0x9ec] ss:$48 sps:$4 sm:$0xff]   ;;  %v15407_v38 = vld [vmem:[#allocation16 + $0x9e0] ss:$48 sps:$4 sm:$0xff]  }
 0x89f   : > { %v11059_v57 = vrot.slane %v11058_v11, 4  ;;  %v11166_v19 = vadd.f32 %v11148_v50, %v11136_v61  ;;  %v11073_v60 = vrot.slane %v11072_v47, 4  ;;  %v11180_v0 = vadd.f32 %v11150_v27, %v11138_v34  ;;  %10880 = vmatpush1.bf16.msra.mxu0 %v15389_v15  ;;  %v15410_v50 = vld [vmem:[#allocation16 + $0x9e8] ss:$48 sps:$4 sm:$0xff]  }
 0x8a0   : > { %v11053_v10 = vadd.f32 %v11052_v48, %v11051_v12  ;;  %v11160_v53 = vrot.slane %v11159_v37, 4  ;;  %v11067_v2 = vadd.f32 %v11066_v41, %v11065_v35  ;;  %v11174_v20 = vrot.slane %v11173_v28, 4  ;;  %10966 = vmatpush1.bf16.msra.mxu1 %v15392_v49  ;;  %10881 = vmatprep.subr.bf16.mxu0 %v15397_v59  ;;  %v15418_v48 = vld [vmem:[#allocation16 + $0xa4c] ss:$48 sps:$4 sm:$0xff]  }
 0x8a1   : > { %v11060_v45 = vadd.f32 %v11059_v57, %v11058_v11  ;;  %v11167_v31 = vrot.slane %v11166_v19, 4  ;;  %v11074_v21 = vadd.f32 %v11073_v60, %v11072_v47  ;;  %v11181_v36 = vrot.slane %v11180_v0, 4  ;;  %10967 = vmatprep.subr.bf16.mxu1 %v15400_v18  ;;  %v15415_v47 = vld [vmem:[#allocation16 + $0xa44] ss:$48 sps:$4 sm:$0xff]  }
 0x8a2   : > { %v11054_v56 = vrot.slane %v11053_v10, 2  ;;  %v11161_v58 = vadd.f32 %v11160_v53, %v11159_v37  ;;  %v11068_v5 = vrot.slane %v11067_v2, 2  ;;  %v11175_v55 = vadd.f32 %v11174_v20, %v11173_v28  ;;  %v15416_v20 = vld [vmem:[#allocation16 + $0xa48] ss:$48 sps:$4 sm:$0xff]  }
 0x8a3   : > { %v11061_v52 = vrot.slane %v11060_v45, 2  ;;  %v11168_v8 = vadd.f32 %v11167_v31, %v11166_v19  ;;  %v11075_v33 = vrot.slane %v11074_v21, 2  ;;  %v11182_v63 = vadd.f32 %v11181_v36, %v11180_v0  ;;  %10882 = vmatpush1.bf16.msra.mxu0 %v15395_v1  ;;  %v15424_v31 = vld [vmem:[#allocation16 + $0xaac] ss:$48 sps:$4 sm:$0xff]  }
 0x8a4   : > { %v11055_v24 = vadd.f32 %v11054_v56, %v11053_v10  ;;  %v11162_v14 = vrot.slane %v11161_v58, 2  ;;  %v11069_v16 = vadd.f32 %v11068_v5, %v11067_v2  ;;  %v11176_v13 = vrot.slane %v11175_v55, 2  ;;  %10968 = vmatpush1.bf16.msra.mxu1 %v15398_v32  ;;  %10883 = vmatprep.subr.bf16.mxu0 %v15403_v54  ;;  %v15413_v10 = vld [vmem:[#allocation16 + $0xa40] ss:$48 sps:$4 sm:$0xff]   ;;  %v15421_v32 = vld [vmem:[#allocation16 + $0xaa4] ss:$48 sps:$4 sm:$0xff]  }
 0x8a5   : > { %v11062_v46 = vadd.f32 %v11061_v52, %v11060_v45  ;;  %v11169_v62 = vrot.slane %v11168_v8, 2  ;;  %v11076_v43 = vadd.f32 %v11075_v33, %v11074_v21  ;;  %v11183_v17 = vrot.slane %v11182_v63, 2  ;;  %10969 = vmatprep.subr.bf16.mxu1 %v15406_v7  ;;  %v15419_v7 = vld [vmem:[#allocation16 + $0xaa0] ss:$48 sps:$4 sm:$0xff]   ;;  %v15422_v5 = vld [vmem:[#allocation16 + $0xaa8] ss:$48 sps:$4 sm:$0xff]  }
 0x8a6   : > { %v11056_v61 = vrot.slane %v11055_v24, 1  ;;  %v11163_v34 = vadd.f32 %v11162_v14, %v11161_v58  ;;  %v11070_v39 = vrot.slane %v11069_v16, 1  ;;  %v11177_v23 = vadd.f32 %v11176_v13, %v11175_v55  ;;  %v15427_v55 = vld [vmem:[#allocation16 + $0xb04] ss:$48 sps:$4 sm:$0xff]   ;;  %v15430_v52 = vld [vmem:[#allocation16 + $0xb0c] ss:$48 sps:$4 sm:$0xff]  }
 0x8a7   : > { %v11063_v15 = vrot.slane %v11062_v46, 1  ;;  %v11170_v12 = vadd.f32 %v11169_v62, %v11168_v8  ;;  %v11077_v29 = vrot.slane %v11076_v43, 1  ;;  %v11184_v35 = vadd.f32 %v11183_v17, %v11182_v63  ;;  %10884 = vmatpush1.bf16.msra.mxu0 %v15401_v30  ;;  %v15425_v33 = vld [vmem:[#allocation16 + $0xb00] ss:$48 sps:$4 sm:$0xff]   ;;  %v15428_v63 = vld [vmem:[#allocation16 + $0xb08] ss:$48 sps:$4 sm:$0xff]  }
 0x8a8   : > { %v11164_v49 = vrot.slane %v11163_v34, 1  ;;  %v11178_v59 = vrot.slane %v11177_v23, 1  ;;  %v11275_v11 = vunpack.c.0.s8 %v16563_v9  ;;  %10970 = vmatpush1.bf16.msra.mxu1 %v15404_v26  ;;  %10885 = vmatprep.subr.bf16.mxu0 %v15409_v25  ;;  %v11057_v37 = vadd.f32 %v11056_v61, %v11055_v24  ;;  %v15433_v30 = vld [vmem:[#allocation16 + $0xb64] ss:$48 sps:$4 sm:$0xff]   ;;  %v15436_v24 = vld [vmem:[#allocation16 + $0xb6c] ss:$48 sps:$4 sm:$0xff]  }
 0x8a9   : > { %v11171_v27 = vrot.slane %v11170_v12, 1  ;;  %v11185_v18 = vrot.slane %v11184_v35, 1  ;;  %10971 = vmatprep.subr.bf16.mxu1 %v15412_v44  ;;  %v11071_v28 = vadd.f32 %v11070_v39, %v11069_v16  ;;  %v11064_v19 = vadd.f32 %v11063_v15, %v11062_v46  ;;  %v15431_v14 = vld [vmem:[#allocation16 + $0xb60] ss:$48 sps:$4 sm:$0xff]   ;;  %v15434_v16 = vld [vmem:[#allocation16 + $0xb68] ss:$48 sps:$4 sm:$0xff]  }
 0x8aa   : > { %v11165_v41 = vadd.f32 %v11164_v49, %v11163_v34  ;;  %v11179_v57 = vadd.f32 %v11178_v59, %v11177_v23  ;;  %v11078_v0 = vadd.f32 %v11077_v29, %v11076_v43  ;;  %v16569_v2 = vsub.s32 %v11275_v11, %v16126_v3  ;;  %v15439_v13 = vld [vmem:[#allocation16 + $0xbc4] ss:$48 sps:$4 sm:$0xff]   ;;  %v15442_v26 = vld [vmem:[#allocation16 + $0xbcc] ss:$48 sps:$4 sm:$0xff]   ;;  %v15437_v25 = vld [vmem:[#allocation16 + $0xbc0] ss:$48 sps:$4 sm:$0xff]  }
 0x8ab   : > { %v11172_v60 = vadd.f32 %v11171_v27, %v11170_v12  ;;  %v11186_v1 = vadd.f32 %v11185_v18, %v11184_v35  ;;  %10886 = vmatpush1.bf16.msra.mxu0 %v15407_v38  ;;  %v15440_v46 = vld [vmem:[#allocation16 + $0xbc8] ss:$48 sps:$4 sm:$0xff]   ;;  %v16578_v62 = vsub.s32 4, %v16126_v3  ;;  %v16581_v43 = vsub.s32 6, %v16126_v3 }
 0x8ac   : > { %v11244_v9 = vsel %vm11243_vm12, %v11057_v37, %v11165_v41  ;;  %v11246_v53 = vsel %vm11243_vm12, %v11071_v28, %v11179_v57  ;;  %10972 = vmatpush1.bf16.msra.mxu1 %v15410_v50  ;;  %10887 = vmatprep.subr.bf16.mxu0 %v15415_v47  ;;  %v16584_v17 = vsub.s32 5, %v16126_v3  ;;  %v16587_v44 = vsub.s32 7, %v16126_v3 }
 0x8ad   : > { %v11245_v54 = vsel %vm11243_vm12, %v11064_v19, %v11172_v60  ;;  %v11247_v45 = vsel %vm11243_vm12, %v11078_v0, %v11186_v1  ;;  %10973 = vmatprep.subr.bf16.mxu1 %v15418_v48  ;;  %v8517_v61 = vrot.slane %v16553_v51, %v16578_v62  ;;  %v8525_v34 = vrot.slane %v16553_v51, %v16581_v43 }
 0x8ae   : > { %v11271_v21 = vcombine.low %v11244_v9, %v11245_v54  ;;  %v11272_v36 = vcombine.low %v11246_v53, %v11247_v45  ;;  %v8529_v39 = vrot.slane %v16553_v51, %v16587_v44 }
 0x8af   : > { %10888 = vmatpush1.bf16.msra.mxu0 %v15413_v10 }
 0x8b0   : > { %v11279_v56 = vrot.slane %v11271_v21, %v16569_v2  ;;  %v11286_v58 = vrot.slane %v11272_v36, %v16569_v2  ;;  %10974 = vmatpush1.bf16.msra.mxu1 %v15416_v20  ;;  %10889 = vmatprep.subr.bf16.mxu0 %v15421_v32 }
 0x8b1   : > { %10975 = vmatprep.subr.bf16.mxu1 %v15424_v31 }
 0x8b2   : > { %v11287_v8 = vcombine.low %v11279_v56, %v11286_v58 }
 0x8b3   : > { %10890 = vmatpush1.bf16.msra.mxu0 %v15419_v7 }
 0x8b4   : > { %10976 = vmatpush1.bf16.msra.mxu1 %v15422_v5  ;;  %10891 = vmatprep.subr.bf16.mxu0 %v15427_v55  ;;  %11328 = vst [vmem:[#allocation2] sm:$0xff] %v11287_v8 }
 0x8b5   : > { %10977 = vmatprep.subr.bf16.mxu1 %v15430_v52 }
 0x8b7   : > { %10892 = vmatpush1.bf16.msra.mxu0 %v15425_v33 }
 0x8b8   : > { %10978 = vmatpush1.bf16.msra.mxu1 %v15428_v63  ;;  %10893 = vmatprep.subr.bf16.mxu0 %v15433_v30 }
 0x8b9   : > { %10979 = vmatprep.subr.bf16.mxu1 %v15436_v24 }
 0x8bb   : > { %10894 = vmatpush1.bf16.msra.mxu0 %v15431_v14 }
 0x8bc   : > { %10980 = vmatpush1.bf16.msra.mxu1 %v15434_v16  ;;  %10895 = vmatprep.subr.bf16.mxu0 %v15439_v13 }
 0x8bd   : > { %10981 = vmatprep.subr.bf16.mxu1 %v15442_v26 }
 0x8bf   : > { %10896 = vmatpush1.bf16.msra.mxu0 %v15437_v25 }
 0x8c0   : > { %10982 = vmatpush1.bf16.msra.mxu1 %v15440_v46 }
 0x8c2   : > { %10898 = vmatmul.mubr.bf16.vlgmr.msra.gmra.mrb[52].mxu0 %v16522_v22 }
 0x8c3   : > { %10984 = vmatmul.mubr.bf16.vlgmr.msra.gmra.mrb[52].mxu1 %v16522_v22  ;;  %v8521_v22 = vrot.slane %v16553_v51, %v16584_v17 }
 0x915   : > { %v10727_v23 = vpop.f32.mrb[48].mxu0 }
 0x916   : > { %v13188_v15 = vadd.f32 %v10727_v23, %v8517_v61  ;;  %v10813_v12 = vpop.f32.mrb[48].mxu1  ;;  %v10729_v29 = vpop.f32.mrb[49].mxu0 }
 0x917   : > { %v13192_v35 = vadd.f32 %v10813_v12, %v8525_v34  ;;  %v13189_v38 = vadd.f32 %v10729_v29, %v8521_v22  ;;  %v10815_v3 = vpop.f32.mrb[49].mxu1  ;;  %v10731_v49 = vpop.f32.mrb[50].mxu0 }
 0x918   : > { %v10998_v59 = vmax.f32 %v13188_v15, 0.0  ;;  %v13193_v11 = vadd.f32 %v10815_v3, %v8529_v39  ;;  %v13190_v50 = vadd.f32 %v10731_v49, %v8517_v61  ;;  %v10817_v47 = vpop.f32.mrb[50].mxu1  ;;  %v10733_v27 = vpop.f32.mrb[51].mxu0 }
 0x919   : > { %v11000_v18 = vmax.f32 %v13192_v35, 0.0  ;;  %v10999_v48 = vmax.f32 %v13189_v38, 0.0  ;;  %v13194_v37 = vadd.f32 %v10817_v47, %v8525_v34  ;;  %v13191_v41 = vadd.f32 %v10733_v27, %v8521_v22  ;;  %v10819_v28 = vpop.f32.mrb[51].mxu1 }
 0x91a   : > { %v11139_v57 = vmul.f32 %v10998_v59, %v10998_v59  ;;  %v11001_v51 = vmax.f32 %v13193_v11, 0.0  ;;  %v11010_v19 = vmax.f32 %v13190_v50, 0.0  ;;  %v13195_v60 = vadd.f32 %v10819_v28, %v8529_v39 }
 0x91b   : > { %v11141_v0 = vmul.f32 %v11000_v18, %v11000_v18  ;;  %v11140_v1 = vmul.f32 %v10999_v48, %v10999_v48  ;;  %v11012_v10 = vmax.f32 %v13194_v37, 0.0  ;;  %v11011_v9 = vmax.f32 %v13191_v41, 0.0 }
 0x91c   : > { %v11142_v53 = vmul.f32 %v11001_v51, %v11001_v51  ;;  %v11079_v20 = vadd.f32 %v11010_v19, %v10998_v59  ;;  %v11151_v32 = vmul.f32 %v11010_v19, %v11010_v19  ;;  %v11013_v54 = vmax.f32 %v13195_v60, 0.0 }
 0x91d   : > { %v11093_v45 = vadd.f32 %v11012_v10, %v11000_v18  ;;  %v11153_v31 = vmul.f32 %v11012_v10, %v11012_v10  ;;  %v11086_v21 = vadd.f32 %v11011_v9, %v10999_v48  ;;  %v11152_v36 = vmul.f32 %v11011_v9, %v11011_v9 }
 0x91e   : > { %v11080_v7 = vrot.slane %v11079_v20, 4  ;;  %v11187_v56 = vadd.f32 %v11151_v32, %v11139_v57  ;;  %v11100_v58 = vadd.f32 %v11013_v54, %v11001_v51  ;;  %v11154_v5 = vmul.f32 %v11013_v54, %v11013_v54 }
 0x91f   : > { %v11094_v55 = vrot.slane %v11093_v45, 4  ;;  %v11201_v52 = vadd.f32 %v11153_v31, %v11141_v0  ;;  %v11087_v8 = vrot.slane %v11086_v21, 4  ;;  %v11194_v33 = vadd.f32 %v11152_v36, %v11140_v1 }
 0x920   : > { %v11081_v63 = vadd.f32 %v11080_v7, %v11079_v20  ;;  %v11188_v30 = vrot.slane %v11187_v56, 4  ;;  %v11101_v24 = vrot.slane %v11100_v58, 4  ;;  %v11208_v14 = vadd.f32 %v11154_v5, %v11142_v53 }
 0x921   : > { %v11095_v16 = vadd.f32 %v11094_v55, %v11093_v45  ;;  %v11202_v13 = vrot.slane %v11201_v52, 4  ;;  %v11088_v26 = vadd.f32 %v11087_v8, %v11086_v21  ;;  %v11195_v25 = vrot.slane %v11194_v33, 4 }
 0x922   : > { %v11082_v46 = vrot.slane %v11081_v63, 2  ;;  %v11189_v61 = vadd.f32 %v11188_v30, %v11187_v56  ;;  %v11102_v34 = vadd.f32 %v11101_v24, %v11100_v58  ;;  %v11209_v22 = vrot.slane %v11208_v14, 4 }
 0x923   : > { %v11096_v39 = vrot.slane %v11095_v16, 2  ;;  %v11203_v23 = vadd.f32 %v11202_v13, %v11201_v52  ;;  %v11089_v15 = vrot.slane %v11088_v26, 2  ;;  %v11196_v12 = vadd.f32 %v11195_v25, %v11194_v33 }
 0x924   : > { %v11083_v29 = vadd.f32 %v11082_v46, %v11081_v63  ;;  %v11190_v35 = vrot.slane %v11189_v61, 2  ;;  %v11103_v38 = vrot.slane %v11102_v34, 2  ;;  %v11210_v3 = vadd.f32 %v11209_v22, %v11208_v14 }
 0x925   : > { %v11097_v49 = vadd.f32 %v11096_v39, %v11095_v16  ;;  %v11204_v59 = vrot.slane %v11203_v23, 2  ;;  %v11090_v11 = vadd.f32 %v11089_v15, %v11088_v26  ;;  %v11197_v50 = vrot.slane %v11196_v12, 2 }
 0x926   : > { %v11084_v47 = vrot.slane %v11083_v29, 1  ;;  %v11191_v27 = vadd.f32 %v11190_v35, %v11189_v61  ;;  %v11104_v18 = vadd.f32 %v11103_v38, %v11102_v34  ;;  %v11211_v48 = vrot.slane %v11210_v3, 2 }
 0x927   : > { %v11098_v37 = vrot.slane %v11097_v49, 1  ;;  %v11205_v41 = vadd.f32 %v11204_v59, %v11203_v23  ;;  %v11091_v28 = vrot.slane %v11090_v11, 1  ;;  %v11198_v57 = vadd.f32 %v11197_v50, %v11196_v12 }
 0x928   : > { %v11192_v51 = vrot.slane %v11191_v27, 1  ;;  %v11105_v19 = vrot.slane %v11104_v18, 1  ;;  %v11212_v60 = vadd.f32 %v11211_v48, %v11210_v3  ;;  %v11085_v10 = vadd.f32 %v11084_v47, %v11083_v29 }
 0x929   : > { %v11206_v0 = vrot.slane %v11205_v41, 1  ;;  %v11199_v1 = vrot.slane %v11198_v57, 1  ;;  %v11099_v20 = vadd.f32 %v11098_v37, %v11097_v49  ;;  %v11092_v54 = vadd.f32 %v11091_v28, %v11090_v11 }
 0x92a   : > { %v11193_v9 = vadd.f32 %v11192_v51, %v11191_v27  ;;  %v11213_v53 = vrot.slane %v11212_v60, 1  ;;  %v11106_v21 = vadd.f32 %v11105_v19, %v11104_v18 }
 0x92b   : > { %v11207_v32 = vadd.f32 %v11206_v0, %v11205_v41  ;;  %v11200_v45 = vadd.f32 %v11199_v1, %v11198_v57 }
 0x92c   : > { %v11248_v31 = vsel %vm11243_vm12, %v11085_v10, %v11193_v9  ;;  %v11214_v36 = vadd.f32 %v11213_v53, %v11212_v60 }
 0x92d   : > { %v11250_v7 = vsel %vm11243_vm12, %v11099_v20, %v11207_v32  ;;  %v11249_v56 = vsel %vm11243_vm12, %v11092_v54, %v11200_v45  ;;  %v8495_v54 = vld [vmem:[%s16687_s10 + $0x8] sm:$0xf] }
 0x92e   : > { %v11288_v58 = vcombine.low %v11248_v31, %v11249_v56  ;;  %v11251_v5 = vsel %vm11243_vm12, %v11106_v21, %v11214_v36  ;;  %v8533_v45 = vrot.slane %v8495_v54, %v16129_v4  ;;  %v8541_v31 = vrot.slane %v8495_v54, %v16160_v40 }
 0x92f   : > { %v11289_v55 = vcombine.low %v11250_v7, %v11251_v5  ;;  %v8537_v21 = vrot.slane %v8495_v54, %v16132_v6  ;;  %v8545_v36 = vrot.slane %v8495_v54, %v16166_v42 }
 0x930   : > { %v11296_v52 = vrot.slane %v11288_v58, %v16569_v2 }
 0x931   : > { %v11303_v8 = vrot.slane %v11289_v55, %v16569_v2 }
 0x933   : > { %v11304_v33 = vcombine.low %v11296_v52, %v11303_v8 }
 0x935   : > { %11329 = vst [vmem:[#allocation2 + $0x8] sm:$0xff] %v11304_v33 }
 0x93c   : > { %v11334_v63 = vld [vmem:[#allocation2] ss:$2 sm:$0xff]  ;;  %v11338_v14 = vld [vmem:[#allocation2 + $0x1] ss:$2 sm:$0xff] }
 0x93d   : > { %v11342_v30 = vmul.f32 0.0625, %v11334_v63 }
 0x93f   : > { %v11344_v24 = vmul.f32 %v11342_v30, %v11334_v63  ;;  %v11372_v61 = vrot.slane %v11342_v30, %v16129_v4  ;;  %v11376_v22 = vrot.slane %v11342_v30, %v16132_v6  ;;  %v11380_v39 = vrot.slane %v11342_v30, %v16160_v40 }
 0x940   : > { %v11384_v15 = vrot.slane %v11342_v30, %v16166_v42  ;;  %v11388_v12 = vrot.slane %v11342_v30, %v16578_v62  ;;  %v11392_v35 = vrot.slane %v11342_v30, %v16584_v17  ;;  %v11396_v38 = vrot.slane %v11342_v30, %v16581_v43 }
 0x941   : > { %v11346_v16 = vsub.f32 %v11338_v14, %v11344_v24  ;;  %v11400_v3 = vrot.slane %v11342_v30, %v16587_v44 }
 0x943   : > { %v11349_v13 = vmul.f32 0.06666667, %v11346_v16 }
 0x945   : > { %v11351_v26 = vmax.f32 %v11349_v13, 0.0 }
 0x947   : > { %15443 = vrsqrt.f32 %v11351_v26  ;;  %vm11355_vm13 = vcmp.eq.f32.partialorder %v11351_v26, inf  ;;  %v11358_v34 = vand.u32 2147483648, %v11351_v26  ;;  %vm11357_vm14 = vcmp.eq.f32.partialorder %v11351_v26, 0.0 }
 0x951   : > { %v15444_v25 = vpop.eup %15443 }
 0x952   : > { %v11354_v46 = vmul.f32 %v15444_v25, %v11351_v26 }
 0x954   : > { %v11356_v23 = vsel %vm11355_vm13, %v11351_v26, %v11354_v46 }
 0x955   : > { %v11359_v29 = vsel %vm11357_vm14, %v11358_v34, %v11356_v23 }
 0x956   : > { %v11434_v49 = vrot.slane %v11359_v29, %v16129_v4  ;;  %v11438_v59 = vrot.slane %v11359_v29, %v16132_v6  ;;  %v11442_v11 = vrot.slane %v11359_v29, %v16160_v40  ;;  %v11446_v50 = vrot.slane %v11359_v29, %v16166_v42 }
 0x957   : > { %v11450_v47 = vrot.slane %v11359_v29, %v16578_v62  ;;  %v11454_v27 = vrot.slane %v11359_v29, %v16584_v17  ;;  %v11458_v18 = vrot.slane %v11359_v29, %v16581_v43  ;;  %v11462_v48 = vrot.slane %v11359_v29, %v16587_v44 }
 0x958   : > { %v11491_v37 = vsel %vm11243_vm12, %v11372_v61, %v11434_v49  ;;  %v11492_v41 = vsel %vm11243_vm12, %v11376_v22, %v11438_v59  ;;  %v11493_v28 = vsel %vm11243_vm12, %v11380_v39, %v11442_v11  ;;  %v11494_v57 = vsel %vm11243_vm12, %v11384_v15, %v11446_v50 }
 0x959   : > { %v11495_v51 = vsel %vm11243_vm12, %v11388_v12, %v11450_v47  ;;  %v11496_v19 = vsel %vm11243_vm12, %v11392_v35, %v11454_v27  ;;  %v11497_v62 = vsel %vm11243_vm12, %v11396_v38, %v11458_v18  ;;  %v11498_v17 = vsel %vm11243_vm12, %v11400_v3, %v11462_v48 }
 0x95a   : > { %v11515_v43 = vcombine.low %v11491_v37, %v11492_v41  ;;  %v11516_v60 = vcombine.low %v11493_v28, %v11494_v57  ;;  %v11532_v44 = vcombine.low %v11495_v51, %v11496_v19  ;;  %v11533_v0 = vcombine.low %v11497_v62, %v11498_v17 }
 0x95c   : > { %v11523_v1 = vrot.slane %v11515_v43, %v16569_v2  ;;  %v11530_v10 = vrot.slane %v11516_v60, %v16569_v2  ;;  %v11540_v9 = vrot.slane %v11532_v44, %v16569_v2  ;;  %v11547_v53 = vrot.slane %v11533_v0, %v16569_v2 }
 0x95e   : > { %v11531_v20 = vcombine.low %v11523_v1, %v11530_v10  ;;  %v11548_v32 = vcombine.low %v11540_v9, %v11547_v53 }
 0x960   : > { %11569 = vst [vmem:[%s16636_s19] sm:$0xff] %v11531_v20  ;;  %11570 = vst [vmem:[%s16636_s19 + $0x8] sm:$0xff] %v11548_v32 }
 0x995   : > { %v10899_v7 = vpop.f32.mrb[52].mxu0 }
 0x996   : > { %v13196_v56 = vadd.f32 %v10899_v7, %v8533_v45  ;;  %v10985_v58 = vpop.f32.mrb[52].mxu1  ;;  %v10901_v5 = vpop.f32.mrb[53].mxu0 }
 0x997   : > { %v13200_v55 = vadd.f32 %v10985_v58, %v8541_v31  ;;  %v13197_v52 = vadd.f32 %v10901_v5, %v8537_v21  ;;  %v10987_v8 = vpop.f32.mrb[53].mxu1  ;;  %v10903_v33 = vpop.f32.mrb[54].mxu0 }
 0x998   : > { %v11002_v63 = vmax.f32 %v13196_v56, 0.0  ;;  %v13201_v30 = vadd.f32 %v10987_v8, %v8545_v36  ;;  %v13198_v24 = vadd.f32 %v10903_v33, %v8533_v45  ;;  %v10989_v14 = vpop.f32.mrb[54].mxu1  ;;  %v10905_v16 = vpop.f32.mrb[55].mxu0 }
 0x999   : > { %v11004_v13 = vmax.f32 %v13200_v55, 0.0  ;;  %v11003_v26 = vmax.f32 %v13197_v52, 0.0  ;;  %v13202_v25 = vadd.f32 %v10989_v14, %v8541_v31  ;;  %v13199_v46 = vadd.f32 %v10905_v16, %v8537_v21  ;;  %v10991_v61 = vpop.f32.mrb[55].mxu1 }
 0x99a   : > { %v11143_v34 = vmul.f32 %v11002_v63, %v11002_v63  ;;  %v11005_v22 = vmax.f32 %v13201_v30, 0.0  ;;  %v11014_v39 = vmax.f32 %v13198_v24, 0.0  ;;  %v13203_v23 = vadd.f32 %v10991_v61, %v8545_v36 }
 0x99b   : > { %v11145_v15 = vmul.f32 %v11004_v13, %v11004_v13  ;;  %v11144_v12 = vmul.f32 %v11003_v26, %v11003_v26  ;;  %v11016_v29 = vmax.f32 %v13202_v25, 0.0  ;;  %v11015_v35 = vmax.f32 %v13199_v46, 0.0 }
 0x99c   : > { %v11146_v38 = vmul.f32 %v11005_v22, %v11005_v22  ;;  %v11107_v3 = vadd.f32 %v11014_v39, %v11002_v63  ;;  %v11155_v49 = vmul.f32 %v11014_v39, %v11014_v39  ;;  %v11017_v59 = vmax.f32 %v13203_v23, 0.0 }
 0x99d   : > { %v11121_v11 = vadd.f32 %v11016_v29, %v11004_v13  ;;  %v11157_v50 = vmul.f32 %v11016_v29, %v11016_v29  ;;  %v11114_v47 = vadd.f32 %v11015_v35, %v11003_v26  ;;  %v11156_v27 = vmul.f32 %v11015_v35, %v11015_v35 }
 0x99e   : > { %v11108_v18 = vrot.slane %v11107_v3, 4  ;;  %v11215_v48 = vadd.f32 %v11155_v49, %v11143_v34  ;;  %v11128_v37 = vadd.f32 %v11017_v59, %v11005_v22  ;;  %v11158_v41 = vmul.f32 %v11017_v59, %v11017_v59 }
 0x99f   : > { %v11122_v28 = vrot.slane %v11121_v11, 4  ;;  %v11229_v57 = vadd.f32 %v11157_v50, %v11145_v15  ;;  %v11115_v51 = vrot.slane %v11114_v47, 4  ;;  %v11222_v19 = vadd.f32 %v11156_v27, %v11144_v12 }
 0x9a0   : > { %v11109_v62 = vadd.f32 %v11108_v18, %v11107_v3  ;;  %v11216_v17 = vrot.slane %v11215_v48, 4  ;;  %v11129_v43 = vrot.slane %v11128_v37, 4  ;;  %v11236_v60 = vadd.f32 %v11158_v41, %v11146_v38 }
 0x9a1   : > { %v11123_v44 = vadd.f32 %v11122_v28, %v11121_v11  ;;  %v11230_v0 = vrot.slane %v11229_v57, 4  ;;  %v11116_v1 = vadd.f32 %v11115_v51, %v11114_v47  ;;  %v11223_v10 = vrot.slane %v11222_v19, 4 }
 0x9a2   : > { %v11110_v9 = vrot.slane %v11109_v62, 2  ;;  %v11217_v53 = vadd.f32 %v11216_v17, %v11215_v48  ;;  %v11130_v20 = vadd.f32 %v11129_v43, %v11128_v37  ;;  %v11237_v32 = vrot.slane %v11236_v60, 4 }
 0x9a3   : > { %v11124_v54 = vrot.slane %v11123_v44, 2  ;;  %v11231_v45 = vadd.f32 %v11230_v0, %v11229_v57  ;;  %v11117_v31 = vrot.slane %v11116_v1, 2  ;;  %v11224_v21 = vadd.f32 %v11223_v10, %v11222_v19 }
 0x9a4   : > { %v11111_v36 = vadd.f32 %v11110_v9, %v11109_v62  ;;  %v11218_v7 = vrot.slane %v11217_v53, 2  ;;  %v11131_v56 = vrot.slane %v11130_v20, 2  ;;  %v11238_v58 = vadd.f32 %v11237_v32, %v11236_v60 }
 0x9a5   : > { %v11125_v5 = vadd.f32 %v11124_v54, %v11123_v44  ;;  %v11232_v55 = vrot.slane %v11231_v45, 2  ;;  %v11118_v52 = vadd.f32 %v11117_v31, %v11116_v1  ;;  %v11225_v8 = vrot.slane %v11224_v21, 2 }
 0x9a6   : > { %v11112_v33 = vrot.slane %v11111_v36, 1  ;;  %v11219_v63 = vadd.f32 %v11218_v7, %v11217_v53  ;;  %v11132_v30 = vadd.f32 %v11131_v56, %v11130_v20  ;;  %v11239_v24 = vrot.slane %v11238_v58, 2 }
 0x9a7   : > { %v11126_v14 = vrot.slane %v11125_v5, 1  ;;  %v11233_v16 = vadd.f32 %v11232_v55, %v11231_v45  ;;  %v11119_v13 = vrot.slane %v11118_v52, 1  ;;  %v11226_v26 = vadd.f32 %v11225_v8, %v11224_v21 }
 0x9a8   : > { %v11220_v25 = vrot.slane %v11219_v63, 1  ;;  %v11133_v46 = vrot.slane %v11132_v30, 1  ;;  %v11240_v61 = vadd.f32 %v11239_v24, %v11238_v58  ;;  %v11113_v39 = vadd.f32 %v11112_v33, %v11111_v36 }
 0x9a9   : > { %v11234_v34 = vrot.slane %v11233_v16, 1  ;;  %v11227_v22 = vrot.slane %v11226_v26, 1  ;;  %v11127_v12 = vadd.f32 %v11126_v14, %v11125_v5  ;;  %v11120_v35 = vadd.f32 %v11119_v13, %v11118_v52 }
 0x9aa   : > { %v11221_v23 = vadd.f32 %v11220_v25, %v11219_v63  ;;  %v11241_v15 = vrot.slane %v11240_v61, 1  ;;  %v11134_v49 = vadd.f32 %v11133_v46, %v11132_v30 }
 0x9ab   : > { %v11235_v29 = vadd.f32 %v11234_v34, %v11233_v16  ;;  %v11228_v38 = vadd.f32 %v11227_v22, %v11226_v26 }
 0x9ac   : > { %v11252_v3 = vsel %vm11243_vm12, %v11113_v39, %v11221_v23  ;;  %v11242_v59 = vadd.f32 %v11241_v15, %v11240_v61 }
 0x9ad   : > { %v11254_v11 = vsel %vm11243_vm12, %v11127_v12, %v11235_v29  ;;  %v11253_v50 = vsel %vm11243_vm12, %v11120_v35, %v11228_v38 }
 0x9ae   : > { %v11305_v47 = vcombine.low %v11252_v3, %v11253_v50  ;;  %v11255_v27 = vsel %vm11243_vm12, %v11134_v49, %v11242_v59 }
 0x9af   : > { %v11306_v18 = vcombine.low %v11254_v11, %v11255_v27 }
 0x9b0   : > { %v11313_v48 = vrot.slane %v11305_v47, %v16569_v2 }
 0x9b1   : > { %v11320_v37 = vrot.slane %v11306_v18, %v16569_v2 }
 0x9b3   : > { %v11321_v41 = vcombine.low %v11313_v48, %v11320_v37 }
 0x9b5   : > { %11330 = vst [vmem:[#allocation2 + $0x10] sm:$0xff] %v11321_v41 }
 0x9bc   : > { %v11336_v28 = vld [vmem:[#allocation2 + $0x10] ss:$2 sm:$0xf]  ;;  %v11340_v19 = vld [vmem:[#allocation2 + $0x11] ss:$2 sm:$0xf] }
 0x9bd   : > { %v11343_v57 = vmul.f32 0.0625, %v11336_v28 }
 0x9bf   : > { %v11345_v51 = vmul.f32 %v11343_v57, %v11336_v28  ;;  %v11404_v10 = vrot.slane %v11343_v57, %v16129_v4  ;;  %v11408_v53 = vrot.slane %v11343_v57, %v16132_v6  ;;  %v11412_v20 = vrot.slane %v11343_v57, %v16160_v40 }
 0x9c0   : > { %v11416_v32 = vrot.slane %v11343_v57, %v16166_v42 }
 0x9c1   : > { %v11347_v62 = vsub.f32 %v11340_v19, %v11345_v51 }
 0x9c3   : > { %v11350_v17 = vmul.f32 0.06666667, %v11347_v62 }
 0x9c5   : > { %v11352_v43 = vmax.f32 %v11350_v17, 0.0 }
 0x9c7   : > { %15445 = vrsqrt.f32 %v11352_v43  ;;  %vm11362_vm15 = vcmp.eq.f32.partialorder %v11352_v43, inf  ;;  %v11365_v0 = vand.u32 2147483648, %v11352_v43  ;;  %vm11364_vm0 = vcmp.eq.f32.partialorder %v11352_v43, 0.0 }
 0x9d1   : > { %v15446_v60 = vpop.eup %15445 }
 0x9d2   : > { %v11361_v44 = vmul.f32 %v15446_v60, %v11352_v43 }
 0x9d4   : > { %v11363_v1 = vsel %vm11362_vm15, %v11352_v43, %v11361_v44 }
 0x9d5   : > { %v11366_v9 = vsel %vm11364_vm0, %v11365_v0, %v11363_v1 }
 0x9d6   : > { %v11466_v54 = vrot.slane %v11366_v9, %v16129_v4  ;;  %v11470_v45 = vrot.slane %v11366_v9, %v16132_v6  ;;  %v11474_v31 = vrot.slane %v11366_v9, %v16160_v40  ;;  %v11478_v21 = vrot.slane %v11366_v9, %v16166_v42 }
 0x9d8   : > { %v11499_v36 = vsel %vm11243_vm12, %v11404_v10, %v11466_v54  ;;  %v11500_v7 = vsel %vm11243_vm12, %v11408_v53, %v11470_v45  ;;  %v11501_v56 = vsel %vm11243_vm12, %v11412_v20, %v11474_v31  ;;  %v11502_v58 = vsel %vm11243_vm12, %v11416_v32, %v11478_v21 }
 0x9d9   : > { %v11549_v5 = vcombine.low %v11499_v36, %v11500_v7  ;;  %v11550_v55 = vcombine.low %v11501_v56, %v11502_v58 }
 0x9db   : > { %v11557_v52 = vrot.slane %v11549_v5, %v16569_v2  ;;  %v11564_v4 = vrot.slane %v11550_v55, %v16569_v2 }
 0x9dd   : > { %v11565_v8 = vcombine.low %v11557_v52, %v11564_v4 }
 0x9df   : > { %11571 = vst [vmem:[%s16636_s19 + $0x10] sm:$0xff] %v11565_v8 }
 0x9e0 PF: > { %s16710_s17 = sld [smem:[#allocation22_spill]] }
 0x9e6   : > { %s26_s19 = sadd.s32 1, %s16710_s17   ;;  %s16711_s17 = smov %s15737_s18 }
 0x9e7   : > { %p23_p3 = scmp.ge.s32.totalorder %s26_s19, 4   ;;  %s16712_s18 = smov %s16714_s21 }
 0x9e9   :  { %25 = sbr.rel (!%p23_p3) target bundleno = 9 (0x9), region = 146 }
 0x9f0   :  { %11593 = vsyncpa [#allocation4], 1 }
 0x9f1   :  { %11595 = vsyncpa [#allocation4 + $0x1], 1 }
 0x9f2   :  { %11596 = vsyncpa [#allocation6], 1 }
 0x9f3   :  { %11597 = vsyncpa [#allocation9], 1 }
 0x9f4   :  { %11598 = vsyncpa [#allocation12], 1 }
 0x9f5   :  { %11599 = vsyncpa [#allocation15], 1 }

</bundles_post_ra>
